<compile_context>
chip_gen: v6e
topology: v6e:2x2x1
jax: 0.10.0
libtpu: 0.0.40
codegen_flags: <defaults>
</compile_context>

<pallas_src>
import jax
import jax.numpy as jnp
from jax.experimental import pallas as pl
from jax.experimental.pallas import tpu as pltpu

_GN_GROUPS = 32
_GN_EPS = 1e-5

# MXU operand dtype. Flip to jnp.bfloat16 on v6e/v7x for ~2-4x MXU throughput
# (accumulation stays f32 via preferred_element_type); kept at f32 here so the
# self-check below holds tight f32 tolerances against the f32 XLA reference.
_MXU_DTYPE = jnp.float32


def _down_kernel(x_ref, w1_ref, g1_ref, b1_ref, grp1_ref,
                 w2_ref, g2_ref, b2_ref, grp2_ref,
                 o_ref,
                 xpad_ref, hpad_ref, slab1_ref, slab2_ref):
    """Fused DoubleConv for one (already max-pooled) image.

    x_ref:     (1, H, W, Cin)      pooled NHWC input (unpadded)
    w1_ref:    (9*Cin, Cmid)       conv1 weights, (dy, dx, ci) row-major rows
    g1_ref/b1_ref: (1, Cmid)       GroupNorm affine
    grp1_ref:  (Cmid, Cmid)        group-membership matrix / group_size
    w2_ref:    (9*Cmid, Cout), g2/b2: (1, Cout), grp2_ref: (Cout, Cout)
    o_ref:     (1, H, W, Cout)
    xpad_ref:  (H+2, W+2, Cin)     VMEM scratch (zero-padded conv1 input)
    hpad_ref:  (H+2, W+2, Cmid)    VMEM scratch (zero-padded intermediate)
    slab1_ref: (H, W, 9*Cin)       VMEM im2col slab for conv1
    slab2_ref: (H, W, 9*Cmid)      VMEM im2col slab for conv2
    """
    _, H, W, Cin = x_ref.shape
    Cmid = w1_ref.shape[1]

    def conv3x3_gn_relu(pad_ref, slab_ref, w_ref, gamma_ref, beta_ref, grp_ref, cin):
        # im2col: tap (dy, dx) -> lane block [t*cin, (t+1)*cin) of the slab.
        for dy in range(3):
            for dx in range(3):
                t = dy * 3 + dx
                slab_ref[:, :, t * cin:(t + 1) * cin] = (
                    pad_ref[dy:dy + H, dx:dx + W, :])

        # One big-K GEMM on the MXU (K = 9*cin), f32 accumulation.
        acc = jax.lax.dot_general(
            slab_ref[...].astype(_MXU_DTYPE), w_ref[...].astype(_MXU_DTYPE),
            (((2,), (0,)), ((), ())),
            preferred_element_type=jnp.float32)                  # (H, W, C)

        # GroupNorm(32): per-channel sums -> group stats spread back to channels
        # with the precomputed membership matrix (no lane-splitting reshapes,
        # no per-step iota constants).
        inv_n = jnp.float32(1.0 / (H * W))
        s = jnp.sum(acc, axis=(0, 1), keepdims=True)[0]          # (1, C)
        ss = jnp.sum(acc * acc, axis=(0, 1), keepdims=True)[0]   # (1, C)
        stats = jnp.concatenate([s, ss], axis=0)                 # (2, C)
        spread = jnp.dot(stats, grp_ref[...],
                         preferred_element_type=jnp.float32) * inv_n
        mean_c = spread[0:1]                                     # (1, C)
        var_c = jnp.maximum(spread[1:2] - mean_c * mean_c, 0.0)
        inv_c = jax.lax.rsqrt(var_c + _GN_EPS)                   # (1, C)

        gamma = gamma_ref[...]
        beta = beta_ref[...]
        scale = (gamma * inv_c)[None]                            # (1, 1, C)
        shift = (beta - gamma * inv_c * mean_c)[None]
        return jnp.maximum(acc * scale + shift, 0.0)             # (H, W, C)

    # ---- layer 1: pad the input inside VMEM, conv + GN + ReLU --------------
    xpad_ref[...] = jnp.zeros(xpad_ref.shape, jnp.float32)
    xpad_ref[1:H + 1, 1:W + 1, :] = x_ref[0]
    h = conv3x3_gn_relu(xpad_ref, slab1_ref, w1_ref, g1_ref, b1_ref, grp1_ref, Cin)

    # ---- layer 2: intermediate activation stays entirely in VMEM -----------
    hpad_ref[...] = jnp.zeros(hpad_ref.shape, jnp.float32)
    hpad_ref[1:H + 1, 1:W + 1, :] = h
    y = conv3x3_gn_relu(hpad_ref, slab2_ref, w2_ref, g2_ref, b2_ref, grp2_ref, Cmid)

    o_ref[0] = y.astype(o_ref.dtype)


def _group_matrix(channels, groups):
    """(C, C) matrix with 1/group_size where two channels share a group."""
    gs = channels // groups
    g = jnp.arange(channels) // gs
    return (g[:, None] == g[None, :]).astype(jnp.float32) / jnp.float32(gs)


def _double_conv_fused(x_nhwc, w1, g1, b1, w2, g2, b2):
    """Fused DoubleConv on NHWC input: one pallas_call, grid over batch."""
    N, H, W, Cin = x_nhwc.shape
    Cmid = w1.shape[-1]
    Cout = w2.shape[-1]
    assert Cmid % _GN_GROUPS == 0 and Cout % _GN_GROUPS == 0, \
        "GroupNorm(32) needs channels % 32 == 0"
    assert w1.shape == (3, 3, Cin, Cmid) and w2.shape == (3, 3, Cmid, Cout)

    f32 = jnp.float32
    # HWIO -> (9*Cin, Cout): rows ordered (dy, dx, ci), matching the slab layout.
    w1r = w1.reshape(9 * Cin, Cmid).astype(f32)
    w2r = w2.reshape(9 * Cmid, Cout).astype(f32)
    g1r = g1.reshape(1, Cmid).astype(f32)
    b1r = b1.reshape(1, Cmid).astype(f32)
    g2r = g2.reshape(1, Cout).astype(f32)
    b2r = b2.reshape(1, Cout).astype(f32)
    grp1 = _group_matrix(Cmid, _GN_GROUPS)
    grp2 = _group_matrix(Cout, _GN_GROUPS)

    const2d = lambda n: (0, 0)
    return pl.pallas_call(
        _down_kernel,
        out_shape=jax.ShapeDtypeStruct((N, H, W, Cout), f32),
        grid=(N,),
        in_specs=[
            pl.BlockSpec((1, H, W, Cin), lambda n: (n, 0, 0, 0)),
            pl.BlockSpec((9 * Cin, Cmid), const2d),
            pl.BlockSpec((1, Cmid), const2d),
            pl.BlockSpec((1, Cmid), const2d),
            pl.BlockSpec((Cmid, Cmid), const2d),
            pl.BlockSpec((9 * Cmid, Cout), const2d),
            pl.BlockSpec((1, Cout), const2d),
            pl.BlockSpec((1, Cout), const2d),
            pl.BlockSpec((Cout, Cout), const2d),
        ],
        out_specs=pl.BlockSpec((1, H, W, Cout), lambda n: (n, 0, 0, 0)),
        scratch_shapes=[
            pltpu.VMEM((H + 2, W + 2, Cin), f32),
            pltpu.VMEM((H + 2, W + 2, Cmid), f32),
            pltpu.VMEM((H, W, 9 * Cin), f32),
            pltpu.VMEM((H, W, 9 * Cmid), f32),
        ],
        compiler_params=pltpu.CompilerParams(
            dimension_semantics=("parallel",)),
    )(x_nhwc.astype(f32), w1r, g1r, b1r, grp1, w2r, g2r, b2r, grp2)


@jax.jit
def down_forward(x_nchw, params):
    """Down: MaxPool2d(2) -> DoubleConv. NCHW in / NCHW out (PyTorch layout)."""
    w1, g1, b1, w2, g2, b2 = params
    N, Cin, H, W = x_nchw.shape
    assert H % 2 == 0 and W % 2 == 0, "MaxPool2d(2) expects even H, W here"

    x = jnp.transpose(x_nchw, (0, 2, 3, 1)).astype(jnp.float32)   # NCHW -> NHWC
    # MaxPool2d(kernel=2, stride=2) via strided slices (XLA side; see TODO above).
    xp = jnp.maximum(
        jnp.maximum(x[:, 0::2, 0::2, :], x[:, 0::2, 1::2, :]),
        jnp.maximum(x[:, 1::2, 0::2, :], x[:, 1::2, 1::2, :]))

    y = _double_conv_fused(xp, w1, g1, b1, w2, g2, b2)
    return jnp.transpose(y, (0, 3, 1, 2))                          # NHWC -> NCHW


# ---------------- pure-JAX reference (for correctness check) ----------------
def _ref_conv_gn_relu(x_nhwc, w_hwio, gamma, beta):
    y = jax.lax.conv_general_dilated(
        x_nhwc, w_hwio, window_strides=(1, 1), padding="SAME",
        dimension_numbers=("NHWC", "HWIO", "NHWC"))
    N, H, W, C = y.shape
    gs = C // _GN_GROUPS
    yg = y.reshape(N, H, W, _GN_GROUPS, gs)
    mean = yg.mean(axis=(1, 2, 4), keepdims=True)
    var = yg.var(axis=(1, 2, 4), keepdims=True)
    yn = ((yg - mean) * jax.lax.rsqrt(var + _GN_EPS)).reshape(N, H, W, C)
    return jnp.maximum(yn * gamma + beta, 0.0)


def _ref_down(x_nchw, params):
    w1, g1, b1, w2, g2, b2 = params
    x = jnp.transpose(x_nchw, (0, 2, 3, 1))
    x = jax.lax.reduce_window(x, -jnp.inf, jax.lax.max,
                              (1, 2, 2, 1), (1, 2, 2, 1), "VALID")
    h = _ref_conv_gn_relu(x, w1, g1, b1)
    y = _ref_conv_gn_relu(h, w2, g2, b2)
    return jnp.transpose(y, (0, 3, 1, 2))


if __name__ == "__main__":
    # Down(in_channels=64, out_channels=128): MaxPool2d(2) -> DoubleConv(64, 128)
    N, Cin, H, W = 2, 64, 32, 32
    Cmid = Cout = 128          # DoubleConv default: mid_channels = out_channels

    key = jax.random.PRNGKey(0)
    k1, k2, k3, k4, k5, k6, kx = jax.random.split(key, 7)

    # Deterministic synthetic parameters (HWIO conv weights; GN affine params).
    w1 = 0.1 * jax.random.normal(k1, (3, 3, Cin, Cmid), jnp.float32)
    g1 = 1.0 + 0.1 * jax.random.normal(k2, (Cmid,), jnp.float32)
    b1 = 0.1 * jax.random.normal(k3, (Cmid,), jnp.float32)
    w2 = 0.1 * jax.random.normal(k4, (3, 3, Cmid, Cout), jnp.float32)
    g2 = 1.0 + 0.1 * jax.random.normal(k5, (Cout,), jnp.float32)
    b2 = 0.1 * jax.random.normal(k6, (Cout,), jnp.float32)
    params = (w1, g1, b1, w2, g2, b2)

    x = jax.random.normal(kx, (N, Cin, H, W), jnp.float32)   # NCHW, like PyTorch

    out = jax.block_until_ready(down_forward(x, params))
    ref = jax.block_until_ready(_ref_down(x, params))

    assert out.shape == (N, Cout, H // 2, W // 2), out.shape
    max_err = float(jnp.max(jnp.abs(out - ref)))
    assert jnp.allclose(out, ref, atol=1e-3, rtol=1e-3), max_err

    print("KERNEL_OK")
</pallas_src>

<mosaic_0001>
module attributes {stable_mosaic.version = 11 : i64} {
  func.func @_down_kernel(%arg0: i32, %arg1: memref<1x16x16x64xf32, #tpu.memory_space<vmem>>, %arg2: memref<576x128xf32, #tpu.memory_space<vmem>>, %arg3: memref<1x128xf32, #tpu.memory_space<vmem>>, %arg4: memref<1x128xf32, #tpu.memory_space<vmem>>, %arg5: memref<128x128xf32, #tpu.memory_space<vmem>>, %arg6: memref<1152x128xf32, #tpu.memory_space<vmem>>, %arg7: memref<1x128xf32, #tpu.memory_space<vmem>>, %arg8: memref<1x128xf32, #tpu.memory_space<vmem>>, %arg9: memref<128x128xf32, #tpu.memory_space<vmem>>, %arg10: memref<1x16x16x128xf32, #tpu.memory_space<vmem>>, %arg11: memref<18x18x64xf32, #tpu.memory_space<vmem>>, %arg12: memref<18x18x128xf32, #tpu.memory_space<vmem>>, %arg13: memref<16x16x576xf32, #tpu.memory_space<vmem>>, %arg14: memref<16x16x1152xf32, #tpu.memory_space<vmem>>) attributes {dimension_semantics = [#tpu.dimension_semantics<parallel>], iteration_bounds = array<i64: 2>, scalar_prefetch = 0 : i64, scratch_operands = 4 : i64, tpu.core_type = #tpu.core_type<tc>, window_params = [{transform_indices = @transform_0, window_bounds = array<i64: 1, 16, 16, 64>}, {pipeline_mode = #tpu.pipeline_mode<synchronous>, transform_indices = @transform_1, window_bounds = array<i64: 576, 128>}, {pipeline_mode = #tpu.pipeline_mode<synchronous>, transform_indices = @transform_2, window_bounds = array<i64: 1, 128>}, {pipeline_mode = #tpu.pipeline_mode<synchronous>, transform_indices = @transform_3, window_bounds = array<i64: 1, 128>}, {pipeline_mode = #tpu.pipeline_mode<synchronous>, transform_indices = @transform_4, window_bounds = array<i64: 128, 128>}, {pipeline_mode = #tpu.pipeline_mode<synchronous>, transform_indices = @transform_5, window_bounds = array<i64: 1152, 128>}, {pipeline_mode = #tpu.pipeline_mode<synchronous>, transform_indices = @transform_6, window_bounds = array<i64: 1, 128>}, {pipeline_mode = #tpu.pipeline_mode<synchronous>, transform_indices = @transform_7, window_bounds = array<i64: 1, 128>}, {pipeline_mode = #tpu.pipeline_mode<synchronous>, transform_indices = @transform_8, window_bounds = array<i64: 128, 128>}, {transform_indices = @transform_9, window_bounds = array<i64: 1, 16, 16, 128>}]} {
    %cst = arith.constant 0.000000e+00 : f32
    %0 = vector.broadcast %cst : f32 to vector<18x18x64xf32>
    %c0 = arith.constant 0 : index
    %c0_0 = arith.constant 0 : index
    %c0_1 = arith.constant 0 : index
    %1 = vector.load %arg11[%c0, %c0_0, %c0_1] : memref<18x18x64xf32, #tpu.memory_space<vmem>>, vector<18x18x64xf32>
    tpu.vector_store %arg11[%c0, %c0_0, %c0_1], %0 {strides = array<i32>} : memref<18x18x64xf32, #tpu.memory_space<vmem>>, vector<18x18x64xf32>,
    %c0_2 = arith.constant 0 : index
    %c0_3 = arith.constant 0 : index
    %c0_4 = arith.constant 0 : index
    %c0_5 = arith.constant 0 : index
    %2 = vector.load %arg1[%c0_2, %c0_3, %c0_4, %c0_5] : memref<1x16x16x64xf32, #tpu.memory_space<vmem>>, vector<1x16x16x64xf32>
    %3 = vector.shape_cast %2 : vector<1x16x16x64xf32> to vector<16x16x64xf32>
    %c1 = arith.constant 1 : index
    %c1_6 = arith.constant 1 : index
    %c0_7 = arith.constant 0 : index
    %4 = vector.load %arg11[%c1, %c1_6, %c0_7] : memref<18x18x64xf32, #tpu.memory_space<vmem>>, vector<16x16x64xf32>
    tpu.vector_store %arg11[%c1, %c1_6, %c0_7], %3 {strides = array<i32>} : memref<18x18x64xf32, #tpu.memory_space<vmem>>, vector<16x16x64xf32>,
    %c0_8 = arith.constant 0 : index
    %c0_9 = arith.constant 0 : index
    %c0_10 = arith.constant 0 : index
    %5 = vector.load %arg11[%c0_8, %c0_9, %c0_10] : memref<18x18x64xf32, #tpu.memory_space<vmem>>, vector<16x16x64xf32>
    %c0_11 = arith.constant 0 : index
    %c0_12 = arith.constant 0 : index
    %c0_13 = arith.constant 0 : index
    %6 = vector.load %arg13[%c0_11, %c0_12, %c0_13] : memref<16x16x576xf32, #tpu.memory_space<vmem>>, vector<16x16x64xf32>
    tpu.vector_store %arg13[%c0_11, %c0_12, %c0_13], %5 {strides = array<i32>} : memref<16x16x576xf32, #tpu.memory_space<vmem>>, vector<16x16x64xf32>,
    %c0_14 = arith.constant 0 : index
    %c1_15 = arith.constant 1 : index
    %c0_16 = arith.constant 0 : index
    %7 = vector.load %arg11[%c0_14, %c1_15, %c0_16] : memref<18x18x64xf32, #tpu.memory_space<vmem>>, vector<16x16x64xf32>
    %c0_17 = arith.constant 0 : index
    %c0_18 = arith.constant 0 : index
    %c64 = arith.constant 64 : index
    %8 = vector.load %arg13[%c0_17, %c0_18, %c64] : memref<16x16x576xf32, #tpu.memory_space<vmem>>, vector<16x16x64xf32>
    tpu.vector_store %arg13[%c0_17, %c0_18, %c64], %7 {strides = array<i32>} : memref<16x16x576xf32, #tpu.memory_space<vmem>>, vector<16x16x64xf32>,
    %c0_19 = arith.constant 0 : index
    %c2 = arith.constant 2 : index
    %c0_20 = arith.constant 0 : index
    %9 = vector.load %arg11[%c0_19, %c2, %c0_20] : memref<18x18x64xf32, #tpu.memory_space<vmem>>, vector<16x16x64xf32>
    %c0_21 = arith.constant 0 : index
    %c0_22 = arith.constant 0 : index
    %c128 = arith.constant 128 : index
    %10 = vector.load %arg13[%c0_21, %c0_22, %c128] : memref<16x16x576xf32, #tpu.memory_space<vmem>>, vector<16x16x64xf32>
    tpu.vector_store %arg13[%c0_21, %c0_22, %c128], %9 {strides = array<i32>} : memref<16x16x576xf32, #tpu.memory_space<vmem>>, vector<16x16x64xf32>,
    %c1_23 = arith.constant 1 : index
    %c0_24 = arith.constant 0 : index
    %c0_25 = arith.constant 0 : index
    %11 = vector.load %arg11[%c1_23, %c0_24, %c0_25] : memref<18x18x64xf32, #tpu.memory_space<vmem>>, vector<16x16x64xf32>
    %c0_26 = arith.constant 0 : index
    %c0_27 = arith.constant 0 : index
    %c192 = arith.constant 192 : index
    %12 = vector.load %arg13[%c0_26, %c0_27, %c192] : memref<16x16x576xf32, #tpu.memory_space<vmem>>, vector<16x16x64xf32>
    tpu.vector_store %arg13[%c0_26, %c0_27, %c192], %11 {strides = array<i32>} : memref<16x16x576xf32, #tpu.memory_space<vmem>>, vector<16x16x64xf32>,
    %c1_28 = arith.constant 1 : index
    %c1_29 = arith.constant 1 : index
    %c0_30 = arith.constant 0 : index
    %13 = vector.load %arg11[%c1_28, %c1_29, %c0_30] : memref<18x18x64xf32, #tpu.memory_space<vmem>>, vector<16x16x64xf32>
    %c0_31 = arith.constant 0 : index
    %c0_32 = arith.constant 0 : index
    %c256 = arith.constant 256 : index
    %14 = vector.load %arg13[%c0_31, %c0_32, %c256] : memref<16x16x576xf32, #tpu.memory_space<vmem>>, vector<16x16x64xf32>
    tpu.vector_store %arg13[%c0_31, %c0_32, %c256], %13 {strides = array<i32>} : memref<16x16x576xf32, #tpu.memory_space<vmem>>, vector<16x16x64xf32>,
    %c1_33 = arith.constant 1 : index
    %c2_34 = arith.constant 2 : index
    %c0_35 = arith.constant 0 : index
    %15 = vector.load %arg11[%c1_33, %c2_34, %c0_35] : memref<18x18x64xf32, #tpu.memory_space<vmem>>, vector<16x16x64xf32>
    %c0_36 = arith.constant 0 : index
    %c0_37 = arith.constant 0 : index
    %c320 = arith.constant 320 : index
    %16 = vector.load %arg13[%c0_36, %c0_37, %c320] : memref<16x16x576xf32, #tpu.memory_space<vmem>>, vector<16x16x64xf32>
    tpu.vector_store %arg13[%c0_36, %c0_37, %c320], %15 {strides = array<i32>} : memref<16x16x576xf32, #tpu.memory_space<vmem>>, vector<16x16x64xf32>,
    %c2_38 = arith.constant 2 : index
    %c0_39 = arith.constant 0 : index
    %c0_40 = arith.constant 0 : index
    %17 = vector.load %arg11[%c2_38, %c0_39, %c0_40] : memref<18x18x64xf32, #tpu.memory_space<vmem>>, vector<16x16x64xf32>
    %c0_41 = arith.constant 0 : index
    %c0_42 = arith.constant 0 : index
    %c384 = arith.constant 384 : index
    %18 = vector.load %arg13[%c0_41, %c0_42, %c384] : memref<16x16x576xf32, #tpu.memory_space<vmem>>, vector<16x16x64xf32>
    tpu.vector_store %arg13[%c0_41, %c0_42, %c384], %17 {strides = array<i32>} : memref<16x16x576xf32, #tpu.memory_space<vmem>>, vector<16x16x64xf32>,
    %c2_43 = arith.constant 2 : index
    %c1_44 = arith.constant 1 : index
    %c0_45 = arith.constant 0 : index
    %19 = vector.load %arg11[%c2_43, %c1_44, %c0_45] : memref<18x18x64xf32, #tpu.memory_space<vmem>>, vector<16x16x64xf32>
    %c0_46 = arith.constant 0 : index
    %c0_47 = arith.constant 0 : index
    %c448 = arith.constant 448 : index
    %20 = vector.load %arg13[%c0_46, %c0_47, %c448] : memref<16x16x576xf32, #tpu.memory_space<vmem>>, vector<16x16x64xf32>
    tpu.vector_store %arg13[%c0_46, %c0_47, %c448], %19 {strides = array<i32>} : memref<16x16x576xf32, #tpu.memory_space<vmem>>, vector<16x16x64xf32>,
    %c2_48 = arith.constant 2 : index
    %c2_49 = arith.constant 2 : index
    %c0_50 = arith.constant 0 : index
    %21 = vector.load %arg11[%c2_48, %c2_49, %c0_50] : memref<18x18x64xf32, #tpu.memory_space<vmem>>, vector<16x16x64xf32>
    %c0_51 = arith.constant 0 : index
    %c0_52 = arith.constant 0 : index
    %c512 = arith.constant 512 : index
    %22 = vector.load %arg13[%c0_51, %c0_52, %c512] : memref<16x16x576xf32, #tpu.memory_space<vmem>>, vector<16x16x64xf32>
    tpu.vector_store %arg13[%c0_51, %c0_52, %c512], %21 {strides = array<i32>} : memref<16x16x576xf32, #tpu.memory_space<vmem>>, vector<16x16x64xf32>,
    %c0_53 = arith.constant 0 : index
    %c0_54 = arith.constant 0 : index
    %c0_55 = arith.constant 0 : index
    %23 = vector.load %arg13[%c0_53, %c0_54, %c0_55] : memref<16x16x576xf32, #tpu.memory_space<vmem>>, vector<16x16x576xf32>
    %c0_56 = arith.constant 0 : index
    %c0_57 = arith.constant 0 : index
    %24 = vector.load %arg2[%c0_56, %c0_57] : memref<576x128xf32, #tpu.memory_space<vmem>>, vector<576x128xf32>
    %cst_58 = arith.constant dense<0.000000e+00> : vector<16x16x128xf32>
    %25 = tpu.matmul %23, %24, %cst_58 {dimension_numbers = #tpu.dot_dimension_numbers<[2], [0], [0, 1], [1], [0, 0, 0, 1, 1, 1], [], []>} : vector<16x16x576xf32>, vector<576x128xf32>, vector<16x16x128xf32> -> vector<16x16x128xf32>
    %cst_59 = arith.constant dense<0.000000e+00> : vector<128xf32>
    %26 = vector.multi_reduction <add>, %25, %cst_59 [0, 1] : vector<16x16x128xf32> to vector<128xf32>
    %27 = vector.shape_cast %26 : vector<128xf32> to vector<1x1x128xf32>
    %28 = vector.shape_cast %27 : vector<1x1x128xf32> to vector<1x128xf32>
    %29 = arith.mulf %25, %25 : vector<16x16x128xf32>
    %cst_60 = arith.constant dense<0.000000e+00> : vector<128xf32>
    %30 = vector.multi_reduction <add>, %29, %cst_60 [0, 1] : vector<16x16x128xf32> to vector<128xf32>
    %31 = vector.shape_cast %30 : vector<128xf32> to vector<1x1x128xf32>
    %32 = vector.shape_cast %31 : vector<1x1x128xf32> to vector<1x128xf32>
    %33 = tpu.concatenate %28, %32 in 0 : vector<1x128xf32>, vector<1x128xf32> -> vector<2x128xf32>
    %c0_61 = arith.constant 0 : index
    %c0_62 = arith.constant 0 : index
    %34 = vector.load %arg5[%c0_61, %c0_62] : memref<128x128xf32, #tpu.memory_space<vmem>>, vector<128x128xf32>
    %cst_63 = arith.constant dense<0.000000e+00> : vector<2x128xf32>
    %35 = tpu.matmul %33, %34, %cst_63 {dimension_numbers = #tpu.dot_dimension_numbers<[1], [0], [0], [1], [0, 0, 1, 1], [], []>} : vector<2x128xf32>, vector<128x128xf32>, vector<2x128xf32> -> vector<2x128xf32>
    %cst_64 = arith.constant 3.906250e-03 : f32
    %36 = vector.broadcast %cst_64 : f32 to vector<2x128xf32>
    %37 = arith.mulf %35, %36 : vector<2x128xf32>
    %38 = vector.extract_strided_slice %37 {offsets = [0, 0], sizes = [1, 128], strides = [1, 1]} : vector<2x128xf32> to vector<1x128xf32>
    %39 = vector.extract_strided_slice %37 {offsets = [1, 0], sizes = [1, 128], strides = [1, 1]} : vector<2x128xf32> to vector<1x128xf32>
    %40 = arith.mulf %38, %38 : vector<1x128xf32>
    %41 = arith.subf %39, %40 : vector<1x128xf32>
    %cst_65 = arith.constant 0.000000e+00 : f32
    %42 = vector.broadcast %cst_65 : f32 to vector<1x128xf32>
    %43 = arith.maximumf %41, %42 : vector<1x128xf32>
    %cst_66 = arith.constant 9.99999974E-6 : f32
    %44 = vector.broadcast %cst_66 : f32 to vector<1x128xf32>
    %45 = arith.addf %43, %44 : vector<1x128xf32>
    %46 = math.rsqrt %45 : vector<1x128xf32>
    %c0_67 = arith.constant 0 : index
    %c0_68 = arith.constant 0 : index
    %47 = vector.load %arg3[%c0_67, %c0_68] : memref<1x128xf32, #tpu.memory_space<vmem>>, vector<1x128xf32>
    %c0_69 = arith.constant 0 : index
    %c0_70 = arith.constant 0 : index
    %48 = vector.load %arg4[%c0_69, %c0_70] : memref<1x128xf32, #tpu.memory_space<vmem>>, vector<1x128xf32>
    %49 = arith.mulf %47, %46 : vector<1x128xf32>
    %50 = vector.shape_cast %49 : vector<1x128xf32> to vector<1x1x128xf32>
    %51 = arith.mulf %47, %46 : vector<1x128xf32>
    %52 = arith.mulf %51, %38 : vector<1x128xf32>
    %53 = arith.subf %48, %52 : vector<1x128xf32>
    %54 = vector.shape_cast %53 : vector<1x128xf32> to vector<1x1x128xf32>
    %55 = vector.broadcast %50 : vector<1x1x128xf32> to vector<16x16x128xf32>
    %56 = arith.mulf %25, %55 : vector<16x16x128xf32>
    %57 = vector.broadcast %54 : vector<1x1x128xf32> to vector<16x16x128xf32>
    %58 = arith.addf %56, %57 : vector<16x16x128xf32>
    %cst_71 = arith.constant 0.000000e+00 : f32
    %59 = vector.broadcast %cst_71 : f32 to vector<16x16x128xf32>
    %60 = arith.maximumf %58, %59 : vector<16x16x128xf32>
    %cst_72 = arith.constant 0.000000e+00 : f32
    %61 = vector.broadcast %cst_72 : f32 to vector<18x18x128xf32>
    %c0_73 = arith.constant 0 : index
    %c0_74 = arith.constant 0 : index
    %c0_75 = arith.constant 0 : index
    %62 = vector.load %arg12[%c0_73, %c0_74, %c0_75] : memref<18x18x128xf32, #tpu.memory_space<vmem>>, vector<18x18x128xf32>
    tpu.vector_store %arg12[%c0_73, %c0_74, %c0_75], %61 {strides = array<i32>} : memref<18x18x128xf32, #tpu.memory_space<vmem>>, vector<18x18x128xf32>,
    %c1_76 = arith.constant 1 : index
    %c1_77 = arith.constant 1 : index
    %c0_78 = arith.constant 0 : index
    %63 = vector.load %arg12[%c1_76, %c1_77, %c0_78] : memref<18x18x128xf32, #tpu.memory_space<vmem>>, vector<16x16x128xf32>
    tpu.vector_store %arg12[%c1_76, %c1_77, %c0_78], %60 {strides = array<i32>} : memref<18x18x128xf32, #tpu.memory_space<vmem>>, vector<16x16x128xf32>,
    %c0_79 = arith.constant 0 : index
    %c0_80 = arith.constant 0 : index
    %c0_81 = arith.constant 0 : index
    %64 = vector.load %arg12[%c0_79, %c0_80, %c0_81] : memref<18x18x128xf32, #tpu.memory_space<vmem>>, vector<16x16x128xf32>
    %c0_82 = arith.constant 0 : index
    %c0_83 = arith.constant 0 : index
    %c0_84 = arith.constant 0 : index
    %65 = vector.load %arg14[%c0_82, %c0_83, %c0_84] : memref<16x16x1152xf32, #tpu.memory_space<vmem>>, vector<16x16x128xf32>
    tpu.vector_store %arg14[%c0_82, %c0_83, %c0_84], %64 {strides = array<i32>} : memref<16x16x1152xf32, #tpu.memory_space<vmem>>, vector<16x16x128xf32>,
    %c0_85 = arith.constant 0 : index
    %c1_86 = arith.constant 1 : index
    %c0_87 = arith.constant 0 : index
    %66 = vector.load %arg12[%c0_85, %c1_86, %c0_87] : memref<18x18x128xf32, #tpu.memory_space<vmem>>, vector<16x16x128xf32>
    %c0_88 = arith.constant 0 : index
    %c0_89 = arith.constant 0 : index
    %c128_90 = arith.constant 128 : index
    %67 = vector.load %arg14[%c0_88, %c0_89, %c128_90] : memref<16x16x1152xf32, #tpu.memory_space<vmem>>, vector<16x16x128xf32>
    tpu.vector_store %arg14[%c0_88, %c0_89, %c128_90], %66 {strides = array<i32>} : memref<16x16x1152xf32, #tpu.memory_space<vmem>>, vector<16x16x128xf32>,
    %c0_91 = arith.constant 0 : index
    %c2_92 = arith.constant 2 : index
    %c0_93 = arith.constant 0 : index
    %68 = vector.load %arg12[%c0_91, %c2_92, %c0_93] : memref<18x18x128xf32, #tpu.memory_space<vmem>>, vector<16x16x128xf32>
    %c0_94 = arith.constant 0 : index
    %c0_95 = arith.constant 0 : index
    %c256_96 = arith.constant 256 : index
    %69 = vector.load %arg14[%c0_94, %c0_95, %c256_96] : memref<16x16x1152xf32, #tpu.memory_space<vmem>>, vector<16x16x128xf32>
    tpu.vector_store %arg14[%c0_94, %c0_95, %c256_96], %68 {strides = array<i32>} : memref<16x16x1152xf32, #tpu.memory_space<vmem>>, vector<16x16x128xf32>,
    %c1_97 = arith.constant 1 : index
    %c0_98 = arith.constant 0 : index
    %c0_99 = arith.constant 0 : index
    %70 = vector.load %arg12[%c1_97, %c0_98, %c0_99] : memref<18x18x128xf32, #tpu.memory_space<vmem>>, vector<16x16x128xf32>
    %c0_100 = arith.constant 0 : index
    %c0_101 = arith.constant 0 : index
    %c384_102 = arith.constant 384 : index
    %71 = vector.load %arg14[%c0_100, %c0_101, %c384_102] : memref<16x16x1152xf32, #tpu.memory_space<vmem>>, vector<16x16x128xf32>
    tpu.vector_store %arg14[%c0_100, %c0_101, %c384_102], %70 {strides = array<i32>} : memref<16x16x1152xf32, #tpu.memory_space<vmem>>, vector<16x16x128xf32>,
    %c1_103 = arith.constant 1 : index
    %c1_104 = arith.constant 1 : index
    %c0_105 = arith.constant 0 : index
    %72 = vector.load %arg12[%c1_103, %c1_104, %c0_105] : memref<18x18x128xf32, #tpu.memory_space<vmem>>, vector<16x16x128xf32>
    %c0_106 = arith.constant 0 : index
    %c0_107 = arith.constant 0 : index
    %c512_108 = arith.constant 512 : index
    %73 = vector.load %arg14[%c0_106, %c0_107, %c512_108] : memref<16x16x1152xf32, #tpu.memory_space<vmem>>, vector<16x16x128xf32>
    tpu.vector_store %arg14[%c0_106, %c0_107, %c512_108], %72 {strides = array<i32>} : memref<16x16x1152xf32, #tpu.memory_space<vmem>>, vector<16x16x128xf32>,
    %c1_109 = arith.constant 1 : index
    %c2_110 = arith.constant 2 : index
    %c0_111 = arith.constant 0 : index
    %74 = vector.load %arg12[%c1_109, %c2_110, %c0_111] : memref<18x18x128xf32, #tpu.memory_space<vmem>>, vector<16x16x128xf32>
    %c0_112 = arith.constant 0 : index
    %c0_113 = arith.constant 0 : index
    %c640 = arith.constant 640 : index
    %75 = vector.load %arg14[%c0_112, %c0_113, %c640] : memref<16x16x1152xf32, #tpu.memory_space<vmem>>, vector<16x16x128xf32>
    tpu.vector_store %arg14[%c0_112, %c0_113, %c640], %74 {strides = array<i32>} : memref<16x16x1152xf32, #tpu.memory_space<vmem>>, vector<16x16x128xf32>,
    %c2_114 = arith.constant 2 : index
    %c0_115 = arith.constant 0 : index
    %c0_116 = arith.constant 0 : index
    %76 = vector.load %arg12[%c2_114, %c0_115, %c0_116] : memref<18x18x128xf32, #tpu.memory_space<vmem>>, vector<16x16x128xf32>
    %c0_117 = arith.constant 0 : index
    %c0_118 = arith.constant 0 : index
    %c768 = arith.constant 768 : index
    %77 = vector.load %arg14[%c0_117, %c0_118, %c768] : memref<16x16x1152xf32, #tpu.memory_space<vmem>>, vector<16x16x128xf32>
    tpu.vector_store %arg14[%c0_117, %c0_118, %c768], %76 {strides = array<i32>} : memref<16x16x1152xf32, #tpu.memory_space<vmem>>, vector<16x16x128xf32>,
    %c2_119 = arith.constant 2 : index
    %c1_120 = arith.constant 1 : index
    %c0_121 = arith.constant 0 : index
    %78 = vector.load %arg12[%c2_119, %c1_120, %c0_121] : memref<18x18x128xf32, #tpu.memory_space<vmem>>, vector<16x16x128xf32>
    %c0_122 = arith.constant 0 : index
    %c0_123 = arith.constant 0 : index
    %c896 = arith.constant 896 : index
    %79 = vector.load %arg14[%c0_122, %c0_123, %c896] : memref<16x16x1152xf32, #tpu.memory_space<vmem>>, vector<16x16x128xf32>
    tpu.vector_store %arg14[%c0_122, %c0_123, %c896], %78 {strides = array<i32>} : memref<16x16x1152xf32, #tpu.memory_space<vmem>>, vector<16x16x128xf32>,
    %c2_124 = arith.constant 2 : index
    %c2_125 = arith.constant 2 : index
    %c0_126 = arith.constant 0 : index
    %80 = vector.load %arg12[%c2_124, %c2_125, %c0_126] : memref<18x18x128xf32, #tpu.memory_space<vmem>>, vector<16x16x128xf32>
    %c0_127 = arith.constant 0 : index
    %c0_128 = arith.constant 0 : index
    %c1024 = arith.constant 1024 : index
    %81 = vector.load %arg14[%c0_127, %c0_128, %c1024] : memref<16x16x1152xf32, #tpu.memory_space<vmem>>, vector<16x16x128xf32>
    tpu.vector_store %arg14[%c0_127, %c0_128, %c1024], %80 {strides = array<i32>} : memref<16x16x1152xf32, #tpu.memory_space<vmem>>, vector<16x16x128xf32>,
    %c0_129 = arith.constant 0 : index
    %c0_130 = arith.constant 0 : index
    %c0_131 = arith.constant 0 : index
    %82 = vector.load %arg14[%c0_129, %c0_130, %c0_131] : memref<16x16x1152xf32, #tpu.memory_space<vmem>>, vector<16x16x1152xf32>
    %c0_132 = arith.constant 0 : index
    %c0_133 = arith.constant 0 : index
    %83 = vector.load %arg6[%c0_132, %c0_133] : memref<1152x128xf32, #tpu.memory_space<vmem>>, vector<1152x128xf32>
    %cst_134 = arith.constant dense<0.000000e+00> : vector<16x16x128xf32>
    %84 = tpu.matmul %82, %83, %cst_134 {dimension_numbers = #tpu.dot_dimension_numbers<[2], [0], [0, 1], [1], [0, 0, 0, 1, 1, 1], [], []>} : vector<16x16x1152xf32>, vector<1152x128xf32>, vector<16x16x128xf32> -> vector<16x16x128xf32>
    %cst_135 = arith.constant dense<0.000000e+00> : vector<128xf32>
    %85 = vector.multi_reduction <add>, %84, %cst_135 [0, 1] : vector<16x16x128xf32> to vector<128xf32>
    %86 = vector.shape_cast %85 : vector<128xf32> to vector<1x1x128xf32>
    %87 = vector.shape_cast %86 : vector<1x1x128xf32> to vector<1x128xf32>
    %88 = arith.mulf %84, %84 : vector<16x16x128xf32>
    %cst_136 = arith.constant dense<0.000000e+00> : vector<128xf32>
    %89 = vector.multi_reduction <add>, %88, %cst_136 [0, 1] : vector<16x16x128xf32> to vector<128xf32>
    %90 = vector.shape_cast %89 : vector<128xf32> to vector<1x1x128xf32>
    %91 = vector.shape_cast %90 : vector<1x1x128xf32> to vector<1x128xf32>
    %92 = tpu.concatenate %87, %91 in 0 : vector<1x128xf32>, vector<1x128xf32> -> vector<2x128xf32>
    %c0_137 = arith.constant 0 : index
    %c0_138 = arith.constant 0 : index
    %93 = vector.load %arg9[%c0_137, %c0_138] : memref<128x128xf32, #tpu.memory_space<vmem>>, vector<128x128xf32>
    %cst_139 = arith.constant dense<0.000000e+00> : vector<2x128xf32>
    %94 = tpu.matmul %92, %93, %cst_139 {dimension_numbers = #tpu.dot_dimension_numbers<[1], [0], [0], [1], [0, 0, 1, 1], [], []>} : vector<2x128xf32>, vector<128x128xf32>, vector<2x128xf32> -> vector<2x128xf32>
    %cst_140 = arith.constant 3.906250e-03 : f32
    %95 = vector.broadcast %cst_140 : f32 to vector<2x128xf32>
    %96 = arith.mulf %94, %95 : vector<2x128xf32>
    %97 = vector.extract_strided_slice %96 {offsets = [0, 0], sizes = [1, 128], strides = [1, 1]} : vector<2x128xf32> to vector<1x128xf32>
    %98 = vector.extract_strided_slice %96 {offsets = [1, 0], sizes = [1, 128], strides = [1, 1]} : vector<2x128xf32> to vector<1x128xf32>
    %99 = arith.mulf %97, %97 : vector<1x128xf32>
    %100 = arith.subf %98, %99 : vector<1x128xf32>
    %cst_141 = arith.constant 0.000000e+00 : f32
    %101 = vector.broadcast %cst_141 : f32 to vector<1x128xf32>
    %102 = arith.maximumf %100, %101 : vector<1x128xf32>
    %cst_142 = arith.constant 9.99999974E-6 : f32
    %103 = vector.broadcast %cst_142 : f32 to vector<1x128xf32>
    %104 = arith.addf %102, %103 : vector<1x128xf32>
    %105 = math.rsqrt %104 : vector<1x128xf32>
    %c0_143 = arith.constant 0 : index
    %c0_144 = arith.constant 0 : index
    %106 = vector.load %arg7[%c0_143, %c0_144] : memref<1x128xf32, #tpu.memory_space<vmem>>, vector<1x128xf32>
    %c0_145 = arith.constant 0 : index
    %c0_146 = arith.constant 0 : index
    %107 = vector.load %arg8[%c0_145, %c0_146] : memref<1x128xf32, #tpu.memory_space<vmem>>, vector<1x128xf32>
    %108 = arith.mulf %106, %105 : vector<1x128xf32>
    %109 = vector.shape_cast %108 : vector<1x128xf32> to vector<1x1x128xf32>
    %110 = arith.mulf %106, %105 : vector<1x128xf32>
    %111 = arith.mulf %110, %97 : vector<1x128xf32>
    %112 = arith.subf %107, %111 : vector<1x128xf32>
    %113 = vector.shape_cast %112 : vector<1x128xf32> to vector<1x1x128xf32>
    %114 = vector.broadcast %109 : vector<1x1x128xf32> to vector<16x16x128xf32>
    %115 = arith.mulf %84, %114 : vector<16x16x128xf32>
    %116 = vector.broadcast %113 : vector<1x1x128xf32> to vector<16x16x128xf32>
    %117 = arith.addf %115, %116 : vector<16x16x128xf32>
    %cst_147 = arith.constant 0.000000e+00 : f32
    %118 = vector.broadcast %cst_147 : f32 to vector<16x16x128xf32>
    %119 = arith.maximumf %117, %118 : vector<16x16x128xf32>
    %c0_148 = arith.constant 0 : index
    %c0_149 = arith.constant 0 : index
    %c0_150 = arith.constant 0 : index
    %c0_151 = arith.constant 0 : index
    %120 = vector.load %arg10[%c0_148, %c0_149, %c0_150, %c0_151] : memref<1x16x16x128xf32, #tpu.memory_space<vmem>>, vector<1x16x16x128xf32>
    %121 = vector.shape_cast %120 : vector<1x16x16x128xf32> to vector<16x16x128xf32>
    %122 = vector.shape_cast %119 : vector<16x16x128xf32> to vector<1x16x16x128xf32>
    tpu.vector_store %arg10[%c0_148, %c0_149, %c0_150, %c0_151], %122 {strides = array<i32>} : memref<1x16x16x128xf32, #tpu.memory_space<vmem>>, vector<1x16x16x128xf32>,
    return
  }
  func.func @transform_0(%arg0: i32) -> (i32, i32, i32, i32) {
    %c0_i32 = arith.constant 0 : i32
    %c0_i32_0 = arith.constant 0 : i32
    %c0_i32_1 = arith.constant 0 : i32
    %c0_i32_2 = arith.constant 0 : i32
    return %arg0, %c0_i32, %c0_i32_0, %c0_i32_1 : i32, i32, i32, i32
  }
  func.func @transform_1(%arg0: i32) -> (i32, i32) {
    %c0_i32 = arith.constant 0 : i32
    %c0_i32_0 = arith.constant 0 : i32
    %c0_i32_1 = arith.constant 0 : i32
    return %c0_i32, %c0_i32_0 : i32, i32
  }
  func.func @transform_2(%arg0: i32) -> (i32, i32) {
    %c0_i32 = arith.constant 0 : i32
    %c0_i32_0 = arith.constant 0 : i32
    %c0_i32_1 = arith.constant 0 : i32
    return %c0_i32, %c0_i32_0 : i32, i32
  }
  func.func @transform_3(%arg0: i32) -> (i32, i32) {
    %c0_i32 = arith.constant 0 : i32
    %c0_i32_0 = arith.constant 0 : i32
    %c0_i32_1 = arith.constant 0 : i32
    return %c0_i32, %c0_i32_0 : i32, i32
  }
  func.func @transform_4(%arg0: i32) -> (i32, i32) {
    %c0_i32 = arith.constant 0 : i32
    %c0_i32_0 = arith.constant 0 : i32
    %c0_i32_1 = arith.constant 0 : i32
    return %c0_i32, %c0_i32_0 : i32, i32
  }
  func.func @transform_5(%arg0: i32) -> (i32, i32) {
    %c0_i32 = arith.constant 0 : i32
    %c0_i32_0 = arith.constant 0 : i32
    %c0_i32_1 = arith.constant 0 : i32
    return %c0_i32, %c0_i32_0 : i32, i32
  }
  func.func @transform_6(%arg0: i32) -> (i32, i32) {
    %c0_i32 = arith.constant 0 : i32
    %c0_i32_0 = arith.constant 0 : i32
    %c0_i32_1 = arith.constant 0 : i32
    return %c0_i32, %c0_i32_0 : i32, i32
  }
  func.func @transform_7(%arg0: i32) -> (i32, i32) {
    %c0_i32 = arith.constant 0 : i32
    %c0_i32_0 = arith.constant 0 : i32
    %c0_i32_1 = arith.constant 0 : i32
    return %c0_i32, %c0_i32_0 : i32, i32
  }
  func.func @transform_8(%arg0: i32) -> (i32, i32) {
    %c0_i32 = arith.constant 0 : i32
    %c0_i32_0 = arith.constant 0 : i32
    %c0_i32_1 = arith.constant 0 : i32
    return %c0_i32, %c0_i32_0 : i32, i32
  }
  func.func @transform_9(%arg0: i32) -> (i32, i32, i32, i32) {
    %c0_i32 = arith.constant 0 : i32
    %c0_i32_0 = arith.constant 0 : i32
    %c0_i32_1 = arith.constant 0 : i32
    %c0_i32_2 = arith.constant 0 : i32
    return %arg0, %c0_i32, %c0_i32_0, %c0_i32_1 : i32, i32, i32, i32
  }
}

</mosaic_0001>

<bundles_post_ra>
// kernel: down_forward.1
= control target key start
LH: loop header
LB: loop body
LE: loop exit
PB: predicated region body
PF: predicated region fallthrough
CT: control target
= control target key end

     0   :  { %14 = vsyncpa [#allocation7], 0  ;;  %s9527_s0 = inlined_call_operand.vmem [shape: f32[2,16,16,64], index: 0, kind: input, shape index: {}]   ;;  %s9528_s1 = inlined_call_operand.vmem [shape: f32[576,128], index: 1, kind: input, shape index: {}]   ;;  %s9529_s2 = inlined_call_operand.vmem [shape: f32[1,128], index: 2, kind: input, shape index: {}]   ;;  %s9530_s3 = inlined_call_operand.vmem [shape: f32[1,128], index: 3, kind: input, shape index: {}]   ;;  %s9531_s4 = inlined_call_operand.vmem [shape: f32[128,128], index: 4, kind: input, shape index: {}, may-alias: {4,8}]   ;;  %s9532_s5 = inlined_call_operand.vmem [shape: f32[1152,128], index: 5, kind: input, shape index: {}]   ;;  %s9533_s6 = inlined_call_operand.vmem [shape: f32[1,128], index: 6, kind: input, shape index: {}]   ;;  %s9534_s7 = inlined_call_operand.vmem [shape: f32[1,128], index: 7, kind: input, shape index: {}]   ;;  %s9535_s8 = inlined_call_operand.vmem [shape: f32[128,128], index: 8, kind: input, shape index: {}, may-alias: {4,8}]   ;;  %s9536_s9 = inlined_call_operand.hbm [shape: f32[2,16,16,128], index: 9, kind: output, shape index: {}]  }
   0x1   :  { %16 = vsyncpa [#allocation7 + $0x1], 0  ;;  %s6094_s30 = smov 0   ;;  %s6096_s10 = smov 0  }
   0x2   :  { %s6098_s11 = smov 0   ;;  %s6100_s12 = smov 0  }
   0x3 LB: > { %s6115_s13 = sadd.s32 4294967295, %s6035_s12   ;;  %s5539_s14 = sadd.s32 4294967294, %s6035_s12   ;;  %s6035_s12 = sphi %s6100_s12, %s9566_s12   ;;  %s6031_s11 = sphi %s6098_s11, %s9565_s11   ;;  %s6027_s10 = sphi %s6096_s10, %s9564_s10   ;;  %s6023_s30 = sphi %s6094_s30, %s9563_s30  }
   0x4   : > { %s6119_s15 = sadd.s32 1, %s6035_s12   ;;  %s223_s16 = sadd.s32 1, %s6031_s11 }
   0x5   : > { %s220_s17 = ssub.s32 %s6035_s12, %s6119_s15  ;;  %p233_p0 = scmp.ne.s32.totalorder %s6031_s11, %s6027_s10 }
   0x6   : > { %p221_p1 = scmp.eq.s32.totalorder %s220_s17, 0  ;;  %p234_p2 = scmp.eq.s32.totalorder %s6115_s13, 1 }
   0x7   : > { %p239_p3 = scmp.ne.s32.totalorder %s6027_s10, %s6023_s30  ;;  %p240_p4 = scmp.eq.s32.totalorder %s5539_s14, 1 }
   0x8   : > { %s6130_s18 = scalar_select %p221_p1, %s6031_s11, %s223_s16  }
   0x9   : > { %p6132_p5 = por %p234_p2, %p233_p0  ;;  %p6136_p6 = por %p240_p4, %p239_p3 }
   0xa   : > { %p5542_p7 = scmp.ge.s32.totalorder %s6035_s12, 1  ;;  %p290_p8 = scmp.lt.s32.totalorder %s6035_s12, 3 }
   0xc   : > { %p291_p9 = pnand %p5542_p7, %p290_p8 }
   0xe   : > { %294 = sbr.rel (%p291_p9) target bundleno = 1724 (0x6bc), region = 56 }
  0x13   : > { %vm331_vm0 = vcmask 523264   ;;  %vm334_vm1 = vcmask 517120   ;;  %p326_p10 = scmp.lt.s32.totalorder %s6115_s13, 1  ;;  %v6146_v0 = vld [vmem:[%s9528_s1 + $0x78] sm:$0xff]  ;;  %v6037_v1 = vmov 0.0   ;;  %v1716_v2 = vld [vmem:[%s9528_s1 + $0x70] sm:$0xff] }
  0x14   : > { %332 = vst.msk [vmem:[#allocation2] sm:$0xff] %vm331_vm0, %v6037_v1  ;;  %333 = vst.msk [vmem:[#allocation2 + $0x8] sm:$0xff] %vm331_vm0, %v6037_v1  ;;  %1870 = vmatprep.subr.mxu0 %v6037_v1  ;;  %2095 = vmatprep.subr.mxu1 %v6037_v1  ;;  %v1715_v3 = vld [vmem:[%s9528_s1 + $0x68] sm:$0xff]  ;;  %v1714_v4 = vld [vmem:[%s9528_s1 + $0x60] sm:$0xff]  ;;  %s6038_s26 = smov 64   ;;  %vm676_vm2 = vcmask 1048064  }
  0x15   : > { %336 = vst.msk [vmem:[#allocation2 + $0x18] sm:$0xff] %vm331_vm0, %v6037_v1  ;;  %337 = vst.msk [vmem:[#allocation2 + $0x20] sm:$0xff] %vm331_vm0, %v6037_v1  ;;  %s327_s25 = scalar_select %p326_p10, %s6115_s13, 1  ;;  %1871 = vmatpush1.msra.mxu0 %v6146_v0  ;;  %v1713_v8 = vld [vmem:[%s9528_s1 + $0x58] sm:$0xff]  ;;  %v1712_v15 = vld [vmem:[%s9528_s1 + $0x50] sm:$0xff]  ;;  %vm6039_vm3 = vmmov 0  }
  0x16   : > { %339 = vst.msk [vmem:[#allocation2 + $0x30] sm:$0xff] %vm331_vm0, %v6037_v1  ;;  %340 = vst.msk [vmem:[#allocation2 + $0x38] sm:$0xff] %vm331_vm0, %v6037_v1  ;;  %1872 = vmatprep.subr.mxu0 %v6037_v1  ;;  %v1711_v25 = vld [vmem:[%s9528_s1 + $0x48] sm:$0xff]  ;;  %v1710_v36 = vld [vmem:[%s9528_s1 + $0x40] sm:$0xff]  ;;  %vm2651_vm4 = vcmask 1040384   ;;  %s5584_s22 = sshll.u32 %s6115_s13, 12 }
  0x17   : > { %342 = vst.msk [vmem:[#allocation2 + $0x48] sm:$0xff] %vm331_vm0, %v6037_v1  ;;  %343 = vst.msk [vmem:[#allocation2 + $0x50] sm:$0xff] %vm331_vm0, %v6037_v1  ;;  %s5583_s28 = sshll.u32 %s327_s25, 8  ;;  %1873 = vmatpush1.msra.mxu0 %v1716_v2  ;;  %v1709_v43 = vld [vmem:[%s9528_s1 + $0x38] sm:$0xff]  ;;  %v1708_v49 = vld [vmem:[%s9528_s1 + $0x30] sm:$0xff]  ;;  %s9469_s25 = scalar_lea.hbm %s9536_s9, %s5584_s22 }
  0x18   : > { %345 = vst.msk [vmem:[#allocation2 + $0x60] sm:$0xff] %vm331_vm0, %v6037_v1  ;;  %346 = vst.msk [vmem:[#allocation2 + $0x68] sm:$0xff] %vm331_vm0, %v6037_v1  ;;  %s6326_s16 = scalar_lea.vmem %s9527_s0, %s5583_s28  ;;  %1874 = vmatprep.subr.mxu0 %v6037_v1  ;;  %v1707_v51 = vld [vmem:[%s9528_s1 + $0x28] sm:$0xff]  ;;  %v1706_v56 = vld [vmem:[%s9528_s1 + $0x20] sm:$0xff]  ;;  %s6041_s29 = smov [#allocation6]  }
  0x19   : > { %348 = vst.msk [vmem:[#allocation2 + $0x78] sm:$0xff] %vm331_vm0, %v6037_v1  ;;  %349 = vst.msk [vmem:[#allocation2 + $0x80] sm:$0xff] %vm331_vm0, %v6037_v1  ;;  %v387_v5 = vld [vmem:[%s6326_s16] sm:$0xff]  ;;  %v388_v6 = vld [vmem:[%s6326_s16 + $0x8] sm:$0xff]  ;;  %1875 = vmatpush1.msra.mxu0 %v1715_v3  ;;  %s5979_s14 = sshll.u32 %s6041_s29, 4  ;;  %s5980_s14 = int_to_ptr.vmem [resolvable:$false] %s5979_s14 }
  0x1a   : > { %351 = vst.msk [vmem:[#allocation2 + $0x90] sm:$0xff] %vm331_vm0, %v6037_v1  ;;  %352 = vst.msk [vmem:[#allocation2 + $0x98] sm:$0xff] %vm331_vm0, %v6037_v1  ;;  %v389_v7 = vld [vmem:[%s6326_s16 + $0x10] sm:$0xff]  ;;  %v390_v9 = vld [vmem:[%s6326_s16 + $0x18] sm:$0xff]  ;;  %1876 = vmatprep.subr.mxu0 %v6037_v1  ;;  %s5981_s17 = scalar_lea.vmem %s5980_s14, 8192 }
  0x1b   : > { %354 = vst.msk [vmem:[#allocation2 + $0xa8] sm:$0xff] %vm331_vm0, %v6037_v1  ;;  %355 = vst.msk [vmem:[#allocation2 + $0xb0] sm:$0xff] %vm331_vm0, %v6037_v1  ;;  %v391_v10 = vld [vmem:[%s6326_s16 + $0x20] sm:$0xff]  ;;  %v392_v11 = vld [vmem:[%s6326_s16 + $0x28] sm:$0xff]  ;;  %1877 = vmatpush1.msra.mxu0 %v1714_v4 }
  0x1c   : > { %357 = vst.msk [vmem:[#allocation2 + $0xc0] sm:$0xff] %vm331_vm0, %v6037_v1  ;;  %358 = vst.msk [vmem:[#allocation2 + $0xc8] sm:$0xff] %vm331_vm0, %v6037_v1  ;;  %v516_v12 = vld [vmem:[#allocation2 + $0x1] sm:$0xff]  ;;  %v393_v14 = vld [vmem:[%s6326_s16 + $0x30] sm:$0xff]  ;;  %1878 = vmatprep.subr.mxu0 %v6037_v1 }
  0x1d   : > { %360 = vst.msk [vmem:[#allocation2 + $0xd8] sm:$0xff] %vm331_vm0, %v6037_v1  ;;  %361 = vst.msk [vmem:[#allocation2 + $0xe0] sm:$0xff] %vm331_vm0, %v6037_v1  ;;  %580 = vrot.lane.b32.xlu0 %v516_v12, %s6038_s26  ;;  %v394_v16 = vld [vmem:[%s6326_s16 + $0x38] sm:$0xff]  ;;  %v395_v17 = vld [vmem:[%s6326_s16 + $0x40] sm:$0xff]  ;;  %1879 = vmatpush1.msra.mxu0 %v1713_v8 }
  0x1e   : > { %363 = vst.msk [vmem:[#allocation2 + $0xf0] sm:$0xff] %vm331_vm0, %v6037_v1  ;;  %364 = vst.msk [vmem:[#allocation2 + $0xf8] sm:$0xff] %vm331_vm0, %v6037_v1  ;;  %v452_v18 = vld [vmem:[#allocation2] sm:$0xff]  ;;  %v396_v19 = vld [vmem:[%s6326_s16 + $0x48] sm:$0xff]  ;;  %1880 = vmatprep.subr.mxu0 %v6037_v1 }
  0x1f   : > { %366 = vst.msk [vmem:[#allocation2 + $0x108] sm:$0xff] %vm331_vm0, %v6037_v1  ;;  %367 = vst.msk [vmem:[#allocation2 + $0x110] sm:$0xff] %vm331_vm0, %v6037_v1  ;;  %v397_v20 = vld [vmem:[%s6326_s16 + $0x50] sm:$0xff]  ;;  %v398_v21 = vld [vmem:[%s6326_s16 + $0x58] sm:$0xff]  ;;  %1881 = vmatpush1.msra.mxu0 %v1712_v15 }
  0x20   : > { %369 = vst.msk [vmem:[#allocation2 + $0x120] sm:$0xff] %vm331_vm0, %v6037_v1  ;;  %370 = vst.msk [vmem:[#allocation2 + $0x128] sm:$0xff] %vm331_vm0, %v6037_v1  ;;  %v399_v22 = vld [vmem:[%s6326_s16 + $0x60] sm:$0xff]  ;;  %v400_v23 = vld [vmem:[%s6326_s16 + $0x68] sm:$0xff]  ;;  %1882 = vmatprep.subr.mxu0 %v6037_v1 }
  0x21   : > { %372 = vst.msk [vmem:[#allocation2 + $0x138] sm:$0xff] %vm331_vm0, %v6037_v1  ;;  %373 = vst.msk [vmem:[#allocation2 + $0x140] sm:$0xff] %vm331_vm0, %v6037_v1  ;;  %v401_v24 = vld [vmem:[%s6326_s16 + $0x70] sm:$0xff]  ;;  %v402_v26 = vld [vmem:[%s6326_s16 + $0x78] sm:$0xff]  ;;  %1883 = vmatpush1.msra.mxu0 %v1711_v25 }
  0x22   : > { %375 = vst.msk [vmem:[#allocation2 + $0x150] sm:$0xff] %vm331_vm0, %v6037_v1  ;;  %376 = vst.msk [vmem:[#allocation2 + $0x158] sm:$0xff] %vm331_vm0, %v6037_v1  ;;  %v403_v27 = vld [vmem:[%s6326_s16 + $0x80] sm:$0xff]  ;;  %v404_v28 = vld [vmem:[%s6326_s16 + $0x88] sm:$0xff]  ;;  %1884 = vmatprep.subr.mxu0 %v6037_v1 }
  0x23   : > { %378 = vst.msk [vmem:[#allocation2 + $0x168] sm:$0xff] %vm331_vm0, %v6037_v1  ;;  %379 = vst.msk [vmem:[#allocation2 + $0x170] sm:$0xff] %vm331_vm0, %v6037_v1  ;;  %v405_v29 = vld [vmem:[%s6326_s16 + $0x90] sm:$0xff]  ;;  %v406_v30 = vld [vmem:[%s6326_s16 + $0x98] sm:$0xff]  ;;  %1885 = vmatpush1.msra.mxu0 %v1710_v36 }
  0x24   : > { %381 = vst.msk [vmem:[#allocation2 + $0x180] sm:$0xff] %vm331_vm0, %v6037_v1  ;;  %382 = vst.msk [vmem:[#allocation2 + $0x188] sm:$0xff] %vm331_vm0, %v6037_v1  ;;  %v407_v31 = vld [vmem:[%s6326_s16 + $0xa0] sm:$0xff]  ;;  %1886 = vmatprep.subr.mxu0 %v6037_v1  ;;  %v1705_v59 = vld [vmem:[%s9528_s1 + $0x18] sm:$0xff] }
  0x25   : > { %384 = vst.msk [vmem:[#allocation2 + $0x198] sm:$0xff] %vm331_vm0, %v6037_v1  ;;  %385 = vst.msk [vmem:[#allocation2 + $0x1a0] sm:$0xff] %vm331_vm0, %v6037_v1  ;;  %1887 = vmatpush1.msra.mxu0 %v1709_v43  ;;  %v408_v61 = vld [vmem:[%s6326_s16 + $0xa8] sm:$0xff]  ;;  %v1704_v62 = vld [vmem:[%s9528_s1 + $0x10] sm:$0xff] }
  0x26   : > { %2878 = vst [vmem:[#allocation3] sm:$0xff] %v6037_v1  ;;  %2879 = vst [vmem:[#allocation3 + $0x8] sm:$0xff] %v6037_v1  ;;  %1888 = vmatprep.subr.mxu0 %v6037_v1  ;;  %v409_v2 = vld [vmem:[%s6326_s16 + $0xb0] sm:$0xff]  ;;  %v1703_v3 = vld [vmem:[%s9528_s1 + $0x8] sm:$0xff] }
  0x27   : > { %2880 = vst [vmem:[#allocation3 + $0x10] sm:$0x3] %v6037_v1  ;;  %2881 = vst [vmem:[#allocation3 + $0x18] sm:$0xff] %v6037_v1  ;;  %1889 = vmatpush1.msra.mxu0 %v1708_v49  ;;  %v453_v4 = vld [vmem:[#allocation2 + $0x8] sm:$0xff]  ;;  %v1733_v12 = vld [vmem:[%s9528_s1 + $0xf8] sm:$0xff] }
  0x28   : > { %2882 = vst [vmem:[#allocation3 + $0x20] sm:$0xff] %v6037_v1  ;;  %2883 = vst [vmem:[#allocation3 + $0x28] sm:$0x3] %v6037_v1  ;;  %1890 = vmatprep.subr.mxu0 %v6037_v1  ;;  %v1748_v15 = vld [vmem:[%s9528_s1 + $0x170] sm:$0xff]  ;;  %v1731_v25 = vld [vmem:[%s9528_s1 + $0xe8] sm:$0xff] }
  0x29   : > { %2884 = vst [vmem:[#allocation3 + $0x30] sm:$0xff] %v6037_v1  ;;  %2885 = vst [vmem:[#allocation3 + $0x38] sm:$0xff] %v6037_v1  ;;  %1891 = vmatpush1.msra.mxu0 %v1707_v51 }
  0x2a   : > { %2886 = vst [vmem:[#allocation3 + $0x40] sm:$0x3] %v6037_v1  ;;  %2887 = vst [vmem:[#allocation3 + $0x48] sm:$0xff] %v6037_v1  ;;  %1892 = vmatprep.subr.mxu0 %v6037_v1 }
  0x2b   : > { %2888 = vst [vmem:[#allocation3 + $0x50] sm:$0xff] %v6037_v1  ;;  %2889 = vst [vmem:[#allocation3 + $0x58] sm:$0x3] %v6037_v1  ;;  %1893 = vmatpush1.msra.mxu0 %v1706_v56  ;;  %v1725_v56 = vld [vmem:[%s9528_s1 + $0xb8] sm:$0xff] }
  0x2c   : > { %2890 = vst [vmem:[#allocation3 + $0x60] sm:$0xff] %v6037_v1  ;;  %2891 = vst [vmem:[#allocation3 + $0x68] sm:$0xff] %v6037_v1  ;;  %1894 = vmatprep.subr.mxu0 %v6037_v1 }
  0x2d   : > { %2892 = vst [vmem:[#allocation3 + $0x70] sm:$0x3] %v6037_v1  ;;  %2893 = vst [vmem:[#allocation3 + $0x78] sm:$0xff] %v6037_v1  ;;  %1895 = vmatpush1.msra.mxu0 %v1705_v59 }
  0x2e   : > { %2894 = vst [vmem:[#allocation3 + $0x80] sm:$0xff] %v6037_v1  ;;  %2895 = vst [vmem:[#allocation3 + $0x88] sm:$0x3] %v6037_v1  ;;  %1896 = vmatprep.subr.mxu0 %v6037_v1 }
  0x2f   : > { %2896 = vst [vmem:[#allocation3 + $0x90] sm:$0xff] %v6037_v1  ;;  %2897 = vst [vmem:[#allocation3 + $0x98] sm:$0xff] %v6037_v1  ;;  %1897 = vmatpush1.msra.mxu0 %v1704_v62  ;;  %v1739_v62 = vld [vmem:[%s9528_s1 + $0x128] sm:$0xff] }
  0x30   : > { %2898 = vst [vmem:[#allocation3 + $0xa0] sm:$0x3] %v6037_v1  ;;  %2899 = vst [vmem:[#allocation3 + $0xa8] sm:$0xff] %v6037_v1  ;;  %1898 = vmatprep.subr.mxu0 %v6037_v1 }
  0x31   : > { %2900 = vst [vmem:[#allocation3 + $0xb0] sm:$0xff] %v6037_v1  ;;  %2901 = vst [vmem:[#allocation3 + $0xb8] sm:$0x3] %v6037_v1  ;;  %1899 = vmatpush1.msra.mxu0 %v1703_v3 }
  0x32   : > { %2902 = vst [vmem:[#allocation3 + $0xc0] sm:$0xff] %v6037_v1  ;;  %2903 = vst [vmem:[#allocation3 + $0xc8] sm:$0xff] %v6037_v1  ;;  %1900 = vmatprep.subr.mxu0 %v6037_v1 }
  0x33   : > { %2904 = vst [vmem:[#allocation3 + $0xd0] sm:$0x3] %v6037_v1  ;;  %2905 = vst [vmem:[#allocation3 + $0xd8] sm:$0xff] %v6037_v1 }
  0x34   : > { %2906 = vst [vmem:[#allocation3 + $0xe0] sm:$0xff] %v6037_v1  ;;  %2907 = vst [vmem:[#allocation3 + $0xe8] sm:$0x3] %v6037_v1 }
  0x35   : > { %2908 = vst [vmem:[#allocation3 + $0xf0] sm:$0xff] %v6037_v1  ;;  %2909 = vst [vmem:[#allocation3 + $0xf8] sm:$0xff] %v6037_v1 }
  0x36   : > { %2910 = vst [vmem:[#allocation3 + $0x100] sm:$0x3] %v6037_v1  ;;  %2911 = vst [vmem:[#allocation3 + $0x108] sm:$0xff] %v6037_v1 }
  0x37   : > { %2912 = vst [vmem:[#allocation3 + $0x110] sm:$0xff] %v6037_v1  ;;  %2913 = vst [vmem:[#allocation3 + $0x118] sm:$0x3] %v6037_v1 }
  0x38   : > { %2914 = vst [vmem:[#allocation3 + $0x120] sm:$0xff] %v6037_v1  ;;  %2915 = vst [vmem:[#allocation3 + $0x128] sm:$0xff] %v6037_v1 }
  0x39   : > { %2916 = vst [vmem:[#allocation3 + $0x130] sm:$0x3] %v6037_v1  ;;  %2917 = vst [vmem:[#allocation3 + $0x138] sm:$0xff] %v6037_v1 }
  0x3a   : > { %2918 = vst [vmem:[#allocation3 + $0x140] sm:$0xff] %v6037_v1  ;;  %2919 = vst [vmem:[#allocation3 + $0x148] sm:$0x3] %v6037_v1 }
  0x3b   : > { %2920 = vst [vmem:[#allocation3 + $0x150] sm:$0xff] %v6037_v1  ;;  %2921 = vst [vmem:[#allocation3 + $0x158] sm:$0xff] %v6037_v1 }
  0x3c   : > { %2922 = vst [vmem:[#allocation3 + $0x160] sm:$0x3] %v6037_v1  ;;  %2923 = vst [vmem:[#allocation3 + $0x168] sm:$0xff] %v6037_v1 }
  0x3d   : > { %2924 = vst [vmem:[#allocation3 + $0x170] sm:$0xff] %v6037_v1  ;;  %2925 = vst [vmem:[#allocation3 + $0x178] sm:$0x3] %v6037_v1 }
  0x3e   : > { %2926 = vst [vmem:[#allocation3 + $0x180] sm:$0xff] %v6037_v1  ;;  %2927 = vst [vmem:[#allocation3 + $0x188] sm:$0xff] %v6037_v1 }
  0x3f   : > { %2928 = vst [vmem:[#allocation3 + $0x190] sm:$0x3] %v6037_v1  ;;  %2929 = vst [vmem:[#allocation3 + $0x198] sm:$0xff] %v6037_v1 }
  0x40   : > { %2930 = vst [vmem:[#allocation3 + $0x1a0] sm:$0xff] %v6037_v1  ;;  %2931 = vst [vmem:[#allocation3 + $0x1a8] sm:$0x3] %v6037_v1 }
  0x41   : > { %335 = vst.msk [vmem:[#allocation2 + $0x10] sm:$0x3] %vm334_vm1, %v6037_v1  ;;  %338 = vst.msk [vmem:[#allocation2 + $0x28] sm:$0x3] %vm334_vm1, %v6037_v1 }
  0x42   : > { %341 = vst.msk [vmem:[#allocation2 + $0x40] sm:$0x3] %vm334_vm1, %v6037_v1  ;;  %344 = vst.msk [vmem:[#allocation2 + $0x58] sm:$0x3] %vm334_vm1, %v6037_v1 }
  0x43   : > { %347 = vst.msk [vmem:[#allocation2 + $0x70] sm:$0x3] %vm334_vm1, %v6037_v1  ;;  %350 = vst.msk [vmem:[#allocation2 + $0x88] sm:$0x3] %vm334_vm1, %v6037_v1 }
  0x44   : > { %353 = vst.msk [vmem:[#allocation2 + $0xa0] sm:$0x3] %vm334_vm1, %v6037_v1  ;;  %356 = vst.msk [vmem:[#allocation2 + $0xb8] sm:$0x3] %vm334_vm1, %v6037_v1 }
  0x45   : > { %359 = vst.msk [vmem:[#allocation2 + $0xd0] sm:$0x3] %vm334_vm1, %v6037_v1  ;;  %362 = vst.msk [vmem:[#allocation2 + $0xe8] sm:$0x3] %vm334_vm1, %v6037_v1 }
  0x46   : > { %365 = vst.msk [vmem:[#allocation2 + $0x100] sm:$0x3] %vm334_vm1, %v6037_v1  ;;  %368 = vst.msk [vmem:[#allocation2 + $0x118] sm:$0x3] %vm334_vm1, %v6037_v1 }
  0x47   : > { %371 = vst.msk [vmem:[#allocation2 + $0x130] sm:$0x3] %vm334_vm1, %v6037_v1  ;;  %374 = vst.msk [vmem:[#allocation2 + $0x148] sm:$0x3] %vm334_vm1, %v6037_v1 }
  0x48   : > { %377 = vst.msk [vmem:[#allocation2 + $0x160] sm:$0x3] %vm334_vm1, %v6037_v1  ;;  %380 = vst.msk [vmem:[#allocation2 + $0x178] sm:$0x3] %vm334_vm1, %v6037_v1  ;;  %v517_v13 = vld [vmem:[#allocation2 + $0x9] sm:$0xff] }
  0x49   : > { %383 = vst.msk [vmem:[#allocation2 + $0x190] sm:$0x3] %vm334_vm1, %v6037_v1  ;;  %386 = vst.msk [vmem:[#allocation2 + $0x1a8] sm:$0x3] %vm334_vm1, %v6037_v1  ;;  %582 = vrot.lane.b32.xlu1 %v517_v13, %s6038_s26  ;;  %v411_v13 = vld [vmem:[%s6326_s16 + $0xc0] sm:$0xff] }
  0x4a   : > { %420 = vst.msk [vmem:[#allocation2 + $0x19] sm:$0xff] %vm331_vm0, %v387_v5  ;;  %421 = vst.msk [vmem:[#allocation2 + $0x21] sm:$0xff] %vm331_vm0, %v388_v6  ;;  %v709_v6 = vld [vmem:[#allocation2 + $0x2] sm:$0xff] }
  0x4b   : > { %422 = vst.msk [vmem:[#allocation2 + $0x31] sm:$0xff] %vm331_vm0, %v389_v7  ;;  %423 = vst.msk [vmem:[#allocation2 + $0x39] sm:$0xff] %vm331_vm0, %v390_v9  ;;  %v710_v7 = vld [vmem:[#allocation2 + $0xa] sm:$0xff]  ;;  %v410_v9 = vld [vmem:[%s6326_s16 + $0xb8] sm:$0xff] }
  0x4c   : > { %424 = vst.msk [vmem:[#allocation2 + $0x49] sm:$0xff] %vm331_vm0, %v391_v10  ;;  %425 = vst.msk [vmem:[#allocation2 + $0x51] sm:$0xff] %vm331_vm0, %v392_v11  ;;  %v1702_v10 = vld [vmem:[%s9528_s1] sm:$0xff] }
  0x4d   : > { %426 = vst.msk [vmem:[#allocation2 + $0x61] sm:$0xff] %vm331_vm0, %v393_v14  ;;  %427 = vst.msk [vmem:[#allocation2 + $0x69] sm:$0xff] %vm331_vm0, %v394_v16  ;;  %v1749_v14 = vld [vmem:[%s9528_s1 + $0x178] sm:$0xff]  ;;  %1901 = vmatpush1.msra.mxu0 %v1702_v10 }
  0x4e   : > { %428 = vst.msk [vmem:[#allocation2 + $0x79] sm:$0xff] %vm331_vm0, %v395_v17  ;;  %484 = vst.msk [vmem:[#allocation4] sm:$0xff] %vm331_vm0, %v452_v18  ;;  %2096 = vmatpush1.msra.mxu1 %v1749_v14  ;;  %1902 = vmatprep.subr.mxu0 %v6037_v1  ;;  %v412_v18 = vld [vmem:[%s6326_s16 + $0xc8] sm:$0xff]  ;;  %v1737_v14 = vld [vmem:[%s9528_s1 + $0x118] sm:$0xff] }
  0x4f   : > { %429 = vst.msk [vmem:[#allocation2 + $0x81] sm:$0xff] %vm331_vm0, %v396_v19  ;;  %430 = vst.msk [vmem:[#allocation2 + $0x91] sm:$0xff] %vm331_vm0, %v397_v20  ;;  %2097 = vmatprep.subr.mxu1 %v6037_v1  ;;  %1903 = vmatpush2.msra.mxu0 %v1733_v12  ;;  %v1732_v19 = vld [vmem:[%s9528_s1 + $0xf0] sm:$0xff]  ;;  %v1747_v20 = vld [vmem:[%s9528_s1 + $0x168] sm:$0xff] }
  0x50   : > { %431 = vst.msk [vmem:[#allocation2 + $0x99] sm:$0xff] %vm331_vm0, %v398_v21  ;;  %432 = vst.msk [vmem:[#allocation2 + $0xa9] sm:$0xff] %vm331_vm0, %v399_v22  ;;  %2098 = vmatpush1.msra.mxu1 %v1748_v15  ;;  %v413_v22 = vld [vmem:[%s6326_s16 + $0xd0] sm:$0xff]  ;;  %1904 = vmatprep.subr.mxu0 %v6037_v1 }
  0x51   : > { %433 = vst.msk [vmem:[#allocation2 + $0xb1] sm:$0xff] %vm331_vm0, %v400_v23  ;;  %434 = vst.msk [vmem:[#allocation2 + $0xc1] sm:$0xff] %vm331_vm0, %v401_v24  ;;  %v773_v32 = vld [vmem:[#allocation2 + $0x18] sm:$0xff]  ;;  %v774_v33 = vld [vmem:[#allocation2 + $0x20] sm:$0xff]  ;;  %2099 = vmatprep.subr.mxu1 %v6037_v1  ;;  %1905 = vmatpush2.msra.mxu0 %v1732_v19 }
  0x52   : > { %435 = vst.msk [vmem:[#allocation2 + $0xc9] sm:$0xff] %vm331_vm0, %v402_v26  ;;  %436 = vst.msk [vmem:[#allocation2 + $0xd9] sm:$0xff] %vm331_vm0, %v403_v27  ;;  %v775_v34 = vld [vmem:[#allocation2 + $0x30] sm:$0xff]  ;;  %837 = vrot.lane.b32.xlu0 %v773_v32, %s6038_s26  ;;  %839 = vrot.lane.b32.xlu1 %v774_v33, %s6038_s26  ;;  %v776_v35 = vld [vmem:[#allocation2 + $0x38] sm:$0xff] }
  0x53   : > { %437 = vst.msk [vmem:[#allocation2 + $0xe1] sm:$0xff] %vm331_vm0, %v404_v28  ;;  %438 = vst.msk [vmem:[#allocation2 + $0xf1] sm:$0xff] %vm331_vm0, %v405_v29  ;;  %v518_v37 = vld [vmem:[#allocation2 + $0x19] sm:$0xff]  ;;  %v777_v38 = vld [vmem:[#allocation2 + $0x48] sm:$0xff]  ;;  %2100 = vmatpush1.msra.mxu1 %v1747_v20  ;;  %1906 = vmatprep.subr.mxu0 %v6037_v1 }
  0x54   : > { %439 = vst.msk [vmem:[#allocation2 + $0xf9] sm:$0xff] %vm331_vm0, %v406_v30  ;;  %440 = vst.msk [vmem:[#allocation2 + $0x109] sm:$0xff] %vm331_vm0, %v407_v31  ;;  %v778_v39 = vld [vmem:[#allocation2 + $0x50] sm:$0xff]  ;;  %v6399_v40 = vld [vmem:[#allocation2 + $0x60] sm:$0xff]  ;;  %2101 = vmatprep.subr.mxu1 %v6037_v1  ;;  %1907 = vmatpush2.msra.mxu0 %v1731_v25 }
  0x55   : > { %486 = vst.msk [vmem:[#allocation4 + $0x50] sm:$0xff] %vm331_vm0, %v773_v32  ;;  %487 = vst.msk [vmem:[#allocation4 + $0x78] sm:$0xff] %vm331_vm0, %v774_v33  ;;  %v6404_v41 = vld [vmem:[#allocation2 + $0x68] sm:$0xff]  ;;  %v6406_v42 = vld [vmem:[#allocation2 + $0x78] sm:$0xff]  ;;  %1908 = vmatprep.subr.mxu0 %v6037_v1 }
  0x56   : > { %488 = vst.msk [vmem:[#allocation4 + $0xa0] sm:$0xff] %vm331_vm0, %v775_v34  ;;  %489 = vst.msk [vmem:[#allocation4 + $0xc8] sm:$0xff] %vm331_vm0, %v776_v35  ;;  %841 = vrot.lane.b32.xlu0 %v775_v34, %s6038_s26  ;;  %584 = vrot.lane.b32.xlu1 %v518_v37, %s6038_s26  ;;  %v6415_v44 = vld [vmem:[#allocation2 + $0x80] sm:$0xff]  ;;  %v6421_v46 = vld [vmem:[#allocation2 + $0x90] sm:$0xff] }
  0x57   : > { %490 = vst.msk [vmem:[#allocation4 + $0xf0] sm:$0xff] %vm331_vm0, %v777_v38  ;;  %491 = vst.msk [vmem:[#allocation4 + $0x118] sm:$0xff] %vm331_vm0, %v778_v39  ;;  %v519_v45 = vld [vmem:[#allocation2 + $0x21] sm:$0xff]  ;;  %v6423_v47 = vld [vmem:[#allocation2 + $0x98] sm:$0xff] }
  0x58   : > { %492 = vst.msk [vmem:[#allocation4 + $0x140] sm:$0xff] %vm331_vm0, %v6399_v40  ;;  %493 = vst.msk [vmem:[#allocation4 + $0x168] sm:$0xff] %vm331_vm0, %v6404_v41  ;;  %v6428_v48 = vld [vmem:[#allocation2 + $0xa8] sm:$0xff]  ;;  %v6437_v50 = vld [vmem:[#allocation2 + $0xb0] sm:$0xff] }
  0x59   : > { %494 = vst.msk [vmem:[#allocation4 + $0x190] sm:$0xff] %vm331_vm0, %v6406_v42  ;;  %495 = vst.msk [vmem:[#allocation4 + $0x1b8] sm:$0xff] %vm331_vm0, %v6415_v44  ;;  %v6449_v52 = vld [vmem:[#allocation2 + $0x31] sm:$0xff]  ;;  %v6451_v53 = vld [vmem:[#allocation2 + $0x1a] sm:$0xff] }
  0x5a   : > { %496 = vst.msk [vmem:[#allocation4 + $0x1e0] sm:$0xff] %vm331_vm0, %v6421_v46  ;;  %497 = vst.msk [vmem:[#allocation4 + $0x208] sm:$0xff] %vm331_vm0, %v6423_v47  ;;  %843 = vrot.lane.b32.xlu0 %v776_v35, %s6038_s26  ;;  %586 = vrot.lane.b32.xlu1 %v519_v45, %s6038_s26  ;;  %v6453_v54 = vld [vmem:[#allocation2 + $0x22] sm:$0xff]  ;;  %v6458_v55 = vld [vmem:[#allocation2 + $0x32] sm:$0xff] }
  0x5b   : > { %498 = vst.msk [vmem:[#allocation4 + $0x230] sm:$0xff] %vm331_vm0, %v6428_v48  ;;  %499 = vst.msk [vmem:[#allocation4 + $0x258] sm:$0xff] %vm331_vm0, %v6437_v50  ;;  %v6468_v57 = vld [vmem:[#allocation2 + $0x3a] sm:$0xff]  ;;  %v6480_v60 = vld [vmem:[#allocation2 + $0x4a] sm:$0xff] }
  0x5c   : > { %743 = vst.msk [vmem:[#allocation4 + $0x58] sm:$0xff] %vm331_vm0, %v6451_v53  ;;  %744 = vst.msk [vmem:[#allocation4 + $0x80] sm:$0xff] %vm331_vm0, %v6453_v54  ;;  %v6472_v58 = vld [vmem:[#allocation2 + $0x39] sm:$0xff]  ;;  %v6493_v63 = vld [vmem:[#allocation2 + $0x49] sm:$0xff] }
  0x5d   : > { %745 = vst.msk [vmem:[#allocation4 + $0xa8] sm:$0xff] %vm331_vm0, %v6458_v55  ;;  %746 = vst.msk [vmem:[#allocation4 + $0xd0] sm:$0xff] %vm331_vm0, %v6468_v57  ;;  %v6495_v0 = vld [vmem:[#allocation2 + $0x52] sm:$0xff]  ;;  %v6505_v5 = vld [vmem:[#allocation2 + $0x62] sm:$0xff] }
  0x5e   : > { %845 = vrot.lane.b32.xlu0 %v777_v38, %s6038_s26  ;;  %588 = vrot.lane.b32.xlu1 %v6449_v52, %s6038_s26  ;;  %747 = vst.msk [vmem:[#allocation4 + $0xf8] sm:$0xff] %vm331_vm0, %v6480_v60  ;;  %441 = vst.msk [vmem:[#allocation2 + $0x111] sm:$0xff] %vm331_vm0, %v408_v61  ;;  %v6514_v8 = vld [vmem:[#allocation2 + $0x51] sm:$0xff]  ;;  %v6544_v16 = vld [vmem:[#allocation2 + $0x7a] sm:$0xff] }
  0x5f   : > { %442 = vst.msk [vmem:[#allocation2 + $0x121] sm:$0xff] %vm331_vm0, %v409_v2  ;;  %748 = vst.msk [vmem:[#allocation4 + $0x120] sm:$0xff] %vm331_vm0, %v6495_v0  ;;  %v6524_v11 = vld [vmem:[#allocation2 + $0x6a] sm:$0xff]  ;;  %v6546_v17 = vld [vmem:[#allocation2 + $0x61] sm:$0xff] }
  0x60   : > { %485 = vst.msk [vmem:[#allocation4 + $0x28] sm:$0xff] %vm331_vm0, %v453_v4  ;;  %749 = vst.msk [vmem:[#allocation4 + $0x148] sm:$0xff] %vm331_vm0, %v6505_v5  ;;  %v6560_v21 = vld [vmem:[#allocation2 + $0x82] sm:$0xff]  ;;  %v6567_v23 = vld [vmem:[#allocation2 + $0x92] sm:$0xff] }
  0x61   : > { %741 = vst.msk [vmem:[#allocation4 + $0x8] sm:$0xff] %vm331_vm0, %v709_v6  ;;  %742 = vst.msk [vmem:[#allocation4 + $0x30] sm:$0xff] %vm331_vm0, %v710_v7  ;;  %v6571_v24 = vld [vmem:[#allocation2 + $0x69] sm:$0xff]  ;;  %v1746_v26 = vld [vmem:[%s9528_s1 + $0x160] sm:$0xff] }
  0x62   : > { %847 = vrot.lane.b32.xlu0 %v778_v39, %s6038_s26  ;;  %590 = vrot.lane.b32.xlu1 %v6472_v58, %s6038_s26  ;;  %443 = vst.msk [vmem:[#allocation2 + $0x129] sm:$0xff] %vm331_vm0, %v410_v9  ;;  %750 = vst.msk [vmem:[#allocation4 + $0x170] sm:$0xff] %vm331_vm0, %v6524_v11  ;;  %v414_v27 = vld [vmem:[%s6326_s16 + $0xd8] sm:$0xff]  ;;  %v1730_v28 = vld [vmem:[%s9528_s1 + $0xe0] sm:$0xff] }
  0x63   : > { %444 = vst.msk [vmem:[#allocation2 + $0x139] sm:$0xff] %vm331_vm0, %v411_v13  ;;  %751 = vst.msk [vmem:[#allocation4 + $0x198] sm:$0xff] %vm331_vm0, %v6544_v16  ;;  %v1745_v29 = vld [vmem:[%s9528_s1 + $0x158] sm:$0xff]  ;;  %2102 = vmatpush1.msra.mxu1 %v1746_v26  ;;  %v415_v32 = vld [vmem:[%s6326_s16 + $0xe0] sm:$0xff]  ;;  %1909 = vmatpush2.msra.mxu0 %v1730_v28 }
  0x64   : > { %445 = vst.msk [vmem:[#allocation2 + $0x141] sm:$0xff] %vm331_vm0, %v412_v18  ;;  %752 = vst.msk [vmem:[#allocation4 + $0x1c0] sm:$0xff] %vm331_vm0, %v6560_v21  ;;  %v6598_v30 = vld [vmem:[#allocation2 + $0x9a] sm:$0xff]  ;;  %2103 = vmatprep.subr.mxu1 %v6037_v1  ;;  %v1744_v34 = vld [vmem:[%s9528_s1 + $0x150] sm:$0xff]  ;;  %1910 = vmatprep.subr.mxu0 %v6037_v1 }
  0x65   : > { %446 = vst.msk [vmem:[#allocation2 + $0x151] sm:$0xff] %vm331_vm0, %v413_v22  ;;  %753 = vst.msk [vmem:[#allocation4 + $0x1e8] sm:$0xff] %vm331_vm0, %v6567_v23  ;;  %v6600_v31 = vld [vmem:[#allocation2 + $0x79] sm:$0xff]  ;;  %2104 = vmatpush1.msra.mxu1 %v1745_v29  ;;  %v6614_v35 = vld [vmem:[#allocation2 + $0xaa] sm:$0xff] }
  0x66   : > { %849 = vrot.lane.b32.xlu0 %v6399_v40, %s6038_s26  ;;  %592 = vrot.lane.b32.xlu1 %v6493_v63, %s6038_s26  ;;  %447 = vst.msk [vmem:[#allocation2 + $0x159] sm:$0xff] %vm331_vm0, %v414_v27  ;;  %754 = vst.msk [vmem:[#allocation4 + $0x210] sm:$0xff] %vm331_vm0, %v6598_v30  ;;  %v1729_v33 = vld [vmem:[%s9528_s1 + $0xd8] sm:$0xff]  ;;  %v6622_v36 = vld [vmem:[#allocation2 + $0x81] sm:$0xff] }
  0x67   : > { %448 = vst.msk [vmem:[#allocation2 + $0x169] sm:$0xff] %vm331_vm0, %v415_v32  ;;  %755 = vst.msk [vmem:[#allocation4 + $0x238] sm:$0xff] %vm331_vm0, %v6614_v35  ;;  %2105 = vmatprep.subr.mxu1 %v6037_v1  ;;  %v416_v37 = vld [vmem:[%s6326_s16 + $0xe8] sm:$0xff]  ;;  %v417_v38 = vld [vmem:[%s6326_s16 + $0xf0] sm:$0xff]  ;;  %1911 = vmatpush2.msra.mxu0 %v1729_v33 }
  0x68   : > { %v1728_v39 = vld [vmem:[%s9528_s1 + $0xd0] sm:$0xff]  ;;  %2106 = vmatpush1.msra.mxu1 %v1744_v34  ;;  %v1743_v40 = vld [vmem:[%s9528_s1 + $0x148] sm:$0xff]  ;;  %449 = vst.msk [vmem:[#allocation2 + $0x171] sm:$0xff] %vm331_vm0, %v416_v37  ;;  %450 = vst.msk [vmem:[#allocation2 + $0x181] sm:$0xff] %vm331_vm0, %v417_v38  ;;  %1912 = vmatprep.subr.mxu0 %v6037_v1 }
  0x69   : > { %2107 = vmatprep.subr.mxu1 %v6037_v1  ;;  %v6648_v43 = vld [vmem:[#allocation2 + $0xb2] sm:$0xff]  ;;  %1913 = vmatpush2.msra.mxu0 %v1728_v39  ;;  %v1726_v45 = vld [vmem:[%s9528_s1 + $0xc0] sm:$0xff]  ;;  %v6696_v3 = vld [vmem:[#allocation2 + $0xa9] sm:$0xff] }
  0x6a   : > { %851 = vrot.lane.b32.xlu0 %v6404_v41, %s6038_s26  ;;  %594 = vrot.lane.b32.xlu1 %v6514_v8, %s6038_s26  ;;  %v1727_v41 = vld [vmem:[%s9528_s1 + $0xc8] sm:$0xff]  ;;  %756 = vst.msk [vmem:[#allocation4 + $0x260] sm:$0xff] %vm331_vm0, %v6648_v43  ;;  %v6668_v49 = vld [vmem:[#allocation2 + $0x99] sm:$0xff]  ;;  %v1724_v61 = vld [vmem:[%s9528_s1 + $0xb0] sm:$0xff] }
  0x6b   : > { %2108 = vmatpush1.msra.mxu1 %v1743_v40  ;;  %1914 = vmatprep.subr.mxu0 %v6037_v1  ;;  %v6672_v51 = vld [vmem:[#allocation2 + $0xc2] sm:$0xff]  ;;  %v1222_v4 = vld [vmem:[#allocation2 + $0x30] sm:$0xff]  ;;  %v1721_v18 = vld [vmem:[%s9528_s1 + $0x98] sm:$0xff] }
  0x6c   : > { %2109 = vmatprep.subr.mxu1 %v6037_v1  ;;  %1915 = vmatpush2.msra.mxu0 %v1727_v41  ;;  %757 = vst.msk [vmem:[#allocation4 + $0x288] sm:$0xff] %vm331_vm0, %v6672_v51  ;;  %v468_v59 = vld [vmem:[#allocation2 + $0xc0] sm:$0xff]  ;;  %1254 = vst.msk [vmem:[#allocation4 + $0x18] sm:$0xff] %vm331_vm0, %v1222_v4  ;;  %v1723_v6 = vld [vmem:[%s9528_s1 + $0xa8] sm:$0xff] }
  0x6d   : > { %1916 = vmatprep.subr.mxu0 %v6037_v1  ;;  %500 = vst.msk [vmem:[#allocation4 + $0x280] sm:$0xff] %vm331_vm0, %v468_v59  ;;  %1266 = vst.msk [vmem:[#allocation4 + $0x1f8] sm:$0xff] %vm331_vm0, %v468_v59  ;;  %v787_v2 = vld [vmem:[#allocation2 + $0xc0] sm:$0xff]  ;;  %v788_v9 = vld [vmem:[#allocation2 + $0xc8] sm:$0xff] }
  0x6e   : > { %853 = vrot.lane.b32.xlu0 %v6406_v42, %s6038_s26  ;;  %596 = vrot.lane.b32.xlu1 %v6546_v17, %s6038_s26  ;;  %v1742_v42 = vld [vmem:[%s9528_s1 + $0x140] sm:$0xff]  ;;  %v6711_v10 = vld [vmem:[#allocation2 + $0xb1] sm:$0xff]  ;;  %v469_v15 = vld [vmem:[#allocation2 + $0xc8] sm:$0xff] }
  0x6f   : > { %2110 = vmatpush1.msra.mxu1 %v1742_v42  ;;  %1917 = vmatpush2.msra.mxu0 %v1726_v45  ;;  %v1738_v7 = vld [vmem:[%s9528_s1 + $0x120] sm:$0xff]  ;;  %v6715_v12 = vld [vmem:[#allocation2 + $0xca] sm:$0xff]  ;;  %501 = vst.msk [vmem:[#allocation4 + $0x2a8] sm:$0xff] %vm331_vm0, %v469_v15  ;;  %1267 = vst.msk [vmem:[#allocation4 + $0x220] sm:$0xff] %vm331_vm0, %v469_v15 }
  0x70   : > { %2111 = vmatprep.subr.mxu1 %v6037_v1  ;;  %1918 = vmatprep.subr.mxu0 %v6037_v1  ;;  %v1722_v13 = vld [vmem:[%s9528_s1 + $0xa0] sm:$0xff]  ;;  %758 = vst.msk [vmem:[#allocation4 + $0x2b0] sm:$0xff] %vm331_vm0, %v6715_v12  ;;  %v1736_v19 = vld [vmem:[%s9528_s1 + $0x110] sm:$0xff]  ;;  %v789_v20 = vld [vmem:[#allocation2 + $0xd8] sm:$0xff] }
  0x71   : > { %1919 = vmatpush2.msra.mxu0 %v1725_v56  ;;  %v6738_v22 = vld [vmem:[#allocation2 + $0xc1] sm:$0xff]  ;;  %v1223_v25 = vld [vmem:[#allocation2 + $0x38] sm:$0xff]  ;;  %v1720_v27 = vld [vmem:[%s9528_s1 + $0x90] sm:$0xff] }
  0x72   : > { %855 = vrot.lane.b32.xlu0 %v6415_v44, %s6038_s26  ;;  %598 = vrot.lane.b32.xlu1 %v6571_v24, %s6038_s26  ;;  %v6650_v44 = vld [vmem:[#allocation2 + $0x91] sm:$0xff]  ;;  %1255 = vst.msk [vmem:[#allocation4 + $0x40] sm:$0xff] %vm331_vm0, %v1223_v25  ;;  %v966_v26 = vld [vmem:[#allocation2 + $0x21] sm:$0xff]  ;;  %v6781_v41 = vld [vmem:[#allocation2 + $0xc9] sm:$0xff] }
  0x73   : > { %1920 = vmatprep.subr.mxu0 %v6037_v1  ;;  %v1735_v28 = vld [vmem:[%s9528_s1 + $0x108] sm:$0xff]  ;;  %998 = vst.msk [vmem:[#allocation4 + $0x38] sm:$0xff] %vm331_vm0, %v966_v26  ;;  %v6755_v29 = vld [vmem:[#allocation2 + $0xda] sm:$0xff]  ;;  %v1764_v42 = vld [vmem:[%s9528_s1 + $0x1f0] sm:$0xff] }
  0x74   : > { %1921 = vmatpush2.msra.mxu0 %v1724_v61  ;;  %v1719_v32 = vld [vmem:[%s9528_s1 + $0x88] sm:$0xff]  ;;  %v1734_v33 = vld [vmem:[%s9528_s1 + $0x100] sm:$0xff]  ;;  %759 = vst.msk [vmem:[#allocation4 + $0x2d8] sm:$0xff] %vm331_vm0, %v6755_v29  ;;  %v470_v34 = vld [vmem:[#allocation2 + $0xd8] sm:$0xff] }
  0x75   : > { %1922 = vmatprep.subr.mxu0 %v6037_v1  ;;  %v1718_v37 = vld [vmem:[%s9528_s1 + $0x80] sm:$0xff]  ;;  %v1765_v38 = vld [vmem:[%s9528_s1 + $0x1f8] sm:$0xff]  ;;  %502 = vst.msk [vmem:[#allocation4 + $0x2d0] sm:$0xff] %vm331_vm0, %v470_v34  ;;  %1268 = vst.msk [vmem:[#allocation4 + $0x248] sm:$0xff] %vm331_vm0, %v470_v34 }
  0x76   : > { %857 = vrot.lane.b32.xlu0 %v6421_v46, %s6038_s26  ;;  %600 = vrot.lane.b32.xlu1 %v6600_v31, %s6038_s26  ;;  %v1741_v46 = vld [vmem:[%s9528_s1 + $0x138] sm:$0xff]  ;;  %v6778_v39 = vld [vmem:[#allocation2 + $0xe2] sm:$0xff]  ;;  %v791_v61 = vld [vmem:[#allocation2 + $0xf0] sm:$0xff] }
  0x77   : > { %2112 = vmatpush1.msra.mxu1 %v1741_v46  ;;  %1923 = vmatpush2.msra.mxu0 %v1723_v6  ;;  %v790_v40 = vld [vmem:[#allocation2 + $0xe0] sm:$0xff]  ;;  %760 = vst.msk [vmem:[#allocation4 + $0x300] sm:$0xff] %vm331_vm0, %v6778_v39  ;;  %v967_v45 = vld [vmem:[#allocation2 + $0x31] sm:$0xff] }
  0x78   : > { %2113 = vmatprep.subr.mxu1 %v6037_v1  ;;  %1924 = vmatprep.subr.mxu0 %v6037_v1  ;;  %999 = vst.msk [vmem:[#allocation4 + $0x60] sm:$0xff] %vm331_vm0, %v967_v45  ;;  %v6800_v46 = vld [vmem:[#allocation2 + $0xf2] sm:$0xff]  ;;  %v471_v56 = vld [vmem:[#allocation2 + $0xe0] sm:$0xff]  ;;  %v6834_v4 = vld [vmem:[#allocation2 + $0x10a] sm:$0xff] }
  0x79   : > { %1925 = vmatpush2.msra.mxu0 %v1722_v13  ;;  %761 = vst.msk [vmem:[#allocation4 + $0x328] sm:$0xff] %vm331_vm0, %v6800_v46  ;;  %503 = vst.msk [vmem:[#allocation4 + $0x2f8] sm:$0xff] %vm331_vm0, %v471_v56  ;;  %v6818_v59 = vld [vmem:[#allocation2 + $0xfa] sm:$0xff]  ;;  %v472_v6 = vld [vmem:[#allocation2 + $0xf0] sm:$0xff] }
  0x7a   : > { %859 = vrot.lane.b32.xlu0 %v6423_v47, %s6038_s26  ;;  %602 = vrot.lane.b32.xlu1 %v6622_v36, %s6038_s26  ;;  %v418_v47 = vld [vmem:[%s6326_s16 + $0xf8] sm:$0xff]  ;;  %1269 = vst.msk [vmem:[#allocation4 + $0x270] sm:$0xff] %vm331_vm0, %v471_v56  ;;  %762 = vst.msk [vmem:[#allocation4 + $0x350] sm:$0xff] %vm331_vm0, %v6818_v59  ;;  %v1226_v15 = vld [vmem:[#allocation2 + $0x60] sm:$0xff] }
  0x7b   : > { %451 = vst.msk [vmem:[#allocation2 + $0x189] sm:$0xff] %vm331_vm0, %v418_v47  ;;  %1926 = vmatprep.subr.mxu0 %v6037_v1  ;;  %v1763_v47 = vld [vmem:[%s9528_s1 + $0x1e8] sm:$0xff]  ;;  %763 = vst.msk [vmem:[#allocation4 + $0x378] sm:$0xff] %vm331_vm0, %v6834_v4  ;;  %v792_v13 = vld [vmem:[#allocation2 + $0xf8] sm:$0xff] }
  0x7c   : > { %1927 = vmatpush2.msra.mxu0 %v1721_v18  ;;  %504 = vst.msk [vmem:[#allocation4 + $0x320] sm:$0xff] %vm331_vm0, %v472_v6  ;;  %1270 = vst.msk [vmem:[#allocation4 + $0x298] sm:$0xff] %vm331_vm0, %v472_v6  ;;  %v6867_v18 = vld [vmem:[#allocation2 + $0x122] sm:$0xff]  ;;  %v1756_v25 = vld [vmem:[%s9528_s1 + $0x1b0] sm:$0xff] }
  0x7d   : > { %1928 = vmatprep.subr.mxu0 %v6037_v1  ;;  %1258 = vst.msk [vmem:[#allocation4 + $0xb8] sm:$0xff] %vm331_vm0, %v1226_v15  ;;  %765 = vst.msk [vmem:[#allocation4 + $0x3c8] sm:$0xff] %vm331_vm0, %v6867_v18  ;;  %v6884_v26 = vld [vmem:[#allocation2 + $0x12a] sm:$0xff]  ;;  %v1754_v34 = vld [vmem:[%s9528_s1 + $0x1a0] sm:$0xff] }
  0x7e   : > { %861 = vrot.lane.b32.xlu0 %v6428_v48, %s6038_s26  ;;  %604 = vrot.lane.b32.xlu1 %v6650_v44, %s6038_s26  ;;  %v1740_v48 = vld [vmem:[%s9528_s1 + $0x130] sm:$0xff]  ;;  %766 = vst.msk [vmem:[#allocation4 + $0x3f0] sm:$0xff] %vm331_vm0, %v6884_v26  ;;  %v1228_v45 = vld [vmem:[#allocation2 + $0x78] sm:$0xff]  ;;  %v1751_v56 = vld [vmem:[%s9528_s1 + $0x188] sm:$0xff] }
  0x7f   : > { %2114 = vmatpush1.msra.mxu1 %v1740_v48  ;;  %1929 = vmatpush2.msra.mxu0 %v1720_v27  ;;  %v1762_v48 = vld [vmem:[%s9528_s1 + $0x1e0] sm:$0xff]  ;;  %v793_v27 = vld [vmem:[#allocation2 + $0x108] sm:$0xff]  ;;  %1260 = vst.msk [vmem:[#allocation4 + $0x108] sm:$0xff] %vm331_vm0, %v1228_v45  ;;  %v6977_v15 = vld [vmem:[#allocation2 + $0x172] sm:$0xff] }
  0x80   : > { %2115 = vmatprep.subr.mxu1 %v6037_v1  ;;  %1930 = vmatprep.subr.mxu0 %v6037_v1  ;;  %772 = vst.msk [vmem:[#allocation4 + $0x4e0] sm:$0xff] %vm331_vm0, %v6977_v15 }
  0x81   : > { %2116 = vmatpush1.msra.mxu1 %v1739_v62  ;;  %1931 = vmatpush2.msra.mxu0 %v1719_v32  ;;  %v6821_v62 = vld [vmem:[#allocation2 + $0xd9] sm:$0xff]  ;;  %v970_v32 = vld [vmem:[#allocation2 + $0x51] sm:$0xff] }
  0x82   : > { %863 = vrot.lane.b32.xlu0 %v6437_v50, %s6038_s26  ;;  %606 = vrot.lane.b32.xlu1 %v6668_v49, %s6038_s26  ;;  %v965_v50 = vld [vmem:[#allocation2 + $0x19] sm:$0xff]  ;;  %1002 = vst.msk [vmem:[#allocation4 + $0xd8] sm:$0xff] %vm331_vm0, %v970_v32  ;;  %v7002_v32 = vld [vmem:[#allocation2 + $0x18a] sm:$0xff] }
  0x83   : > { %997 = vst.msk [vmem:[#allocation4 + $0x10] sm:$0xff] %vm331_vm0, %v965_v50  ;;  %2117 = vmatprep.subr.mxu1 %v6037_v1  ;;  %1932 = vmatprep.subr.mxu0 %v6037_v1  ;;  %v1760_v50 = vld [vmem:[%s9528_s1 + $0x1d0] sm:$0xff]  ;;  %1539 = vst.msk [vmem:[#allocation4 + $0x4a8] sm:$0xff] %vm331_vm0, %v7002_v32 }
  0x84   : > { %2118 = vmatpush1.msra.mxu1 %v1738_v7  ;;  %1933 = vmatpush2.msra.mxu0 %v1718_v37  ;;  %v1759_v7 = vld [vmem:[%s9528_s1 + $0x1c8] sm:$0xff] }
  0x85   : > { %2119 = vmatprep.subr.mxu1 %v6037_v1  ;;  %v474_v37 = vld [vmem:[#allocation2 + $0x108] sm:$0xff] }
  0x86   : > { %865 = vrot.lane.b32.xlu0 %v787_v2, %s6038_s26  ;;  %608 = vrot.lane.b32.xlu1 %v6696_v3, %s6038_s26  ;;  %v1225_v2 = vld [vmem:[#allocation2 + $0x50] sm:$0xff]  ;;  %506 = vst.msk [vmem:[#allocation4 + $0x370] sm:$0xff] %vm331_vm0, %v474_v37  ;;  %1272 = vst.msk [vmem:[#allocation4 + $0x2e8] sm:$0xff] %vm331_vm0, %v474_v37  ;;  %v1231_v37 = vld [vmem:[#allocation2 + $0x98] sm:$0xff] }
  0x87   : > { %2120 = vmatpush1.msra.mxu1 %v1737_v14  ;;  %1257 = vst.msk [vmem:[#allocation4 + $0x90] sm:$0xff] %vm331_vm0, %v1225_v2  ;;  %v6854_v14 = vld [vmem:[#allocation2 + $0xe1] sm:$0xff]  ;;  %1263 = vst.msk [vmem:[#allocation4 + $0x180] sm:$0xff] %vm331_vm0, %v1231_v37  ;;  %v1769_v37 = vld [vmem:[%s9528_s1 + $0x218] sm:$0xff] }
  0x88   : > { %2121 = vmatprep.subr.mxu1 %v6037_v1  ;;  %v6952_v2 = vld [vmem:[#allocation2 + $0x15a] sm:$0xff] }
  0x89   : > { %2122 = vmatpush1.msra.mxu1 %v1736_v19  ;;  %v1757_v19 = vld [vmem:[%s9528_s1 + $0x1b8] sm:$0xff]  ;;  %770 = vst.msk [vmem:[#allocation4 + $0x490] sm:$0xff] %vm331_vm0, %v6952_v2 }
  0x8a   : > { %867 = vrot.lane.b32.xlu0 %v788_v9, %s6038_s26  ;;  %610 = vrot.lane.b32.xlu1 %v6711_v10, %s6038_s26  ;;  %v6851_v9 = vld [vmem:[#allocation2 + $0x112] sm:$0xff] }
  0x8b   : > { %2123 = vmatprep.subr.mxu1 %v6037_v1  ;;  %764 = vst.msk [vmem:[#allocation4 + $0x3a0] sm:$0xff] %vm331_vm0, %v6851_v9 }
  0x8c   : > { %2124 = vmatpush1.msra.mxu1 %v1735_v28  ;;  %v6887_v28 = vld [vmem:[#allocation2 + $0xf1] sm:$0xff] }
  0x8d   : > { %2125 = vmatprep.subr.mxu1 %v6037_v1 }
  0x8e   : > { %869 = vrot.lane.b32.xlu0 %v789_v20, %s6038_s26  ;;  %612 = vrot.lane.b32.xlu1 %v6738_v22, %s6038_s26  ;;  %v473_v20 = vld [vmem:[#allocation2 + $0xf8] sm:$0xff] }
  0x8f   : > { %2126 = vmatpush1.msra.mxu1 %v1734_v33  ;;  %505 = vst.msk [vmem:[#allocation4 + $0x348] sm:$0xff] %vm331_vm0, %v473_v20  ;;  %1271 = vst.msk [vmem:[#allocation4 + $0x2c0] sm:$0xff] %vm331_vm0, %v473_v20  ;;  %v6902_v33 = vld [vmem:[#allocation2 + $0x13a] sm:$0xff] }
  0x90   : > { %2127 = vmatprep.subr.mxu1 %v6037_v1  ;;  %767 = vst.msk [vmem:[#allocation4 + $0x418] sm:$0xff] %vm331_vm0, %v6902_v33 }
  0x91   : > { %2128 = vmatpush2.msra.mxu1 %v1765_v38  ;;  %v1753_v38 = vld [vmem:[%s9528_s1 + $0x198] sm:$0xff] }
  0x92   : > { %1350 = vrot.lane.b32.xlu0 %v6449_v52, %s6038_s26  ;;  %1093 = vrot.lane.b32.xlu1 %v6451_v53, %s6038_s26  ;;  %v1224_v52 = vld [vmem:[#allocation2 + $0x48] sm:$0xff]  ;;  %v6790_v53 = vld [vmem:[%s9528_s1 + $0x238] sm:$0xff] }
  0x93   : > { %1256 = vst.msk [vmem:[#allocation4 + $0x68] sm:$0xff] %vm331_vm0, %v1224_v52  ;;  %2129 = vmatprep.subr.mxu1 %v6037_v1  ;;  %5707 = vmatprep.subr.mxu0 %v6790_v53  ;;  %v794_v52 = vld [vmem:[#allocation2 + $0x110] sm:$0xff] }
  0x94   : > { %2130 = vmatpush2.msra.mxu1 %v1764_v42  ;;  %v6922_v42 = vld [vmem:[#allocation2 + $0xf9] sm:$0xff] }
  0x95   : > { %2131 = vmatprep.subr.mxu1 %v6037_v1 }
  0x96   : > { %871 = vrot.lane.b32.xlu0 %v790_v40, %s6038_s26  ;;  %614 = vrot.lane.b32.xlu1 %v6781_v41, %s6038_s26  ;;  %v6919_v40 = vld [vmem:[#allocation2 + $0x142] sm:$0xff] }
  0x97   : > { %2132 = vmatpush2.msra.mxu1 %v1763_v47  ;;  %768 = vst.msk [vmem:[#allocation4 + $0x440] sm:$0xff] %vm331_vm0, %v6919_v40  ;;  %v6935_v47 = vld [vmem:[#allocation2 + $0x152] sm:$0xff] }
  0x98   : > { %2133 = vmatprep.subr.mxu1 %v6037_v1  ;;  %769 = vst.msk [vmem:[#allocation4 + $0x468] sm:$0xff] %vm331_vm0, %v6935_v47 }
  0x99   : > { %2134 = vmatpush2.msra.mxu1 %v1762_v48  ;;  %v475_v48 = vld [vmem:[#allocation2 + $0x110] sm:$0xff] }
  0x9a   : > { %1352 = vrot.lane.b32.xlu0 %v6472_v58, %s6038_s26  ;;  %1095 = vrot.lane.b32.xlu1 %v6453_v54, %s6038_s26  ;;  %v1761_v54 = vld [vmem:[%s9528_s1 + $0x1d8] sm:$0xff]  ;;  %507 = vst.msk [vmem:[#allocation4 + $0x398] sm:$0xff] %vm331_vm0, %v475_v48  ;;  %1273 = vst.msk [vmem:[#allocation4 + $0x310] sm:$0xff] %vm331_vm0, %v475_v48 }
  0x9b   : > { %v968_v58 = vld [vmem:[#allocation2 + $0x39] sm:$0xff]  ;;  %2135 = vmatprep.subr.mxu1 %v6037_v1 }
  0x9c   : > { %1000 = vst.msk [vmem:[#allocation4 + $0x88] sm:$0xff] %vm331_vm0, %v968_v58  ;;  %2136 = vmatpush2.msra.mxu1 %v1761_v54  ;;  %v795_v54 = vld [vmem:[#allocation2 + $0x120] sm:$0xff]  ;;  %v6955_v58 = vld [vmem:[#allocation2 + $0x109] sm:$0xff] }
  0x9d   : > { %2137 = vmatprep.subr.mxu1 %v6037_v1 }
  0x9e   : > { %873 = vrot.lane.b32.xlu0 %v791_v61, %s6038_s26  ;;  %616 = vrot.lane.b32.xlu1 %v6821_v62, %s6038_s26  ;;  %v1750_v61 = vld [vmem:[%s9528_s1 + $0x180] sm:$0xff] }
  0x9f   : > { %2138 = vmatpush2.msra.mxu1 %v1760_v50  ;;  %v1229_v50 = vld [vmem:[#allocation2 + $0x80] sm:$0xff] }
  0xa0   : > { %2139 = vmatprep.subr.mxu1 %v6037_v1  ;;  %1261 = vst.msk [vmem:[#allocation4 + $0x130] sm:$0xff] %vm331_vm0, %v1229_v50  ;;  %v478_v50 = vld [vmem:[#allocation2 + $0x138] sm:$0xff] }
  0xa1   : > { %2140 = vmatpush2.msra.mxu1 %v1759_v7  ;;  %v6965_v7 = vld [vmem:[#allocation2 + $0x16a] sm:$0xff]  ;;  %510 = vst.msk [vmem:[#allocation4 + $0x410] sm:$0xff] %vm331_vm0, %v478_v50  ;;  %1276 = vst.msk [vmem:[#allocation4 + $0x388] sm:$0xff] %vm331_vm0, %v478_v50 }
  0xa2   : > { %1354 = vrot.lane.b32.xlu0 %v6493_v63, %s6038_s26  ;;  %1097 = vrot.lane.b32.xlu1 %v6458_v55, %s6038_s26  ;;  %v1758_v55 = vld [vmem:[%s9528_s1 + $0x1c0] sm:$0xff]  ;;  %v969_v63 = vld [vmem:[#allocation2 + $0x49] sm:$0xff]  ;;  %771 = vst.msk [vmem:[#allocation4 + $0x4b8] sm:$0xff] %vm331_vm0, %v6965_v7 }
  0xa3   : > { %1001 = vst.msk [vmem:[#allocation4 + $0xb0] sm:$0xff] %vm331_vm0, %v969_v63  ;;  %2141 = vmatprep.subr.mxu1 %v6037_v1  ;;  %v6980_v63 = vld [vmem:[#allocation2 + $0x111] sm:$0xff] }
  0xa4   : > { %2142 = vmatpush2.msra.mxu1 %v1758_v55  ;;  %v796_v55 = vld [vmem:[#allocation2 + $0x128] sm:$0xff]  ;;  %v480_v50 = vld [vmem:[#allocation2 + $0x150] sm:$0xff] }
  0xa5   : > { %2143 = vmatprep.subr.mxu1 %v6037_v1  ;;  %v1227_v1 = vld [vmem:[#allocation2 + $0x68] sm:$0xff]  ;;  %512 = vst.msk [vmem:[#allocation4 + $0x460] sm:$0xff] %vm331_vm0, %v480_v50  ;;  %1278 = vst.msk [vmem:[#allocation4 + $0x3d8] sm:$0xff] %vm331_vm0, %v480_v50 }
  0xa6   : > { %875 = vrot.lane.b32.xlu0 %v792_v13, %s6038_s26  ;;  %618 = vrot.lane.b32.xlu1 %v6854_v14, %s6038_s26  ;;  %1259 = vst.msk [vmem:[#allocation4 + $0xe0] sm:$0xff] %vm331_vm0, %v1227_v1  ;;  %v476_v13 = vld [vmem:[#allocation2 + $0x120] sm:$0xff] }
  0xa7   : > { %2144 = vmatpush2.msra.mxu1 %v1757_v19  ;;  %508 = vst.msk [vmem:[#allocation4 + $0x3c0] sm:$0xff] %vm331_vm0, %v476_v13  ;;  %1274 = vst.msk [vmem:[#allocation4 + $0x338] sm:$0xff] %vm331_vm0, %v476_v13  ;;  %v1230_v19 = vld [vmem:[#allocation2 + $0x90] sm:$0xff] }
  0xa8   : > { %1262 = vst.msk [vmem:[#allocation4 + $0x158] sm:$0xff] %vm331_vm0, %v1230_v19 }
  0xaa   : > { %1356 = vrot.lane.b32.xlu0 %v6514_v8, %s6038_s26  ;;  %1099 = vrot.lane.b32.xlu1 %v6468_v57, %s6038_s26  ;;  %v6891_v8 = vld [vmem:[#allocation3] sm:$0xff]  ;;  %v1755_v57 = vld [vmem:[%s9528_s1 + $0x1a8] sm:$0xff] }
  0xab   : > { %2145 = vmatprep.subr.mxu1 %v6891_v8 }
  0xac   : > { %2146 = vmatpush2.msra.mxu1 %v1756_v25 }
  0xad   : > { %2147 = vmatprep.subr.mxu1 %v6891_v8 }
  0xae   : > { %877 = vrot.lane.b32.xlu0 %v793_v27, %s6038_s26  ;;  %620 = vrot.lane.b32.xlu1 %v6887_v28, %s6038_s26 }
  0xaf   : > { %2148 = vmatpush2.msra.mxu1 %v1755_v57  ;;  %v477_v57 = vld [vmem:[#allocation2 + $0x128] sm:$0xff] }
  0xb0   : > { %2149 = vmatprep.subr.mxu1 %v6891_v8  ;;  %509 = vst.msk [vmem:[#allocation4 + $0x3e8] sm:$0xff] %vm331_vm0, %v477_v57  ;;  %1275 = vst.msk [vmem:[#allocation4 + $0x360] sm:$0xff] %vm331_vm0, %v477_v57  ;;  %v479_v57 = vld [vmem:[#allocation2 + $0x140] sm:$0xff] }
  0xb1   : > { %2150 = vmatpush2.msra.mxu1 %v1754_v34  ;;  %v797_v34 = vld [vmem:[#allocation2 + $0x138] sm:$0xff]  ;;  %511 = vst.msk [vmem:[#allocation4 + $0x438] sm:$0xff] %vm331_vm0, %v479_v57  ;;  %1277 = vst.msk [vmem:[#allocation4 + $0x3b0] sm:$0xff] %vm331_vm0, %v479_v57 }
  0xb2   : > { %1358 = vrot.lane.b32.xlu0 %v6546_v17, %s6038_s26  ;;  %1101 = vrot.lane.b32.xlu1 %v6480_v60, %s6038_s26  ;;  %v1752_v60 = vld [vmem:[%s9528_s1 + $0x190] sm:$0xff]  ;;  %v971_v17 = vld [vmem:[#allocation2 + $0x61] sm:$0xff] }
  0xb3   : > { %2151 = vmatprep.subr.mxu1 %v6891_v8  ;;  %1003 = vst.msk [vmem:[#allocation4 + $0x100] sm:$0xff] %vm331_vm0, %v971_v17  ;;  %v7007_v17 = vld [vmem:[#allocation2 + $0x121] sm:$0xff] }
  0xb4   : > { %2152 = vmatpush2.msra.mxu1 %v1753_v38 }
  0xb5   : > { %2153 = vmatprep.subr.mxu1 %v6891_v8 }
  0xb6   : > { %879 = vrot.lane.b32.xlu0 %v794_v52, %s6038_s26  ;;  %622 = vrot.lane.b32.xlu1 %v6922_v42, %s6038_s26 }
  0xb7   : > { %2154 = vmatpush2.msra.mxu1 %v1752_v60 }
  0xb8   : > { %2155 = vmatprep.subr.mxu1 %v6891_v8 }
  0xb9   : > { %2156 = vmatpush2.msra.mxu1 %v1751_v56  ;;  %v1772_v56 = vld [vmem:[%s9528_s1 + $0x230] sm:$0xff] }
  0xba   : > { %1360 = vrot.lane.b32.xlu0 %v6571_v24, %s6038_s26  ;;  %1103 = vrot.lane.b32.xlu1 %v6495_v0, %s6038_s26  ;;  %v972_v0 = vld [vmem:[#allocation2 + $0x69] sm:$0xff]  ;;  %v581_v24 = vpop.permute.xlu0 %580 }
  0xbb   : > { %2157 = vmatprep.subr.mxu1 %v6891_v8  ;;  %v583_v6 = vpop.permute.xlu1 %582  ;;  %1004 = vst.msk [vmem:[#allocation4 + $0x128] sm:$0xff] %vm331_vm0, %v972_v0 }
  0xbc   : > { %2158 = vmatpush2.msra.mxu1 %v1750_v61  ;;  %677 = vst.msk [vmem:[#allocation4] sm:$0xff] %vm676_vm2, %v581_v24  ;;  %678 = vst.msk [vmem:[#allocation4 + $0x28] sm:$0xff] %vm676_vm2, %v583_v6  ;;  %v1771_v24 = vld [vmem:[%s9528_s1 + $0x228] sm:$0xff] }
  0xbd   : > { %5771 = vmatprep.subr.mxu1 %v6891_v8  ;;  %v1232_v6 = vld [vmem:[#allocation2 + $0xa8] sm:$0xff] }
  0xbe   : > { %881 = vrot.lane.b32.xlu0 %v795_v54, %s6038_s26  ;;  %624 = vrot.lane.b32.xlu1 %v6955_v58, %s6038_s26  ;;  %1264 = vst.msk [vmem:[#allocation4 + $0x1a8] sm:$0xff] %vm331_vm0, %v1232_v6 }
  0xc2   : > { %1362 = vrot.lane.b32.xlu0 %v6600_v31, %s6038_s26  ;;  %1105 = vrot.lane.b32.xlu1 %v6505_v5, %s6038_s26  ;;  %v973_v5 = vld [vmem:[#allocation2 + $0x79] sm:$0xff]  ;;  %v6991_v31 = vld [vmem:[#allocation2 + $0x182] sm:$0xff] }
  0xc3   : > { %1005 = vst.msk [vmem:[#allocation4 + $0x150] sm:$0xff] %vm331_vm0, %v973_v5  ;;  %1538 = vst.msk [vmem:[#allocation4 + $0x480] sm:$0xff] %vm331_vm0, %v6991_v31  ;;  %v1547_v54 = vld [vmem:[#allocation4 + $0x28] sm:$0xff] }
  0xc4   : > { %v838_v20 = vpop.permute.xlu0 %837  ;;  %v840_v25 = vpop.permute.xlu1 %839 }
  0xc5   : > { %933 = vst.msk [vmem:[#allocation4 + $0x8] sm:$0xff] %vm676_vm2, %v838_v20  ;;  %934 = vst.msk [vmem:[#allocation4 + $0x30] sm:$0xff] %vm676_vm2, %v840_v25  ;;  %v975_v20 = vld [vmem:[#allocation2 + $0x91] sm:$0xff] }
  0xc6   : > { %883 = vrot.lane.b32.xlu0 %v796_v55, %s6038_s26  ;;  %626 = vrot.lane.b32.xlu1 %v6980_v63, %s6038_s26  ;;  %v7032_v55 = vld [vmem:[#allocation2 + $0x129] sm:$0xff]  ;;  %1007 = vst.msk [vmem:[#allocation4 + $0x1a0] sm:$0xff] %vm331_vm0, %v975_v20 }
  0xc8   : > { %v842_v27 = vpop.permute.xlu0 %841  ;;  %v585_v1 = vpop.permute.xlu1 %584 }
  0xc9   : > { %935 = vst.msk [vmem:[#allocation4 + $0x58] sm:$0xff] %vm676_vm2, %v842_v27  ;;  %679 = vst.msk [vmem:[#allocation4 + $0x50] sm:$0xff] %vm676_vm2, %v585_v1 }
  0xca   : > { %1364 = vrot.lane.b32.xlu0 %v6622_v36, %s6038_s26  ;;  %1107 = vrot.lane.b32.xlu1 %v6524_v11, %s6038_s26  ;;  %v1542_v11 = vld [vmem:[#allocation4] sm:$0xff] }
  0xcb   : > { %v974_v36 = vld [vmem:[#allocation2 + $0x81] sm:$0xff] }
  0xcc   : > { %v844_v38 = vpop.permute.xlu0 %843  ;;  %v1543_v52 = vld [vmem:[#allocation4 + $0x8] sm:$0xff]  ;;  %v587_v45 = vpop.permute.xlu1 %586  ;;  %v1548_v60 = vld [vmem:[#allocation4 + $0x30] sm:$0xff]  ;;  %1006 = vst.msk [vmem:[#allocation4 + $0x178] sm:$0xff] %vm331_vm0, %v974_v36  ;;  %v976_v36 = vld [vmem:[#allocation2 + $0x99] sm:$0xff] }
  0xcd   : > { %936 = vst.msk [vmem:[#allocation4 + $0x80] sm:$0xff] %vm676_vm2, %v844_v38  ;;  %1934 = vmatprep.mubr.f32.mxu0 %v1543_v52  ;;  %680 = vst.msk [vmem:[#allocation4 + $0x78] sm:$0xff] %vm676_vm2, %v587_v45  ;;  %v1233_v38 = vld [vmem:[#allocation2 + $0xb0] sm:$0xff] }
  0xce   : > { %885 = vrot.lane.b32.xlu0 %v797_v34, %s6038_s26  ;;  %1935 = vmatmul.mubr.f32.vlgmr.msra.gmra.mxu0 %v1542_v11  ;;  %v799_v52 = vld [vmem:[#allocation2 + $0x150] sm:$0xff]  ;;  %1265 = vst.msk [vmem:[#allocation4 + $0x1d0] sm:$0xff] %vm331_vm0, %v1233_v38  ;;  %1008 = vst.msk [vmem:[#allocation4 + $0x1c8] sm:$0xff] %vm331_vm0, %v976_v36 }
  0xcf   : > { %1939 = vmatprep.mubr.f32.mxu0 %v1548_v60  ;;  %628 = vrot.lane.b32.xlu1 %v7007_v17, %s6038_s26  ;;  %v7055_v60 = vld [vmem:[#allocation2 + $0x139] sm:$0xff]  ;;  %v978_v38 = vld [vmem:[#allocation2 + $0xb1] sm:$0xff] }
  0xd0   : > { %v846_v48 = vpop.permute.xlu0 %845  ;;  %v589_v61 = vpop.permute.xlu1 %588  ;;  %5708 = vmatpush3.msra.mxu0 %v6790_v53  ;;  %v1553_v0 = vld [vmem:[#allocation4 + $0x58] sm:$0xff]  ;;  %v798_v53 = vld [vmem:[#allocation2 + $0x140] sm:$0xff]  ;;  %v1552_v19 = vld [vmem:[#allocation4 + $0x50] sm:$0xff]  ;;  %1010 = vst.msk [vmem:[#allocation4 + $0x218] sm:$0xff] %vm331_vm0, %v978_v38 }
  0xd1   : > { %937 = vst.msk [vmem:[#allocation4 + $0xa8] sm:$0xff] %vm676_vm2, %v846_v48  ;;  %681 = vst.msk [vmem:[#allocation4 + $0xa0] sm:$0xff] %vm676_vm2, %v589_v61  ;;  %5709 = vmatprep.subr.mxu0 %v1772_v56  ;;  %v1481_v38 = vld [vmem:[#allocation2 + $0x52] sm:$0xff] }
  0xd2   : > { %1366 = vrot.lane.b32.xlu0 %v6650_v44, %s6038_s26  ;;  %1940 = vmatmul.mubr.f32.gmra.mxu0 %v1547_v54  ;;  %1513 = vst.msk [vmem:[#allocation4 + $0x98] sm:$0xff] %vm331_vm0, %v1481_v38 }
  0xd3   : > { %1944 = vmatprep.mubr.f32.mxu0 %v1553_v0  ;;  %1109 = vrot.lane.b32.xlu1 %v6544_v16, %s6038_s26  ;;  %v1770_v16 = vld [vmem:[%s9528_s1 + $0x220] sm:$0xff] }
  0xd4   : > { %v848_v13 = vpop.permute.xlu0 %847  ;;  %v591_v44 = vpop.permute.xlu1 %590  ;;  %5710 = vmatpush3.msra.mxu0 %v1772_v56  ;;  %v1558_v25 = vld [vmem:[#allocation4 + $0x80] sm:$0xff]  ;;  %v1557_v1 = vld [vmem:[#allocation4 + $0x78] sm:$0xff]  ;;  %v1768_v56 = vld [vmem:[%s9528_s1 + $0x210] sm:$0xff] }
  0xd5   : > { %938 = vst.msk [vmem:[#allocation4 + $0xd0] sm:$0xff] %vm676_vm2, %v848_v13  ;;  %682 = vst.msk [vmem:[#allocation4 + $0xc8] sm:$0xff] %vm676_vm2, %v591_v44  ;;  %5711 = vmatprep.subr.mxu0 %v1771_v24  ;;  %v7074_v13 = vld [vmem:[#allocation2 + $0x141] sm:$0xff]  ;;  %v977_v44 = vld [vmem:[#allocation2 + $0xa9] sm:$0xff] }
  0xd6   : > { %887 = vrot.lane.b32.xlu0 %v798_v53, %s6038_s26  ;;  %1945 = vmatmul.mubr.f32.gmra.mxu0 %v1552_v19  ;;  %1009 = vst.msk [vmem:[#allocation4 + $0x1f0] sm:$0xff] %vm331_vm0, %v977_v44  ;;  %v803_v44 = vld [vmem:[#allocation2 + $0x180] sm:$0xff] }
  0xd7   : > { %630 = vrot.lane.b32.xlu1 %v7032_v55, %s6038_s26  ;;  %1949 = vmatprep.mubr.f32.mxu0 %v1558_v25 }
  0xd8   : > { %v850_v5 = vpop.permute.xlu0 %849  ;;  %v593_v27 = vpop.permute.xlu1 %592  ;;  %5712 = vmatpush3.msra.mxu0 %v1771_v24  ;;  %v1563_v34 = vld [vmem:[#allocation4 + $0xa8] sm:$0xff]  ;;  %v1562_v11 = vld [vmem:[#allocation4 + $0xa0] sm:$0xff]  ;;  %v800_v24 = vld [vmem:[#allocation2 + $0x158] sm:$0xff] }
  0xd9   : > { %939 = vst.msk [vmem:[#allocation4 + $0xf8] sm:$0xff] %vm676_vm2, %v850_v5  ;;  %683 = vst.msk [vmem:[#allocation4 + $0xf0] sm:$0xff] %vm676_vm2, %v593_v27  ;;  %5713 = vmatprep.subr.mxu0 %v1770_v16  ;;  %v481_v5 = vld [vmem:[#allocation2 + $0x158] sm:$0xff] }
  0xda   : > { %1368 = vrot.lane.b32.xlu0 %v6668_v49, %s6038_s26  ;;  %1950 = vmatmul.mubr.f32.gmra.mxu0 %v1557_v1  ;;  %513 = vst.msk [vmem:[#allocation4 + $0x488] sm:$0xff] %vm331_vm0, %v481_v5  ;;  %1279 = vst.msk [vmem:[#allocation4 + $0x400] sm:$0xff] %vm331_vm0, %v481_v5  ;;  %v801_v1 = vld [vmem:[#allocation2 + $0x168] sm:$0xff] }
  0xdb   : > { %1111 = vrot.lane.b32.xlu1 %v6560_v21, %s6038_s26  ;;  %1954 = vmatprep.mubr.f32.mxu0 %v1563_v34 }
  0xdc   : > { %v852_v45 = vpop.permute.xlu0 %851  ;;  %v595_v49 = vpop.permute.xlu1 %594  ;;  %5714 = vmatpush3.msra.mxu0 %v1770_v16  ;;  %v1568_v21 = vld [vmem:[#allocation4 + $0xd0] sm:$0xff]  ;;  %v1567_v54 = vld [vmem:[#allocation4 + $0xc8] sm:$0xff] }
  0xdd   : > { %940 = vst.msk [vmem:[#allocation4 + $0x120] sm:$0xff] %vm676_vm2, %v852_v45  ;;  %684 = vst.msk [vmem:[#allocation4 + $0x118] sm:$0xff] %vm676_vm2, %v595_v49  ;;  %5715 = vmatprep.subr.mxu0 %v1769_v37 }
  0xde   : > { %889 = vrot.lane.b32.xlu0 %v799_v52, %s6038_s26  ;;  %1955 = vmatmul.mubr.f32.gmra.mxu0 %v1562_v11  ;;  %v482_v11 = vld [vmem:[#allocation2 + $0x168] sm:$0xff] }
  0xdf   : > { %632 = vrot.lane.b32.xlu1 %v7055_v60, %s6038_s26  ;;  %1959 = vmatprep.mubr.f32.mxu0 %v1568_v21  ;;  %514 = vst.msk [vmem:[#allocation4 + $0x4b0] sm:$0xff] %vm331_vm0, %v482_v11  ;;  %1280 = vst.msk [vmem:[#allocation4 + $0x428] sm:$0xff] %vm331_vm0, %v482_v11  ;;  %v802_v21 = vld [vmem:[#allocation2 + $0x170] sm:$0xff]  ;;  %v982_v11 = vld [vmem:[#allocation2 + $0xe1] sm:$0xff] }
  0xe0   : > { %v854_v48 = vpop.permute.xlu0 %853  ;;  %v597_v61 = vpop.permute.xlu1 %596  ;;  %5716 = vmatpush3.msra.mxu0 %v1769_v37  ;;  %v1573_v0 = vld [vmem:[#allocation4 + $0xf8] sm:$0xff]  ;;  %1014 = vst.msk [vmem:[#allocation4 + $0x2b8] sm:$0xff] %vm331_vm0, %v982_v11 }
  0xe1   : > { %941 = vst.msk [vmem:[#allocation4 + $0x148] sm:$0xff] %vm676_vm2, %v854_v48  ;;  %685 = vst.msk [vmem:[#allocation4 + $0x140] sm:$0xff] %vm676_vm2, %v597_v61  ;;  %5717 = vmatprep.subr.mxu0 %v1768_v56  ;;  %v7093_v37 = vld [vmem:[#allocation2 + $0x151] sm:$0xff]  ;;  %v7109_v61 = vld [vmem:[#allocation2 + $0x159] sm:$0xff] }
  0xe2   : > { %1370 = vrot.lane.b32.xlu0 %v6696_v3, %s6038_s26  ;;  %1960 = vmatmul.mubr.f32.gmra.mxu0 %v1567_v54  ;;  %v1572_v3 = vld [vmem:[#allocation4 + $0xf0] sm:$0xff]  ;;  %v979_v54 = vld [vmem:[#allocation2 + $0xc1] sm:$0xff] }
  0xe3   : > { %1113 = vrot.lane.b32.xlu1 %v6567_v23, %s6038_s26  ;;  %1964 = vmatprep.mubr.f32.mxu0 %v1573_v0  ;;  %v1767_v23 = vld [vmem:[%s9528_s1 + $0x208] sm:$0xff]  ;;  %1011 = vst.msk [vmem:[#allocation4 + $0x240] sm:$0xff] %vm331_vm0, %v979_v54  ;;  %v983_v54 = vld [vmem:[#allocation2 + $0xf1] sm:$0xff] }
  0xe4   : > { %v856_v6 = vpop.permute.xlu0 %855  ;;  %v599_v53 = vpop.permute.xlu1 %598  ;;  %5718 = vmatpush3.msra.mxu0 %v1768_v56  ;;  %v1578_v19 = vld [vmem:[#allocation4 + $0x120] sm:$0xff]  ;;  %v1577_v16 = vld [vmem:[#allocation4 + $0x118] sm:$0xff]  ;;  %1015 = vst.msk [vmem:[#allocation4 + $0x2e0] sm:$0xff] %vm331_vm0, %v983_v54  ;;  %v1496_v54 = vld [vmem:[#allocation2 + $0x10a] sm:$0xff] }
  0xe5   : > { %942 = vst.msk [vmem:[#allocation4 + $0x170] sm:$0xff] %vm676_vm2, %v856_v6  ;;  %686 = vst.msk [vmem:[#allocation4 + $0x168] sm:$0xff] %vm676_vm2, %v599_v53  ;;  %5719 = vmatprep.subr.mxu0 %v1767_v23  ;;  %v483_v53 = vld [vmem:[#allocation2 + $0x170] sm:$0xff] }
  0xe6   : > { %891 = vrot.lane.b32.xlu0 %v800_v24, %s6038_s26  ;;  %1965 = vmatmul.mubr.f32.gmra.mxu0 %v1572_v3  ;;  %515 = vst.msk [vmem:[#allocation4 + $0x4d8] sm:$0xff] %vm331_vm0, %v483_v53  ;;  %1281 = vst.msk [vmem:[#allocation4 + $0x450] sm:$0xff] %vm331_vm0, %v483_v53 }
  0xe7   : > { %634 = vrot.lane.b32.xlu1 %v7074_v13, %s6038_s26  ;;  %1969 = vmatprep.mubr.f32.mxu0 %v1578_v19  ;;  %1528 = vst.msk [vmem:[#allocation4 + $0x2f0] sm:$0xff] %vm331_vm0, %v1496_v54 }
  0xe8   : > { %v858_v20 = vpop.permute.xlu0 %857  ;;  %v601_v25 = vpop.permute.xlu1 %600  ;;  %5720 = vmatpush3.msra.mxu0 %v1767_v23  ;;  %v1583_v27 = vld [vmem:[#allocation4 + $0x148] sm:$0xff] }
  0xe9   : > { %943 = vst.msk [vmem:[#allocation4 + $0x198] sm:$0xff] %vm676_vm2, %v858_v20  ;;  %687 = vst.msk [vmem:[#allocation4 + $0x190] sm:$0xff] %vm676_vm2, %v601_v25  ;;  %v7128_v20 = vld [vmem:[#allocation2 + $0x169] sm:$0xff] }
  0xea   : > { %1372 = vrot.lane.b32.xlu0 %v6711_v10, %s6038_s26  ;;  %1970 = vmatmul.mubr.f32.gmra.mxu0 %v1577_v16  ;;  %v1582_v10 = vld [vmem:[#allocation4 + $0x140] sm:$0xff]  ;;  %v980_v25 = vld [vmem:[#allocation2 + $0xc9] sm:$0xff]  ;;  %v1478_v16 = vld [vmem:[#allocation2 + $0x32] sm:$0xff] }
  0xeb   : > { %1115 = vrot.lane.b32.xlu1 %v6598_v30, %s6038_s26  ;;  %1974 = vmatprep.mubr.f32.mxu0 %v1583_v27  ;;  %1012 = vst.msk [vmem:[#allocation4 + $0x268] sm:$0xff] %vm331_vm0, %v980_v25  ;;  %1510 = vst.msk [vmem:[#allocation4 + $0x20] sm:$0xff] %vm331_vm0, %v1478_v16 }
  0xec   : > { %v860_v57 = vpop.permute.xlu0 %859  ;;  %v603_v34 = vpop.permute.xlu1 %602  ;;  %v1588_v52 = vld [vmem:[#allocation4 + $0x170] sm:$0xff]  ;;  %v1587_v49 = vld [vmem:[#allocation4 + $0x168] sm:$0xff] }
  0xed   : > { %944 = vst.msk [vmem:[#allocation4 + $0x1c0] sm:$0xff] %vm676_vm2, %v860_v57  ;;  %688 = vst.msk [vmem:[#allocation4 + $0x1b8] sm:$0xff] %vm676_vm2, %v603_v34  ;;  %v981_v57 = vld [vmem:[#allocation2 + $0xd9] sm:$0xff]  ;;  %v1480_v34 = vld [vmem:[#allocation2 + $0x4a] sm:$0xff] }
  0xee   : > { %893 = vrot.lane.b32.xlu0 %v801_v1, %s6038_s26  ;;  %1975 = vmatmul.mubr.f32.gmra.mxu0 %v1582_v10  ;;  %1013 = vst.msk [vmem:[#allocation4 + $0x290] sm:$0xff] %vm331_vm0, %v981_v57  ;;  %1512 = vst.msk [vmem:[#allocation4 + $0x70] sm:$0xff] %vm331_vm0, %v1480_v34  ;;  %v1490_v57 = vld [vmem:[#allocation2 + $0xc2] sm:$0xff] }
  0xef   : > { %636 = vrot.lane.b32.xlu1 %v7093_v37, %s6038_s26  ;;  %1979 = vmatprep.mubr.f32.mxu0 %v1588_v52  ;;  %v804_v52 = vld [vmem:[#allocation2 + $0x188] sm:$0xff]  ;;  %1522 = vst.msk [vmem:[#allocation4 + $0x200] sm:$0xff] %vm331_vm0, %v1490_v57 }
  0xf0   : > { %v862_v30 = vpop.permute.xlu0 %861  ;;  %v605_v45 = vpop.permute.xlu1 %604  ;;  %v1593_v36 = vld [vmem:[#allocation4 + $0x198] sm:$0xff] }
  0xf1   : > { %945 = vst.msk [vmem:[#allocation4 + $0x1e8] sm:$0xff] %vm676_vm2, %v862_v30  ;;  %689 = vst.msk [vmem:[#allocation4 + $0x1e0] sm:$0xff] %vm676_vm2, %v605_v45 }
  0xf2   : > { %1374 = vrot.lane.b32.xlu0 %v6738_v22, %s6038_s26  ;;  %1980 = vmatmul.mubr.f32.gmra.mxu0 %v1587_v49  ;;  %v1592_v22 = vld [vmem:[#allocation4 + $0x190] sm:$0xff] }
  0xf3   : > { %1117 = vrot.lane.b32.xlu1 %v6614_v35, %s6038_s26  ;;  %1984 = vmatprep.mubr.f32.mxu0 %v1593_v36  ;;  %v1766_v35 = vld [vmem:[%s9528_s1 + $0x200] sm:$0xff]  ;;  %v7148_v49 = vld [vmem:[#allocation2 + $0x171] sm:$0xff] }
  0xf4   : > { %v864_v56 = vpop.permute.xlu0 %863  ;;  %v607_v48 = vpop.permute.xlu1 %606  ;;  %v1598_v50 = vld [vmem:[#allocation4 + $0x1c0] sm:$0xff]  ;;  %5721 = vmatprep.subr.mxu0 %v1766_v35  ;;  %v1597_v6 = vld [vmem:[#allocation4 + $0x1b8] sm:$0xff] }
  0xf5   : > { %946 = vst.msk [vmem:[#allocation4 + $0x210] sm:$0xff] %vm676_vm2, %v864_v56  ;;  %690 = vst.msk [vmem:[#allocation4 + $0x208] sm:$0xff] %vm676_vm2, %v607_v48  ;;  %5722 = vmatpush3.msra.mxu0 %v1766_v35  ;;  %v1482_v36 = vld [vmem:[#allocation2 + $0x62] sm:$0xff] }
  0xf6   : > { %895 = vrot.lane.b32.xlu0 %v802_v21, %s6038_s26  ;;  %1985 = vmatmul.mubr.f32.gmra.mxu0 %v1592_v22  ;;  %1514 = vst.msk [vmem:[#allocation4 + $0xc0] sm:$0xff] %vm331_vm0, %v1482_v36 }
  0xf7   : > { %638 = vrot.lane.b32.xlu1 %v7109_v61, %s6038_s26  ;;  %1989 = vmatprep.mubr.f32.mxu0 %v1598_v50  ;;  %v1484_v50 = vld [vmem:[#allocation2 + $0x7a] sm:$0xff] }
  0xf8   : > { %v866_v0 = vpop.permute.xlu0 %865  ;;  %v609_v24 = vpop.permute.xlu1 %608  ;;  %v1603_v3 = vld [vmem:[#allocation4 + $0x1e8] sm:$0xff]  ;;  %3974 = vmatprep.subr.mxu0 %v6891_v8  ;;  %1516 = vst.msk [vmem:[#allocation4 + $0x110] sm:$0xff] %vm331_vm0, %v1484_v50 }
  0xf9   : > { %947 = vst.msk [vmem:[#allocation4 + $0x238] sm:$0xff] %vm676_vm2, %v866_v0  ;;  %691 = vst.msk [vmem:[#allocation4 + $0x230] sm:$0xff] %vm676_vm2, %v609_v24  ;;  %v1485_v0 = vld [vmem:[#allocation2 + $0x82] sm:$0xff] }
  0xfa   : > { %1376 = vrot.lane.b32.xlu0 %v6781_v41, %s6038_s26  ;;  %1990 = vmatmul.mubr.f32.gmra.mxu0 %v1597_v6  ;;  %v1602_v41 = vld [vmem:[#allocation4 + $0x1e0] sm:$0xff]  ;;  %1517 = vst.msk [vmem:[#allocation4 + $0x138] sm:$0xff] %vm331_vm0, %v1485_v0 }
  0xfb   : > { %1119 = vrot.lane.b32.xlu1 %v6648_v43, %s6038_s26  ;;  %1994 = vmatprep.mubr.f32.mxu0 %v1603_v3  ;;  %v1479_v43 = vld [vmem:[#allocation2 + $0x3a] sm:$0xff] }
  0xfc   : > { %v868_v19 = vpop.permute.xlu0 %867  ;;  %v611_v23 = vpop.permute.xlu1 %610  ;;  %v1608_v5 = vld [vmem:[#allocation4 + $0x210] sm:$0xff]  ;;  %1511 = vst.msk [vmem:[#allocation4 + $0x48] sm:$0xff] %vm331_vm0, %v1479_v43  ;;  %v1607_v1 = vld [vmem:[#allocation4 + $0x208] sm:$0xff] }
  0xfd   : > { %948 = vst.msk [vmem:[#allocation4 + $0x260] sm:$0xff] %vm676_vm2, %v868_v19  ;;  %692 = vst.msk [vmem:[#allocation4 + $0x258] sm:$0xff] %vm676_vm2, %v611_v23  ;;  %v1486_v19 = vld [vmem:[#allocation2 + $0x92] sm:$0xff] }
  0xfe   : > { %897 = vrot.lane.b32.xlu0 %v803_v44, %s6038_s26  ;;  %1995 = vmatmul.mubr.f32.gmra.mxu0 %v1602_v41  ;;  %v984_v44 = vld [vmem:[#allocation2 + $0xf9] sm:$0xff]  ;;  %1518 = vst.msk [vmem:[#allocation4 + $0x160] sm:$0xff] %vm331_vm0, %v1486_v19 }
  0xff   : > { %640 = vrot.lane.b32.xlu1 %v7128_v20, %s6038_s26  ;;  %1999 = vmatprep.mubr.f32.mxu0 %v1608_v5  ;;  %1016 = vst.msk [vmem:[#allocation4 + $0x308] sm:$0xff] %vm331_vm0, %v984_v44  ;;  %v1488_v5 = vld [vmem:[#allocation2 + $0xaa] sm:$0xff]  ;;  %v1500_v19 = vld [vmem:[#allocation2 + $0x13a] sm:$0xff] }
 0x100   : > { %v870_v8 = vpop.permute.xlu0 %869  ;;  %v613_v27 = vpop.permute.xlu1 %612  ;;  %v1613_v10 = vld [vmem:[#allocation4 + $0x238] sm:$0xff]  ;;  %1520 = vst.msk [vmem:[#allocation4 + $0x1b0] sm:$0xff] %vm331_vm0, %v1488_v5  ;;  %1532 = vst.msk [vmem:[#allocation4 + $0x390] sm:$0xff] %vm331_vm0, %v1500_v19 }
 0x101   : > { %949 = vst.msk [vmem:[#allocation4 + $0x288] sm:$0xff] %vm676_vm2, %v870_v8  ;;  %693 = vst.msk [vmem:[#allocation4 + $0x280] sm:$0xff] %vm676_vm2, %v613_v27 }
 0x102   : > { %1378 = vrot.lane.b32.xlu0 %v6821_v62, %s6038_s26  ;;  %2000 = vmatmul.mubr.f32.gmra.mxu0 %v1607_v1  ;;  %v1612_v62 = vld [vmem:[#allocation4 + $0x230] sm:$0xff] }
 0x103   : > { %1121 = vrot.lane.b32.xlu1 %v6672_v51, %s6038_s26  ;;  %2004 = vmatprep.mubr.f32.mxu0 %v1613_v10  ;;  %v1483_v51 = vld [vmem:[#allocation2 + $0x6a] sm:$0xff] }
 0x104   : > { %v1351_v30 = vpop.permute.xlu0 %1350  ;;  %v1094_v45 = vpop.permute.xlu1 %1093  ;;  %v1618_v21 = vld [vmem:[#allocation4 + $0x260] sm:$0xff]  ;;  %1515 = vst.msk [vmem:[#allocation4 + $0xe8] sm:$0xff] %vm331_vm0, %v1483_v51  ;;  %v1617_v22 = vld [vmem:[#allocation4 + $0x258] sm:$0xff] }
 0x105   : > { %1446 = vst.msk [vmem:[#allocation4 + $0x18] sm:$0xff] %vm676_vm2, %v1351_v30  ;;  %1189 = vst.msk [vmem:[#allocation4 + $0x10] sm:$0xff] %vm676_vm2, %v1094_v45  ;;  %v1492_v30 = vld [vmem:[#allocation2 + $0xda] sm:$0xff] }
 0x106   : > { %899 = vrot.lane.b32.xlu0 %v804_v52, %s6038_s26  ;;  %2005 = vmatmul.mubr.f32.gmra.mxu0 %v1612_v62  ;;  %1524 = vst.msk [vmem:[#allocation4 + $0x250] sm:$0xff] %vm331_vm0, %v1492_v30  ;;  %v995_v30 = vld [vmem:[#allocation2 + $0x181] sm:$0xff] }
 0x107   : > { %642 = vrot.lane.b32.xlu1 %v7148_v49, %s6038_s26  ;;  %2009 = vmatprep.mubr.f32.mxu0 %v1618_v21  ;;  %v1494_v21 = vld [vmem:[#allocation2 + $0xf2] sm:$0xff]  ;;  %1027 = vst.msk [vmem:[#allocation4 + $0x4c0] sm:$0xff] %vm331_vm0, %v995_v30 }
 0x108   : > { %v872_v56 = vpop.permute.xlu0 %871  ;;  %v615_v48 = vpop.permute.xlu1 %614  ;;  %v1623_v35 = vld [vmem:[#allocation4 + $0x288] sm:$0xff]  ;;  %1526 = vst.msk [vmem:[#allocation4 + $0x2a0] sm:$0xff] %vm331_vm0, %v1494_v21 }
 0x109   : > { %950 = vst.msk [vmem:[#allocation4 + $0x2b0] sm:$0xff] %vm676_vm2, %v872_v56  ;;  %694 = vst.msk [vmem:[#allocation4 + $0x2a8] sm:$0xff] %vm676_vm2, %v615_v48 }
 0x10a   : > { %1380 = vrot.lane.b32.xlu0 %v6854_v14, %s6038_s26  ;;  %2010 = vmatmul.mubr.f32.gmra.mxu0 %v1617_v22  ;;  %v1622_v14 = vld [vmem:[#allocation4 + $0x280] sm:$0xff] }
 0x10b   : > { %1123 = vrot.lane.b32.xlu1 %v6715_v12, %s6038_s26  ;;  %2014 = vmatprep.mubr.f32.mxu0 %v1623_v35  ;;  %v1487_v12 = vld [vmem:[#allocation2 + $0x9a] sm:$0xff] }
 0x10c   : > { %v1353_v24 = vpop.permute.xlu0 %1352  ;;  %v1545_v6 = vld [vmem:[#allocation4 + $0x18] sm:$0xff]  ;;  %v1096_v53 = vpop.permute.xlu1 %1095  ;;  %v1544_v3 = vld [vmem:[#allocation4 + $0x10] sm:$0xff]  ;;  %1519 = vst.msk [vmem:[#allocation4 + $0x188] sm:$0xff] %vm331_vm0, %v1487_v12 }
 0x10d   : > { %1447 = vst.msk [vmem:[#allocation4 + $0x40] sm:$0xff] %vm676_vm2, %v1353_v24  ;;  %2159 = vmatprep.mubr.f32.mxu1 %v1545_v6  ;;  %1190 = vst.msk [vmem:[#allocation4 + $0x38] sm:$0xff] %vm676_vm2, %v1096_v53  ;;  %v1498_v6 = vld [vmem:[#allocation2 + $0x122] sm:$0xff] }
 0x10e   : > { %1382 = vrot.lane.b32.xlu0 %v6887_v28, %s6038_s26  ;;  %2015 = vmatmul.mubr.f32.gmra.mxu0 %v1622_v14  ;;  %v985_v28 = vld [vmem:[#allocation2 + $0x109] sm:$0xff]  ;;  %1530 = vst.msk [vmem:[#allocation4 + $0x340] sm:$0xff] %vm331_vm0, %v1498_v6 }
 0x10f   : > { %2160 = vmatmul.mubr.f32.vlgmr.msra.gmra.mxu1 %v1544_v3  ;;  %1125 = vrot.lane.b32.xlu1 %v6755_v29, %s6038_s26  ;;  %1017 = vst.msk [vmem:[#allocation4 + $0x330] sm:$0xff] %vm331_vm0, %v985_v28  ;;  %v1489_v29 = vld [vmem:[#allocation2 + $0xb2] sm:$0xff]  ;;  %v1503_v28 = vld [vmem:[#allocation2 + $0x15a] sm:$0xff] }
 0x110   : > { %v874_v23 = vpop.permute.xlu0 %873  ;;  %v617_v41 = vpop.permute.xlu1 %616  ;;  %v1628_v25 = vld [vmem:[#allocation4 + $0x2b0] sm:$0xff]  ;;  %v1627_v16 = vld [vmem:[#allocation4 + $0x2a8] sm:$0xff]  ;;  %1521 = vst.msk [vmem:[#allocation4 + $0x1d8] sm:$0xff] %vm331_vm0, %v1489_v29  ;;  %1535 = vst.msk [vmem:[#allocation4 + $0x408] sm:$0xff] %vm331_vm0, %v1503_v28 }
 0x111   : > { %951 = vst.msk [vmem:[#allocation4 + $0x2d8] sm:$0xff] %vm676_vm2, %v874_v23  ;;  %695 = vst.msk [vmem:[#allocation4 + $0x2d0] sm:$0xff] %vm676_vm2, %v617_v41  ;;  %2019 = vmatprep.mubr.f32.mxu0 %v1628_v25 }
 0x112   : > { %1384 = vrot.lane.b32.xlu0 %v6922_v42, %s6038_s26  ;;  %2020 = vmatmul.mubr.f32.gmra.mxu0 %v1627_v16  ;;  %v986_v42 = vld [vmem:[#allocation2 + $0x111] sm:$0xff] }
 0x113   : > { %1127 = vrot.lane.b32.xlu1 %v6778_v39, %s6038_s26  ;;  %1018 = vst.msk [vmem:[#allocation4 + $0x358] sm:$0xff] %vm331_vm0, %v986_v42  ;;  %v1491_v39 = vld [vmem:[#allocation2 + $0xca] sm:$0xff]  ;;  %v1502_v16 = vld [vmem:[#allocation2 + $0x152] sm:$0xff] }
 0x114   : > { %v1355_v43 = vpop.permute.xlu0 %1354  ;;  %v1550_v8 = vld [vmem:[#allocation4 + $0x40] sm:$0xff]  ;;  %v1098_v27 = vpop.permute.xlu1 %1097  ;;  %v1549_v1 = vld [vmem:[#allocation4 + $0x38] sm:$0xff]  ;;  %1523 = vst.msk [vmem:[#allocation4 + $0x228] sm:$0xff] %vm331_vm0, %v1491_v39  ;;  %1534 = vst.msk [vmem:[#allocation4 + $0x3e0] sm:$0xff] %vm331_vm0, %v1502_v16 }
 0x115   : > { %1448 = vst.msk [vmem:[#allocation4 + $0x68] sm:$0xff] %vm676_vm2, %v1355_v43  ;;  %2164 = vmatprep.mubr.f32.mxu1 %v1550_v8  ;;  %1191 = vst.msk [vmem:[#allocation4 + $0x60] sm:$0xff] %vm676_vm2, %v1098_v27  ;;  %v1504_v27 = vld [vmem:[#allocation2 + $0x16a] sm:$0xff] }
 0x116   : > { %1386 = vrot.lane.b32.xlu0 %v6955_v58, %s6038_s26  ;;  %2165 = vmatmul.mubr.f32.gmra.mxu1 %v1549_v1  ;;  %v987_v58 = vld [vmem:[#allocation2 + $0x121] sm:$0xff]  ;;  %1536 = vst.msk [vmem:[#allocation4 + $0x430] sm:$0xff] %vm331_vm0, %v1504_v27  ;;  %v1505_v1 = vld [vmem:[#allocation2 + $0x172] sm:$0xff] }
 0x117   : > { %1129 = vrot.lane.b32.xlu1 %v6800_v46, %s6038_s26  ;;  %1019 = vst.msk [vmem:[#allocation4 + $0x380] sm:$0xff] %vm331_vm0, %v987_v58  ;;  %v1493_v46 = vld [vmem:[#allocation2 + $0xe2] sm:$0xff]  ;;  %1537 = vst.msk [vmem:[#allocation4 + $0x458] sm:$0xff] %vm331_vm0, %v1505_v1 }
 0x118   : > { %v876_v34 = vpop.permute.xlu0 %875  ;;  %v619_v10 = vpop.permute.xlu1 %618  ;;  %v1633_v38 = vld [vmem:[#allocation4 + $0x2d8] sm:$0xff]  ;;  %v1632_v52 = vld [vmem:[#allocation4 + $0x2d0] sm:$0xff]  ;;  %1525 = vst.msk [vmem:[#allocation4 + $0x278] sm:$0xff] %vm331_vm0, %v1493_v46  ;;  %v1509_v46 = vld [vmem:[#allocation2 + $0x1a2] sm:$0xff] }
 0x119   : > { %952 = vst.msk [vmem:[#allocation4 + $0x300] sm:$0xff] %vm676_vm2, %v876_v34  ;;  %696 = vst.msk [vmem:[#allocation4 + $0x2f8] sm:$0xff] %vm676_vm2, %v619_v10  ;;  %2024 = vmatprep.mubr.f32.mxu0 %v1633_v38 }
 0x11a   : > { %1388 = vrot.lane.b32.xlu0 %v6980_v63, %s6038_s26  ;;  %2025 = vmatmul.mubr.f32.gmra.mxu0 %v1632_v52  ;;  %v988_v63 = vld [vmem:[#allocation2 + $0x129] sm:$0xff]  ;;  %1541 = vst.msk [vmem:[#allocation4 + $0x4f8] sm:$0xff] %vm331_vm0, %v1509_v46 }
 0x11b   : > { %1131 = vrot.lane.b32.xlu1 %v6818_v59, %s6038_s26  ;;  %1020 = vst.msk [vmem:[#allocation4 + $0x3a8] sm:$0xff] %vm331_vm0, %v988_v63  ;;  %v1495_v59 = vld [vmem:[#allocation2 + $0xfa] sm:$0xff] }
 0x11c   : > { %v1357_v45 = vpop.permute.xlu0 %1356  ;;  %v1555_v62 = vld [vmem:[#allocation4 + $0x68] sm:$0xff]  ;;  %v1100_v11 = vpop.permute.xlu1 %1099  ;;  %v1554_v36 = vld [vmem:[#allocation4 + $0x60] sm:$0xff]  ;;  %1527 = vst.msk [vmem:[#allocation4 + $0x2c8] sm:$0xff] %vm331_vm0, %v1495_v59 }
 0x11d   : > { %1449 = vst.msk [vmem:[#allocation4 + $0x90] sm:$0xff] %vm676_vm2, %v1357_v45  ;;  %2169 = vmatprep.mubr.f32.mxu1 %v1555_v62  ;;  %1192 = vst.msk [vmem:[#allocation4 + $0x88] sm:$0xff] %vm676_vm2, %v1100_v11  ;;  %v1314_v45 = vld [vmem:[#allocation2 + $0x181] sm:$0xff] }
 0x11e   : > { %1390 = vrot.lane.b32.xlu0 %v7007_v17, %s6038_s26  ;;  %2170 = vmatmul.mubr.f32.gmra.mxu1 %v1554_v36  ;;  %v989_v17 = vld [vmem:[#allocation2 + $0x139] sm:$0xff] }
 0x11f   : > { %1133 = vrot.lane.b32.xlu1 %v6834_v4, %s6038_s26  ;;  %1021 = vst.msk [vmem:[#allocation4 + $0x3d0] sm:$0xff] %vm331_vm0, %v989_v17  ;;  %v1497_v4 = vld [vmem:[#allocation2 + $0x112] sm:$0xff] }
 0x120   : > { %v878_v51 = vpop.permute.xlu0 %877  ;;  %v621_v56 = vpop.permute.xlu1 %620  ;;  %v1638_v48 = vld [vmem:[#allocation4 + $0x300] sm:$0xff]  ;;  %v1637_v22 = vld [vmem:[#allocation4 + $0x2f8] sm:$0xff]  ;;  %1529 = vst.msk [vmem:[#allocation4 + $0x318] sm:$0xff] %vm331_vm0, %v1497_v4 }
 0x121   : > { %953 = vst.msk [vmem:[#allocation4 + $0x328] sm:$0xff] %vm676_vm2, %v878_v51  ;;  %697 = vst.msk [vmem:[#allocation4 + $0x320] sm:$0xff] %vm676_vm2, %v621_v56  ;;  %2029 = vmatprep.mubr.f32.mxu0 %v1638_v48  ;;  %v1316_v48 = vld [vmem:[#allocation2 + $0x199] sm:$0xff]  ;;  %v1317_v4 = vld [vmem:[#allocation2 + $0x1a1] sm:$0xff] }
 0x122   : > { %1392 = vrot.lane.b32.xlu0 %v7032_v55, %s6038_s26  ;;  %2030 = vmatmul.mubr.f32.gmra.mxu0 %v1637_v22  ;;  %v990_v55 = vld [vmem:[#allocation2 + $0x141] sm:$0xff] }
 0x123   : > { %1135 = vrot.lane.b32.xlu1 %v6851_v9, %s6038_s26  ;;  %1022 = vst.msk [vmem:[#allocation4 + $0x3f8] sm:$0xff] %vm331_vm0, %v990_v55  ;;  %v1499_v9 = vld [vmem:[#allocation2 + $0x12a] sm:$0xff] }
 0x124   : > { %v1359_v50 = vpop.permute.xlu0 %1358  ;;  %v1560_v35 = vld [vmem:[#allocation4 + $0x90] sm:$0xff]  ;;  %v1102_v0 = vpop.permute.xlu1 %1101  ;;  %v1559_v24 = vld [vmem:[#allocation4 + $0x88] sm:$0xff]  ;;  %1531 = vst.msk [vmem:[#allocation4 + $0x368] sm:$0xff] %vm331_vm0, %v1499_v9 }
 0x125   : > { %1450 = vst.msk [vmem:[#allocation4 + $0xb8] sm:$0xff] %vm676_vm2, %v1359_v50  ;;  %2174 = vmatprep.mubr.f32.mxu1 %v1560_v35  ;;  %1193 = vst.msk [vmem:[#allocation4 + $0xb0] sm:$0xff] %vm676_vm2, %v1102_v0 }
 0x126   : > { %1394 = vrot.lane.b32.xlu0 %v7055_v60, %s6038_s26  ;;  %2175 = vmatmul.mubr.f32.gmra.mxu1 %v1559_v24  ;;  %v991_v60 = vld [vmem:[#allocation2 + $0x151] sm:$0xff] }
 0x127   : > { %1137 = vrot.lane.b32.xlu1 %v6867_v18, %s6038_s26  ;;  %1023 = vst.msk [vmem:[#allocation4 + $0x420] sm:$0xff] %vm331_vm0, %v991_v60  ;;  %v1501_v18 = vld [vmem:[#allocation2 + $0x142] sm:$0xff] }
 0x128   : > { %v880_v53 = vpop.permute.xlu0 %879  ;;  %v623_v3 = vpop.permute.xlu1 %622  ;;  %v1643_v14 = vld [vmem:[#allocation4 + $0x328] sm:$0xff]  ;;  %v1642_v44 = vld [vmem:[#allocation4 + $0x320] sm:$0xff]  ;;  %1533 = vst.msk [vmem:[#allocation4 + $0x3b8] sm:$0xff] %vm331_vm0, %v1501_v18 }
 0x129   : > { %954 = vst.msk [vmem:[#allocation4 + $0x350] sm:$0xff] %vm676_vm2, %v880_v53  ;;  %698 = vst.msk [vmem:[#allocation4 + $0x348] sm:$0xff] %vm676_vm2, %v623_v3  ;;  %2034 = vmatprep.mubr.f32.mxu0 %v1643_v14 }
 0x12a   : > { %1396 = vrot.lane.b32.xlu0 %v7074_v13, %s6038_s26  ;;  %2035 = vmatmul.mubr.f32.gmra.mxu0 %v1642_v44  ;;  %v992_v13 = vld [vmem:[#allocation2 + $0x159] sm:$0xff] }
 0x12b   : > { %1139 = vrot.lane.b32.xlu1 %v6884_v26, %s6038_s26  ;;  %1024 = vst.msk [vmem:[#allocation4 + $0x448] sm:$0xff] %vm331_vm0, %v992_v13  ;;  %v1250_v26 = vld [vmem:[#allocation2 + $0x180] sm:$0xff] }
 0x12c   : > { %v1361_v12 = vpop.permute.xlu0 %1360  ;;  %v1565_v23 = vld [vmem:[#allocation4 + $0xb8] sm:$0xff]  ;;  %v1104_v41 = vpop.permute.xlu1 %1103  ;;  %v1564_v25 = vld [vmem:[#allocation4 + $0xb0] sm:$0xff]  ;;  %1282 = vst.msk [vmem:[#allocation4 + $0x478] sm:$0xff] %vm331_vm0, %v1250_v26 }
 0x12d   : > { %1451 = vst.msk [vmem:[#allocation4 + $0xe0] sm:$0xff] %vm676_vm2, %v1361_v12  ;;  %2179 = vmatprep.mubr.f32.mxu1 %v1565_v23  ;;  %1194 = vst.msk [vmem:[#allocation4 + $0xd8] sm:$0xff] %vm676_vm2, %v1104_v41 }
 0x12e   : > { %1398 = vrot.lane.b32.xlu0 %v7093_v37, %s6038_s26  ;;  %2180 = vmatmul.mubr.f32.gmra.mxu1 %v1564_v25  ;;  %v993_v37 = vld [vmem:[#allocation2 + $0x169] sm:$0xff] }
 0x12f   : > { %1141 = vrot.lane.b32.xlu1 %v6902_v33, %s6038_s26  ;;  %1025 = vst.msk [vmem:[#allocation4 + $0x470] sm:$0xff] %vm331_vm0, %v993_v37  ;;  %v1251_v33 = vld [vmem:[#allocation2 + $0x188] sm:$0xff] }
 0x130   : > { %v882_v5 = vpop.permute.xlu0 %881  ;;  %v625_v29 = vpop.permute.xlu1 %624  ;;  %v1648_v43 = vld [vmem:[#allocation4 + $0x350] sm:$0xff]  ;;  %v1647_v8 = vld [vmem:[#allocation4 + $0x348] sm:$0xff]  ;;  %1283 = vst.msk [vmem:[#allocation4 + $0x4a0] sm:$0xff] %vm331_vm0, %v1251_v33 }
 0x131   : > { %955 = vst.msk [vmem:[#allocation4 + $0x378] sm:$0xff] %vm676_vm2, %v882_v5  ;;  %699 = vst.msk [vmem:[#allocation4 + $0x370] sm:$0xff] %vm676_vm2, %v625_v29  ;;  %2039 = vmatprep.mubr.f32.mxu0 %v1648_v43 }
 0x132   : > { %1400 = vrot.lane.b32.xlu0 %v7109_v61, %s6038_s26  ;;  %2040 = vmatmul.mubr.f32.gmra.mxu0 %v1647_v8  ;;  %v994_v61 = vld [vmem:[#allocation2 + $0x171] sm:$0xff] }
 0x133   : > { %1143 = vrot.lane.b32.xlu1 %v6919_v40, %s6038_s26  ;;  %1026 = vst.msk [vmem:[#allocation4 + $0x498] sm:$0xff] %vm331_vm0, %v994_v61  ;;  %v1252_v40 = vld [vmem:[#allocation2 + $0x198] sm:$0xff] }
 0x134   : > { %v1363_v42 = vpop.permute.xlu0 %1362  ;;  %v1570_v57 = vld [vmem:[#allocation4 + $0xe0] sm:$0xff]  ;;  %v1106_v39 = vpop.permute.xlu1 %1105  ;;  %v1569_v34 = vld [vmem:[#allocation4 + $0xd8] sm:$0xff]  ;;  %1284 = vst.msk [vmem:[#allocation4 + $0x4c8] sm:$0xff] %vm331_vm0, %v1252_v40 }
 0x135   : > { %1452 = vst.msk [vmem:[#allocation4 + $0x108] sm:$0xff] %vm676_vm2, %v1363_v42  ;;  %2184 = vmatprep.mubr.f32.mxu1 %v1570_v57  ;;  %1195 = vst.msk [vmem:[#allocation4 + $0x100] sm:$0xff] %vm676_vm2, %v1106_v39 }
 0x136   : > { %1402 = vrot.lane.b32.xlu0 %v7128_v20, %s6038_s26  ;;  %2185 = vmatmul.mubr.f32.gmra.mxu1 %v1569_v34  ;;  %v1508_v20 = vld [vmem:[#allocation2 + $0x19a] sm:$0xff] }
 0x137   : > { %1145 = vrot.lane.b32.xlu1 %v6935_v47, %s6038_s26  ;;  %v1253_v47 = vld [vmem:[#allocation2 + $0x1a0] sm:$0xff]  ;;  %1540 = vst.msk [vmem:[#allocation4 + $0x4d0] sm:$0xff] %vm331_vm0, %v1508_v20 }
 0x138   : > { %v884_v10 = vpop.permute.xlu0 %883  ;;  %v627_v38 = vpop.permute.xlu1 %626  ;;  %v1653_v52 = vld [vmem:[#allocation4 + $0x378] sm:$0xff]  ;;  %v1652_v58 = vld [vmem:[#allocation4 + $0x370] sm:$0xff]  ;;  %1285 = vst.msk [vmem:[#allocation4 + $0x4f0] sm:$0xff] %vm331_vm0, %v1253_v47 }
 0x139   : > { %956 = vst.msk [vmem:[#allocation4 + $0x3a0] sm:$0xff] %vm676_vm2, %v884_v10  ;;  %700 = vst.msk [vmem:[#allocation4 + $0x398] sm:$0xff] %vm676_vm2, %v627_v38  ;;  %2044 = vmatprep.mubr.f32.mxu0 %v1653_v52 }
 0x13a   : > { %1404 = vrot.lane.b32.xlu0 %v7148_v49, %s6038_s26  ;;  %2045 = vmatmul.mubr.f32.gmra.mxu0 %v1652_v58  ;;  %v996_v49 = vld [vmem:[#allocation2 + $0x189] sm:$0xff] }
 0x13b   : > { %1147 = vrot.lane.b32.xlu1 %v6952_v2, %s6038_s26  ;;  %1028 = vst.msk [vmem:[#allocation4 + $0x4e8] sm:$0xff] %vm331_vm0, %v996_v49  ;;  %v1315_v2 = vld [vmem:[#allocation2 + $0x189] sm:$0xff] }
 0x13c   : > { %v1365_v62 = vpop.permute.xlu0 %1364  ;;  %v1575_v11 = vld [vmem:[#allocation4 + $0x108] sm:$0xff]  ;;  %v1108_v36 = vpop.permute.xlu1 %1107  ;;  %v1574_v63 = vld [vmem:[#allocation4 + $0x100] sm:$0xff] }
 0x13d   : > { %1453 = vst.msk [vmem:[#allocation4 + $0x130] sm:$0xff] %vm676_vm2, %v1365_v62  ;;  %2189 = vmatprep.mubr.f32.mxu1 %v1575_v11  ;;  %1196 = vst.msk [vmem:[#allocation4 + $0x128] sm:$0xff] %vm676_vm2, %v1108_v36 }
 0x13e   : > { %1406 = vrot.lane.b32.xlu0 %v1314_v45, %s6038_s26  ;;  %2190 = vmatmul.mubr.f32.gmra.mxu1 %v1574_v63 }
 0x13f   : > { %1149 = vrot.lane.b32.xlu1 %v6965_v7, %s6038_s26 }
 0x140   : > { %v886_v21 = vpop.permute.xlu0 %885  ;;  %v1658_v59 = vld [vmem:[#allocation4 + $0x3a0] sm:$0xff]  ;;  %v1657_v51 = vld [vmem:[#allocation4 + $0x398] sm:$0xff] }
 0x141   : > { %957 = vst.msk [vmem:[#allocation4 + $0x3c8] sm:$0xff] %vm676_vm2, %v886_v21  ;;  %v629_v56 = vpop.permute.xlu1 %628  ;;  %2049 = vmatprep.mubr.f32.mxu0 %v1658_v59 }
 0x142   : > { %701 = vst.msk [vmem:[#allocation4 + $0x3c0] sm:$0xff] %vm676_vm2, %v629_v56  ;;  %1408 = vrot.lane.b32.xlu0 %v1315_v2, %s6038_s26  ;;  %2050 = vmatmul.mubr.f32.gmra.mxu0 %v1657_v51 }
 0x143   : > { %1151 = vrot.lane.b32.xlu1 %v6977_v15, %s6038_s26 }
 0x144   : > { %v1367_v22 = vpop.permute.xlu0 %1366  ;;  %v1580_v17 = vld [vmem:[#allocation4 + $0x130] sm:$0xff]  ;;  %v1579_v7 = vld [vmem:[#allocation4 + $0x128] sm:$0xff] }
 0x145   : > { %1454 = vst.msk [vmem:[#allocation4 + $0x158] sm:$0xff] %vm676_vm2, %v1367_v22  ;;  %2194 = vmatprep.mubr.f32.mxu1 %v1580_v17  ;;  %v1110_v54 = vpop.permute.xlu1 %1109 }
 0x146   : > { %1197 = vst.msk [vmem:[#allocation4 + $0x150] sm:$0xff] %vm676_vm2, %v1110_v54  ;;  %1410 = vrot.lane.b32.xlu0 %v1316_v48, %s6038_s26  ;;  %2195 = vmatmul.mubr.f32.gmra.mxu1 %v1579_v7  ;;  %v1546_v48 = vld [vmem:[#allocation4 + $0x20] sm:$0xff]  ;;  %v1551_v7 = vld [vmem:[#allocation4 + $0x48] sm:$0xff] }
 0x147   : > { %1153 = vrot.lane.b32.xlu1 %v6991_v31, %s6038_s26 }
 0x148   : > { %v888_v50 = vpop.permute.xlu0 %887  ;;  %v1663_v35 = vld [vmem:[#allocation4 + $0x3c8] sm:$0xff] }
 0x149   : > { %958 = vst.msk [vmem:[#allocation4 + $0x3f0] sm:$0xff] %vm676_vm2, %v888_v50  ;;  %v631_v15 = vpop.permute.xlu1 %630  ;;  %2054 = vmatprep.mubr.f32.mxu0 %v1663_v35  ;;  %v1662_v0 = vld [vmem:[#allocation4 + $0x3c0] sm:$0xff]  ;;  %v1556_v50 = vld [vmem:[#allocation4 + $0x70] sm:$0xff] }
 0x14a   : > { %702 = vst.msk [vmem:[#allocation4 + $0x3e8] sm:$0xff] %vm676_vm2, %v631_v15  ;;  %1412 = vrot.lane.b32.xlu0 %v1317_v4, %s6038_s26  ;;  %2055 = vmatmul.mubr.f32.gmra.mxu0 %v1662_v0  ;;  %v1561_v0 = vld [vmem:[#allocation4 + $0x98] sm:$0xff] }
 0x14b   : > { %1155 = vrot.lane.b32.xlu1 %v7002_v32, %s6038_s26  ;;  %s323_s26 = sand.u32 1, %s6027_s10  }
 0x14c   : > { %v1369_v24 = vpop.permute.xlu0 %1368  ;;  %v1585_v55 = vld [vmem:[#allocation4 + $0x158] sm:$0xff]  ;;  %s5543_s21 = sshll.u32 %s323_s26, 8  ;;  %s9487_s27 = scalar_lea.sflag [#allocation7], %s323_s26 }
 0x14d   : > { %1455 = vst.msk [vmem:[#allocation4 + $0x180] sm:$0xff] %vm676_vm2, %v1369_v24  ;;  %2199 = vmatprep.mubr.f32.mxu1 %v1585_v55  ;;  %v1112_v31 = vpop.permute.xlu1 %1111  ;;  %v1584_v6 = vld [vmem:[#allocation4 + $0x150] sm:$0xff]  ;;  %s9428_s16 = scalar_lea.vmem [#allocation6], %s5543_s21 }
 0x14e   : > { %1198 = vst.msk [vmem:[#allocation4 + $0x178] sm:$0xff] %vm676_vm2, %v1112_v31  ;;  %2200 = vmatmul.mubr.f32.gmra.mxu1 %v1584_v6  ;;  %v1566_v31 = vld [vmem:[#allocation4 + $0xc0] sm:$0xff]  ;;  %s5477_s23 = sshll.u32 %s9428_s16, 4  ;;  %s9471_s23 = int_to_ptr.vmem [resolvable:$true] %s5477_s23 }
 0x14f   : > { %s5975_s28 = scalar_lea.vmem %s9471_s23, 4096  ;;  %p5982_p0 = scmp.lt.s32.totalorder %s9471_s23, %s5980_s14 }
 0x150   : > { %v890_v9 = vpop.permute.xlu0 %889  ;;  %v1668_v53 = vld [vmem:[#allocation4 + $0x3f0] sm:$0xff]  ;;  %p5976_p11 = scmp.ne.s32.totalorder %s9471_s23, %s5975_s28  ;;  %p5983_p1 = scmp.lt.s32.totalorder %s5981_s17, %s5975_s28 }
 0x151   : > { %959 = vst.msk [vmem:[#allocation4 + $0x418] sm:$0xff] %vm676_vm2, %v890_v9  ;;  %v633_v3 = vpop.permute.xlu1 %632  ;;  %2059 = vmatprep.mubr.f32.mxu0 %v1668_v53  ;;  %v1667_v14 = vld [vmem:[#allocation4 + $0x3e8] sm:$0xff] }
 0x152   : > { %703 = vst.msk [vmem:[#allocation4 + $0x410] sm:$0xff] %vm676_vm2, %v633_v3  ;;  %2060 = vmatmul.mubr.f32.gmra.mxu0 %v1667_v14  ;;  %v1571_v53 = vld [vmem:[#allocation4 + $0xe8] sm:$0xff]  ;;  %p5977_p12 = pnand %p5976_p11, %p6132_p5  ;;  %p5984_p2 = por %p5983_p1, %p5982_p0 }
 0x154   : > { %v1371_v32 = vpop.permute.xlu0 %1370  ;;  %v1590_v44 = vld [vmem:[#allocation4 + $0x180] sm:$0xff]  ;;  %p5978_p13 = pneg %p5977_p12 }
 0x155   : > { %1456 = vst.msk [vmem:[#allocation4 + $0x1a8] sm:$0xff] %vm676_vm2, %v1371_v32  ;;  %2204 = vmatprep.mubr.f32.mxu1 %v1590_v44  ;;  %v1114_v60 = vpop.permute.xlu1 %1113  ;;  %v1589_v19 = vld [vmem:[#allocation4 + $0x178] sm:$0xff]  ;;  %v1576_v32 = vld [vmem:[#allocation4 + $0x110] sm:$0xff] }
 0x156   : > { %1199 = vst.msk [vmem:[#allocation4 + $0x1a0] sm:$0xff] %vm676_vm2, %v1114_v60  ;;  %2205 = vmatmul.mubr.f32.gmra.mxu1 %v1589_v19  ;;  %p5985_p3 = pnand %p5984_p2, %p5978_p13 }
 0x158   : > { %v892_v18 = vpop.permute.xlu0 %891  ;;  %v1673_v12 = vld [vmem:[#allocation4 + $0x418] sm:$0xff] }
 0x159   : > { %960 = vst.msk [vmem:[#allocation4 + $0x440] sm:$0xff] %vm676_vm2, %v892_v18  ;;  %v635_v23 = vpop.permute.xlu1 %634  ;;  %2064 = vmatprep.mubr.f32.mxu0 %v1673_v12  ;;  %v1672_v41 = vld [vmem:[#allocation4 + $0x410] sm:$0xff]  ;;  %v1581_v18 = vld [vmem:[#allocation4 + $0x138] sm:$0xff] }
 0x15a   : > { %704 = vst.msk [vmem:[#allocation4 + $0x438] sm:$0xff] %vm676_vm2, %v635_v23  ;;  %2065 = vmatmul.mubr.f32.gmra.mxu0 %v1672_v41 }
 0x15c   : > { %v1373_v25 = vpop.permute.xlu0 %1372  ;;  %v1595_v13 = vld [vmem:[#allocation4 + $0x1a8] sm:$0xff] }
 0x15d   : > { %1457 = vst.msk [vmem:[#allocation4 + $0x1d0] sm:$0xff] %vm676_vm2, %v1373_v25  ;;  %2209 = vmatprep.mubr.f32.mxu1 %v1595_v13  ;;  %v1116_v16 = vpop.permute.xlu1 %1115  ;;  %v1594_v26 = vld [vmem:[#allocation4 + $0x1a0] sm:$0xff] }
 0x15e   : > { %1200 = vst.msk [vmem:[#allocation4 + $0x1c8] sm:$0xff] %vm676_vm2, %v1116_v16  ;;  %2210 = vmatmul.mubr.f32.gmra.mxu1 %v1594_v26  ;;  %v1586_v25 = vld [vmem:[#allocation4 + $0x160] sm:$0xff] }
 0x160   : > { %v894_v28 = vpop.permute.xlu0 %893  ;;  %v1678_v5 = vld [vmem:[#allocation4 + $0x440] sm:$0xff] }
 0x161   : > { %961 = vst.msk [vmem:[#allocation4 + $0x468] sm:$0xff] %vm676_vm2, %v894_v28  ;;  %v637_v29 = vpop.permute.xlu1 %636  ;;  %2069 = vmatprep.mubr.f32.mxu0 %v1678_v5  ;;  %v1677_v43 = vld [vmem:[#allocation4 + $0x438] sm:$0xff]  ;;  %v1591_v28 = vld [vmem:[#allocation4 + $0x188] sm:$0xff] }
 0x162   : > { %705 = vst.msk [vmem:[#allocation4 + $0x460] sm:$0xff] %vm676_vm2, %v637_v29  ;;  %2070 = vmatmul.mubr.f32.gmra.mxu0 %v1677_v43 }
 0x164   : > { %v1375_v8 = vpop.permute.xlu0 %1374  ;;  %v1600_v37 = vld [vmem:[#allocation4 + $0x1d0] sm:$0xff] }
 0x165   : > { %1458 = vst.msk [vmem:[#allocation4 + $0x1f8] sm:$0xff] %vm676_vm2, %v1375_v8  ;;  %2214 = vmatprep.mubr.f32.mxu1 %v1600_v37  ;;  %v1118_v27 = vpop.permute.xlu1 %1117  ;;  %v1599_v33 = vld [vmem:[#allocation4 + $0x1c8] sm:$0xff]  ;;  %v1596_v8 = vld [vmem:[#allocation4 + $0x1b0] sm:$0xff] }
 0x166   : > { %1201 = vst.msk [vmem:[#allocation4 + $0x1f0] sm:$0xff] %vm676_vm2, %v1118_v27  ;;  %2215 = vmatmul.mubr.f32.gmra.mxu1 %v1599_v33 }
 0x168   : > { %v896_v1 = vpop.permute.xlu0 %895  ;;  %v1683_v42 = vld [vmem:[#allocation4 + $0x468] sm:$0xff] }
 0x169   : > { %962 = vst.msk [vmem:[#allocation4 + $0x490] sm:$0xff] %vm676_vm2, %v896_v1  ;;  %v639_v57 = vpop.permute.xlu1 %638  ;;  %2074 = vmatprep.mubr.f32.mxu0 %v1683_v42  ;;  %v1682_v39 = vld [vmem:[#allocation4 + $0x460] sm:$0xff]  ;;  %v1601_v1 = vld [vmem:[#allocation4 + $0x1d8] sm:$0xff] }
 0x16a   : > { %706 = vst.msk [vmem:[#allocation4 + $0x488] sm:$0xff] %vm676_vm2, %v639_v57  ;;  %2075 = vmatmul.mubr.f32.gmra.mxu0 %v1682_v39 }
 0x16c   : > { %v1377_v34 = vpop.permute.xlu0 %1376  ;;  %v1605_v61 = vld [vmem:[#allocation4 + $0x1f8] sm:$0xff] }
 0x16d   : > { %1459 = vst.msk [vmem:[#allocation4 + $0x220] sm:$0xff] %vm676_vm2, %v1377_v34  ;;  %2219 = vmatprep.mubr.f32.mxu1 %v1605_v61  ;;  %v1120_v40 = vpop.permute.xlu1 %1119  ;;  %v1604_v10 = vld [vmem:[#allocation4 + $0x1f0] sm:$0xff]  ;;  %v1606_v34 = vld [vmem:[#allocation4 + $0x200] sm:$0xff] }
 0x16e   : > { %1202 = vst.msk [vmem:[#allocation4 + $0x218] sm:$0xff] %vm676_vm2, %v1120_v40  ;;  %2220 = vmatmul.mubr.f32.gmra.mxu1 %v1604_v10 }
 0x170   : > { %v898_v38 = vpop.permute.xlu0 %897  ;;  %v1688_v52 = vld [vmem:[#allocation4 + $0x490] sm:$0xff] }
 0x171   : > { %963 = vst.msk [vmem:[#allocation4 + $0x4b8] sm:$0xff] %vm676_vm2, %v898_v38  ;;  %v641_v58 = vpop.permute.xlu1 %640  ;;  %2079 = vmatprep.mubr.f32.mxu0 %v1688_v52  ;;  %v1687_v30 = vld [vmem:[#allocation4 + $0x488] sm:$0xff] }
 0x172   : > { %707 = vst.msk [vmem:[#allocation4 + $0x4b0] sm:$0xff] %vm676_vm2, %v641_v58  ;;  %2080 = vmatmul.mubr.f32.gmra.mxu0 %v1687_v30  ;;  %v1611_v38 = vld [vmem:[#allocation4 + $0x228] sm:$0xff] }
 0x174   : > { %v1379_v20 = vpop.permute.xlu0 %1378  ;;  %v1610_v47 = vld [vmem:[#allocation4 + $0x220] sm:$0xff] }
 0x175   : > { %1460 = vst.msk [vmem:[#allocation4 + $0x248] sm:$0xff] %vm676_vm2, %v1379_v20  ;;  %2224 = vmatprep.mubr.f32.mxu1 %v1610_v47  ;;  %v1122_v46 = vpop.permute.xlu1 %1121  ;;  %v1609_v45 = vld [vmem:[#allocation4 + $0x218] sm:$0xff]  ;;  %v1616_v20 = vld [vmem:[#allocation4 + $0x250] sm:$0xff] }
 0x176   : > { %1203 = vst.msk [vmem:[#allocation4 + $0x240] sm:$0xff] %vm676_vm2, %v1122_v46  ;;  %2225 = vmatmul.mubr.f32.gmra.mxu1 %v1609_v45  ;;  %v2668_v47 = vld [vmem:[%s9531_s4 + $0x78] sm:$0xff] }
 0x177   : > { %5772 = vmatpush3.msra.mxu1 %v2668_v47  ;;  %v1686_v47 = vld [vmem:[#allocation4 + $0x480] sm:$0xff] }
 0x178   : > { %v900_v62 = vpop.permute.xlu0 %899  ;;  %v1693_v11 = vld [vmem:[#allocation4 + $0x4b8] sm:$0xff] }
 0x179   : > { %964 = vst.msk [vmem:[#allocation4 + $0x4e0] sm:$0xff] %vm676_vm2, %v900_v62  ;;  %v643_v36 = vpop.permute.xlu1 %642  ;;  %2084 = vmatprep.mubr.f32.mxu0 %v1693_v11  ;;  %v1692_v63 = vld [vmem:[#allocation4 + $0x4b0] sm:$0xff]  ;;  %v1621_v11 = vld [vmem:[#allocation4 + $0x278] sm:$0xff] }
 0x17a   : > { %708 = vst.msk [vmem:[#allocation4 + $0x4d8] sm:$0xff] %vm676_vm2, %v643_v36  ;;  %2085 = vmatmul.mubr.f32.gmra.mxu0 %v1692_v63  ;;  %v7368_v36 = vld [vmem:[#allocation3] sm:$0xff] }
 0x17b   : > { %5773 = vmatprep.subr.mxu1 %v7368_v36 }
 0x17c   : > { %v1381_v49 = vpop.permute.xlu0 %1380  ;;  %v1615_v2 = vld [vmem:[#allocation4 + $0x248] sm:$0xff] }
 0x17d   : > { %1461 = vst.msk [vmem:[#allocation4 + $0x270] sm:$0xff] %vm676_vm2, %v1381_v49  ;;  %2229 = vmatprep.mubr.f32.mxu1 %v1615_v2  ;;  %v1124_v21 = vpop.permute.xlu1 %1123  ;;  %v1614_v59 = vld [vmem:[#allocation4 + $0x240] sm:$0xff] }
 0x17e   : > { %1204 = vst.msk [vmem:[#allocation4 + $0x268] sm:$0xff] %vm676_vm2, %v1124_v21  ;;  %2230 = vmatmul.mubr.f32.gmra.mxu1 %v1614_v59  ;;  %v1626_v21 = vld [vmem:[#allocation4 + $0x2a0] sm:$0xff] }
 0x180   : > { %v1383_v51 = vpop.permute.xlu0 %1382  ;;  %v1698_v56 = vld [vmem:[#allocation4 + $0x4e0] sm:$0xff] }
 0x181   : > { %1462 = vst.msk [vmem:[#allocation4 + $0x298] sm:$0xff] %vm676_vm2, %v1383_v51  ;;  %v1126_v22 = vpop.permute.xlu1 %1125  ;;  %2089 = vmatprep.mubr.f32.mxu0 %v1698_v56  ;;  %v1697_v17 = vld [vmem:[#allocation4 + $0x4d8] sm:$0xff] }
 0x182   : > { %1205 = vst.msk [vmem:[#allocation4 + $0x290] sm:$0xff] %vm676_vm2, %v1126_v22  ;;  %2090 = vmatmul.mubr.f32.gmra.mxu0 %v1697_v17 }
 0x183   : > { %5723 = vmatprep.mubr.msk.f32.mxu0 %vm331_vm0, %v1546_v48  ;;  %v1631_v48 = vld [vmem:[#allocation4 + $0x2c8] sm:$0xff] }
 0x184   : > { %v1385_v54 = vpop.permute.xlu0 %1384  ;;  %v1620_v4 = vld [vmem:[#allocation4 + $0x270] sm:$0xff] }
 0x185   : > { %1463 = vst.msk [vmem:[#allocation4 + $0x2c0] sm:$0xff] %vm676_vm2, %v1385_v54  ;;  %2234 = vmatprep.mubr.f32.mxu1 %v1620_v4  ;;  %v1128_v35 = vpop.permute.xlu1 %1127  ;;  %v1619_v15 = vld [vmem:[#allocation4 + $0x268] sm:$0xff]  ;;  %v1636_v54 = vld [vmem:[#allocation4 + $0x2f0] sm:$0xff] }
 0x186   : > { %1206 = vst.msk [vmem:[#allocation4 + $0x2b8] sm:$0xff] %vm676_vm2, %v1128_v35  ;;  %2235 = vmatmul.mubr.f32.gmra.mxu1 %v1619_v15  ;;  %5724 = vmatmul.mubr.msk.f32.vlgmr.msra.gmra.mxu0 %vm331_vm0, %v1551_v7  ;;  %v2667_v4 = vld [vmem:[%s9531_s4 + $0x70] sm:$0xff] }
 0x187   : > { %5726 = vmatprep.mubr.msk.f32.mxu0 %vm331_vm0, %v1556_v50  ;;  %5774 = vmatpush3.msra.mxu1 %v2667_v4 }
 0x188   : > { %v1387_v24 = vpop.permute.xlu0 %1386  ;;  %v1625_v55 = vld [vmem:[#allocation4 + $0x298] sm:$0xff]  ;;  %5775 = vmatprep.subr.mxu1 %v7368_v36 }
 0x189   : > { %1464 = vst.msk [vmem:[#allocation4 + $0x2e8] sm:$0xff] %vm676_vm2, %v1387_v24  ;;  %2239 = vmatprep.mubr.f32.mxu1 %v1625_v55  ;;  %v1130_v6 = vpop.permute.xlu1 %1129  ;;  %v1624_v9 = vld [vmem:[#allocation4 + $0x290] sm:$0xff] }
 0x18a   : > { %1207 = vst.msk [vmem:[#allocation4 + $0x2e0] sm:$0xff] %vm676_vm2, %v1130_v6  ;;  %2240 = vmatmul.mubr.f32.gmra.mxu1 %v1624_v9  ;;  %5727 = vmatmul.mubr.msk.f32.gmra.mxu0 %vm331_vm0, %v1561_v0  ;;  %v1641_v0 = vld [vmem:[#allocation4 + $0x318] sm:$0xff]  ;;  %v1646_v6 = vld [vmem:[#allocation4 + $0x340] sm:$0xff] }
 0x18b   : > { %5729 = vmatprep.mubr.msk.f32.mxu0 %vm331_vm0, %v1566_v31 }
 0x18c   : > { %v1389_v3 = vpop.permute.xlu0 %1388  ;;  %v1630_v14 = vld [vmem:[#allocation4 + $0x2c0] sm:$0xff] }
 0x18d   : > { %1465 = vst.msk [vmem:[#allocation4 + $0x310] sm:$0xff] %vm676_vm2, %v1389_v3  ;;  %2244 = vmatprep.mubr.f32.mxu1 %v1630_v14  ;;  %v1132_v44 = vpop.permute.xlu1 %1131  ;;  %v1629_v60 = vld [vmem:[#allocation4 + $0x2b8] sm:$0xff]  ;;  %v1651_v14 = vld [vmem:[#allocation4 + $0x368] sm:$0xff] }
 0x18e   : > { %1208 = vst.msk [vmem:[#allocation4 + $0x308] sm:$0xff] %vm676_vm2, %v1132_v44  ;;  %v7337_v19 = vpop.f32.mrf.mxu0  ;;  %2245 = vmatmul.mubr.f32.gmra.mxu1 %v1629_v60  ;;  %5730 = vmatmul.mubr.msk.f32.gmra.mxu0 %vm331_vm0, %v1571_v53 }
 0x18f   : > { %5732 = vmatprep.mubr.msk.f32.mxu0 %vm331_vm0, %v1576_v32 }
 0x190   : > { %v1938_v12 = vpop.f32.mrf.mxu0  ;;  %v1391_v23 = vpop.permute.xlu0 %1390  ;;  %v1635_v41 = vld [vmem:[#allocation4 + $0x2e8] sm:$0xff] }
 0x191   : > { %1466 = vst.msk [vmem:[#allocation4 + $0x338] sm:$0xff] %vm676_vm2, %v1391_v23  ;;  %2249 = vmatprep.mubr.f32.mxu1 %v1635_v41  ;;  %v1134_v13 = vpop.permute.xlu1 %1133  ;;  %v1634_v16 = vld [vmem:[#allocation4 + $0x2e0] sm:$0xff]  ;;  %v2666_v12 = vld [vmem:[%s9531_s4 + $0x68] sm:$0xff] }
 0x192   : > { %1209 = vst.msk [vmem:[#allocation4 + $0x330] sm:$0xff] %vm676_vm2, %v1134_v13  ;;  %v7343_v26 = vpop.f32.mrf.mxu0  ;;  %2250 = vmatmul.mubr.f32.gmra.mxu1 %v1634_v16  ;;  %5733 = vmatmul.mubr.msk.f32.gmra.mxu0 %vm331_vm0, %v1581_v18  ;;  %v1656_v18 = vld [vmem:[#allocation4 + $0x390] sm:$0xff]  ;;  %v1661_v13 = vld [vmem:[#allocation4 + $0x3b8] sm:$0xff] }
 0x193   : > { %5735 = vmatprep.mubr.msk.f32.mxu0 %vm331_vm0, %v1586_v25  ;;  %5776 = vmatpush3.msra.mxu1 %v2666_v12 }
 0x194   : > { %v1943_v5 = vpop.f32.mrf.mxu0  ;;  %v1393_v29 = vpop.permute.xlu0 %1392  ;;  %v1640_v43 = vld [vmem:[#allocation4 + $0x310] sm:$0xff]  ;;  %5777 = vmatprep.subr.mxu1 %v7368_v36 }
 0x195   : > { %1467 = vst.msk [vmem:[#allocation4 + $0x360] sm:$0xff] %vm676_vm2, %v1393_v29  ;;  %2254 = vmatprep.mubr.f32.mxu1 %v1640_v43  ;;  %v1136_v37 = vpop.permute.xlu1 %1135  ;;  %v1639_v27 = vld [vmem:[#allocation4 + $0x308] sm:$0xff]  ;;  %v1666_v29 = vld [vmem:[#allocation4 + $0x3e0] sm:$0xff] }
 0x196   : > { %1210 = vst.msk [vmem:[#allocation4 + $0x358] sm:$0xff] %vm676_vm2, %v1136_v37  ;;  %v7349_v33 = vpop.f32.mrf.mxu0  ;;  %2255 = vmatmul.mubr.f32.gmra.mxu1 %v1639_v27  ;;  %5736 = vmatmul.mubr.msk.f32.gmra.mxu0 %vm331_vm0, %v1591_v28  ;;  %v1671_v27 = vld [vmem:[#allocation4 + $0x408] sm:$0xff] }
 0x197   : > { %5738 = vmatprep.mubr.msk.f32.mxu0 %vm331_vm0, %v1596_v8 }
 0x198   : > { %v1395_v42 = vpop.permute.xlu0 %1394  ;;  %v1948_v57 = vpop.f32.mrf.mxu0  ;;  %v1645_v39 = vld [vmem:[#allocation4 + $0x338] sm:$0xff] }
 0x199   : > { %1468 = vst.msk [vmem:[#allocation4 + $0x388] sm:$0xff] %vm676_vm2, %v1395_v42  ;;  %2259 = vmatprep.mubr.f32.mxu1 %v1645_v39  ;;  %v1138_v61 = vpop.permute.xlu1 %1137  ;;  %v1644_v40 = vld [vmem:[#allocation4 + $0x330] sm:$0xff] }
 0x19a   : > { %1211 = vst.msk [vmem:[#allocation4 + $0x380] sm:$0xff] %vm676_vm2, %v1138_v61  ;;  %v7355_v10 = vpop.f32.mrf.mxu0  ;;  %2260 = vmatmul.mubr.f32.gmra.mxu1 %v1644_v40  ;;  %5739 = vmatmul.mubr.msk.f32.gmra.mxu0 %vm331_vm0, %v1601_v1  ;;  %v1676_v39 = vld [vmem:[#allocation4 + $0x430] sm:$0xff] }
 0x19b   : > { %5741 = vmatprep.mubr.msk.f32.mxu0 %vm331_vm0, %v1606_v34  ;;  %v2665_v34 = vld [vmem:[%s9531_s4 + $0x60] sm:$0xff] }
 0x19c   : > { %v1397_v52 = vpop.permute.xlu0 %1396  ;;  %v1953_v58 = vpop.f32.mrf.mxu0  ;;  %v1650_v30 = vld [vmem:[#allocation4 + $0x360] sm:$0xff]  ;;  %5778 = vmatpush3.msra.mxu1 %v2665_v34  ;;  %v2659_v34 = vld [vmem:[%s9531_s4 + $0x30] sm:$0xff] }
 0x19d   : > { %1469 = vst.msk [vmem:[#allocation4 + $0x3b0] sm:$0xff] %vm676_vm2, %v1397_v52  ;;  %2264 = vmatprep.mubr.f32.mxu1 %v1650_v30  ;;  %v1140_v46 = vpop.permute.xlu1 %1139  ;;  %v1649_v45 = vld [vmem:[#allocation4 + $0x358] sm:$0xff]  ;;  %5779 = vmatprep.subr.mxu1 %v7368_v36 }
 0x19e   : > { %1212 = vst.msk [vmem:[#allocation4 + $0x3a8] sm:$0xff] %vm676_vm2, %v1140_v46  ;;  %v7364_v62 = vpop.f32.mrf.mxu0  ;;  %2265 = vmatmul.mubr.f32.gmra.mxu1 %v1649_v45  ;;  %5742 = vmatmul.mubr.msk.f32.gmra.mxu0 %vm331_vm0, %v1611_v38  ;;  %v1681_v52 = vld [vmem:[#allocation4 + $0x458] sm:$0xff] }
 0x19f   : > { %5744 = vmatprep.mubr.msk.f32.mxu0 %vm331_vm0, %v1616_v20 }
 0x1a0   : > { %v1399_v63 = vpop.permute.xlu0 %1398  ;;  %v1958_v49 = vpop.f32.mrf.mxu0  ;;  %v1655_v2 = vld [vmem:[#allocation4 + $0x388] sm:$0xff] }
 0x1a1   : > { %1470 = vst.msk [vmem:[#allocation4 + $0x3d8] sm:$0xff] %vm676_vm2, %v1399_v63  ;;  %2269 = vmatprep.mubr.f32.mxu1 %v1655_v2  ;;  %v1142_v59 = vpop.permute.xlu1 %1141  ;;  %v1654_v51 = vld [vmem:[#allocation4 + $0x380] sm:$0xff]  ;;  %v1691_v63 = vld [vmem:[#allocation4 + $0x4a8] sm:$0xff] }
 0x1a2   : > { %1213 = vst.msk [vmem:[#allocation4 + $0x3d0] sm:$0xff] %vm676_vm2, %v1142_v59  ;;  %v7373_v56 = vpop.f32.mrf.mxu0  ;;  %2270 = vmatmul.mubr.f32.gmra.mxu1 %v1654_v51  ;;  %5745 = vmatmul.mubr.msk.f32.gmra.mxu0 %vm331_vm0, %v1621_v11  ;;  %v1696_v59 = vld [vmem:[#allocation4 + $0x4d0] sm:$0xff]  ;;  %v2664_v51 = vld [vmem:[%s9531_s4 + $0x58] sm:$0xff] }
 0x1a3   : > { %5747 = vmatprep.mubr.msk.f32.mxu0 %vm331_vm0, %v1626_v21  ;;  %5780 = vmatpush3.msra.mxu1 %v2664_v51  ;;  %v2656_v51 = vld [vmem:[%s9531_s4 + $0x18] sm:$0xff] }
 0x1a4   : > { %v1401_v22 = vpop.permute.xlu0 %1400  ;;  %v1963_v17 = vpop.f32.mrf.mxu0  ;;  %v1660_v7 = vld [vmem:[#allocation4 + $0x3b0] sm:$0xff]  ;;  %5781 = vmatprep.subr.mxu1 %v7368_v36 }
 0x1a5   : > { %1471 = vst.msk [vmem:[#allocation4 + $0x400] sm:$0xff] %vm676_vm2, %v1401_v22  ;;  %2274 = vmatprep.mubr.f32.mxu1 %v1660_v7  ;;  %v1144_v50 = vpop.permute.xlu1 %1143  ;;  %v1659_v35 = vld [vmem:[#allocation4 + $0x3a8] sm:$0xff]  ;;  %v1701_v7 = vld [vmem:[#allocation4 + $0x4f8] sm:$0xff] }
 0x1a6   : > { %1214 = vst.msk [vmem:[#allocation4 + $0x3f8] sm:$0xff] %vm676_vm2, %v1144_v50  ;;  %v7382_v15 = vpop.f32.mrf.mxu0  ;;  %2275 = vmatmul.mubr.f32.gmra.mxu1 %v1659_v35  ;;  %5748 = vmatmul.mubr.msk.f32.gmra.mxu0 %vm331_vm0, %v1631_v48 }
 0x1a7   : > { %5750 = vmatprep.mubr.msk.f32.mxu0 %vm331_vm0, %v1636_v54 }
 0x1a8   : > { %v1403_v24 = vpop.permute.xlu0 %1402  ;;  %v1968_v55 = vpop.f32.mrf.mxu0  ;;  %v1665_v31 = vld [vmem:[#allocation4 + $0x3d8] sm:$0xff] }
 0x1a9   : > { %1472 = vst.msk [vmem:[#allocation4 + $0x428] sm:$0xff] %vm676_vm2, %v1403_v24  ;;  %2279 = vmatprep.mubr.f32.mxu1 %v1665_v31  ;;  %v1146_v9 = vpop.permute.xlu1 %1145  ;;  %v1664_v53 = vld [vmem:[#allocation4 + $0x3d0] sm:$0xff] }
 0x1aa   : > { %1215 = vst.msk [vmem:[#allocation4 + $0x420] sm:$0xff] %vm676_vm2, %v1146_v9  ;;  %v7389_v3 = vpop.f32.mrf.mxu0  ;;  %2280 = vmatmul.mubr.f32.gmra.mxu1 %v1664_v53  ;;  %5751 = vmatmul.mubr.msk.f32.gmra.mxu0 %vm331_vm0, %v1641_v0  ;;  %v2663_v55 = vld [vmem:[%s9531_s4 + $0x50] sm:$0xff] }
 0x1ab   : > { %5753 = vmatprep.mubr.msk.f32.mxu0 %vm331_vm0, %v1646_v6  ;;  %5782 = vmatpush3.msra.mxu1 %v2663_v55 }
 0x1ac   : > { %v1405_v32 = vpop.permute.xlu0 %1404  ;;  %v1973_v44 = vpop.f32.mrf.mxu0  ;;  %v1670_v60 = vld [vmem:[#allocation4 + $0x400] sm:$0xff]  ;;  %5783 = vmatprep.subr.mxu1 %v7368_v36 }
 0x1ad   : > { %1473 = vst.msk [vmem:[#allocation4 + $0x450] sm:$0xff] %vm676_vm2, %v1405_v32  ;;  %2284 = vmatprep.mubr.f32.mxu1 %v1670_v60  ;;  %v1148_v23 = vpop.permute.xlu1 %1147  ;;  %v1669_v41 = vld [vmem:[#allocation4 + $0x3f8] sm:$0xff] }
 0x1ae   : > { %1216 = vst.msk [vmem:[#allocation4 + $0x448] sm:$0xff] %vm676_vm2, %v1148_v23  ;;  %v7398_v25 = vpop.f32.mrf.mxu0  ;;  %2285 = vmatmul.mubr.f32.gmra.mxu1 %v1669_v41  ;;  %5754 = vmatmul.mubr.msk.f32.gmra.mxu0 %vm331_vm0, %v1651_v14  ;;  %v2662_v23 = vld [vmem:[%s9531_s4 + $0x48] sm:$0xff] }
 0x1af   : > { %5756 = vmatprep.mubr.msk.f32.mxu0 %vm331_vm0, %v1656_v18  ;;  %5784 = vmatpush3.msra.mxu1 %v2662_v23 }
 0x1b0   : > { %v1407_v16 = vpop.permute.xlu0 %1406  ;;  %v1978_v28 = vpop.f32.mrf.mxu0  ;;  %v1675_v5 = vld [vmem:[#allocation4 + $0x428] sm:$0xff]  ;;  %5785 = vmatprep.subr.mxu1 %v7368_v36 }
 0x1b1   : > { %1474 = vst.msk [vmem:[#allocation4 + $0x478] sm:$0xff] %vm676_vm2, %v1407_v16  ;;  %2289 = vmatprep.mubr.f32.mxu1 %v1675_v5  ;;  %v1150_v43 = vpop.permute.xlu1 %1149  ;;  %v1674_v8 = vld [vmem:[#allocation4 + $0x420] sm:$0xff] }
 0x1b2   : > { %1217 = vst.msk [vmem:[#allocation4 + $0x470] sm:$0xff] %vm676_vm2, %v1150_v43  ;;  %v7405_v37 = vpop.f32.mrf.mxu0  ;;  %2290 = vmatmul.mubr.f32.gmra.mxu1 %v1674_v8  ;;  %5757 = vmatmul.mubr.msk.f32.gmra.mxu0 %vm331_vm0, %v1661_v13 }
 0x1b3   : > { %5759 = vmatprep.mubr.msk.f32.mxu0 %vm331_vm0, %v1666_v29 }
 0x1b4   : > { %v1409_v1 = vpop.permute.xlu0 %1408  ;;  %v1983_v42 = vpop.f32.mrf.mxu0  ;;  %v1680_v57 = vld [vmem:[#allocation4 + $0x450] sm:$0xff] }
 0x1b5   : > { %1475 = vst.msk [vmem:[#allocation4 + $0x4a0] sm:$0xff] %vm676_vm2, %v1409_v1  ;;  %2294 = vmatprep.mubr.f32.mxu1 %v1680_v57  ;;  %v1152_v61 = vpop.permute.xlu1 %1151  ;;  %v1679_v40 = vld [vmem:[#allocation4 + $0x448] sm:$0xff] }
 0x1b6   : > { %1218 = vst.msk [vmem:[#allocation4 + $0x498] sm:$0xff] %vm676_vm2, %v1152_v61  ;;  %v7414_v38 = vpop.f32.mrf.mxu0  ;;  %2295 = vmatmul.mubr.f32.gmra.mxu1 %v1679_v40  ;;  %5760 = vmatmul.mubr.msk.f32.gmra.mxu0 %vm331_vm0, %v1671_v27  ;;  %v2660_v27 = vld [vmem:[%s9531_s4 + $0x38] sm:$0xff] }
 0x1b7   : > { %5762 = vmatprep.mubr.msk.f32.mxu0 %vm331_vm0, %v1676_v39 }
 0x1b8   : > { %v1411_v58 = vpop.permute.xlu0 %1410  ;;  %v1988_v30 = vpop.f32.mrf.mxu0  ;;  %v1685_v20 = vld [vmem:[#allocation4 + $0x478] sm:$0xff] }
 0x1b9   : > { %1476 = vst.msk [vmem:[#allocation4 + $0x4c8] sm:$0xff] %vm676_vm2, %v1411_v58  ;;  %2299 = vmatprep.mubr.f32.mxu1 %v1685_v20  ;;  %v1154_v46 = vpop.permute.xlu1 %1153  ;;  %v1684_v45 = vld [vmem:[#allocation4 + $0x470] sm:$0xff]  ;;  %v2658_v30 = vld [vmem:[%s9531_s4 + $0x28] sm:$0xff] }
 0x1ba   : > { %1219 = vst.msk [vmem:[#allocation4 + $0x4c0] sm:$0xff] %vm676_vm2, %v1154_v46  ;;  %v7421_v11 = vpop.f32.mrf.mxu0  ;;  %2300 = vmatmul.mubr.f32.gmra.mxu1 %v1684_v45  ;;  %5763 = vmatmul.mubr.msk.f32.gmra.mxu0 %vm331_vm0, %v1681_v52 }
 0x1bb   : > { %5765 = vmatprep.mubr.msk.f32.mxu0 %vm331_vm0, %v1686_v47 }
 0x1bc   : > { %v1413_v49 = vpop.permute.xlu0 %1412  ;;  %v1993_v2 = vpop.f32.mrf.mxu0  ;;  %v1690_v21 = vld [vmem:[#allocation4 + $0x4a0] sm:$0xff] }
 0x1bd   : > { %1477 = vst.msk [vmem:[#allocation4 + $0x4f0] sm:$0xff] %vm676_vm2, %v1413_v49  ;;  %2304 = vmatprep.mubr.f32.mxu1 %v1690_v21  ;;  %v1156_v48 = vpop.permute.xlu1 %1155  ;;  %v1689_v22 = vld [vmem:[#allocation4 + $0x498] sm:$0xff] }
 0x1be   : > { %1220 = vst.msk [vmem:[#allocation4 + $0x4e8] sm:$0xff] %vm676_vm2, %v1156_v48  ;;  %v7430_v17 = vpop.f32.mrf.mxu0  ;;  %2305 = vmatmul.mubr.f32.gmra.mxu1 %v1689_v22  ;;  %5766 = vmatmul.mubr.msk.f32.gmra.mxu0 %vm331_vm0, %v1691_v63  ;;  %v2657_v63 = vld [vmem:[%s9531_s4 + $0x20] sm:$0xff] }
 0x1bf   : > { %5768 = vmatprep.mubr.msk.f32.mxu0 %vm331_vm0, %v1696_v59 }
 0x1c0   : > { %v1998_v54 = vpop.f32.mrf.mxu0  ;;  %v1695_v4 = vld [vmem:[#allocation4 + $0x4c8] sm:$0xff] }
 0x1c1   : > { %2309 = vmatprep.mubr.f32.mxu1 %v1695_v4  ;;  %v1694_v50 = vld [vmem:[#allocation4 + $0x4c0] sm:$0xff] }
 0x1c2   : > { %v7435_v35 = vpop.f32.mrf.mxu0  ;;  %2310 = vmatmul.mubr.f32.gmra.mxu1 %v1694_v50  ;;  %5769 = vmatmul.mubr.msk.f32.gmra.mxu0 %vm331_vm0, %v1701_v7  ;;  %v2655_v50 = vld [vmem:[%s9531_s4 + $0x10] sm:$0xff] }
 0x1c4   : > { %v2003_v0 = vpop.f32.mrf.mxu0  ;;  %v1700_v24 = vld [vmem:[#allocation4 + $0x4f0] sm:$0xff] }
 0x1c5   : > { %2314 = vmatprep.mubr.f32.mxu1 %v1700_v24  ;;  %v1699_v31 = vld [vmem:[#allocation4 + $0x4e8] sm:$0xff] }
 0x1c6   : > { %v7441_v6 = vpop.f32.mrf.mxu0  ;;  %2315 = vmatmul.mubr.f32.gmra.mxu1 %v1699_v31 }
 0x1c7   : > { %5803 = vmatprep.mubr.msk.f32.mxu1 %vm6039_vm3, %v7368_v36 }
 0x1c8   : > { %v2008_v9 = vpop.f32.mrf.mxu0 }
 0x1c9   : > { %v2654_v9 = vld [vmem:[%s9531_s4 + $0x8] sm:$0xff] }
 0x1ca   : > { %v7444_v53 = vpop.f32.mrf.mxu0 }
 0x1cc   : > { %v2013_v14 = vpop.f32.mrf.mxu0 }
 0x1cd   : > { %v2653_v14 = vld [vmem:[%s9531_s4] sm:$0xff] }
 0x1ce   : > { %v7446_v32 = vpop.f32.mrf.mxu0 }
 0x1cf   : > { %v2161_v44 = vpop.f32.mrf.mxu1 }
 0x1d0   : > { %v7449_v60 = vadd.f32 %v2161_v44, %v7337_v19  ;;  %v2018_v18 = vpop.f32.mrf.mxu0  ;;  %v2661_v19 = vld [vmem:[%s9531_s4 + $0x40] sm:$0xff] }
 0x1d1   : > { %v2163_v12 = vpop.f32.mrf.mxu1  ;;  %5786 = vmatpush3.msra.mxu1 %v2661_v19  ;;  %v3844_v19 = vld [vmem:[%s9532_s5 + $0x70] sm:$0xff] }
 0x1d2   : > { %v7454_v41 = vpop.f32.mrf.mxu0  ;;  %5787 = vmatprep.subr.mxu1 %v7368_v36 }
 0x1d3   : > { %5788 = vmatpush3.msra.mxu1 %v2660_v27 }
 0x1d4   : > { %v2023_v13 = vpop.f32.mrf.mxu0  ;;  %5789 = vmatprep.subr.mxu1 %v7368_v36 }
 0x1d5   : > { %5790 = vmatpush3.msra.mxu1 %v2659_v34  ;;  %v3841_v34 = vld [vmem:[%s9532_s5 + $0x58] sm:$0xff] }
 0x1d6   : > { %v7457_v16 = vpop.f32.mrf.mxu1  ;;  %5791 = vmatprep.subr.mxu1 %v7368_v36 }
 0x1d7   : > { %5792 = vmatpush3.msra.mxu1 %v2658_v30 }
 0x1d8   : > { %v2168_v28 = vpop.f32.mrf.mxu1  ;;  %5793 = vmatprep.subr.mxu1 %v7368_v36 }
 0x1d9   : > { %5794 = vmatpush3.msra.mxu1 %v2657_v63  ;;  %v3845_v28 = vld [vmem:[%s9532_s5 + $0x78] sm:$0xff]  ;;  %v3838_v63 = vld [vmem:[%s9532_s5 + $0x40] sm:$0xff] }
 0x1da   : > { %v7462_v5 = vpop.f32.mrf.mxu0  ;;  %5795 = vmatprep.subr.mxu1 %v7368_v36  ;;  %3975 = vmatpush1.msra.mxu0 %v3845_v28 }
 0x1db   : > { %5796 = vmatpush3.msra.mxu1 %v2656_v51  ;;  %3976 = vmatprep.subr.mxu0 %v7368_v36 }
 0x1dc   : > { %v2028_v29 = vpop.f32.mrf.mxu0  ;;  %5797 = vmatprep.subr.mxu1 %v7368_v36  ;;  %3977 = vmatpush1.msra.mxu0 %v3844_v19 }
 0x1dd   : > { %5798 = vmatpush3.msra.mxu1 %v2655_v50  ;;  %3978 = vmatprep.subr.mxu0 %v7368_v36 }
 0x1de   : > { %v7465_v43 = vpop.f32.mrf.mxu1  ;;  %5799 = vmatprep.subr.mxu1 %v7368_v36 }
 0x1df   : > { %5800 = vmatpush3.msra.mxu1 %v2654_v9 }
 0x1e0   : > { %v2173_v8 = vpop.f32.mrf.mxu1  ;;  %5801 = vmatprep.subr.mxu1 %v7368_v36 }
 0x1e1   : > { %5802 = vmatpush3.msra.mxu1 %v2653_v14  ;;  %v3843_v8 = vld [vmem:[%s9532_s5 + $0x68] sm:$0xff] }
 0x1e2   : > { %v7470_v1 = vpop.f32.mrf.mxu0  ;;  %4199 = vmatprep.subr.mxu1 %v7368_v36  ;;  %3979 = vmatpush1.msra.mxu0 %v3843_v8 }
 0x1e3   : > { %3980 = vmatprep.subr.mxu0 %v7368_v36 }
 0x1e4   : > { %v2033_v42 = vpop.f32.mrf.mxu0 }
 0x1e5   : > { %v3842_v42 = vld [vmem:[%s9532_s5 + $0x60] sm:$0xff] }
 0x1e6   : > { %v7473_v57 = vpop.f32.mrf.mxu1  ;;  %3981 = vmatpush1.msra.mxu0 %v3842_v42 }
 0x1e7   : > { %3982 = vmatprep.subr.mxu0 %v7368_v36 }
 0x1e8   : > { %v2178_v39 = vpop.f32.mrf.mxu1  ;;  %3983 = vmatpush1.msra.mxu0 %v3841_v34  ;;  %v2167_v34 = vadd.f32 %v7457_v16, %v7343_v26 }
 0x1e9   : > { %3984 = vmatprep.subr.mxu0 %v7368_v36 }
 0x1ea   : > { %v7478_v61 = vpop.f32.mrf.mxu0 }
 0x1ec   : > { %v2038_v40 = vpop.f32.mrf.mxu0 }
 0x1ee   : > { %v7481_v52 = vpop.f32.mrf.mxu1 }
 0x1f0   : > { %v2183_v58 = vpop.f32.mrf.mxu1 }
 0x1f1   : > { %v3840_v58 = vld [vmem:[%s9532_s5 + $0x50] sm:$0xff] }
 0x1f2   : > { %v7486_v20 = vpop.f32.mrf.mxu0  ;;  %3985 = vmatpush1.msra.mxu0 %v3840_v58 }
 0x1f3   : > { %3986 = vmatprep.subr.mxu0 %v7368_v36 }
 0x1f4   : > { %v2043_v47 = vpop.f32.mrf.mxu0 }
 0x1f5   : > { %v3839_v47 = vld [vmem:[%s9532_s5 + $0x48] sm:$0xff] }
 0x1f6   : > { %v7489_v46 = vpop.f32.mrf.mxu1  ;;  %3987 = vmatpush1.msra.mxu0 %v3839_v47 }
 0x1f7   : > { %3988 = vmatprep.subr.mxu0 %v7368_v36 }
 0x1f8   : > { %v2188_v45 = vpop.f32.mrf.mxu1  ;;  %3989 = vmatpush1.msra.mxu0 %v3838_v63  ;;  %v2177_v63 = vadd.f32 %v7473_v57, %v7355_v10  ;;  %v2182_v57 = vadd.f32 %v7481_v52, %v7364_v62 }
 0x1f9   : > { %3990 = vmatprep.subr.mxu0 %v7368_v36 }
 0x1fa   : > { %v7494_v49 = vpop.f32.mrf.mxu0 }
 0x1fc   : > { %v2048_v2 = vpop.f32.mrf.mxu0 }
 0x1fe   : > { %v7497_v21 = vpop.f32.mrf.mxu1 }
 0x200   : > { %v2193_v59 = vpop.f32.mrf.mxu1 }
 0x201   : > { %v3837_v59 = vld [vmem:[%s9532_s5 + $0x38] sm:$0xff] }
 0x202   : > { %v7502_v48 = vpop.f32.mrf.mxu0  ;;  %3991 = vmatpush1.msra.mxu0 %v3837_v59 }
 0x203   : > { %3992 = vmatprep.subr.mxu0 %v7368_v36 }
 0x204   : > { %v2053_v22 = vpop.f32.mrf.mxu0 }
 0x205   : > { %v3836_v22 = vld [vmem:[%s9532_s5 + $0x30] sm:$0xff] }
 0x206   : > { %v7505_v7 = vpop.f32.mrf.mxu1  ;;  %3993 = vmatpush1.msra.mxu0 %v3836_v22  ;;  %v2172_v22 = vadd.f32 %v7465_v43, %v7349_v33  ;;  %v2187_v43 = vadd.f32 %v7489_v46, %v7373_v56 }
 0x207   : > { %3994 = vmatprep.subr.mxu0 %v7368_v36  ;;  %v2197_v56 = vadd.f32 %v7505_v7, %v7389_v3 }
 0x208   : > { %v2198_v54 = vpop.f32.mrf.mxu1 }
 0x20a   : > { %v7507_v4 = vpop.f32.mrf.mxu0 }
 0x20c   : > { %v2058_v0 = vpop.f32.mrf.mxu0 }
 0x20e   : > { %v7513_v24 = vpop.f32.mrf.mxu1 }
 0x210   : > { %v2203_v55 = vpop.f32.mrf.mxu1 }
 0x212   : > { %v7515_v31 = vpop.f32.mrf.mxu0 }
 0x214   : > { %v2063_v44 = vpop.f32.mrf.mxu0 }
 0x216   : > { %v7526_v18 = vpop.f32.mrf.mxu1 }
 0x218   : > { %v2208_v12 = vpop.f32.mrf.mxu1 }
 0x21a   : > { %v7529_v23 = vpop.f32.mrf.mxu0 }
 0x21c   : > { %v2068_v13 = vpop.f32.mrf.mxu0 }
 0x21e   : > { %v7537_v29 = vpop.f32.mrf.mxu1 }
 0x220   : > { %v2213_v27 = vpop.f32.mrf.mxu1 }
 0x222   : > { %v7547_v39 = vpop.f32.mrf.mxu0 }
 0x224   : > { %v2073_v40 = vpop.f32.mrf.mxu0 }
 0x226   : > { %v7557_v30 = vpop.f32.mrf.mxu1 }
 0x228   : > { %v2218_v45 = vpop.f32.mrf.mxu1 }
 0x22a   : > { %v7567_v2 = vpop.f32.mrf.mxu0 }
 0x22c   : > { %v2078_v51 = vpop.f32.mrf.mxu0 }
 0x22e   : > { %v7577_v54 = vpop.f32.mrf.mxu1 }
 0x230   : > { %v2223_v50 = vpop.f32.mrf.mxu1 }
 0x232   : > { %v7581_v0 = vpop.f32.mrf.mxu0 }
 0x234   : > { %v2083_v55 = vpop.f32.mrf.mxu0 }
 0x236   : > { %v7583_v9 = vpop.f32.mrf.mxu1 }
 0x238   : > { %v2228_v14 = vpop.f32.mrf.mxu1 }
 0x23a   : > { %v7585_v44 = vpop.f32.mrf.mxu0 }
 0x23c   : > { %v2088_v12 = vpop.f32.mrf.mxu0 }
 0x23e   : > { %v7587_v13 = vpop.f32.mrf.mxu1 }
 0x240   : > { %v2233_v28 = vpop.f32.mrf.mxu1 }
 0x242   : > { %v7589_v19 = vpop.f32.mrf.mxu0 }
 0x244   : > { %v2093_v8 = vpop.f32.mrf.mxu0 }
 0x246   : > { %v7591_v27 = vpop.f32.mrf.mxu1  ;;  %v5725_v42 = vpop.f32.mrf.mxu0 }
 0x247   : > { %v7595_v47 = vadd.f32 %v5725_v42, %v2167_v34 }
 0x248   : > { %v2238_v40 = vpop.f32.mrf.mxu1  ;;  %v2386_v58 = vpop.f32.mrf.mxu0 }
 0x249   : > { %v7598_v45 = vadd.f32 %v2386_v58, %v7449_v60  ;;  %v2583_v60 = vmul.f32 %v7595_v47, %v7595_v47 }
 0x24a   : > { %v7602_v59 = vpop.f32.mrf.mxu1  ;;  %v5728_v51 = vpop.f32.mrf.mxu0 }
 0x24b   : > { %v2582_v50 = vmul.f32 %v7598_v45, %v7598_v45  ;;  %v7608_v26 = vadd.f32 %v5728_v51, %v2177_v63  ;;  %v2545_v14 = vadd.f32 %v7595_v47, %v7598_v45 }
 0x24c   : > { %v2243_v16 = vpop.f32.mrf.mxu1  ;;  %v2396_v55 = vpop.f32.mrf.mxu0 }
 0x24d   : > { %v7614_v10 = vadd.f32 %v2396_v55, %v2172_v22  ;;  %v2614_v28 = vadd.f32 %v2583_v60, %v2582_v50  ;;  %v2585_v34 = vmul.f32 %v7608_v26, %v7608_v26  ;;  %v2192_v50 = vadd.f32 %v7497_v21, %v7382_v15 }
 0x24e   : > { %v7618_v12 = vpop.f32.mrf.mxu1  ;;  %v5731_v33 = vpop.f32.mrf.mxu0  ;;  %v2202_v15 = vadd.f32 %v7513_v24, %v7398_v25 }
 0x24f   : > { %v2546_v8 = vadd.f32 %v2545_v14, %v7614_v10  ;;  %v2584_v42 = vmul.f32 %v7614_v10, %v7614_v10  ;;  %v7627_v51 = vadd.f32 %v5731_v33, %v2187_v43 }
 0x250   : > { %v2248_v40 = vpop.f32.mrf.mxu1  ;;  %v2406_v58 = vpop.f32.mrf.mxu0 }
 0x251   : > { %v2615_v63 = vadd.f32 %v2614_v28, %v2584_v42  ;;  %v7629_v62 = vadd.f32 %v2406_v58, %v2182_v57  ;;  %v2547_v52 = vadd.f32 %v2546_v8, %v7608_v26  ;;  %v2587_v43 = vmul.f32 %v7627_v51, %v7627_v51 }
 0x252   : > { %v7634_v46 = vpop.f32.mrf.mxu1  ;;  %v5734_v22 = vpop.f32.mrf.mxu0  ;;  %v2207_v42 = vadd.f32 %v7526_v18, %v7405_v37  ;;  %v2217_v37 = vadd.f32 %v7557_v30, %v7421_v11 }
 0x253   : > { %v2548_v16 = vadd.f32 %v2547_v52, %v7629_v62  ;;  %v2586_v55 = vmul.f32 %v7629_v62, %v7629_v62  ;;  %v2616_v60 = vadd.f32 %v2615_v63, %v2585_v34  ;;  %v7641_v14 = vadd.f32 %v5734_v22, %v2197_v56 }
 0x254   : > { %v2253_v57 = vpop.f32.mrf.mxu1  ;;  %v2416_v33 = vpop.f32.mrf.mxu0 }
 0x255   : > { %v2617_v3 = vadd.f32 %v2616_v60, %v2586_v55  ;;  %v7645_v7 = vadd.f32 %v2416_v33, %v2192_v50  ;;  %v2549_v28 = vadd.f32 %v2548_v16, %v7627_v51  ;;  %v2589_v63 = vmul.f32 %v7641_v14, %v7641_v14 }
 0x256   : > { %v7650_v21 = vpop.f32.mrf.mxu1  ;;  %v5737_v8 = vpop.f32.mrf.mxu0  ;;  %v2212_v55 = vadd.f32 %v7537_v29, %v7414_v38  ;;  %v2222_v38 = vadd.f32 %v7577_v54, %v7430_v17 }
 0x257   : > { %v2550_v34 = vadd.f32 %v2549_v28, %v7645_v7  ;;  %v2588_v40 = vmul.f32 %v7645_v7, %v7645_v7  ;;  %v2618_v58 = vadd.f32 %v2617_v3, %v2587_v43  ;;  %v7659_v50 = vadd.f32 %v5737_v8, %v2207_v42 }
 0x258   : > { %v2258_v52 = vpop.f32.mrf.mxu1  ;;  %v2426_v56 = vpop.f32.mrf.mxu0 }
 0x259   : > { %v2619_v22 = vadd.f32 %v2618_v58, %v2588_v40  ;;  %v7661_v25 = vadd.f32 %v2426_v56, %v2202_v15  ;;  %v2551_v24 = vadd.f32 %v2550_v34, %v7641_v14  ;;  %v2591_v15 = vmul.f32 %v7659_v50, %v7659_v50 }
 0x25a   : > { %v7666_v18 = vpop.f32.mrf.mxu1  ;;  %v5740_v16 = vpop.f32.mrf.mxu0  ;;  %v2227_v34 = vadd.f32 %v7583_v9, %v7435_v35  ;;  %v2237_v35 = vadd.f32 %v7591_v27, %v7444_v53 }
 0x25b   : > { %v2552_v60 = vadd.f32 %v2551_v24, %v7661_v25  ;;  %v2590_v57 = vmul.f32 %v7661_v25, %v7661_v25  ;;  %v2620_v33 = vadd.f32 %v2619_v22, %v2589_v63  ;;  %v7673_v43 = vadd.f32 %v5740_v16, %v2217_v37 }
 0x25c   : > { %v2263_v3 = vpop.f32.mrf.mxu1  ;;  %v2436_v28 = vpop.f32.mrf.mxu0 }
 0x25d   : > { %v2621_v11 = vadd.f32 %v2620_v33, %v2590_v57  ;;  %v7677_v30 = vadd.f32 %v2436_v28, %v2212_v55  ;;  %v2553_v8 = vadd.f32 %v2552_v60, %v7659_v50  ;;  %v2593_v52 = vmul.f32 %v7673_v43, %v7673_v43 }
 0x25e   : > { %v2266_v29 = vpop.f32.mrf.mxu1  ;;  %v5743_v42 = vpop.f32.mrf.mxu0  ;;  %v2232_v55 = vadd.f32 %v7587_v13, %v7441_v6  ;;  %v2242_v6 = vadd.f32 %v7602_v59, %v7446_v32 }
 0x25f   : > { %v2554_v40 = vadd.f32 %v2553_v8, %v7677_v30  ;;  %v2592_v58 = vmul.f32 %v7677_v30, %v7677_v30  ;;  %v2622_v63 = vadd.f32 %v2621_v11, %v2591_v15  ;;  %v7689_v37 = vadd.f32 %v5743_v42, %v2227_v34 }
 0x260   : > { %v2268_v56 = vpop.f32.mrf.mxu1  ;;  %v2446_v22 = vpop.f32.mrf.mxu0  ;;  %v2247_v42 = vadd.f32 %v7618_v12, %v7454_v41  ;;  %v2257_v41 = vadd.f32 %v7650_v21, %v7470_v1 }
 0x261   : > { %v2623_v24 = vadd.f32 %v2622_v63, %v2592_v58  ;;  %v7691_v17 = vadd.f32 %v2446_v22, %v2222_v38  ;;  %v2555_v54 = vadd.f32 %v2554_v40, %v7673_v43  ;;  %v2595_v11 = vmul.f32 %v7689_v37, %v7689_v37 }
 0x262   : > { %v2271_v9 = vpop.f32.mrf.mxu1  ;;  %v5746_v16 = vpop.f32.mrf.mxu0 }
 0x263   : > { %v2556_v60 = vadd.f32 %v2555_v54, %v7691_v17  ;;  %v2594_v57 = vmul.f32 %v7691_v17, %v7691_v17  ;;  %v2624_v33 = vadd.f32 %v2623_v24, %v2593_v52  ;;  %v7701_v3 = vadd.f32 %v5746_v16, %v2237_v35 }
 0x264   : > { %v2273_v28 = vpop.f32.mrf.mxu1  ;;  %v2456_v15 = vpop.f32.mrf.mxu0  ;;  %v2252_v35 = vadd.f32 %v7634_v46, %v7462_v5  ;;  %v2262_v5 = vadd.f32 %v7666_v18, %v7478_v61 }
 0x265   : > { %v2625_v8 = vadd.f32 %v2624_v33, %v2594_v57  ;;  %v7705_v53 = vadd.f32 %v2456_v15, %v2232_v55  ;;  %v2557_v27 = vadd.f32 %v2556_v60, %v7689_v37  ;;  %v2597_v63 = vmul.f32 %v7701_v3, %v7701_v3 }
 0x266   : > { %v2276_v13 = vpop.f32.mrf.mxu1  ;;  %v5749_v38 = vpop.f32.mrf.mxu0 }
 0x267   : > { %v2558_v34 = vadd.f32 %v2557_v27, %v7705_v53  ;;  %v2596_v40 = vmul.f32 %v7705_v53, %v7705_v53  ;;  %v2626_v58 = vadd.f32 %v2625_v8, %v2595_v11  ;;  %v7717_v24 = vadd.f32 %v5749_v38, %v2247_v42 }
 0x268   : > { %v2278_v52 = vpop.f32.mrf.mxu1  ;;  %v2466_v56 = vpop.f32.mrf.mxu0  ;;  %v2267_v27 = vadd.f32 %v2266_v29, %v7486_v20  ;;  %v2277_v20 = vadd.f32 %v2276_v13, %v7502_v48 }
 0x269   : > { %v2627_v22 = vadd.f32 %v2626_v58, %v2596_v40  ;;  %v7719_v32 = vadd.f32 %v2466_v56, %v2242_v6  ;;  %v2559_v59 = vadd.f32 %v2558_v34, %v7701_v3  ;;  %v2599_v15 = vmul.f32 %v7717_v24, %v7717_v24 }
 0x26a   : > { %v2281_v12 = vpop.f32.mrf.mxu1  ;;  %v5752_v54 = vpop.f32.mrf.mxu0 }
 0x26b   : > { %v2560_v16 = vadd.f32 %v2559_v59, %v7719_v32  ;;  %v2598_v55 = vmul.f32 %v7719_v32, %v7719_v32  ;;  %v2628_v60 = vadd.f32 %v2627_v22, %v2597_v63  ;;  %v7729_v57 = vadd.f32 %v5752_v54, %v2257_v41 }
 0x26c   : > { %v2283_v33 = vpop.f32.mrf.mxu1  ;;  %v2476_v28 = vpop.f32.mrf.mxu0  ;;  %v2272_v22 = vadd.f32 %v2271_v9, %v7494_v49  ;;  %v2282_v49 = vadd.f32 %v2281_v12, %v7507_v4 }
 0x26d   : > { %v2629_v11 = vadd.f32 %v2628_v60, %v2598_v55  ;;  %v7733_v1 = vadd.f32 %v2476_v28, %v2252_v35  ;;  %v2561_v21 = vadd.f32 %v2560_v16, %v7717_v24  ;;  %v2601_v34 = vmul.f32 %v7729_v57, %v7729_v57 }
 0x26e   : > { %v2286_v46 = vpop.f32.mrf.mxu1  ;;  %v5755_v8 = vpop.f32.mrf.mxu0 }
 0x26f   : > { %v2562_v6 = vadd.f32 %v2561_v21, %v7733_v1  ;;  %v2600_v38 = vmul.f32 %v7733_v1, %v7733_v1  ;;  %v2630_v42 = vadd.f32 %v2629_v11, %v2599_v15  ;;  %v7744_v52 = vadd.f32 %v5755_v8, %v2267_v27 }
 0x270   : > { %v2288_v40 = vpop.f32.mrf.mxu1  ;;  %v2486_v58 = vpop.f32.mrf.mxu0  ;;  %v2287_v15 = vadd.f32 %v2286_v46, %v7515_v31 }
 0x271   : > { %v2631_v63 = vadd.f32 %v2630_v42, %v2600_v38  ;;  %v7746_v56 = vadd.f32 %v2486_v58, %v2262_v5  ;;  %v2563_v61 = vadd.f32 %v2562_v6, %v7729_v57  ;;  %v2603_v60 = vmul.f32 %v7744_v52, %v7744_v52 }
 0x272   : > { %v2291_v18 = vpop.f32.mrf.mxu1  ;;  %v5758_v29 = vpop.f32.mrf.mxu0 }
 0x273   : > { %v2564_v59 = vadd.f32 %v2563_v61, %v7746_v56  ;;  %v2602_v41 = vmul.f32 %v7746_v56, %v7746_v56  ;;  %v2632_v54 = vadd.f32 %v2631_v63, %v2601_v34  ;;  %v7754_v35 = vadd.f32 %v5758_v29, %v2277_v20 }
 0x274   : > { %v2293_v16 = vpop.f32.mrf.mxu1  ;;  %v2496_v55 = vpop.f32.mrf.mxu0  ;;  %v2292_v40 = vadd.f32 %v2291_v18, %v7529_v23 }
 0x275   : > { %v2633_v33 = vadd.f32 %v2632_v54, %v2602_v41  ;;  %v7758_v28 = vadd.f32 %v2496_v55, %v2272_v22  ;;  %v2565_v48 = vadd.f32 %v2564_v59, %v7744_v52  ;;  %v2605_v8 = vmul.f32 %v7754_v35, %v7754_v35 }
 0x276   : > { %v2296_v9 = vpop.f32.mrf.mxu1  ;;  %v5761_v13 = vpop.f32.mrf.mxu0 }
 0x277   : > { %v2566_v11 = vadd.f32 %v2565_v48, %v7758_v28  ;;  %v2604_v21 = vmul.f32 %v7758_v28, %v7758_v28  ;;  %v2634_v5 = vadd.f32 %v2633_v33, %v2603_v60  ;;  %v7768_v42 = vadd.f32 %v5761_v13, %v2287_v15 }
 0x278   : > { %v2298_v27 = vpop.f32.mrf.mxu1  ;;  %v2506_v6 = vpop.f32.mrf.mxu0  ;;  %v2297_v31 = vadd.f32 %v2296_v9, %v7547_v39 }
 0x279   : > { %v2635_v38 = vadd.f32 %v2634_v5, %v2604_v21  ;;  %v7770_v34 = vadd.f32 %v2506_v6, %v2282_v49  ;;  %v2567_v4 = vadd.f32 %v2566_v11, %v7754_v35  ;;  %v2607_v59 = vmul.f32 %v7768_v42, %v7768_v42 }
 0x27a   : > { %v2301_v12 = vpop.f32.mrf.mxu1  ;;  %v5764_v46 = vpop.f32.mrf.mxu0 }
 0x27b   : > { %v2568_v58 = vadd.f32 %v2567_v4, %v7770_v34  ;;  %v2606_v63 = vmul.f32 %v7770_v34, %v7770_v34  ;;  %v2636_v61 = vadd.f32 %v2635_v38, %v2605_v8  ;;  %v7778_v20 = vadd.f32 %v5764_v46, %v2297_v31 }
 0x27c   : > { %v2303_v29 = vpop.f32.mrf.mxu1  ;;  %v2516_v22 = vpop.f32.mrf.mxu0  ;;  %v2302_v23 = vadd.f32 %v2301_v12, %v7567_v2 }
 0x27d   : > { %v2637_v41 = vadd.f32 %v2636_v61, %v2606_v63  ;;  %v7782_v54 = vadd.f32 %v2516_v22, %v2292_v40  ;;  %v2569_v39 = vadd.f32 %v2568_v58, %v7768_v42  ;;  %v2609_v49 = vmul.f32 %v7778_v20, %v7778_v20 }
 0x27e   : > { %v2306_v18 = vpop.f32.mrf.mxu1  ;;  %v5767_v16 = vpop.f32.mrf.mxu0 }
 0x27f   : > { %v2570_v55 = vadd.f32 %v2569_v39, %v7782_v54  ;;  %v2608_v60 = vmul.f32 %v7782_v54, %v7782_v54  ;;  %v2638_v33 = vadd.f32 %v2637_v41, %v2607_v59  ;;  %v2307_v48 = vadd.f32 %v2306_v18, %v7581_v0 }
 0x280   : > { %v2308_v9 = vpop.f32.mrf.mxu1  ;;  %v2526_v13 = vpop.f32.mrf.mxu0 }
 0x281   : > { %v2639_v15 = vadd.f32 %v2638_v33, %v2608_v60  ;;  %v7792_v11 = vadd.f32 %v5767_v16, %v2307_v48  ;;  %v7794_v21 = vadd.f32 %v2526_v13, %v2302_v23  ;;  %v2571_v2 = vadd.f32 %v2570_v55, %v7778_v20 }
 0x282   : > { %v2311_v5 = vpop.f32.mrf.mxu1  ;;  %v5770_v8 = vpop.f32.mrf.mxu0 }
 0x283   : > { %v2572_v27 = vadd.f32 %v2571_v2, %v7794_v21  ;;  %v2610_v6 = vmul.f32 %v7794_v21, %v7794_v21  ;;  %v2640_v0 = vadd.f32 %v2639_v15, %v2609_v49  ;;  %v2312_v38 = vadd.f32 %v2311_v5, %v7585_v44 }
 0x284   : > { %v2313_v4 = vpop.f32.mrf.mxu1  ;;  %v2536_v31 = vpop.f32.mrf.mxu0  ;;  %v2611_v12 = vmul.f32 %v7792_v11, %v7792_v11 }
 0x285   : > { %v2641_v46 = vadd.f32 %v2640_v0, %v2610_v6  ;;  %v2573_v40 = vadd.f32 %v2572_v27, %v7792_v11  ;;  %v7804_v58 = vadd.f32 %v2536_v31, %v2312_v38  ;;  %v3877_v27 = vld [vmem:[%s9532_s5 + $0x178] sm:$0xff]  ;;  %v3876_v0 = vld [vmem:[%s9532_s5 + $0x170] sm:$0xff]  ;;  %v3875_v38 = vld [vmem:[%s9532_s5 + $0x168] sm:$0xff] }
 0x286   : > { %v2316_v63 = vpop.f32.mrf.mxu1  ;;  %v7826_v4 = vld [vmem:[#allocation3] sm:$0xff]  ;;  %v3874_v31 = vld [vmem:[%s9532_s5 + $0x160] sm:$0xff] }
 0x287   : > { %v2642_v61 = vadd.f32 %v2641_v46, %v2611_v12  ;;  %v2317_v29 = vadd.f32 %v2316_v63, %v7589_v19  ;;  %v2612_v22 = vmul.f32 %v7804_v58, %v7804_v58  ;;  %v2574_v44 = vadd.f32 %v2573_v40, %v7804_v58  ;;  %v3835_v12 = vld [vmem:[%s9532_s5 + $0x28] sm:$0xff]  ;;  %v3834_v46 = vld [vmem:[%s9532_s5 + $0x20] sm:$0xff]  ;;  %v3872_v40 = vld [vmem:[%s9532_s5 + $0x150] sm:$0xff] }
 0x288   : > { %v2318_v59 = vpop.f32.mrf.mxu1  ;;  %3995 = vmatpush1.msra.mxu0 %v3835_v12  ;;  %v3833_v63 = vld [vmem:[%s9532_s5 + $0x18] sm:$0xff]  ;;  %v3851_v12 = vld [vmem:[%s9532_s5 + $0xa8] sm:$0xff] }
 0x289   : > { %v7810_v41 = vadd.f32 %v5770_v8, %v2317_v29  ;;  %v2643_v39 = vadd.f32 %v2642_v61, %v2612_v22  ;;  %3996 = vmatprep.subr.mxu0 %v7826_v4  ;;  %v3871_v61 = vld [vmem:[%s9532_s5 + $0x148] sm:$0xff]  ;;  %v3832_v29 = vld [vmem:[%s9532_s5 + $0x10] sm:$0xff]  ;;  %v3870_v22 = vld [vmem:[%s9532_s5 + $0x140] sm:$0xff] }
 0x28a   : > { %3997 = vmatpush1.msra.mxu0 %v3834_v46  ;;  %v3831_v59 = vld [vmem:[%s9532_s5 + $0x8] sm:$0xff]  ;;  %v3889_v46 = vld [vmem:[%s9532_s5 + $0x1d8] sm:$0xff] }
 0x28b   : > { %v2575_v23 = vadd.f32 %v2574_v44, %v7810_v41  ;;  %v2613_v18 = vmul.f32 %v7810_v41, %v7810_v41  ;;  %3998 = vmatprep.subr.mxu0 %v7826_v4  ;;  %v3869_v44 = vld [vmem:[%s9532_s5 + $0x138] sm:$0xff] }
 0x28c   : > { %3999 = vmatpush1.msra.mxu0 %v3833_v63  ;;  %v3888_v63 = vld [vmem:[%s9532_s5 + $0x1d0] sm:$0xff] }
 0x28d   : > { %v2576_v16 = vrot.slane %v2575_v23, 4  ;;  %v2644_v55 = vadd.f32 %v2643_v39, %v2613_v18  ;;  %4000 = vmatprep.subr.mxu0 %v7826_v4  ;;  %v3830_v39 = vld [vmem:[%s9532_s5] sm:$0xff]  ;;  %v3861_v18 = vld [vmem:[%s9532_s5 + $0xf8] sm:$0xff] }
 0x28e   : > { %4001 = vmatpush1.msra.mxu0 %v3832_v29  ;;  %v3887_v29 = vld [vmem:[%s9532_s5 + $0x1c8] sm:$0xff] }
 0x28f   : > { %v2577_v60 = vadd.f32 %v2576_v16, %v2575_v23  ;;  %v2645_v33 = vrot.slane %v2644_v55, 4  ;;  %4002 = vmatprep.subr.mxu0 %v7826_v4  ;;  %v3868_v23 = vld [vmem:[%s9532_s5 + $0x130] sm:$0xff]  ;;  %v3867_v16 = vld [vmem:[%s9532_s5 + $0x128] sm:$0xff] }
 0x290   : > { %4003 = vmatpush1.msra.mxu0 %v3831_v59  ;;  %v3886_v59 = vld [vmem:[%s9532_s5 + $0x1c0] sm:$0xff] }
 0x291   : > { %v2578_v48 = vrot.slane %v2577_v60, 2  ;;  %v2646_v19 = vadd.f32 %v2645_v33, %v2644_v55  ;;  %4004 = vmatprep.subr.mxu0 %v7826_v4  ;;  %v3860_v55 = vld [vmem:[%s9532_s5 + $0xf0] sm:$0xff]  ;;  %v3859_v33 = vld [vmem:[%s9532_s5 + $0xe8] sm:$0xff] }
 0x292   : > { %4005 = vmatpush1.msra.mxu0 %v3830_v39  ;;  %v3885_v39 = vld [vmem:[%s9532_s5 + $0x1b8] sm:$0xff] }
 0x293   : > { %v2579_v49 = vadd.f32 %v2578_v48, %v2577_v60  ;;  %v2647_v9 = vrot.slane %v2646_v19, 2  ;;  %4006 = vmatprep.subr.mxu0 %v7826_v4  ;;  %v3866_v60 = vld [vmem:[%s9532_s5 + $0x120] sm:$0xff]  ;;  %v3865_v48 = vld [vmem:[%s9532_s5 + $0x118] sm:$0xff] }
 0x294   : > { %4007 = vmatpush2.msra.mxu0 %v3861_v18  ;;  %v3029_v18 = vld [vmem:[#allocation3 + $0x1] sm:$0xff] }
 0x295   : > { %v2580_v13 = vrot.slane %v2579_v49, 1  ;;  %v2648_v15 = vadd.f32 %v2647_v9, %v2646_v19  ;;  %4008 = vmatprep.subr.mxu0 %v7826_v4  ;;  %v3858_v19 = vld [vmem:[%s9532_s5 + $0xe0] sm:$0xff]  ;;  %v3857_v9 = vld [vmem:[%s9532_s5 + $0xd8] sm:$0xff]  ;;  %4038 = vmatprep.mubr.f32.mxu0 %v3029_v18 }
 0x296   : > { %4009 = vmatpush2.msra.mxu0 %v3860_v55  ;;  %v3883_v55 = vld [vmem:[%s9532_s5 + $0x1a8] sm:$0xff] }
 0x297   : > { %v2649_v2 = vrot.slane %v2648_v15, 1  ;;  %v2581_v5 = vadd.f32 %v2580_v13, %v2579_v49  ;;  %4010 = vmatprep.subr.mxu0 %v7826_v4  ;;  %v3864_v49 = vld [vmem:[%s9532_s5 + $0x110] sm:$0xff]  ;;  %v3863_v13 = vld [vmem:[%s9532_s5 + $0x108] sm:$0xff] }
 0x298   : > { %4011 = vmatpush2.msra.mxu0 %v3859_v33  ;;  %v3882_v33 = vld [vmem:[%s9532_s5 + $0x1a0] sm:$0xff] }
 0x299   : > { %v2650_v8 = vadd.f32 %v2649_v2, %v2648_v15  ;;  %4012 = vmatprep.subr.mxu0 %v7826_v4  ;;  %v3856_v15 = vld [vmem:[%s9532_s5 + $0xd0] sm:$0xff]  ;;  %v3862_v2 = vld [vmem:[%s9532_s5 + $0x100] sm:$0xff] }
 0x29a   : > { %4013 = vmatpush2.msra.mxu0 %v3858_v19  ;;  %v3881_v19 = vld [vmem:[%s9532_s5 + $0x198] sm:$0xff] }
 0x29b   : > { %v2652_v6 = vsel %vm2651_vm4, %v2581_v5, %v2650_v8  ;;  %4014 = vmatprep.subr.mxu0 %v7826_v4  ;;  %v3855_v5 = vld [vmem:[%s9532_s5 + $0xc8] sm:$0xff]  ;;  %v3893_v8 = vld [vmem:[%s9532_s5 + $0x1f8] sm:$0xff] }
 0x29c   : > { %5804 = vmatmul.mubr.f32.vlgmr.msra.gmra.mxu1 %v2652_v6  ;;  %4015 = vmatpush2.msra.mxu0 %v3857_v9  ;;  %v3892_v6 = vld [vmem:[%s9532_s5 + $0x1f0] sm:$0xff] }
 0x29d   : > { %4200 = vmatpush1.msra.mxu1 %v3877_v27  ;;  %4016 = vmatprep.subr.mxu0 %v7826_v4  ;;  %v3854_v27 = vld [vmem:[%s9532_s5 + $0xc0] sm:$0xff]  ;;  %v3908_v9 = vld [vmem:[%s9532_s5 + $0x270] sm:$0xff] }
 0x29e   : > { %4201 = vmatprep.subr.mxu1 %v7368_v36  ;;  %v3873_v36 = vld [vmem:[%s9532_s5 + $0x158] sm:$0xff]  ;;  %4017 = vmatpush2.msra.mxu0 %v3856_v15  ;;  %v3879_v15 = vld [vmem:[%s9532_s5 + $0x188] sm:$0xff] }
 0x29f   : > { %4202 = vmatpush1.msra.mxu1 %v3876_v0  ;;  %4018 = vmatprep.subr.mxu0 %v7826_v4  ;;  %v3853_v0 = vld [vmem:[%s9532_s5 + $0xb8] sm:$0xff] }
 0x2a0   : > { %4203 = vmatprep.subr.mxu1 %v7826_v4  ;;  %4019 = vmatpush2.msra.mxu0 %v3855_v5  ;;  %v3906_v5 = vld [vmem:[%s9532_s5 + $0x260] sm:$0xff] }
 0x2a1   : > { %4204 = vmatpush1.msra.mxu1 %v3875_v38  ;;  %4020 = vmatprep.subr.mxu0 %v7826_v4  ;;  %v3891_v38 = vld [vmem:[%s9532_s5 + $0x1e8] sm:$0xff] }
 0x2a2   : > { %4205 = vmatprep.subr.mxu1 %v7826_v4  ;;  %4021 = vmatpush2.msra.mxu0 %v3854_v27  ;;  %v3904_v27 = vld [vmem:[%s9532_s5 + $0x250] sm:$0xff] }
 0x2a3   : > { %4206 = vmatpush1.msra.mxu1 %v3874_v31  ;;  %4022 = vmatprep.subr.mxu0 %v7826_v4  ;;  %v3852_v31 = vld [vmem:[%s9532_s5 + $0xb0] sm:$0xff] }
 0x2a4   : > { %4207 = vmatprep.subr.mxu1 %v7826_v4  ;;  %4023 = vmatpush2.msra.mxu0 %v3853_v0  ;;  %v3902_v0 = vld [vmem:[%s9532_s5 + $0x240] sm:$0xff] }
 0x2a5   : > { %4208 = vmatpush1.msra.mxu1 %v3873_v36  ;;  %4024 = vmatprep.subr.mxu0 %v7826_v4  ;;  %v3890_v36 = vld [vmem:[%s9532_s5 + $0x1e0] sm:$0xff] }
 0x2a6   : > { %4209 = vmatprep.subr.mxu1 %v7826_v4  ;;  %4025 = vmatpush2.msra.mxu0 %v3852_v31  ;;  %v3900_v31 = vld [vmem:[%s9532_s5 + $0x230] sm:$0xff] }
 0x2a7   : > { %4210 = vmatpush1.msra.mxu1 %v3872_v40  ;;  %4026 = vmatprep.subr.mxu0 %v7826_v4  ;;  %v3850_v40 = vld [vmem:[%s9532_s5 + $0xa0] sm:$0xff] }
 0x2a8   : > { %4211 = vmatprep.subr.mxu1 %v7826_v4  ;;  %4027 = vmatpush2.msra.mxu0 %v3851_v12  ;;  %v3898_v12 = vld [vmem:[%s9532_s5 + $0x220] sm:$0xff] }
 0x2a9   : > { %4212 = vmatpush1.msra.mxu1 %v3871_v61  ;;  %4028 = vmatprep.subr.mxu0 %v7826_v4  ;;  %v3849_v61 = vld [vmem:[%s9532_s5 + $0x98] sm:$0xff] }
 0x2aa   : > { %4213 = vmatprep.subr.mxu1 %v7826_v4  ;;  %4029 = vmatpush2.msra.mxu0 %v3850_v40  ;;  %v3896_v40 = vld [vmem:[%s9532_s5 + $0x210] sm:$0xff] }
 0x2ab   : > { %4214 = vmatpush1.msra.mxu1 %v3870_v22  ;;  %4030 = vmatprep.subr.mxu0 %v7826_v4  ;;  %v3848_v22 = vld [vmem:[%s9532_s5 + $0x90] sm:$0xff] }
 0x2ac   : > { %4215 = vmatprep.subr.mxu1 %v7826_v4  ;;  %4031 = vmatpush2.msra.mxu0 %v3849_v61  ;;  %v3894_v61 = vld [vmem:[%s9532_s5 + $0x200] sm:$0xff] }
 0x2ad   : > { %4216 = vmatpush1.msra.mxu1 %v3869_v44  ;;  %4032 = vmatprep.subr.mxu0 %v7826_v4  ;;  %v3847_v44 = vld [vmem:[%s9532_s5 + $0x88] sm:$0xff] }
 0x2ae   : > { %4217 = vmatprep.subr.mxu1 %v7826_v4  ;;  %4033 = vmatpush2.msra.mxu0 %v3848_v22  ;;  %v3924_v22 = vld [vmem:[%s9532_s5 + $0x2f0] sm:$0xff] }
 0x2af   : > { %4218 = vmatpush1.msra.mxu1 %v3868_v23  ;;  %4034 = vmatprep.subr.mxu0 %v7826_v4  ;;  %v3846_v23 = vld [vmem:[%s9532_s5 + $0x80] sm:$0xff] }
 0x2b0   : > { %4219 = vmatprep.subr.mxu1 %v7826_v4  ;;  %4035 = vmatpush2.msra.mxu0 %v3847_v44  ;;  %v3923_v44 = vld [vmem:[%s9532_s5 + $0x2e8] sm:$0xff] }
 0x2b1   : > { %4220 = vmatpush1.msra.mxu1 %v3867_v16  ;;  %4036 = vmatprep.subr.mxu0 %v7826_v4  ;;  %v3884_v16 = vld [vmem:[%s9532_s5 + $0x1b0] sm:$0xff] }
 0x2b2   : > { %4221 = vmatprep.subr.mxu1 %v7826_v4  ;;  %4037 = vmatpush2.msra.mxu0 %v3846_v23 }
 0x2b3   : > { %4222 = vmatpush1.msra.mxu1 %v3866_v60  ;;  %4039 = vmatmul.mubr.f32.vlgmr.msra.gmra.mxu0 %v7826_v4  ;;  %v3030_v60 = vld [vmem:[#allocation3 + $0x9] sm:$0xff] }
 0x2b4   : > { %4223 = vmatprep.subr.mxu1 %v7826_v4  ;;  %4424 = vmatprep.subr.mxu0 %v7826_v4 }
 0x2b5   : > { %4224 = vmatpush1.msra.mxu1 %v3865_v48  ;;  %4043 = vmatprep.mubr.f32.mxu0 %v3030_v60  ;;  %v3909_v48 = vld [vmem:[%s9532_s5 + $0x278] sm:$0xff] }
 0x2b6   : > { %4225 = vmatprep.subr.mxu1 %v7826_v4  ;;  %4425 = vmatpush1.msra.mxu0 %v3909_v48 }
 0x2b7   : > { %4226 = vmatpush1.msra.mxu1 %v3864_v49  ;;  %4044 = vmatmul.mubr.f32.gmra.mxu0 %v7826_v4  ;;  %v3880_v49 = vld [vmem:[%s9532_s5 + $0x190] sm:$0xff] }
 0x2b8   : > { %4227 = vmatprep.subr.mxu1 %v7826_v4  ;;  %4426 = vmatprep.subr.mxu0 %v7826_v4 }
 0x2b9   : > { %4228 = vmatpush1.msra.mxu1 %v3863_v13  ;;  %v3907_v13 = vld [vmem:[%s9532_s5 + $0x268] sm:$0xff]  ;;  %4427 = vmatpush1.msra.mxu0 %v3908_v9  ;;  %v6040_v9 = vmov 1966171168  }
 0x2ba   : > { %4229 = vmatprep.subr.mxu1 %v7826_v4  ;;  %4428 = vmatprep.subr.mxu0 %v7826_v4 }
 0x2bb   : > { %4230 = vmatpush1.msra.mxu1 %v3862_v2  ;;  %v3878_v2 = vld [vmem:[%s9532_s5 + $0x180] sm:$0xff]  ;;  %4429 = vmatpush1.msra.mxu0 %v3907_v13  ;;  %v2752_v13 = vunpack.c.l.s4 %v6040_v9 }
 0x2bc   : > { %4231 = vmatprep.subr.mxu1 %v7826_v4  ;;  %4430 = vmatprep.subr.mxu0 %v7826_v4 }
 0x2bd   : > { %4232 = vmatpush2.msra.mxu1 %v3893_v8  ;;  %4431 = vmatpush1.msra.mxu0 %v3906_v5  ;;  %v3905_v8 = vld [vmem:[%s9532_s5 + $0x258] sm:$0xff]  ;;  %v2753_v5 = vunpack.c.0.s8 %v2752_v13 }
 0x2be   : > { %4233 = vmatprep.subr.mxu1 %v7826_v4  ;;  %4432 = vmatprep.subr.mxu0 %v7826_v4 }
 0x2bf   : > { %4234 = vmatpush2.msra.mxu1 %v3892_v6  ;;  %4433 = vmatpush1.msra.mxu0 %v3905_v8  ;;  %v3903_v6 = vld [vmem:[%s9532_s5 + $0x248] sm:$0xff] }
 0x2c0   : > { %4235 = vmatprep.subr.mxu1 %v7826_v4  ;;  %4434 = vmatprep.subr.mxu0 %v7826_v4 }
 0x2c1   : > { %4236 = vmatpush2.msra.mxu1 %v3891_v38  ;;  %4435 = vmatpush1.msra.mxu0 %v3904_v27  ;;  %v3901_v38 = vld [vmem:[%s9532_s5 + $0x238] sm:$0xff]  ;;  %v3918_v27 = vld [vmem:[%s9532_s5 + $0x2c0] sm:$0xff] }
 0x2c2   : > { %4237 = vmatprep.subr.mxu1 %v7826_v4  ;;  %4436 = vmatprep.subr.mxu0 %v7826_v4 }
 0x2c3   : > { %4238 = vmatpush2.msra.mxu1 %v3890_v36  ;;  %4437 = vmatpush1.msra.mxu0 %v3903_v6  ;;  %v3899_v36 = vld [vmem:[%s9532_s5 + $0x228] sm:$0xff] }
 0x2c4   : > { %4239 = vmatprep.subr.mxu1 %v7826_v4  ;;  %4438 = vmatprep.subr.mxu0 %v7826_v4 }
 0x2c5   : > { %4240 = vmatpush2.msra.mxu1 %v3889_v46  ;;  %4439 = vmatpush1.msra.mxu0 %v3902_v0  ;;  %v3897_v46 = vld [vmem:[%s9532_s5 + $0x218] sm:$0xff] }
 0x2c6   : > { %4241 = vmatprep.subr.mxu1 %v7826_v4  ;;  %4440 = vmatprep.subr.mxu0 %v7826_v4  ;;  %v3917_v0 = vld [vmem:[%s9532_s5 + $0x2b8] sm:$0xff] }
 0x2c7   : > { %4242 = vmatpush2.msra.mxu1 %v3888_v63  ;;  %4441 = vmatpush1.msra.mxu0 %v3901_v38  ;;  %v3895_v63 = vld [vmem:[%s9532_s5 + $0x208] sm:$0xff] }
 0x2c8   : > { %4243 = vmatprep.subr.mxu1 %v7826_v4  ;;  %4442 = vmatprep.subr.mxu0 %v7826_v4 }
 0x2c9   : > { %4244 = vmatpush2.msra.mxu1 %v3887_v29  ;;  %4443 = vmatpush1.msra.mxu0 %v3900_v31  ;;  %v3925_v29 = vld [vmem:[%s9532_s5 + $0x2f8] sm:$0xff] }
 0x2ca   : > { %4245 = vmatprep.subr.mxu1 %v7826_v4  ;;  %4444 = vmatprep.subr.mxu0 %v7826_v4 }
 0x2cb   : > { %4246 = vmatpush2.msra.mxu1 %v3886_v59  ;;  %4445 = vmatpush1.msra.mxu0 %v3899_v36  ;;  %v3916_v36 = vld [vmem:[%s9532_s5 + $0x2b0] sm:$0xff] }
 0x2cc   : > { %4247 = vmatprep.subr.mxu1 %v7826_v4  ;;  %4446 = vmatprep.subr.mxu0 %v7826_v4 }
 0x2cd   : > { %4248 = vmatpush2.msra.mxu1 %v3885_v39  ;;  %4447 = vmatpush1.msra.mxu0 %v3898_v12 }
 0x2ce   : > { %4249 = vmatprep.subr.mxu1 %v7826_v4  ;;  %4448 = vmatprep.subr.mxu0 %v7826_v4 }
 0x2cf   : > { %4250 = vmatpush2.msra.mxu1 %v3884_v16  ;;  %4449 = vmatpush1.msra.mxu0 %v3897_v46  ;;  %v3922_v16 = vld [vmem:[%s9532_s5 + $0x2e0] sm:$0xff] }
 0x2d0   : > { %4251 = vmatprep.subr.mxu1 %v7826_v4  ;;  %4450 = vmatprep.subr.mxu0 %v7826_v4  ;;  %v2748_v46 = vld [vmem:[%s9529_s2] sm:$0x1] }
 0x2d1   : > { %4252 = vmatpush2.msra.mxu1 %v3883_v55  ;;  %4451 = vmatpush1.msra.mxu0 %v3896_v40 }
 0x2d2   : > { %4253 = vmatprep.subr.mxu1 %v7826_v4  ;;  %4452 = vmatprep.subr.mxu0 %v7826_v4 }
 0x2d3   : > { %4254 = vmatpush2.msra.mxu1 %v3882_v33  ;;  %4453 = vmatpush1.msra.mxu0 %v3895_v63  ;;  %v3921_v33 = vld [vmem:[%s9532_s5 + $0x2d8] sm:$0xff] }
 0x2d4   : > { %4255 = vmatprep.subr.mxu1 %v7826_v4  ;;  %4454 = vmatprep.subr.mxu0 %v7826_v4 }
 0x2d5   : > { %4256 = vmatpush2.msra.mxu1 %v3881_v19  ;;  %4455 = vmatpush1.msra.mxu0 %v3894_v61  ;;  %v3915_v61 = vld [vmem:[%s9532_s5 + $0x2a8] sm:$0xff] }
 0x2d6   : > { %4257 = vmatprep.subr.mxu1 %v7826_v4  ;;  %4456 = vmatprep.subr.mxu0 %v7826_v4 }
 0x2d7   : > { %4258 = vmatpush2.msra.mxu1 %v3880_v49  ;;  %4457 = vmatpush2.msra.mxu0 %v3925_v29  ;;  %v3920_v49 = vld [vmem:[%s9532_s5 + $0x2d0] sm:$0xff] }
 0x2d8   : > { %4259 = vmatprep.subr.mxu1 %v7826_v4  ;;  %4458 = vmatprep.subr.mxu0 %v7826_v4 }
 0x2d9   : > { %4260 = vmatpush2.msra.mxu1 %v3879_v15  ;;  %4459 = vmatpush2.msra.mxu0 %v3924_v22  ;;  %v2754_v15 = vlaneseq  ;;  %v2749_v22 = vld [vmem:[%s9530_s3] sm:$0x1] }
 0x2da   : > { %4261 = vmatprep.subr.mxu1 %v7826_v4  ;;  %4460 = vmatprep.subr.mxu0 %v7826_v4 }
 0x2db   : > { %4262 = vmatpush2.msra.mxu1 %v3878_v2  ;;  %4461 = vmatpush2.msra.mxu0 %v3923_v44  ;;  %v3919_v2 = vld [vmem:[%s9532_s5 + $0x2c8] sm:$0xff]  ;;  %v2755_v8 = vshrl.u32 %v2754_v15, 7 }
 0x2dc   : > { %4649 = vmatprep.subr.mxu1 %v7826_v4  ;;  %4462 = vmatprep.subr.mxu0 %v7826_v4 }
 0x2dd   : > { %4463 = vmatpush2.msra.mxu0 %v3922_v16  ;;  %v8132_v6 = vsub.s32 %v2753_v5, %v2755_v8  ;;  %v8147_v63 = vsub.s32 0, %v2755_v8 }
 0x2de   : > { %4464 = vmatprep.subr.mxu0 %v7826_v4 }
 0x2df   : > { %4465 = vmatpush2.msra.mxu0 %v3921_v33  ;;  %9548 = vst [vmem:[#allocation9_spill] sm:$0xff] %v8132_v6  ;;  %9549 = vst [vmem:[#allocation10_spill] sm:$0xff] %v8147_v63 }
 0x2e0   : > { %4466 = vmatprep.subr.mxu0 %v7826_v4 }
 0x2e1   : > { %4467 = vmatpush2.msra.mxu0 %v3920_v49 }
 0x2e2   : > { %4468 = vmatprep.subr.mxu0 %v7826_v4 }
 0x2e3   : > { %4469 = vmatpush2.msra.mxu0 %v3919_v2 }
 0x2e4   : > { %4470 = vmatprep.subr.mxu0 %v7826_v4 }
 0x2e5   : > { %4471 = vmatpush2.msra.mxu0 %v3918_v27 }
 0x2e6   : > { %4472 = vmatprep.subr.mxu0 %v7826_v4 }
 0x2e7   : > { %4473 = vmatpush2.msra.mxu0 %v3917_v0 }
 0x2e8   : > { %4474 = vmatprep.subr.mxu0 %v7826_v4 }
 0x2e9   : > { %4475 = vmatpush2.msra.mxu0 %v3916_v36 }
 0x2ea   : > { %4476 = vmatprep.subr.mxu0 %v7826_v4 }
 0x2eb   : > { %4477 = vmatpush2.msra.mxu0 %v3915_v61 }
 0x2ec   : > { %4478 = vmatprep.subr.mxu0 %v7826_v4 }
 0x35c   : > { %v2735_v59 = vpop.f32.mrf.mxu1 }
 0x35d   : > { %v2739_v39 = vmul.f32 0.00390625, %v2735_v59 }
 0x35e   : > { %v5805_v23 = vpop.f32.mrf.mxu1 }
 0x35f   : > { %v2740_v18 = vmul.f32 %v2739_v39, %v2739_v39  ;;  %v3914_v23 = vld [vmem:[%s9532_s5 + $0x2a0] sm:$0xff] }
 0x360   : > { %4479 = vmatpush2.msra.mxu0 %v3914_v23 }
 0x361   : > { %v2742_v55 = vrot.slane %v2740_v18, 7  ;;  %4480 = vmatprep.subr.mxu0 %v7826_v4 }
 0x363   : > { %v2744_v60 = vsub.f32 %v2739_v39, %v2742_v55 }
 0x365   : > { %v2745_v48 = vmax.f32 %v2744_v60, 0.0 }
 0x367   : > { %v2746_v19 = vadd.f32 1e-05, %v2745_v48 }
 0x369   : > { %5966 = vrsqrt.f32 %v2746_v19 }
 0x376   : > { %v5967_v38 = vpop.eup %5966 }
 0x377   : > { %v2757_v31 = vrot.slane %v5967_v38, %v8132_v6 }
 0x379   : > { %v2758_v12 = vcombine.high %v2757_v31, %v2757_v31  ;;  %v3911_v31 = vld [vmem:[%s9532_s5 + $0x288] sm:$0xff] }
 0x37b   : > { %v2765_v40 = vrot.slane %v2758_v12, %v8132_v6 }
 0x37d   : > { %v2767_v29 = vmul.f32 %v2765_v40, %v2748_v46 }
 0x37f   : > { %v2768_v59 = vmul.f32 %v2767_v29, %v2739_v39  ;;  %v2774_v44 = vrot.slane %v2767_v29, %v8147_v63 }
 0x381   : > { %v2769_v18 = vsub.f32 %v2749_v22, %v2768_v59  ;;  %v2776_v16 = vmul.f32 %v2774_v44, %v7598_v45  ;;  %v2777_v55 = vmul.f32 %v2774_v44, %v7595_v47  ;;  %v2778_v60 = vmul.f32 %v2774_v44, %v7614_v10 }
 0x382   : > { %v2779_v33 = vmul.f32 %v2774_v44, %v7608_v26  ;;  %v2780_v48 = vmul.f32 %v2774_v44, %v7629_v62  ;;  %v2781_v39 = vmul.f32 %v2774_v44, %v7627_v51  ;;  %v2782_v19 = vmul.f32 %v2774_v44, %v7645_v7  ;;  %v3913_v7 = vld [vmem:[%s9532_s5 + $0x298] sm:$0xff] }
 0x383   : > { %v8169_v49 = vrot.slane %v2769_v18, %v8147_v63  ;;  %v2783_v45 = vmul.f32 %v2774_v44, %v7641_v14  ;;  %v2784_v47 = vmul.f32 %v2774_v44, %v7661_v25  ;;  %v2785_v10 = vmul.f32 %v2774_v44, %v7659_v50  ;;  %4481 = vmatpush2.msra.mxu0 %v3913_v7 }
 0x384   : > { %v2786_v9 = vmul.f32 %v2774_v44, %v7677_v30  ;;  %v2787_v26 = vmul.f32 %v2774_v44, %v7673_v43  ;;  %v2788_v62 = vmul.f32 %v2774_v44, %v7691_v17  ;;  %v2789_v51 = vmul.f32 %v2774_v44, %v7689_v37  ;;  %4482 = vmatprep.subr.mxu0 %v7826_v4 }
 0x385   : > { %v2790_v13 = vmul.f32 %v2774_v44, %v7705_v53  ;;  %v2791_v14 = vmul.f32 %v2774_v44, %v7701_v3  ;;  %v2792_v25 = vmul.f32 %v2774_v44, %v7719_v32  ;;  %v2793_v50 = vmul.f32 %v2774_v44, %v7717_v24 }
 0x386   : > { %v2794_v30 = vmul.f32 %v2774_v44, %v7733_v1  ;;  %v2795_v43 = vmul.f32 %v2774_v44, %v7729_v57  ;;  %v2796_v17 = vmul.f32 %v2774_v44, %v7746_v56  ;;  %v2797_v37 = vmul.f32 %v2774_v44, %v7744_v52  ;;  %v3912_v52 = vld [vmem:[%s9532_s5 + $0x290] sm:$0xff] }
 0x387   : > { %v2798_v15 = vmul.f32 %v2774_v44, %v7758_v28  ;;  %v2799_v53 = vmul.f32 %v2774_v44, %v7754_v35  ;;  %v2800_v3 = vmul.f32 %v2774_v44, %v7770_v34  ;;  %v2801_v32 = vmul.f32 %v2774_v44, %v7768_v42  ;;  %4483 = vmatpush2.msra.mxu0 %v3912_v52 }
 0x388   : > { %v2802_v24 = vmul.f32 %v2774_v44, %v7782_v54  ;;  %v2803_v1 = vmul.f32 %v2774_v44, %v7778_v20  ;;  %v2804_v57 = vmul.f32 %v2774_v44, %v7794_v21  ;;  %v2805_v56 = vmul.f32 %v2774_v44, %v7792_v11  ;;  %4484 = vmatprep.subr.mxu0 %v7826_v4 }
 0x389   : > { %v2806_v28 = vmul.f32 %v2774_v44, %v7804_v58  ;;  %v2807_v35 = vmul.f32 %v2774_v44, %v7810_v41  ;;  %v2814_v34 = vadd.f32 %v8169_v49, %v2776_v16  ;;  %v8205_v42 = vadd.f32 %v8169_v49, %v2777_v55  ;;  %4485 = vmatpush2.msra.mxu0 %v3911_v31 }
 0x38a   : > { %v8208_v20 = vadd.f32 %v8169_v49, %v2778_v60  ;;  %v8211_v54 = vadd.f32 %v8169_v49, %v2779_v33  ;;  %v8214_v11 = vadd.f32 %v8169_v49, %v2780_v48  ;;  %v8217_v21 = vadd.f32 %v8169_v49, %v2781_v39  ;;  %4486 = vmatprep.subr.mxu0 %v7826_v4  ;;  %v3910_v39 = vld [vmem:[%s9532_s5 + $0x280] sm:$0xff] }
 0x38b   : > { %v8221_v58 = vadd.f32 %v8169_v49, %v2782_v19  ;;  %v8224_v41 = vadd.f32 %v8169_v49, %v2783_v45  ;;  %v8227_v2 = vadd.f32 %v8169_v49, %v2784_v47  ;;  %v8230_v5 = vadd.f32 %v8169_v49, %v2785_v10  ;;  %4487 = vmatpush2.msra.mxu0 %v3910_v39 }
 0x38c   : > { %v8233_v8 = vadd.f32 %v8169_v49, %v2786_v9  ;;  %v8236_v27 = vadd.f32 %v8169_v49, %v2787_v26  ;;  %v8239_v0 = vadd.f32 %v8169_v49, %v2788_v62  ;;  %v8242_v38 = vadd.f32 %v8169_v49, %v2789_v51  ;;  %v8309_v9 = vld [vmem:[%s9532_s5 + $0x478] sm:$0xff] }
 0x38d   : > { %v8248_v36 = vadd.f32 %v8169_v49, %v2790_v13  ;;  %v8251_v12 = vadd.f32 %v8169_v49, %v2791_v14  ;;  %v8254_v46 = vadd.f32 %v8169_v49, %v2792_v25  ;;  %v8257_v40 = vadd.f32 %v8169_v49, %v2793_v50  ;;  %5806 = vmatprep.subr.mxu0 %v8309_v9 }
 0x38e   : > { %v8260_v61 = vadd.f32 %v8169_v49, %v2794_v30  ;;  %v8263_v29 = vadd.f32 %v8169_v49, %v2795_v43  ;;  %v8266_v22 = vadd.f32 %v8169_v49, %v2796_v17  ;;  %v8269_v59 = vadd.f32 %v8169_v49, %v2797_v37 }
 0x38f   : > { %v8273_v44 = vadd.f32 %v8169_v49, %v2798_v15  ;;  %v8276_v23 = vadd.f32 %v8169_v49, %v2799_v53  ;;  %v8279_v18 = vadd.f32 %v8169_v49, %v2800_v3  ;;  %v8282_v16 = vadd.f32 %v8169_v49, %v2801_v32 }
 0x390   : > { %v8285_v55 = vadd.f32 %v8169_v49, %v2802_v24  ;;  %v8288_v60 = vadd.f32 %v8169_v49, %v2803_v1  ;;  %v8291_v33 = vadd.f32 %v8169_v49, %v2804_v57  ;;  %v8294_v48 = vadd.f32 %v8169_v49, %v2805_v56 }
 0x391   : > { %v8300_v19 = vadd.f32 %v8169_v49, %v2806_v28  ;;  %v8303_v45 = vadd.f32 %v8169_v49, %v2807_v35  ;;  %v2846_v47 = vmax.f32 %v2814_v34, 0.0  ;;  %v2847_v10 = vmax.f32 %v8205_v42, 0.0 }
 0x392   : > { %v2848_v26 = vmax.f32 %v8208_v20, 0.0  ;;  %v2849_v62 = vmax.f32 %v8211_v54, 0.0  ;;  %v2850_v51 = vmax.f32 %v8214_v11, 0.0  ;;  %v2851_v7 = vmax.f32 %v8217_v21, 0.0  ;;  %v3936_v54 = vld [vmem:[%s9532_s5 + $0x350] sm:$0xff]  ;;  %v3933_v21 = vld [vmem:[%s9532_s5 + $0x338] sm:$0xff] }
 0x393   : > { %v2852_v49 = vmax.f32 %v8221_v58, 0.0  ;;  %v2853_v13 = vmax.f32 %v8224_v41, 0.0  ;;  %v2854_v14 = vmax.f32 %v8227_v2, 0.0  ;;  %v2855_v25 = vmax.f32 %v8230_v5, 0.0  ;;  %2933 = vst [vmem:[#allocation3 + $0x19] sm:$0xff] %v2846_v47  ;;  %2934 = vst [vmem:[#allocation3 + $0x21] sm:$0xff] %v2847_v10  ;;  %4048 = vmatprep.mubr.f32.mxu0 %v2846_v47 }
 0x394   : > { %v2856_v50 = vmax.f32 %v8233_v8, 0.0  ;;  %v2857_v30 = vmax.f32 %v8236_v27, 0.0  ;;  %v2858_v43 = vmax.f32 %v8239_v0, 0.0  ;;  %v2859_v17 = vmax.f32 %v8242_v38, 0.0  ;;  %2935 = vst [vmem:[#allocation3 + $0x31] sm:$0xff] %v2848_v26  ;;  %2936 = vst [vmem:[#allocation3 + $0x39] sm:$0xff] %v2849_v62 }
 0x395   : > { %2937 = vst [vmem:[#allocation3 + $0x49] sm:$0xff] %v2850_v51  ;;  %2938 = vst [vmem:[#allocation3 + $0x51] sm:$0xff] %v2851_v7  ;;  %v2860_v37 = vmax.f32 %v8248_v36, 0.0  ;;  %v2861_v15 = vmax.f32 %v8251_v12, 0.0  ;;  %v2862_v53 = vmax.f32 %v8254_v46, 0.0  ;;  %v9537_v3 = vmax.f32 %v8257_v40, 0.0 }
 0x396   : > { %2939 = vst [vmem:[#allocation3 + $0x61] sm:$0xff] %v2852_v49  ;;  %2940 = vst [vmem:[#allocation3 + $0x69] sm:$0xff] %v2853_v13  ;;  %v2864_v32 = vmax.f32 %v8260_v61, 0.0  ;;  %v2865_v24 = vmax.f32 %v8263_v29, 0.0  ;;  %v2866_v1 = vmax.f32 %v8266_v22, 0.0  ;;  %v2867_v57 = vmax.f32 %v8269_v59, 0.0 }
 0x397   : > { %2941 = vst [vmem:[#allocation3 + $0x79] sm:$0xff] %v2854_v14  ;;  %2942 = vst [vmem:[#allocation3 + $0x81] sm:$0xff] %v2855_v25  ;;  %v2868_v56 = vmax.f32 %v8273_v44, 0.0  ;;  %v2869_v52 = vmax.f32 %v8276_v23, 0.0  ;;  %v2870_v28 = vmax.f32 %v8279_v18, 0.0  ;;  %v2871_v35 = vmax.f32 %v8282_v16, 0.0 }
 0x398   : > { %2943 = vst [vmem:[#allocation3 + $0x91] sm:$0xff] %v2856_v50  ;;  %2944 = vst [vmem:[#allocation3 + $0x99] sm:$0xff] %v2857_v30  ;;  %v2872_v34 = vmax.f32 %v8285_v55, 0.0  ;;  %v2873_v31 = vmax.f32 %v8288_v60, 0.0  ;;  %v2874_v39 = vmax.f32 %v8291_v33, 0.0  ;;  %v2875_v47 = vmax.f32 %v8294_v48, 0.0 }
 0x399   : > { %2945 = vst [vmem:[#allocation3 + $0xa9] sm:$0xff] %v2858_v43  ;;  %2946 = vst [vmem:[#allocation3 + $0xb1] sm:$0xff] %v2859_v17  ;;  %v2877_v60 = vmax.f32 %v8303_v45, 0.0  ;;  %v3093_v33 = vld [vmem:[#allocation3 + $0x2] sm:$0xff]  ;;  %v3930_v41 = vld [vmem:[%s9532_s5 + $0x320] sm:$0xff] }
 0x39a   : > { %2947 = vst [vmem:[#allocation3 + $0xc1] sm:$0xff] %v2860_v37  ;;  %2948 = vst [vmem:[#allocation3 + $0xc9] sm:$0xff] %v2861_v15  ;;  %v3157_v48 = vld [vmem:[#allocation3 + $0x18] sm:$0xff]  ;;  %v3158_v45 = vld [vmem:[#allocation3 + $0x20] sm:$0xff] }
 0x39b   : > { %2949 = vst [vmem:[#allocation3 + $0xd9] sm:$0xff] %v2862_v53  ;;  %2950 = vst [vmem:[#allocation3 + $0xe1] sm:$0xff] %v9537_v3  ;;  %v2876_v3 = vmax.f32 %v8300_v19, 0.0  ;;  %v3941_v19 = vld [vmem:[%s9532_s5 + $0x378] sm:$0xff]  ;;  %4263 = vmatprep.mubr.f32.mxu1 %v3157_v48  ;;  %4049 = vmatmul.mubr.f32.gmra.mxu0 %v3157_v48  ;;  %v8408_v42 = vld [vmem:[#allocation3 + $0x30] sm:$0xff] }
 0x39c   : > { %2951 = vst [vmem:[#allocation3 + $0xf1] sm:$0xff] %v2864_v32  ;;  %2952 = vst [vmem:[#allocation3 + $0xf9] sm:$0xff] %v2865_v24  ;;  %4264 = vmatmul.mubr.f32.vlgmr.msra.gmra.mxu1 %v3093_v33  ;;  %4053 = vmatprep.mubr.f32.mxu0 %v2847_v10  ;;  %v3938_v10 = vld [vmem:[%s9532_s5 + $0x360] sm:$0xff]  ;;  %v8422_v20 = vld [vmem:[#allocation3 + $0x38] sm:$0xff] }
 0x39d   : > { %2953 = vst [vmem:[#allocation3 + $0x109] sm:$0xff] %v2866_v1  ;;  %2954 = vst [vmem:[#allocation3 + $0x111] sm:$0xff] %v2867_v57  ;;  %4268 = vmatprep.mubr.f32.mxu1 %v3158_v45  ;;  %4650 = vmatpush1.msra.mxu1 %v3941_v19  ;;  %v3935_v33 = vld [vmem:[%s9532_s5 + $0x348] sm:$0xff]  ;;  %v8452_v11 = vld [vmem:[#allocation3 + $0x50] sm:$0xff] }
 0x39e   : > { %2955 = vst [vmem:[#allocation3 + $0x121] sm:$0xff] %v2868_v56  ;;  %2956 = vst [vmem:[#allocation3 + $0x129] sm:$0xff] %v2869_v52  ;;  %4651 = vmatprep.subr.mxu1 %v7826_v4  ;;  %v8446_v48 = vld [vmem:[#allocation3 + $0x32] sm:$0xff]  ;;  %v8460_v19 = vld [vmem:[#allocation3 + $0x3a] sm:$0xff] }
 0x39f   : > { %2957 = vst [vmem:[#allocation3 + $0x139] sm:$0xff] %v2870_v28  ;;  %2958 = vst [vmem:[#allocation3 + $0x141] sm:$0xff] %v2871_v35  ;;  %4054 = vmatmul.mubr.f32.gmra.mxu0 %v3158_v45  ;;  %v3932_v45 = vld [vmem:[%s9532_s5 + $0x330] sm:$0xff]  ;;  %v8482_v58 = vld [vmem:[#allocation3 + $0x68] sm:$0xff] }
 0x3a0   : > { %2959 = vst [vmem:[#allocation3 + $0x151] sm:$0xff] %v2872_v34  ;;  %2960 = vst [vmem:[#allocation3 + $0x159] sm:$0xff] %v2873_v31  ;;  %v3940_v31 = vld [vmem:[%s9532_s5 + $0x370] sm:$0xff]  ;;  %4058 = vmatprep.mubr.f32.mxu0 %v2848_v26  ;;  %v3937_v26 = vld [vmem:[%s9532_s5 + $0x358] sm:$0xff] }
 0x3a1   : > { %2961 = vst [vmem:[#allocation3 + $0x169] sm:$0xff] %v2874_v39  ;;  %2962 = vst [vmem:[#allocation3 + $0x171] sm:$0xff] %v2875_v47  ;;  %v3094_v39 = vld [vmem:[#allocation3 + $0xa] sm:$0xff]  ;;  %4652 = vmatpush1.msra.mxu1 %v3940_v31  ;;  %v8416_v47 = vld [vmem:[#allocation3 + $0x1a] sm:$0xff] }
 0x3a2   : > { %2963 = vst [vmem:[#allocation3 + $0x181] sm:$0xff] %v2876_v3  ;;  %2964 = vst [vmem:[#allocation3 + $0x189] sm:$0xff] %v2877_v60  ;;  %v3939_v3 = vld [vmem:[%s9532_s5 + $0x368] sm:$0xff]  ;;  %4269 = vmatmul.mubr.f32.gmra.mxu1 %v3094_v39  ;;  %4653 = vmatprep.subr.mxu1 %v7826_v4  ;;  %v8430_v60 = vld [vmem:[#allocation3 + $0x22] sm:$0xff] }
 0x3a3   : > { %4273 = vmatprep.mubr.f32.mxu1 %v8408_v42  ;;  %4654 = vmatpush1.msra.mxu1 %v3939_v3  ;;  %v8476_v31 = vld [vmem:[#allocation3 + $0x4a] sm:$0xff]  ;;  %v8490_v39 = vld [vmem:[#allocation3 + $0x52] sm:$0xff]  ;;  %v8512_v2 = vld [vmem:[#allocation3 + $0x80] sm:$0xff] }
 0x3a4   : > { %4059 = vmatmul.mubr.f32.gmra.mxu0 %v8408_v42  ;;  %4655 = vmatprep.subr.mxu1 %v7826_v4  ;;  %v3929_v3 = vld [vmem:[%s9532_s5 + $0x318] sm:$0xff]  ;;  %v3927_v5 = vld [vmem:[%s9532_s5 + $0x308] sm:$0xff]  ;;  %v3956_v27 = vld [vmem:[%s9532_s5 + $0x3f0] sm:$0xff] }
 0x3a5   : > { %4063 = vmatprep.mubr.f32.mxu0 %v2849_v62  ;;  %4656 = vmatpush1.msra.mxu1 %v3938_v10  ;;  %v8438_v62 = vld [vmem:[#allocation3 + $0x48] sm:$0xff]  ;;  %v8544_v8 = vld [vmem:[#allocation3 + $0x98] sm:$0xff]  ;;  %v8574_v0 = vld [vmem:[#allocation3 + $0xb0] sm:$0xff] }
 0x3a6   : > { %4274 = vmatmul.mubr.f32.gmra.mxu1 %v8416_v47  ;;  %4657 = vmatprep.subr.mxu1 %v7826_v4  ;;  %v8506_v10 = vld [vmem:[#allocation3 + $0x62] sm:$0xff]  ;;  %v3950_v12 = vld [vmem:[%s9532_s5 + $0x3c0] sm:$0xff]  ;;  %v8668_v61 = vld [vmem:[#allocation3 + $0xf8] sm:$0xff] }
 0x3a7   : > { %4278 = vmatprep.mubr.f32.mxu1 %v8422_v20  ;;  %4658 = vmatpush1.msra.mxu1 %v3937_v26  ;;  %v8520_v26 = vld [vmem:[#allocation3 + $0x6a] sm:$0xff]  ;;  %v3944_v29 = vld [vmem:[%s9532_s5 + $0x390] sm:$0xff]  ;;  %v8725_v44 = vld [vmem:[#allocation3 + $0x112] sm:$0xff] }
 0x3a8   : > { %4064 = vmatmul.mubr.f32.gmra.mxu0 %v8422_v20  ;;  %4659 = vmatprep.subr.mxu1 %v7826_v4  ;;  %v3953_v38 = vld [vmem:[%s9532_s5 + $0x3d8] sm:$0xff]  ;;  %v8698_v22 = vld [vmem:[#allocation3 + $0x110] sm:$0xff]  ;;  %v8711_v59 = vld [vmem:[#allocation3 + $0x120] sm:$0xff] }
 0x3a9   : > { %4068 = vmatprep.mubr.f32.mxu0 %v2850_v51  ;;  %4660 = vmatpush1.msra.mxu1 %v3936_v54  ;;  %v3934_v51 = vld [vmem:[%s9532_s5 + $0x340] sm:$0xff]  ;;  %v8531_v54 = vld [vmem:[#allocation3] sm:$0xff]  ;;  %v8604_v36 = vld [vmem:[#allocation3 + $0xc8] sm:$0xff] }
 0x3aa   : > { %4279 = vmatmul.mubr.f32.gmra.mxu1 %v8430_v60  ;;  %4661 = vmatprep.subr.mxu1 %v7826_v4  ;;  %9550 = vst [vmem:[#allocation11_spill] sm:$0xff] %v8531_v54  ;;  %v8734_v23 = vld [vmem:[#allocation3 + $0x122] sm:$0xff]  ;;  %v8743_v18 = vld [vmem:[#allocation3 + $0x12a] sm:$0xff]  ;;  %v8752_v16 = vld [vmem:[#allocation3 + $0x13a] sm:$0xff] }
 0x3ab   : > { %4283 = vmatprep.mubr.f32.mxu1 %v8438_v62  ;;  %4662 = vmatpush1.msra.mxu1 %v3935_v33  ;;  %v8538_v33 = vld [vmem:[#allocation3 + $0x7a] sm:$0xff]  ;;  %v8762_v55 = vld [vmem:[#allocation3 + $0x142] sm:$0xff] }
 0x3ac   : > { %4069 = vmatmul.mubr.f32.gmra.mxu0 %v8438_v62  ;;  %4663 = vmatprep.subr.mxu1 %v7826_v4  ;;  %v8782_v63 = vld [vmem:[#allocation3 + $0x15a] sm:$0xff] }
 0x3ad   : > { %4073 = vmatprep.mubr.f32.mxu0 %v2851_v7  ;;  %4664 = vmatpush1.msra.mxu1 %v3934_v51  ;;  %v8468_v7 = vld [vmem:[#allocation3 + $0x60] sm:$0xff] }
 0x3ae   : > { %4284 = vmatmul.mubr.f32.gmra.mxu1 %v8446_v48  ;;  %4665 = vmatprep.subr.mxu1 %v7826_v4  ;;  %v8552_v51 = vld [vmem:[#allocation3 + $0x82] sm:$0xff] }
 0x3af   : > { %4288 = vmatprep.mubr.f32.mxu1 %v8452_v11  ;;  %4666 = vmatpush1.msra.mxu1 %v3933_v21  ;;  %v3955_v21 = vld [vmem:[%s9532_s5 + $0x3e8] sm:$0xff]  ;;  %v8785_v6 = vld [vmem:[#allocation3 + $0x180] sm:$0xff] }
 0x3b0   : > { %4074 = vmatmul.mubr.f32.gmra.mxu0 %v8452_v11  ;;  %4667 = vmatprep.subr.mxu1 %v7826_v4  ;;  %9555 = vst [vmem:[#allocation15_spill] sm:$0xff] %v8785_v6 }
 0x3b1   : > { %4078 = vmatprep.mubr.f32.mxu0 %v2852_v49  ;;  %v3931_v49 = vld [vmem:[%s9532_s5 + $0x328] sm:$0xff]  ;;  %4668 = vmatpush1.msra.mxu1 %v3932_v45 }
 0x3b2   : > { %4289 = vmatmul.mubr.f32.gmra.mxu1 %v8460_v19  ;;  %4669 = vmatprep.subr.mxu1 %v7826_v4  ;;  %v8568_v45 = vld [vmem:[#allocation3 + $0x92] sm:$0xff] }
 0x3b3   : > { %4293 = vmatprep.mubr.f32.mxu1 %v8468_v7  ;;  %4670 = vmatpush1.msra.mxu1 %v3931_v49  ;;  %v8582_v49 = vld [vmem:[#allocation3 + $0x9a] sm:$0xff] }
 0x3b4   : > { %4079 = vmatmul.mubr.f32.gmra.mxu0 %v8468_v7  ;;  %4671 = vmatprep.subr.mxu1 %v7826_v4 }
 0x3b5   : > { %4083 = vmatprep.mubr.f32.mxu0 %v2853_v13  ;;  %v8498_v13 = vld [vmem:[#allocation3 + $0x78] sm:$0xff]  ;;  %4672 = vmatpush1.msra.mxu1 %v3930_v41  ;;  %v3952_v41 = vld [vmem:[%s9532_s5 + $0x3d0] sm:$0xff] }
 0x3b6   : > { %4294 = vmatmul.mubr.f32.gmra.mxu1 %v8476_v31  ;;  %4673 = vmatprep.subr.mxu1 %v7826_v4 }
 0x3b7   : > { %4298 = vmatprep.mubr.f32.mxu1 %v8482_v58  ;;  %4674 = vmatpush1.msra.mxu1 %v3929_v3  ;;  %v8598_v3 = vld [vmem:[#allocation3 + $0xaa] sm:$0xff] }
 0x3b8   : > { %4084 = vmatmul.mubr.f32.gmra.mxu0 %v8482_v58  ;;  %4675 = vmatprep.subr.mxu1 %v7826_v4  ;;  %v3926_v4 = vld [vmem:[%s9532_s5 + $0x300] sm:$0xff] }
 0x3b9   : > { %4088 = vmatprep.mubr.f32.mxu0 %v2854_v14  ;;  %v3928_v14 = vld [vmem:[%s9532_s5 + $0x310] sm:$0xff] }
 0x3ba   : > { %4299 = vmatmul.mubr.f32.gmra.mxu1 %v8490_v39 }
 0x3bb   : > { %4303 = vmatprep.mubr.f32.mxu1 %v8498_v13  ;;  %4676 = vmatpush1.msra.mxu1 %v3928_v14  ;;  %v8612_v14 = vld [vmem:[#allocation3 + $0xb2] sm:$0xff] }
 0x3bc   : > { %4089 = vmatmul.mubr.f32.gmra.mxu0 %v8498_v13  ;;  %4677 = vmatprep.subr.mxu1 %v8531_v54 }
 0x3bd   : > { %4093 = vmatprep.mubr.f32.mxu0 %v2855_v25  ;;  %v8528_v25 = vld [vmem:[#allocation3 + $0x90] sm:$0xff]  ;;  %4678 = vmatpush1.msra.mxu1 %v3927_v5  ;;  %v8622_v5 = vld [vmem:[#allocation3 + $0xd8] sm:$0xff] }
 0x3be   : > { %4304 = vmatmul.mubr.f32.gmra.mxu1 %v8506_v10  ;;  %4679 = vmatprep.subr.mxu1 %v8531_v54 }
 0x3bf   : > { %4308 = vmatprep.mubr.f32.mxu1 %v8512_v2  ;;  %4680 = vmatpush1.msra.mxu1 %v3926_v4 }
 0x3c0   : > { %4094 = vmatmul.mubr.f32.gmra.mxu0 %v8512_v2  ;;  %4681 = vmatprep.subr.mxu1 %v8531_v54 }
 0x3c1   : > { %4098 = vmatprep.mubr.f32.mxu0 %v2856_v50  ;;  %v3957_v50 = vld [vmem:[%s9532_s5 + $0x3f8] sm:$0xff] }
 0x3c2   : > { %4309 = vmatmul.mubr.f32.gmra.mxu1 %v8520_v26 }
 0x3c3   : > { %4313 = vmatprep.mubr.f32.mxu1 %v8528_v25  ;;  %4682 = vmatpush2.msra.mxu1 %v3957_v50  ;;  %v3949_v50 = vld [vmem:[%s9532_s5 + $0x3b8] sm:$0xff] }
 0x3c4   : > { %4099 = vmatmul.mubr.f32.gmra.mxu0 %v8528_v25  ;;  %4683 = vmatprep.subr.mxu1 %v8531_v54 }
 0x3c5   : > { %4103 = vmatprep.mubr.f32.mxu0 %v2857_v30  ;;  %v8560_v30 = vld [vmem:[#allocation3 + $0xa8] sm:$0xff]  ;;  %4684 = vmatpush2.msra.mxu1 %v3956_v27 }
 0x3c6   : > { %4314 = vmatmul.mubr.f32.gmra.mxu1 %v8538_v33  ;;  %4685 = vmatprep.subr.mxu1 %v8531_v54  ;;  %v8630_v27 = vld [vmem:[#allocation3 + $0xc2] sm:$0xff] }
 0x3c7   : > { %4318 = vmatprep.mubr.f32.mxu1 %v8544_v8  ;;  %4686 = vmatpush2.msra.mxu1 %v3955_v21  ;;  %v8638_v21 = vld [vmem:[#allocation3 + $0xe0] sm:$0xff] }
 0x3c8   : > { %4104 = vmatmul.mubr.f32.gmra.mxu0 %v8544_v8  ;;  %4687 = vmatprep.subr.mxu1 %v8531_v54 }
 0x3c9   : > { %4108 = vmatprep.mubr.f32.mxu0 %v2858_v43  ;;  %v3954_v43 = vld [vmem:[%s9532_s5 + $0x3e0] sm:$0xff] }
 0x3ca   : > { %4319 = vmatmul.mubr.f32.gmra.mxu1 %v8552_v51 }
 0x3cb   : > { %4323 = vmatprep.mubr.f32.mxu1 %v8560_v30  ;;  %4688 = vmatpush2.msra.mxu1 %v3954_v43  ;;  %v3948_v43 = vld [vmem:[%s9532_s5 + $0x3b0] sm:$0xff] }
 0x3cc   : > { %4109 = vmatmul.mubr.f32.gmra.mxu0 %v8560_v30  ;;  %4689 = vmatprep.subr.mxu1 %v8531_v54 }
 0x3cd   : > { %4113 = vmatprep.mubr.f32.mxu0 %v2859_v17  ;;  %v8590_v17 = vld [vmem:[#allocation3 + $0xc0] sm:$0xff]  ;;  %4690 = vmatpush2.msra.mxu1 %v3953_v38 }
 0x3ce   : > { %4324 = vmatmul.mubr.f32.gmra.mxu1 %v8568_v45  ;;  %4691 = vmatprep.subr.mxu1 %v8531_v54 }
 0x3cf   : > { %4328 = vmatprep.mubr.f32.mxu1 %v8574_v0  ;;  %4692 = vmatpush2.msra.mxu1 %v3952_v41  ;;  %v8646_v41 = vld [vmem:[#allocation3 + $0xca] sm:$0xff] }
 0x3d0   : > { %4114 = vmatmul.mubr.f32.gmra.mxu0 %v8574_v0  ;;  %4693 = vmatprep.subr.mxu1 %v8531_v54 }
 0x3d1   : > { %4118 = vmatprep.mubr.f32.mxu0 %v2860_v37  ;;  %v3951_v37 = vld [vmem:[%s9532_s5 + $0x3c8] sm:$0xff] }
 0x3d2   : > { %4329 = vmatmul.mubr.f32.gmra.mxu1 %v8582_v49 }
 0x3d3   : > { %4333 = vmatprep.mubr.f32.mxu1 %v8590_v17  ;;  %4694 = vmatpush2.msra.mxu1 %v3951_v37  ;;  %v8654_v37 = vld [vmem:[#allocation3 + $0xf0] sm:$0xff] }
 0x3d4   : > { %4119 = vmatmul.mubr.f32.gmra.mxu0 %v8590_v17  ;;  %4695 = vmatprep.subr.mxu1 %v8531_v54 }
 0x3d5   : > { %4123 = vmatprep.mubr.f32.mxu0 %v2861_v15  ;;  %v8617_v15 = vpop.f32.mrf.mxu0  ;;  %4696 = vmatpush2.msra.mxu1 %v3950_v12  ;;  %v3946_v12 = vld [vmem:[%s9532_s5 + $0x3a0] sm:$0xff] }
 0x3d6   : > { %4334 = vmatmul.mubr.f32.gmra.mxu1 %v8598_v3  ;;  %9551 = vst [vmem:[#allocation12_spill] sm:$0xff] %v8617_v15  ;;  %4697 = vmatprep.subr.mxu1 %v8531_v54  ;;  %v8789_v15 = vld [vmem:[#allocation3 + $0x16a] sm:$0xff] }
 0x3d7   : > { %4338 = vmatprep.mubr.f32.mxu1 %v8604_v36  ;;  %v4042_v4 = vpop.f32.mrf.mxu0  ;;  %4698 = vmatpush2.msra.mxu1 %v3949_v50  ;;  %v8676_v50 = vld [vmem:[#allocation3 + $0xe2] sm:$0xff] }
 0x3d8   : > { %4124 = vmatmul.mubr.f32.gmra.mxu0 %v8604_v36  ;;  %4699 = vmatprep.subr.mxu1 %v8531_v54  ;;  %v8662_v4 = vld [vmem:[#allocation3 + $0xda] sm:$0xff] }
 0x3d9   : > { %4128 = vmatprep.mubr.f32.mxu0 %v2862_v53  ;;  %v8633_v46 = vpop.f32.mrf.mxu0  ;;  %v9553_v53 = vmax.f32 %v8257_v40, 0.0  ;;  %4700 = vmatpush2.msra.mxu1 %v3948_v43  ;;  %v3947_v40 = vld [vmem:[%s9532_s5 + $0x3a8] sm:$0xff] }
 0x3da   : > { %4339 = vmatmul.mubr.f32.gmra.mxu1 %v8612_v14  ;;  %9552 = vst [vmem:[#allocation13_spill] sm:$0xff] %v8633_v46  ;;  %4701 = vmatprep.subr.mxu1 %v8531_v54  ;;  %v8692_v43 = vld [vmem:[#allocation3 + $0xf2] sm:$0xff] }
 0x3db   : > { %4343 = vmatprep.mubr.f32.mxu1 %v8622_v5  ;;  %v4047_v38 = vpop.f32.mrf.mxu0  ;;  %4702 = vmatpush2.msra.mxu1 %v3947_v40  ;;  %v8721_v40 = vld [vmem:[#allocation3 + $0x128] sm:$0xff]  ;;  %v3221_v46 = vld [vmem:[#allocation3 + $0x19] sm:$0xff] }
 0x3dc   : > { %4129 = vmatmul.mubr.f32.gmra.mxu0 %v8622_v5  ;;  %4703 = vmatprep.subr.mxu1 %v8531_v54  ;;  %v8706_v38 = vld [vmem:[#allocation3 + $0xfa] sm:$0xff] }
 0x3dd   : > { %4133 = vmatprep.mubr.f32.mxu0 %v9553_v53  ;;  %4704 = vmatpush2.msra.mxu1 %v3946_v12  ;;  %v3943_v53 = vld [vmem:[%s9532_s5 + $0x388] sm:$0xff] }
 0x3de   : > { %4344 = vmatmul.mubr.f32.gmra.mxu1 %v8630_v27  ;;  %4705 = vmatprep.subr.mxu1 %v8531_v54  ;;  %v8758_v12 = vld [vmem:[#allocation3 + $0x158] sm:$0xff] }
 0x3df   : > { %4348 = vmatprep.mubr.f32.mxu1 %v8638_v21 }
 0x3e0   : > { %4134 = vmatmul.mubr.f32.gmra.mxu0 %v8638_v21 }
 0x3e1   : > { %4138 = vmatprep.mubr.f32.mxu0 %v2864_v32  ;;  %v3945_v32 = vld [vmem:[%s9532_s5 + $0x398] sm:$0xff] }
 0x3e2   : > { %4349 = vmatmul.mubr.f32.gmra.mxu1 %v8646_v41 }
 0x3e3   : > { %4353 = vmatprep.mubr.f32.mxu1 %v8654_v37  ;;  %4706 = vmatpush2.msra.mxu1 %v3945_v32  ;;  %v8768_v32 = vld [vmem:[#allocation3 + $0x168] sm:$0xff] }
 0x3e4   : > { %4139 = vmatmul.mubr.f32.gmra.mxu0 %v8654_v37  ;;  %4707 = vmatprep.subr.mxu1 %v8531_v54 }
 0x3e5   : > { %4143 = vmatprep.mubr.f32.mxu0 %v2865_v24  ;;  %v8684_v24 = vld [vmem:[#allocation3 + $0x108] sm:$0xff]  ;;  %4708 = vmatpush2.msra.mxu1 %v3944_v29  ;;  %v8772_v29 = vld [vmem:[#allocation3 + $0x152] sm:$0xff] }
 0x3e6   : > { %4354 = vmatmul.mubr.f32.gmra.mxu1 %v8662_v4  ;;  %4709 = vmatprep.subr.mxu1 %v8531_v54 }
 0x3e7   : > { %4358 = vmatprep.mubr.f32.mxu1 %v8668_v61  ;;  %4710 = vmatpush2.msra.mxu1 %v3943_v53  ;;  %v8774_v53 = vld [vmem:[#allocation3 + $0x171] sm:$0xff] }
 0x3e8   : > { %4144 = vmatmul.mubr.f32.gmra.mxu0 %v8668_v61  ;;  %4711 = vmatprep.subr.mxu1 %v8531_v54 }
 0x3e9   : > { %4148 = vmatprep.mubr.f32.mxu0 %v2866_v1  ;;  %v3942_v1 = vld [vmem:[%s9532_s5 + $0x380] sm:$0xff] }
 0x3ea   : > { %4359 = vmatmul.mubr.f32.gmra.mxu1 %v8676_v50 }
 0x3eb   : > { %4363 = vmatprep.mubr.f32.mxu1 %v8684_v24  ;;  %4712 = vmatpush2.msra.mxu1 %v3942_v1  ;;  %v8778_v1 = vld [vmem:[#allocation3 + $0x170] sm:$0xff] }
 0x3ec   : > { %4149 = vmatmul.mubr.f32.gmra.mxu0 %v8684_v24  ;;  %5886 = vmatprep.subr.mxu1 %v8531_v54  ;;  %9554 = vst [vmem:[#allocation14_spill] sm:$0xff] %v8778_v1  ;;  %v3972_v54 = vld [vmem:[%s9532_s5 + $0x470] sm:$0xff] }
 0x3ed   : > { %4153 = vmatprep.mubr.f32.mxu0 %v2867_v57  ;;  %v8716_v57 = vld [vmem:[#allocation3 + $0x10a] sm:$0xff] }
 0x3ee   : > { %4364 = vmatmul.mubr.f32.gmra.mxu1 %v8692_v43 }
 0x3ef   : > { %4368 = vmatprep.mubr.f32.mxu1 %v8698_v22 }
 0x3f0   : > { %4154 = vmatmul.mubr.f32.gmra.mxu0 %v8698_v22 }
 0x3f1   : > { %4158 = vmatprep.mubr.f32.mxu0 %v2868_v56  ;;  %v8730_v56 = vld [vmem:[#allocation3 + $0x138] sm:$0xff] }
 0x3f2   : > { %4369 = vmatmul.mubr.f32.gmra.mxu1 %v8706_v38 }
 0x3f3   : > { %4373 = vmatprep.mubr.f32.mxu1 %v8711_v59 }
 0x3f4   : > { %4159 = vmatmul.mubr.f32.gmra.mxu0 %v8711_v59 }
 0x3f5   : > { %4163 = vmatprep.mubr.f32.mxu0 %v2869_v52  ;;  %v8739_v52 = vld [vmem:[#allocation3 + $0x140] sm:$0xff] }
 0x3f6   : > { %4374 = vmatmul.mubr.f32.gmra.mxu1 %v8716_v57 }
 0x3f7   : > { %4378 = vmatprep.mubr.f32.mxu1 %v8721_v40 }
 0x3f8   : > { %4164 = vmatmul.mubr.f32.gmra.mxu0 %v8721_v40 }
 0x3f9   : > { %4168 = vmatprep.mubr.f32.mxu0 %v2870_v28  ;;  %v8748_v28 = vld [vmem:[#allocation3 + $0x150] sm:$0xff] }
 0x3fa   : > { %4379 = vmatmul.mubr.f32.gmra.mxu1 %v8725_v44 }
 0x3fb   : > { %4383 = vmatprep.mubr.f32.mxu1 %v8730_v56 }
 0x3fc   : > { %4169 = vmatmul.mubr.f32.gmra.mxu0 %v8730_v56 }
 0x3fd   : > { %4173 = vmatprep.mubr.f32.mxu0 %v2871_v35  ;;  %v8754_v35 = vld [vmem:[#allocation3 + $0x159] sm:$0xff] }
 0x3fe   : > { %4384 = vmatmul.mubr.f32.gmra.mxu1 %v8734_v23 }
 0x3ff   : > { %4388 = vmatprep.mubr.f32.mxu1 %v8739_v52 }
 0x400   : > { %4174 = vmatmul.mubr.f32.gmra.mxu0 %v8739_v52 }
 0x401   : > { %4178 = vmatprep.mubr.f32.mxu0 %v2872_v34  ;;  %v8764_v34 = vld [vmem:[#allocation3 + $0x169] sm:$0xff] }
 0x402   : > { %4389 = vmatmul.mubr.f32.gmra.mxu1 %v8743_v18 }
 0x403   : > { %4393 = vmatprep.mubr.f32.mxu1 %v8748_v28 }
 0x404   : > { %4179 = vmatmul.mubr.f32.gmra.mxu0 %v8748_v28 }
 0x405   : > { %4183 = vmatprep.mubr.f32.mxu0 %v8754_v35 }
 0x406   : > { %4394 = vmatmul.mubr.f32.gmra.mxu1 %v8752_v16 }
 0x407   : > { %4398 = vmatprep.mubr.f32.mxu1 %v8758_v12 }
 0x408   : > { %4184 = vmatmul.mubr.f32.gmra.mxu0 %v8758_v12 }
 0x409   : > { %4188 = vmatprep.mubr.f32.mxu0 %v8764_v34 }
 0x40a   : > { %4399 = vmatmul.mubr.f32.gmra.mxu1 %v8762_v55 }
 0x40b   : > { %4403 = vmatprep.mubr.f32.mxu1 %v8768_v32 }
 0x40c   : > { %4189 = vmatmul.mubr.f32.gmra.mxu0 %v8768_v32 }
 0x40d   : > { %4193 = vmatprep.mubr.f32.mxu0 %v8774_v53 }
 0x40e   : > { %4404 = vmatmul.mubr.f32.gmra.mxu1 %v8772_v29 }
 0x40f   : > { %4408 = vmatprep.mubr.f32.mxu1 %v8778_v1 }
 0x410   : > { %4194 = vmatmul.mubr.f32.gmra.mxu0 %v8778_v1  ;;  %v8796_v1 = vld [vmem:[#allocation3 + $0x188] sm:$0xff] }
 0x411   : > { %4488 = vmatprep.mubr.f32.mxu0 %v8416_v47  ;;  %v3222_v47 = vld [vmem:[#allocation3 + $0x21] sm:$0xff] }
 0x412   : > { %4409 = vmatmul.mubr.f32.gmra.mxu1 %v8782_v63 }
 0x413   : > { %4413 = vmatprep.mubr.f32.mxu1 %v8785_v6  ;;  %v8800_v6 = vld [vmem:[#allocation3 + $0x172] sm:$0xff] }
 0x414   : > { %4489 = vmatmul.mubr.f32.vlgmr.msra.gmra.mxu0 %v3221_v46  ;;  %v3971_v46 = vld [vmem:[%s9532_s5 + $0x468] sm:$0xff] }
 0x415   : > { %5807 = vmatpush3.msra.mxu0 %v8309_v9  ;;  %4493 = vmatprep.mubr.f32.mxu0 %v8430_v60  ;;  %v3414_v9 = vld [vmem:[#allocation3 + $0x31] sm:$0xff] }
 0x416   : > { %4414 = vmatmul.mubr.f32.gmra.mxu1 %v8789_v15  ;;  %5808 = vmatprep.subr.mxu0 %v3972_v54  ;;  %v3970_v60 = vld [vmem:[%s9532_s5 + $0x460] sm:$0xff] }
 0x417   : > { %4418 = vmatprep.mubr.f32.mxu1 %v8796_v1  ;;  %5809 = vmatpush3.msra.mxu0 %v3972_v54  ;;  %v3416_v54 = vld [vmem:[#allocation3 + $0x49] sm:$0xff] }
 0x418   : > { %4494 = vmatmul.mubr.f32.gmra.mxu0 %v3222_v47  ;;  %5810 = vmatprep.subr.mxu0 %v3971_v46  ;;  %v3415_v47 = vld [vmem:[#allocation3 + $0x39] sm:$0xff] }
 0x419   : > { %4498 = vmatprep.mubr.f32.mxu0 %v8446_v48  ;;  %5811 = vmatpush3.msra.mxu0 %v3971_v46  ;;  %v3969_v48 = vld [vmem:[%s9532_s5 + $0x458] sm:$0xff] }
 0x41a   : > { %4419 = vmatmul.mubr.f32.gmra.mxu1 %v8800_v6  ;;  %5812 = vmatprep.subr.mxu0 %v3970_v60 }
 0x41b   : > { %4713 = vmatprep.mubr.f32.mxu1 %v3414_v9  ;;  %5813 = vmatpush3.msra.mxu0 %v3970_v60 }
 0x41c   : > { %4499 = vmatmul.mubr.f32.gmra.mxu0 %v3414_v9  ;;  %5814 = vmatprep.subr.mxu0 %v3969_v48 }
 0x41d   : > { %4503 = vmatprep.mubr.f32.mxu0 %v8460_v19  ;;  %v3417_v19 = vld [vmem:[#allocation3 + $0x51] sm:$0xff]  ;;  %5815 = vmatpush3.msra.mxu0 %v3969_v48 }
 0x41e   : > { %4714 = vmatmul.mubr.f32.vlgmr.msra.gmra.mxu1 %v8408_v42  ;;  %v3968_v42 = vld [vmem:[%s9532_s5 + $0x450] sm:$0xff] }
 0x41f   : > { %4718 = vmatprep.mubr.f32.mxu1 %v3415_v47  ;;  %5816 = vmatprep.subr.mxu0 %v3968_v42 }
 0x420   : > { %4504 = vmatmul.mubr.f32.gmra.mxu0 %v3415_v47 }
 0x421   : > { %4508 = vmatprep.mubr.f32.mxu0 %v8476_v31  ;;  %v3418_v31 = vld [vmem:[#allocation3 + $0x61] sm:$0xff]  ;;  %5817 = vmatpush3.msra.mxu0 %v3968_v42 }
 0x422   : > { %4719 = vmatmul.mubr.f32.gmra.mxu1 %v8422_v20  ;;  %v3967_v20 = vld [vmem:[%s9532_s5 + $0x448] sm:$0xff] }
 0x423   : > { %4723 = vmatprep.mubr.f32.mxu1 %v3416_v54  ;;  %5818 = vmatprep.subr.mxu0 %v3967_v20 }
 0x424   : > { %4509 = vmatmul.mubr.f32.gmra.mxu0 %v3416_v54 }
 0x425   : > { %4513 = vmatprep.mubr.f32.mxu0 %v8490_v39  ;;  %v3419_v39 = vld [vmem:[#allocation3 + $0x69] sm:$0xff]  ;;  %5819 = vmatpush3.msra.mxu0 %v3967_v20 }
 0x426   : > { %4724 = vmatmul.mubr.f32.gmra.mxu1 %v8438_v62  ;;  %v3966_v62 = vld [vmem:[%s9532_s5 + $0x440] sm:$0xff] }
 0x427   : > { %4728 = vmatprep.mubr.f32.mxu1 %v3417_v19  ;;  %5820 = vmatprep.subr.mxu0 %v3966_v62 }
 0x428   : > { %4514 = vmatmul.mubr.f32.gmra.mxu0 %v3417_v19  ;;  %v3434_v19 = vld [vmem:[#allocation3 + $0x121] sm:$0xff] }
 0x429   : > { %4518 = vmatprep.mubr.f32.mxu0 %v8506_v10  ;;  %v3420_v10 = vld [vmem:[#allocation3 + $0x79] sm:$0xff]  ;;  %5821 = vmatpush3.msra.mxu0 %v3966_v62 }
 0x42a   : > { %4729 = vmatmul.mubr.f32.gmra.mxu1 %v8452_v11  ;;  %v3965_v11 = vld [vmem:[%s9532_s5 + $0x438] sm:$0xff] }
 0x42b   : > { %4733 = vmatprep.mubr.f32.mxu1 %v3418_v31  ;;  %5822 = vmatprep.subr.mxu0 %v3965_v11 }
 0x42c   : > { %4519 = vmatmul.mubr.f32.gmra.mxu0 %v3418_v31 }
 0x42d   : > { %4523 = vmatprep.mubr.f32.mxu0 %v8520_v26  ;;  %v3421_v26 = vld [vmem:[#allocation3 + $0x81] sm:$0xff]  ;;  %5823 = vmatpush3.msra.mxu0 %v3965_v11 }
 0x42e   : > { %4734 = vmatmul.mubr.f32.gmra.mxu1 %v8468_v7  ;;  %v3964_v7 = vld [vmem:[%s9532_s5 + $0x430] sm:$0xff] }
 0x42f   : > { %4738 = vmatprep.mubr.f32.mxu1 %v3419_v39  ;;  %5824 = vmatprep.subr.mxu0 %v3964_v7 }
 0x430   : > { %4524 = vmatmul.mubr.f32.gmra.mxu0 %v3419_v39  ;;  %v3435_v39 = vld [vmem:[#allocation3 + $0x129] sm:$0xff] }
 0x431   : > { %4528 = vmatprep.mubr.f32.mxu0 %v8538_v33  ;;  %v3422_v33 = vld [vmem:[#allocation3 + $0x91] sm:$0xff]  ;;  %5825 = vmatpush3.msra.mxu0 %v3964_v7 }
 0x432   : > { %4739 = vmatmul.mubr.f32.gmra.mxu1 %v8482_v58  ;;  %v3963_v58 = vld [vmem:[%s9532_s5 + $0x428] sm:$0xff] }
 0x433   : > { %4743 = vmatprep.mubr.f32.mxu1 %v3420_v10  ;;  %5826 = vmatprep.subr.mxu0 %v3963_v58 }
 0x434   : > { %4529 = vmatmul.mubr.f32.gmra.mxu0 %v3420_v10 }
 0x435   : > { %4533 = vmatprep.mubr.f32.mxu0 %v8552_v51  ;;  %v3423_v51 = vld [vmem:[#allocation3 + $0x99] sm:$0xff]  ;;  %5827 = vmatpush3.msra.mxu0 %v3963_v58 }
 0x436   : > { %4744 = vmatmul.mubr.f32.gmra.mxu1 %v8498_v13  ;;  %v3962_v13 = vld [vmem:[%s9532_s5 + $0x420] sm:$0xff] }
 0x437   : > { %4748 = vmatprep.mubr.f32.mxu1 %v3421_v26  ;;  %5828 = vmatprep.subr.mxu0 %v3962_v13 }
 0x438   : > { %4534 = vmatmul.mubr.f32.gmra.mxu0 %v3421_v26  ;;  %v3436_v26 = vld [vmem:[#allocation3 + $0x139] sm:$0xff] }
 0x439   : > { %4538 = vmatprep.mubr.f32.mxu0 %v8568_v45  ;;  %v3424_v45 = vld [vmem:[#allocation3 + $0xa9] sm:$0xff]  ;;  %5829 = vmatpush3.msra.mxu0 %v3962_v13 }
 0x43a   : > { %4749 = vmatmul.mubr.f32.gmra.mxu1 %v8512_v2  ;;  %v3961_v2 = vld [vmem:[%s9532_s5 + $0x418] sm:$0xff] }
 0x43b   : > { %4753 = vmatprep.mubr.f32.mxu1 %v3422_v33  ;;  %5830 = vmatprep.subr.mxu0 %v3961_v2 }
 0x43c   : > { %4539 = vmatmul.mubr.f32.gmra.mxu0 %v3422_v33 }
 0x43d   : > { %4543 = vmatprep.mubr.f32.mxu0 %v8582_v49  ;;  %v3425_v49 = vld [vmem:[#allocation3 + $0xb1] sm:$0xff]  ;;  %5831 = vmatpush3.msra.mxu0 %v3961_v2 }
 0x43e   : > { %4754 = vmatmul.mubr.f32.gmra.mxu1 %v8528_v25  ;;  %v3960_v25 = vld [vmem:[%s9532_s5 + $0x410] sm:$0xff] }
 0x43f   : > { %4758 = vmatprep.mubr.f32.mxu1 %v3423_v51  ;;  %5832 = vmatprep.subr.mxu0 %v3960_v25 }
 0x440   : > { %4544 = vmatmul.mubr.f32.gmra.mxu0 %v3423_v51  ;;  %v3437_v51 = vld [vmem:[#allocation3 + $0x141] sm:$0xff] }
 0x441   : > { %4548 = vmatprep.mubr.f32.mxu0 %v8598_v3  ;;  %v3426_v3 = vld [vmem:[#allocation3 + $0xc1] sm:$0xff]  ;;  %5833 = vmatpush3.msra.mxu0 %v3960_v25 }
 0x442   : > { %4759 = vmatmul.mubr.f32.gmra.mxu1 %v8544_v8  ;;  %v3959_v8 = vld [vmem:[%s9532_s5 + $0x408] sm:$0xff] }
 0x443   : > { %4763 = vmatprep.mubr.f32.mxu1 %v3424_v45  ;;  %5834 = vmatprep.subr.mxu0 %v3959_v8 }
 0x444   : > { %4549 = vmatmul.mubr.f32.gmra.mxu0 %v3424_v45 }
 0x445   : > { %4553 = vmatprep.mubr.f32.mxu0 %v8612_v14  ;;  %v3427_v14 = vld [vmem:[#allocation3 + $0xc9] sm:$0xff]  ;;  %5835 = vmatpush3.msra.mxu0 %v3959_v8 }
 0x446   : > { %4764 = vmatmul.mubr.f32.gmra.mxu1 %v8560_v30  ;;  %v3958_v30 = vld [vmem:[%s9532_s5 + $0x400] sm:$0xff] }
 0x447   : > { %4768 = vmatprep.mubr.f32.mxu1 %v3425_v49  ;;  %5836 = vmatprep.subr.mxu0 %v3958_v30 }
 0x448   : > { %4554 = vmatmul.mubr.f32.gmra.mxu0 %v3425_v49  ;;  %v3438_v49 = vld [vmem:[#allocation3 + $0x151] sm:$0xff] }
 0x449   : > { %4558 = vmatprep.mubr.f32.mxu0 %v8630_v27  ;;  %5837 = vmatpush3.msra.mxu0 %v3958_v30  ;;  %v3430_v27 = vld [vmem:[#allocation3 + $0xf1] sm:$0xff] }
 0x44a   : > { %4769 = vmatmul.mubr.f32.gmra.mxu1 %v8574_v0  ;;  %v3428_v0 = vld [vmem:[#allocation3 + $0xd9] sm:$0xff] }
 0x44b   : > { %4773 = vmatprep.mubr.f32.mxu1 %v3426_v3 }
 0x44c   : > { %4559 = vmatmul.mubr.f32.gmra.mxu0 %v3426_v3 }
 0x44d   : > { %4563 = vmatprep.mubr.f32.mxu0 %v8646_v41 }
 0x44e   : > { %4774 = vmatmul.mubr.f32.gmra.mxu1 %v8590_v17  ;;  %v3429_v17 = vld [vmem:[#allocation3 + $0xe1] sm:$0xff] }
 0x44f   : > { %4778 = vmatprep.mubr.f32.mxu1 %v3427_v14 }
 0x450   : > { %4564 = vmatmul.mubr.f32.gmra.mxu0 %v3427_v14 }
 0x451   : > { %4568 = vmatprep.mubr.f32.mxu0 %v8662_v4 }
 0x452   : > { %4779 = vmatmul.mubr.f32.gmra.mxu1 %v8604_v36 }
 0x453   : > { %4783 = vmatprep.mubr.f32.mxu1 %v3428_v0 }
 0x454   : > { %4569 = vmatmul.mubr.f32.gmra.mxu0 %v3428_v0 }
 0x455   : > { %4573 = vmatprep.mubr.f32.mxu0 %v8676_v50 }
 0x456   : > { %4784 = vmatmul.mubr.f32.gmra.mxu1 %v8622_v5  ;;  %v3431_v5 = vld [vmem:[#allocation3 + $0xf9] sm:$0xff] }
 0x457   : > { %4788 = vmatprep.mubr.f32.mxu1 %v3429_v17 }
 0x458   : > { %4574 = vmatmul.mubr.f32.gmra.mxu0 %v3429_v17 }
 0x459   : > { %4578 = vmatprep.mubr.f32.mxu0 %v8692_v43 }
 0x45a   : > { %4789 = vmatmul.mubr.f32.gmra.mxu1 %v8638_v21  ;;  %v3432_v21 = vld [vmem:[#allocation3 + $0x109] sm:$0xff] }
 0x45b   : > { %4793 = vmatprep.mubr.f32.mxu1 %v3430_v27  ;;  %v4050_v36 = vpop.f32.mrf.mxu0 }
 0x45c   : > { %4579 = vmatmul.mubr.f32.gmra.mxu0 %v3430_v27  ;;  %v8878_v41 = vpop.f32.mrf.mxu1 }
 0x45d   : > { %4583 = vmatprep.mubr.f32.mxu0 %v8706_v38  ;;  %v4052_v4 = vpop.f32.mrf.mxu0  ;;  %v3433_v38 = vld [vmem:[#allocation3 + $0x111] sm:$0xff] }
 0x45e   : > { %4794 = vmatmul.mubr.f32.gmra.mxu1 %v8654_v37  ;;  %v4267_v50 = vpop.f32.mrf.mxu1 }
 0x45f   : > { %4798 = vmatprep.mubr.f32.mxu1 %v3431_v5  ;;  %v4055_v46 = vpop.f32.mrf.mxu0 }
 0x460   : > { %4584 = vmatmul.mubr.f32.gmra.mxu0 %v3431_v5 }
 0x461   : > { %4588 = vmatprep.mubr.f32.mxu0 %v8716_v57  ;;  %v4057_v43 = vpop.f32.mrf.mxu0 }
 0x462   : > { %v8882_v9 = vpop.f32.mrf.mxu1  ;;  %4799 = vmatmul.mubr.f32.gmra.mxu1 %v8668_v61  ;;  %v9556_v43 = vld [vmem:[#allocation14_spill] sm:$0xff] }
 0x463   : > { %4803 = vmatprep.mubr.f32.mxu1 %v3432_v21 }
 0x464   : > { %v4272_v60 = vpop.f32.mrf.mxu1  ;;  %v4060_v47 = vpop.f32.mrf.mxu0  ;;  %4589 = vmatmul.mubr.f32.gmra.mxu0 %v3432_v21 }
 0x465   : > { %4593 = vmatprep.mubr.f32.mxu0 %v8725_v44 }
 0x466   : > { %v4275_v37 = vpop.f32.mrf.mxu1  ;;  %4804 = vmatmul.mubr.f32.gmra.mxu1 %v8684_v24  ;;  %v4062_v54 = vpop.f32.mrf.mxu0 }
 0x467   : > { %v8888_v48 = vadd.f32 %v4275_v37, %v4050_v36  ;;  %4808 = vmatprep.mubr.f32.mxu1 %v3433_v38 }
 0x468   : > { %v4277_v42 = vpop.f32.mrf.mxu1  ;;  %v4065_v61 = vpop.f32.mrf.mxu0  ;;  %4594 = vmatmul.mubr.f32.gmra.mxu0 %v3433_v38  ;;  %v8934_v38 = vld [vmem:[#allocation3 + $0x18a] sm:$0xff] }
 0x469   : > { %4598 = vmatprep.mubr.f32.mxu0 %v8734_v23  ;;  %v9557_v42 = vld [vmem:[#allocation15_spill] sm:$0xff] }
 0x46a   : > { %v4280_v57 = vpop.f32.mrf.mxu1  ;;  %4809 = vmatmul.mubr.f32.gmra.mxu1 %v8698_v22  ;;  %v4067_v24 = vpop.f32.mrf.mxu0 }
 0x46b   : > { %v8892_v20 = vadd.f32 %v4280_v57, %v4055_v46  ;;  %4813 = vmatprep.mubr.f32.mxu1 %v3434_v19  ;;  %v8928_v46 = vld [vmem:[#allocation3 + $0x182] sm:$0xff]  ;;  %v3444_v24 = vld [vmem:[#allocation3 + $0x199] sm:$0xff] }
 0x46c   : > { %v4282_v31 = vpop.f32.mrf.mxu1  ;;  %v4070_v44 = vpop.f32.mrf.mxu0  ;;  %4599 = vmatmul.mubr.f32.gmra.mxu0 %v3434_v19 }
 0x46d   : > { %4603 = vmatprep.mubr.f32.mxu0 %v8743_v18 }
 0x46e   : > { %v4285_v62 = vpop.f32.mrf.mxu1  ;;  %4814 = vmatmul.mubr.f32.gmra.mxu1 %v8711_v59  ;;  %v4072_v22 = vpop.f32.mrf.mxu0 }
 0x46f   : > { %v8896_v11 = vadd.f32 %v4285_v62, %v4060_v47  ;;  %4818 = vmatprep.mubr.f32.mxu1 %v3435_v39 }
 0x470   : > { %v4287_v10 = vpop.f32.mrf.mxu1  ;;  %v4075_v23 = vpop.f32.mrf.mxu0  ;;  %4604 = vmatmul.mubr.f32.gmra.mxu0 %v3435_v39 }
 0x471   : > { %4608 = vmatprep.mubr.f32.mxu0 %v8752_v16 }
 0x472   : > { %v4290_v7 = vpop.f32.mrf.mxu1  ;;  %4819 = vmatmul.mubr.f32.gmra.mxu1 %v8721_v40  ;;  %v4077_v59 = vpop.f32.mrf.mxu0 }
 0x473   : > { %v8900_v58 = vadd.f32 %v4290_v7, %v4065_v61  ;;  %4823 = vmatprep.mubr.f32.mxu1 %v3436_v26  ;;  %v3445_v7 = vld [vmem:[#allocation3 + $0x1a1] sm:$0xff]  ;;  %v3480_v59 = vld [vmem:[#allocation3 + $0x4a] sm:$0xff] }
 0x474   : > { %v4292_v33 = vpop.f32.mrf.mxu1  ;;  %v4080_v18 = vpop.f32.mrf.mxu0  ;;  %4609 = vmatmul.mubr.f32.gmra.mxu0 %v3436_v26 }
 0x475   : > { %4613 = vmatprep.mubr.f32.mxu0 %v8762_v55 }
 0x476   : > { %v4295_v13 = vpop.f32.mrf.mxu1  ;;  %4824 = vmatmul.mubr.f32.gmra.mxu1 %v8730_v56  ;;  %v4082_v40 = vpop.f32.mrf.mxu0 }
 0x477   : > { %v8904_v2 = vadd.f32 %v4295_v13, %v4070_v44  ;;  %4828 = vmatprep.mubr.f32.mxu1 %v3437_v51  ;;  %v3478_v44 = vld [vmem:[#allocation3 + $0x32] sm:$0xff] }
 0x478   : > { %v4297_v45 = vpop.f32.mrf.mxu1  ;;  %v4085_v16 = vpop.f32.mrf.mxu0  ;;  %4614 = vmatmul.mubr.f32.gmra.mxu0 %v3437_v51  ;;  %v3481_v40 = vld [vmem:[#allocation3 + $0x52] sm:$0xff] }
 0x479   : > { %4618 = vmatprep.mubr.f32.mxu0 %v8772_v29 }
 0x47a   : > { %v4300_v25 = vpop.f32.mrf.mxu1  ;;  %4829 = vmatmul.mubr.f32.gmra.mxu1 %v8739_v52  ;;  %v4087_v56 = vpop.f32.mrf.mxu0 }
 0x47b   : > { %v8908_v8 = vadd.f32 %v4300_v25, %v4075_v23  ;;  %4833 = vmatprep.mubr.f32.mxu1 %v3438_v49  ;;  %v3479_v23 = vld [vmem:[#allocation3 + $0x3a] sm:$0xff] }
 0x47c   : > { %v4302_v3 = vpop.f32.mrf.mxu1  ;;  %v4090_v55 = vpop.f32.mrf.mxu0  ;;  %4619 = vmatmul.mubr.f32.gmra.mxu0 %v3438_v49 }
 0x47d   : > { %4623 = vmatprep.mubr.f32.mxu0 %v8782_v63 }
 0x47e   : > { %v4305_v30 = vpop.f32.mrf.mxu1  ;;  %4834 = vmatmul.mubr.f32.gmra.mxu1 %v8748_v28  ;;  %v4092_v52 = vpop.f32.mrf.mxu0 }
 0x47f   : > { %v8912_v14 = vadd.f32 %v4305_v30, %v4080_v18  ;;  %4838 = vmatprep.mubr.f32.mxu1 %v8754_v35  ;;  %v9558_v18 = vld [vmem:[#allocation11_spill] sm:$0xff] }
 0x480   : > { %v4307_v0 = vpop.f32.mrf.mxu1  ;;  %v4095_v29 = vpop.f32.mrf.mxu0  ;;  %4624 = vmatmul.mubr.f32.gmra.mxu0 %v8754_v35  ;;  %v3484_v52 = vld [vmem:[#allocation3 + $0x7a] sm:$0xff] }
 0x481   : > { %4628 = vmatprep.mubr.f32.mxu0 %v8789_v15 }
 0x482   : > { %v4310_v17 = vpop.f32.mrf.mxu1  ;;  %4839 = vmatmul.mubr.f32.gmra.mxu1 %v8758_v12  ;;  %v4097_v28 = vpop.f32.mrf.mxu0 }
 0x483   : > { %v8918_v27 = vadd.f32 %v4310_v17, %v4085_v16  ;;  %4843 = vmatprep.mubr.f32.mxu1 %v8764_v34  ;;  %v3482_v16 = vld [vmem:[#allocation3 + $0x62] sm:$0xff] }
 0x484   : > { %v4312_v63 = vpop.f32.mrf.mxu1  ;;  %v4100_v36 = vpop.f32.mrf.mxu0  ;;  %4629 = vmatmul.mubr.f32.gmra.mxu0 %v8764_v34  ;;  %v3442_v34 = vld [vmem:[#allocation3 + $0x181] sm:$0xff] }
 0x485   : > { %4633 = vmatprep.mubr.f32.mxu0 %v8800_v6  ;;  %v3485_v63 = vld [vmem:[#allocation3 + $0x82] sm:$0xff] }
 0x486   : > { %v4315_v5 = vpop.f32.mrf.mxu1  ;;  %4844 = vmatmul.mubr.f32.gmra.mxu1 %v8768_v32  ;;  %v4102_v12 = vpop.f32.mrf.mxu0 }
 0x487   : > { %v8924_v35 = vadd.f32 %v4315_v5, %v4090_v55  ;;  %4848 = vmatprep.mubr.f32.mxu1 %v8774_v53  ;;  %v3483_v55 = vld [vmem:[#allocation3 + $0x6a] sm:$0xff]  ;;  %v3486_v5 = vld [vmem:[#allocation3 + $0x92] sm:$0xff] }
 0x488   : > { %v4317_v4 = vpop.f32.mrf.mxu1  ;;  %v4105_v50 = vpop.f32.mrf.mxu0  ;;  %4634 = vmatmul.mubr.f32.gmra.mxu0 %v8774_v53  ;;  %v3443_v53 = vld [vmem:[#allocation3 + $0x189] sm:$0xff] }
 0x489   : > { %4638 = vmatprep.mubr.f32.mxu0 %v8928_v46 }
 0x48a   : > { %v4320_v21 = vpop.f32.mrf.mxu1  ;;  %4849 = vmatmul.mubr.f32.gmra.mxu1 %v9556_v43  ;;  %v4107_v60 = vpop.f32.mrf.mxu0  ;;  %v3487_v43 = vld [vmem:[#allocation3 + $0x9a] sm:$0xff] }
 0x48b   : > { %v8932_v32 = vadd.f32 %v4320_v21, %v4095_v29  ;;  %4853 = vmatprep.mubr.f32.mxu1 %v3442_v34  ;;  %v3488_v60 = vld [vmem:[#allocation3 + $0xaa] sm:$0xff] }
 0x48c   : > { %v4322_v47 = vpop.f32.mrf.mxu1  ;;  %v4110_v37 = vpop.f32.mrf.mxu0  ;;  %4639 = vmatmul.mubr.f32.gmra.mxu0 %v3442_v34 }
 0x48d   : > { %4643 = vmatprep.mubr.f32.mxu0 %v8934_v38 }
 0x48e   : > { %v4325_v54 = vpop.f32.mrf.mxu1  ;;  %4854 = vmatmul.mubr.f32.gmra.mxu1 %v9557_v42  ;;  %v4112_v57 = vpop.f32.mrf.mxu0 }
 0x48f   : > { %v8938_v61 = vadd.f32 %v4325_v54, %v4100_v36  ;;  %4858 = vmatprep.mubr.f32.mxu1 %v3443_v53 }
 0x490   : > { %v4327_v19 = vpop.f32.mrf.mxu1  ;;  %v4115_v31 = vpop.f32.mrf.mxu0  ;;  %4644 = vmatmul.mubr.f32.gmra.mxu0 %v3443_v53  ;;  %v3489_v53 = vld [vmem:[#allocation3 + $0xb2] sm:$0xff] }
 0x491   : > { %5838 = vmatprep.mubr.f32.mxu0 %v3478_v44  ;;  %v3490_v19 = vld [vmem:[#allocation3 + $0xc2] sm:$0xff] }
 0x492   : > { %v4330_v62 = vpop.f32.mrf.mxu1  ;;  %4859 = vmatmul.mubr.f32.gmra.mxu1 %v8796_v1  ;;  %v4117_v22 = vpop.f32.mrf.mxu0 }
 0x493   : > { %v8941_v39 = vadd.f32 %v4330_v62, %v4105_v50  ;;  %4863 = vmatprep.mubr.f32.mxu1 %v3444_v24  ;;  %v5221_v62 = vld [vmem:[%s9535_s8 + $0x78] sm:$0xff] }
 0x494   : > { %v4332_v10 = vpop.f32.mrf.mxu1  ;;  %v4120_v26 = vpop.f32.mrf.mxu0  ;;  %5839 = vmatmul.mubr.f32.vlgmr.msra.gmra.mxu0 %v3479_v23  ;;  %5887 = vmatpush3.msra.mxu1 %v5221_v62  ;;  %v3501_v62 = vld [vmem:[#allocation3 + $0x142] sm:$0xff] }
 0x495   : > { %5841 = vmatprep.mubr.f32.mxu0 %v3480_v59  ;;  %v3491_v10 = vld [vmem:[#allocation3 + $0xca] sm:$0xff] }
 0x496   : > { %v4335_v33 = vpop.f32.mrf.mxu1  ;;  %4864 = vmatmul.mubr.f32.gmra.mxu1 %v9558_v18  ;;  %v4122_v51 = vpop.f32.mrf.mxu0 }
 0x497   : > { %v8944_v13 = vadd.f32 %v4335_v33, %v4110_v37  ;;  %4868 = vmatprep.mubr.f32.mxu1 %v3445_v7  ;;  %v3492_v7 = vld [vmem:[#allocation3 + $0xda] sm:$0xff] }
 0x498   : > { %v4337_v1 = vpop.f32.mrf.mxu1  ;;  %v4125_v45 = vpop.f32.mrf.mxu0  ;;  %5842 = vmatmul.mubr.f32.gmra.mxu0 %v3481_v40 }
 0x499   : > { %5844 = vmatprep.mubr.f32.mxu0 %v3482_v16  ;;  %v3493_v1 = vld [vmem:[#allocation3 + $0xe2] sm:$0xff] }
 0x49a   : > { %v4340_v25 = vpop.f32.mrf.mxu1  ;;  %4869 = vmatmul.mubr.f32.gmra.mxu1 %v9558_v18  ;;  %v4127_v56 = vpop.f32.mrf.mxu0 }
 0x49b   : > { %v8947_v49 = vadd.f32 %v4340_v25, %v4115_v31  ;;  %5918 = vmatprep.mubr.msk.f32.mxu1 %vm6039_vm3, %v9558_v18 }
 0x49c   : > { %v4342_v3 = vpop.f32.mrf.mxu1  ;;  %v4130_v30 = vpop.f32.mrf.mxu0  ;;  %5845 = vmatmul.mubr.f32.gmra.mxu0 %v3483_v55 }
 0x49d   : > { %5847 = vmatprep.mubr.f32.mxu0 %v3484_v52  ;;  %v5220_v3 = vld [vmem:[%s9535_s8 + $0x70] sm:$0xff] }
 0x49e   : > { %v4345_v0 = vpop.f32.mrf.mxu1  ;;  %v4132_v17 = vpop.f32.mrf.mxu0 }
 0x49f   : > { %v8951_v29 = vadd.f32 %v4345_v0, %v4120_v26  ;;  %v8962_v26 = vld [vmem:[#allocation3] sm:$0xff]  ;;  %v3496_v0 = vld [vmem:[#allocation3 + $0x10a] sm:$0xff] }
 0x4a0   : > { %v4347_v28 = vpop.f32.mrf.mxu1  ;;  %v4135_v36 = vpop.f32.mrf.mxu0  ;;  %5848 = vmatmul.mubr.f32.gmra.mxu0 %v3485_v63  ;;  %5888 = vmatprep.subr.mxu1 %v8962_v26 }
 0x4a1   : > { %5850 = vmatprep.mubr.f32.mxu0 %v3486_v5  ;;  %5889 = vmatpush3.msra.mxu1 %v5220_v3  ;;  %v3497_v5 = vld [vmem:[#allocation3 + $0x112] sm:$0xff] }
 0x4a2   : > { %v4350_v12 = vpop.f32.mrf.mxu1  ;;  %v4137_v50 = vpop.f32.mrf.mxu0  ;;  %5890 = vmatprep.subr.mxu1 %v8962_v26 }
 0x4a3   : > { %v8953_v4 = vadd.f32 %v4350_v12, %v4125_v45  ;;  %v3494_v45 = vld [vmem:[#allocation3 + $0xf2] sm:$0xff]  ;;  %v3498_v50 = vld [vmem:[#allocation3 + $0x122] sm:$0xff] }
 0x4a4   : > { %v4352_v21 = vpop.f32.mrf.mxu1  ;;  %v4140_v34 = vpop.f32.mrf.mxu0  ;;  %5851 = vmatmul.mubr.f32.gmra.mxu0 %v3487_v43 }
 0x4a5   : > { %5853 = vmatprep.mubr.f32.mxu0 %v3488_v60  ;;  %v5219_v60 = vld [vmem:[%s9535_s8 + $0x68] sm:$0xff] }
 0x4a6   : > { %v4355_v47 = vpop.f32.mrf.mxu1  ;;  %v4142_v54 = vpop.f32.mrf.mxu0  ;;  %5891 = vmatpush3.msra.mxu1 %v5219_v60 }
 0x4a7   : > { %v8955_v37 = vadd.f32 %v4355_v47, %v4130_v30  ;;  %v3495_v30 = vld [vmem:[#allocation3 + $0xfa] sm:$0xff]  ;;  %v3499_v54 = vld [vmem:[#allocation3 + $0x12a] sm:$0xff]  ;;  %5892 = vmatprep.subr.mxu1 %v8962_v26 }
 0x4a8   : > { %v4357_v42 = vpop.f32.mrf.mxu1  ;;  %v4145_v57 = vpop.f32.mrf.mxu0  ;;  %5854 = vmatmul.mubr.f32.gmra.mxu0 %v3489_v53  ;;  %v3500_v53 = vld [vmem:[#allocation3 + $0x13a] sm:$0xff] }
 0x4a9   : > { %5856 = vmatprep.mubr.f32.mxu0 %v3490_v19 }
 0x4aa   : > { %v4360_v24 = vpop.f32.mrf.mxu1  ;;  %v4147_v44 = vpop.f32.mrf.mxu0 }
 0x4ab   : > { %v8957_v31 = vadd.f32 %v4360_v24, %v4135_v36 }
 0x4ac   : > { %v4362_v22 = vpop.f32.mrf.mxu1  ;;  %v4150_v23 = vpop.f32.mrf.mxu0  ;;  %5857 = vmatmul.mubr.f32.gmra.mxu0 %v3491_v10  ;;  %v3502_v10 = vld [vmem:[#allocation3 + $0x152] sm:$0xff] }
 0x4ad   : > { %5859 = vmatprep.mubr.f32.mxu0 %v3492_v7 }
 0x4ae   : > { %v4365_v59 = vpop.f32.mrf.mxu1  ;;  %v4152_v18 = vpop.f32.mrf.mxu0 }
 0x4af   : > { %v8965_v33 = vadd.f32 %v4365_v59, %v4140_v34  ;;  %v5218_v18 = vld [vmem:[%s9535_s8 + $0x60] sm:$0xff] }
 0x4b0   : > { %v4367_v51 = vpop.f32.mrf.mxu1  ;;  %v4155_v40 = vpop.f32.mrf.mxu0  ;;  %5860 = vmatmul.mubr.f32.gmra.mxu0 %v3493_v1  ;;  %v3503_v1 = vld [vmem:[#allocation3 + $0x15a] sm:$0xff]  ;;  %5893 = vmatpush3.msra.mxu1 %v5218_v18 }
 0x4b1   : > { %5862 = vmatprep.mubr.f32.mxu0 %v3494_v45  ;;  %5894 = vmatprep.subr.mxu1 %v8962_v26 }
 0x4b2   : > { %v4370_v16 = vpop.f32.mrf.mxu1  ;;  %v4157_v56 = vpop.f32.mrf.mxu0 }
 0x4b3   : > { %v8967_v25 = vadd.f32 %v4370_v16, %v4145_v57 }
 0x4b4   : > { %v4372_v55 = vpop.f32.mrf.mxu1  ;;  %v4160_v52 = vpop.f32.mrf.mxu0  ;;  %5863 = vmatmul.mubr.f32.gmra.mxu0 %v3495_v30 }
 0x4b5   : > { %5865 = vmatprep.mubr.f32.mxu0 %v3496_v0 }
 0x4b6   : > { %v4375_v17 = vpop.f32.mrf.mxu1  ;;  %v4162_v63 = vpop.f32.mrf.mxu0 }
 0x4b7   : > { %v8973_v28 = vadd.f32 %v4375_v17, %v4150_v23  ;;  %v3508_v17 = vld [vmem:[#allocation3 + $0x19a] sm:$0xff]  ;;  %v5217_v63 = vld [vmem:[%s9535_s8 + $0x58] sm:$0xff] }
 0x4b8   : > { %v4377_v36 = vpop.f32.mrf.mxu1  ;;  %v4165_v12 = vpop.f32.mrf.mxu0  ;;  %5866 = vmatmul.mubr.f32.gmra.mxu0 %v3497_v5  ;;  %5895 = vmatpush3.msra.mxu1 %v5217_v63 }
 0x4b9   : > { %5868 = vmatprep.mubr.f32.mxu0 %v3498_v50  ;;  %5896 = vmatprep.subr.mxu1 %v8962_v26 }
 0x4ba   : > { %v4380_v21 = vpop.f32.mrf.mxu1  ;;  %v4167_v34 = vpop.f32.mrf.mxu0 }
 0x4bb   : > { %v8975_v43 = vadd.f32 %v4380_v21, %v4155_v40 }
 0x4bc   : > { %v4382_v47 = vpop.f32.mrf.mxu1  ;;  %v4170_v42 = vpop.f32.mrf.mxu0  ;;  %5869 = vmatmul.mubr.f32.gmra.mxu0 %v3499_v54  ;;  %v5216_v54 = vld [vmem:[%s9535_s8 + $0x50] sm:$0xff] }
 0x4bd   : > { %5871 = vmatprep.mubr.f32.mxu0 %v3500_v53  ;;  %5897 = vmatpush3.msra.mxu1 %v5216_v54 }
 0x4be   : > { %v4385_v57 = vpop.f32.mrf.mxu1  ;;  %v4172_v24 = vpop.f32.mrf.mxu0  ;;  %5898 = vmatprep.subr.mxu1 %v8962_v26 }
 0x4bf   : > { %v8981_v19 = vadd.f32 %v4385_v57, %v4160_v52 }
 0x4c0   : > { %v4387_v44 = vpop.f32.mrf.mxu1  ;;  %v4175_v22 = vpop.f32.mrf.mxu0  ;;  %5872 = vmatmul.mubr.f32.gmra.mxu0 %v3501_v62 }
 0x4c1   : > { %5874 = vmatprep.mubr.f32.mxu0 %v3502_v10  ;;  %v9560_v10 = vld [vmem:[#allocation13_spill] sm:$0xff] }
 0x4c2   : > { %v4390_v23 = vpop.f32.mrf.mxu1  ;;  %v4177_v59 = vpop.f32.mrf.mxu0 }
 0x4c3   : > { %v8983_v7 = vadd.f32 %v4390_v23, %v4165_v12  ;;  %v4271_v23 = vadd.f32 %v8882_v9, %v9560_v10 }
 0x4c4   : > { %v4392_v51 = vpop.f32.mrf.mxu1  ;;  %v4180_v40 = vpop.f32.mrf.mxu0  ;;  %5875 = vmatmul.mubr.f32.gmra.mxu0 %v3503_v1 }
 0x4c5   : > { %5877 = vmatprep.mubr.f32.mxu0 %v8789_v15 }
 0x4c6   : > { %v4395_v45 = vpop.f32.mrf.mxu1  ;;  %v4182_v56 = vpop.f32.mrf.mxu0 }
 0x4c7   : > { %v8990_v16 = vadd.f32 %v4395_v45, %v4170_v42  ;;  %v5215_v56 = vld [vmem:[%s9535_s8 + $0x48] sm:$0xff] }
 0x4c8   : > { %v4397_v3 = vpop.f32.mrf.mxu1  ;;  %v4185_v55 = vpop.f32.mrf.mxu0  ;;  %5878 = vmatmul.mubr.f32.gmra.mxu0 %v8800_v6  ;;  %v3509_v6 = vld [vmem:[#allocation3 + $0x1a2] sm:$0xff]  ;;  %5899 = vmatpush3.msra.mxu1 %v5215_v56 }
 0x4c9   : > { %5880 = vmatprep.mubr.f32.mxu0 %v8928_v46  ;;  %5900 = vmatprep.subr.mxu1 %v8962_v26 }
 0x4ca   : > { %v4400_v30 = vpop.f32.mrf.mxu1  ;;  %v4187_v0 = vpop.f32.mrf.mxu0 }
 0x4cb   : > { %v8994_v52 = vadd.f32 %v4400_v30, %v4175_v22 }
 0x4cc   : > { %v4402_v36 = vpop.f32.mrf.mxu1  ;;  %v4190_v15 = vpop.f32.mrf.mxu0  ;;  %5881 = vmatmul.mubr.f32.gmra.mxu0 %v8934_v38  ;;  %v9559_v38 = vld [vmem:[#allocation12_spill] sm:$0xff] }
 0x4cd   : > { %5883 = vmatprep.mubr.f32.mxu0 %v3508_v17  ;;  %v4266_v42 = vadd.f32 %v8878_v41, %v9559_v38 }
 0x4ce   : > { %v4405_v5 = vpop.f32.mrf.mxu1  ;;  %v4192_v46 = vpop.f32.mrf.mxu0 }
 0x4cf   : > { %v9001_v12 = vadd.f32 %v4405_v5, %v4180_v40 }
 0x4d0   : > { %v4407_v50 = vpop.f32.mrf.mxu1  ;;  %v4195_v21 = vpop.f32.mrf.mxu0  ;;  %5884 = vmatmul.mubr.f32.gmra.mxu0 %v3509_v6 }
 0x4d1   : > { %v5214_v50 = vld [vmem:[%s9535_s8 + $0x40] sm:$0xff] }
 0x4d2   : > { %v4410_v34 = vpop.f32.mrf.mxu1  ;;  %v4197_v47 = vpop.f32.mrf.mxu0  ;;  %5901 = vmatpush3.msra.mxu1 %v5214_v50 }
 0x4d3   : > { %v9003_v60 = vadd.f32 %v4410_v34, %v4185_v55  ;;  %5902 = vmatprep.subr.mxu1 %v8962_v26 }
 0x4d4   : > { %v4412_v53 = vpop.f32.mrf.mxu1  ;;  %v4490_v57 = vpop.f32.mrf.mxu0 }
 0x4d5   : > { %v4491_v44 = vadd.f32 %v4490_v57, %v4266_v42 }
 0x4d6   : > { %v4415_v24 = vpop.f32.mrf.mxu1  ;;  %v4492_v22 = vpop.f32.mrf.mxu0 }
 0x4d7   : > { %v9011_v62 = vadd.f32 %v4415_v24, %v4190_v15  ;;  %v5213_v22 = vld [vmem:[%s9535_s8 + $0x38] sm:$0xff] }
 0x4d8   : > { %v4417_v59 = vpop.f32.mrf.mxu1  ;;  %v4495_v18 = vpop.f32.mrf.mxu0  ;;  %5903 = vmatpush3.msra.mxu1 %v5213_v22 }
 0x4d9   : > { %v4496_v1 = vadd.f32 %v4495_v18, %v4271_v23  ;;  %5904 = vmatprep.subr.mxu1 %v8962_v26 }
 0x4da   : > { %v4420_v51 = vpop.f32.mrf.mxu1  ;;  %v4497_v41 = vpop.f32.mrf.mxu0 }
 0x4db   : > { %v9015_v40 = vadd.f32 %v4420_v51, %v4195_v21 }
 0x4dc   : > { %v4422_v45 = vpop.f32.mrf.mxu1  ;;  %v4500_v3 = vpop.f32.mrf.mxu0 }
 0x4dd   : > { %v4501_v55 = vadd.f32 %v4500_v3, %v8888_v48 }
 0x4de   : > { %v4715_v30 = vpop.f32.mrf.mxu1  ;;  %v4502_v0 = vpop.f32.mrf.mxu0 }
 0x4df   : > { %v9022_v9 = vadd.f32 %v4715_v30, %v4491_v44 }
 0x4e0   : > { %v4717_v17 = vpop.f32.mrf.mxu1  ;;  %v4505_v63 = vpop.f32.mrf.mxu0 }
 0x4e1   : > { %v4506_v36 = vadd.f32 %v4505_v63, %v8892_v20 }
 0x4e2   : > { %v4720_v15 = vpop.f32.mrf.mxu1  ;;  %v4507_v6 = vpop.f32.mrf.mxu0 }
 0x4e3   : > { %v9025_v5 = vadd.f32 %v4720_v15, %v4496_v1 }
 0x4e4   : > { %v4722_v46 = vpop.f32.mrf.mxu1  ;;  %v4510_v48 = vpop.f32.mrf.mxu0 }
 0x4e5   : > { %v4511_v21 = vadd.f32 %v4510_v48, %v8896_v11 }
 0x4e6   : > { %v4725_v34 = vpop.f32.mrf.mxu1  ;;  %v4512_v54 = vpop.f32.mrf.mxu0 }
 0x4e7   : > { %v9032_v47 = vadd.f32 %v4725_v34, %v4501_v55  ;;  %v5212_v55 = vld [vmem:[%s9535_s8 + $0x30] sm:$0xff] }
 0x4e8   : > { %v4727_v20 = vpop.f32.mrf.mxu1  ;;  %v4515_v38 = vpop.f32.mrf.mxu0  ;;  %5905 = vmatpush3.msra.mxu1 %v5212_v55 }
 0x4e9   : > { %v4516_v42 = vadd.f32 %v4515_v38, %v8900_v58  ;;  %5906 = vmatprep.subr.mxu1 %v8962_v26 }
 0x4ea   : > { %v4730_v53 = vpop.f32.mrf.mxu1  ;;  %v4517_v24 = vpop.f32.mrf.mxu0 }
 0x4eb   : > { %v9035_v57 = vadd.f32 %v4730_v53, %v4506_v36 }
 0x4ec   : > { %v4732_v44 = vpop.f32.mrf.mxu1  ;;  %v4520_v11 = vpop.f32.mrf.mxu0 }
 0x4ed   : > { %v4521_v10 = vadd.f32 %v4520_v11, %v8904_v2 }
 0x4ee   : > { %v4735_v23 = vpop.f32.mrf.mxu1  ;;  %v4522_v18 = vpop.f32.mrf.mxu0 }
 0x4ef   : > { %v9042_v59 = vadd.f32 %v4735_v23, %v4511_v21  ;;  %v5211_v21 = vld [vmem:[%s9535_s8 + $0x28] sm:$0xff] }
 0x4f0   : > { %v4737_v58 = vpop.f32.mrf.mxu1  ;;  %v4525_v51 = vpop.f32.mrf.mxu0  ;;  %5907 = vmatpush3.msra.mxu1 %v5211_v21 }
 0x4f1   : > { %v4526_v1 = vadd.f32 %v4525_v51, %v8908_v8  ;;  %5908 = vmatprep.subr.mxu1 %v8962_v26 }
 0x4f2   : > { %v4740_v41 = vpop.f32.mrf.mxu1  ;;  %v4527_v56 = vpop.f32.mrf.mxu0 }
 0x4f3   : > { %v9045_v45 = vadd.f32 %v4740_v41, %v4516_v42 }
 0x4f4   : > { %v4742_v3 = vpop.f32.mrf.mxu1  ;;  %v4530_v2 = vpop.f32.mrf.mxu0 }
 0x4f5   : > { %v4531_v30 = vadd.f32 %v4530_v2, %v8912_v14 }
 0x4f6   : > { %v4745_v0 = vpop.f32.mrf.mxu1  ;;  %v4532_v63 = vpop.f32.mrf.mxu0 }
 0x4f7   : > { %v9052_v17 = vadd.f32 %v4745_v0, %v4521_v10  ;;  %v5210_v10 = vld [vmem:[%s9535_s8 + $0x20] sm:$0xff] }
 0x4f8   : > { %v4747_v8 = vpop.f32.mrf.mxu1  ;;  %v4535_v36 = vpop.f32.mrf.mxu0  ;;  %5909 = vmatpush3.msra.mxu1 %v5210_v10 }
 0x4f9   : > { %v4536_v15 = vadd.f32 %v4535_v36, %v8918_v27  ;;  %5910 = vmatprep.subr.mxu1 %v8962_v26 }
 0x4fa   : > { %v4750_v6 = vpop.f32.mrf.mxu1  ;;  %v4537_v50 = vpop.f32.mrf.mxu0 }
 0x4fb   : > { %v9055_v46 = vadd.f32 %v4750_v6, %v4526_v1 }
 0x4fc   : > { %v4752_v48 = vpop.f32.mrf.mxu1  ;;  %v4540_v14 = vpop.f32.mrf.mxu0 }
 0x4fd   : > { %v4541_v34 = vadd.f32 %v4540_v14, %v8924_v35 }
 0x4fe   : > { %v4755_v54 = vpop.f32.mrf.mxu1  ;;  %v4542_v38 = vpop.f32.mrf.mxu0 }
 0x4ff   : > { %v9062_v20 = vadd.f32 %v4755_v54, %v4531_v30  ;;  %v5209_v30 = vld [vmem:[%s9535_s8 + $0x18] sm:$0xff] }
 0x500   : > { %v4757_v27 = vpop.f32.mrf.mxu1  ;;  %v4545_v42 = vpop.f32.mrf.mxu0  ;;  %5911 = vmatpush3.msra.mxu1 %v5209_v30 }
 0x501   : > { %v4546_v53 = vadd.f32 %v4545_v42, %v8932_v32  ;;  %5912 = vmatprep.subr.mxu1 %v8962_v26 }
 0x502   : > { %v4760_v24 = vpop.f32.mrf.mxu1  ;;  %v4547_v22 = vpop.f32.mrf.mxu0 }
 0x503   : > { %v9065_v44 = vadd.f32 %v4760_v24, %v4536_v15 }
 0x504   : > { %v4762_v11 = vpop.f32.mrf.mxu1  ;;  %v4550_v35 = vpop.f32.mrf.mxu0 }
 0x505   : > { %v4551_v23 = vadd.f32 %v4550_v35, %v8938_v61 }
 0x506   : > { %v4765_v18 = vpop.f32.mrf.mxu1  ;;  %v4552_v51 = vpop.f32.mrf.mxu0 }
 0x507   : > { %v9072_v58 = vadd.f32 %v4765_v18, %v4541_v34  ;;  %v5208_v34 = vld [vmem:[%s9535_s8 + $0x10] sm:$0xff] }
 0x508   : > { %v4767_v32 = vpop.f32.mrf.mxu1  ;;  %v4555_v1 = vpop.f32.mrf.mxu0  ;;  %5913 = vmatpush3.msra.mxu1 %v5208_v34 }
 0x509   : > { %v4556_v41 = vadd.f32 %v4555_v1, %v8941_v39  ;;  %5914 = vmatprep.subr.mxu1 %v8962_v26 }
 0x50a   : > { %v4770_v56 = vpop.f32.mrf.mxu1  ;;  %v4557_v55 = vpop.f32.mrf.mxu0 }
 0x50b   : > { %v9075_v3 = vadd.f32 %v4770_v56, %v4546_v53 }
 0x50c   : > { %v4772_v2 = vpop.f32.mrf.mxu1  ;;  %v4560_v61 = vpop.f32.mrf.mxu0 }
 0x50d   : > { %v4561_v0 = vadd.f32 %v4560_v61, %v8944_v13  ;;  %v5206_v2 = vld [vmem:[%s9535_s8] sm:$0xff] }
 0x50e   : > { %v4775_v63 = vpop.f32.mrf.mxu1  ;;  %v4562_v36 = vpop.f32.mrf.mxu0 }
 0x50f   : > { %v9082_v8 = vadd.f32 %v4775_v63, %v4551_v23 }
 0x510   : > { %v4777_v39 = vpop.f32.mrf.mxu1  ;;  %v4565_v15 = vpop.f32.mrf.mxu0 }
 0x511   : > { %v4566_v6 = vadd.f32 %v4565_v15, %v8947_v49 }
 0x512   : > { %v4780_v50 = vpop.f32.mrf.mxu1  ;;  %v4567_v21 = vpop.f32.mrf.mxu0 }
 0x513   : > { %v9085_v48 = vadd.f32 %v4780_v50, %v4556_v41 }
 0x514   : > { %v4782_v14 = vpop.f32.mrf.mxu1  ;;  %v4570_v13 = vpop.f32.mrf.mxu0 }
 0x515   : > { %v4571_v54 = vadd.f32 %v4570_v13, %v8951_v29 }
 0x516   : > { %v4785_v38 = vpop.f32.mrf.mxu1  ;;  %v4572_v42 = vpop.f32.mrf.mxu0 }
 0x517   : > { %v9092_v27 = vadd.f32 %v4785_v38, %v4561_v0 }
 0x518   : > { %v4787_v49 = vpop.f32.mrf.mxu1  ;;  %v4575_v53 = vpop.f32.mrf.mxu0 }
 0x519   : > { %v4576_v24 = vadd.f32 %v4575_v53, %v8953_v4  ;;  %v5207_v4 = vld [vmem:[%s9535_s8 + $0x8] sm:$0xff] }
 0x51a   : > { %v4790_v22 = vpop.f32.mrf.mxu1  ;;  %v4577_v10 = vpop.f32.mrf.mxu0  ;;  %5915 = vmatpush3.msra.mxu1 %v5207_v4 }
 0x51b   : > { %v9095_v11 = vadd.f32 %v4790_v22, %v4566_v6  ;;  %5916 = vmatprep.subr.mxu1 %v8962_v26 }
 0x51c   : > { %v4792_v35 = vpop.f32.mrf.mxu1  ;;  %v4580_v23 = vpop.f32.mrf.mxu0  ;;  %5917 = vmatpush3.msra.mxu1 %v5206_v2 }
 0x51d   : > { %v4581_v18 = vadd.f32 %v4580_v23, %v8955_v37 }
 0x51e   : > { %v4795_v51 = vpop.f32.mrf.mxu1  ;;  %v4582_v32 = vpop.f32.mrf.mxu0 }
 0x51f   : > { %v9098_v29 = vadd.f32 %v4795_v51, %v4571_v54 }
 0x520   : > { %v4797_v1 = vpop.f32.mrf.mxu1  ;;  %v4585_v41 = vpop.f32.mrf.mxu0 }
 0x521   : > { %v4586_v56 = vadd.f32 %v4585_v41, %v8957_v31 }
 0x522   : > { %v4800_v55 = vpop.f32.mrf.mxu1  ;;  %v4587_v37 = vpop.f32.mrf.mxu0 }
 0x523   : > { %v9107_v30 = vadd.f32 %v4800_v55, %v4576_v24 }
 0x524   : > { %v4802_v61 = vpop.f32.mrf.mxu1  ;;  %v4590_v0 = vpop.f32.mrf.mxu0 }
 0x525   : > { %v4591_v31 = vadd.f32 %v4590_v0, %v8965_v33 }
 0x526   : > { %v4805_v63 = vpop.f32.mrf.mxu1  ;;  %v4592_v39 = vpop.f32.mrf.mxu0 }
 0x527   : > { %v9111_v36 = vadd.f32 %v4805_v63, %v4581_v18 }
 0x528   : > { %v4807_v15 = vpop.f32.mrf.mxu1  ;;  %v4595_v6 = vpop.f32.mrf.mxu0 }
 0x529   : > { %v4596_v50 = vadd.f32 %v4595_v6, %v8967_v25 }
 0x52a   : > { %v4810_v21 = vpop.f32.mrf.mxu1  ;;  %v4597_v34 = vpop.f32.mrf.mxu0 }
 0x52b   : > { %v9114_v14 = vadd.f32 %v4810_v21, %v4586_v56 }
 0x52c   : > { %v4812_v13 = vpop.f32.mrf.mxu1  ;;  %v4600_v54 = vpop.f32.mrf.mxu0 }
 0x52d   : > { %v4601_v26 = vadd.f32 %v4600_v54, %v8973_v28 }
 0x52e   : > { %v4815_v38 = vpop.f32.mrf.mxu1  ;;  %v4602_v33 = vpop.f32.mrf.mxu0 }
 0x52f   : > { %v9117_v42 = vadd.f32 %v4815_v38, %v4591_v31 }
 0x530   : > { %v4817_v49 = vpop.f32.mrf.mxu1  ;;  %v4605_v53 = vpop.f32.mrf.mxu0 }
 0x531   : > { %v4606_v24 = vadd.f32 %v4605_v53, %v8975_v43 }
 0x532   : > { %v4820_v22 = vpop.f32.mrf.mxu1  ;;  %v4607_v25 = vpop.f32.mrf.mxu0 }
 0x533   : > { %v9120_v10 = vadd.f32 %v4820_v22, %v4596_v50 }
 0x534   : > { %v4822_v35 = vpop.f32.mrf.mxu1  ;;  %v4610_v23 = vpop.f32.mrf.mxu0 }
 0x535   : > { %v4611_v18 = vadd.f32 %v4610_v23, %v8981_v19 }
 0x536   : > { %v4825_v51 = vpop.f32.mrf.mxu1  ;;  %v4612_v28 = vpop.f32.mrf.mxu0 }
 0x537   : > { %v9123_v32 = vadd.f32 %v4825_v51, %v4601_v26 }
 0x538   : > { %v4827_v1 = vpop.f32.mrf.mxu1  ;;  %v4615_v41 = vpop.f32.mrf.mxu0 }
 0x539   : > { %v4616_v56 = vadd.f32 %v4615_v41, %v8983_v7 }
 0x53a   : > { %v4830_v55 = vpop.f32.mrf.mxu1  ;;  %v4617_v43 = vpop.f32.mrf.mxu0 }
 0x53b   : > { %v9126_v4 = vadd.f32 %v4830_v55, %v4606_v24 }
 0x53c   : > { %v4832_v2 = vpop.f32.mrf.mxu1  ;;  %v4620_v37 = vpop.f32.mrf.mxu0 }
 0x53d   : > { %v4621_v61 = vadd.f32 %v4620_v37, %v8990_v16 }
 0x53e   : > { %v4835_v0 = vpop.f32.mrf.mxu1  ;;  %v4622_v19 = vpop.f32.mrf.mxu0 }
 0x53f   : > { %v9129_v31 = vadd.f32 %v4835_v0, %v4611_v18 }
 0x540   : > { %v4837_v63 = vpop.f32.mrf.mxu1  ;;  %v4625_v39 = vpop.f32.mrf.mxu0 }
 0x541   : > { %v4626_v15 = vadd.f32 %v4625_v39, %v8994_v52 }
 0x542   : > { %v4840_v6 = vpop.f32.mrf.mxu1  ;;  %v4627_v7 = vpop.f32.mrf.mxu0 }
 0x543   : > { %v9132_v50 = vadd.f32 %v4840_v6, %v4616_v56 }
 0x544   : > { %v4842_v21 = vpop.f32.mrf.mxu1  ;;  %v4630_v34 = vpop.f32.mrf.mxu0 }
 0x545   : > { %v9135_v13 = vadd.f32 %v4630_v34, %v9001_v12 }
 0x546   : > { %v4845_v54 = vpop.f32.mrf.mxu1  ;;  %v4632_v16 = vpop.f32.mrf.mxu0 }
 0x547   : > { %v9137_v26 = vadd.f32 %v4845_v54, %v4621_v61 }
 0x548   : > { %v4847_v38 = vpop.f32.mrf.mxu1  ;;  %v4635_v33 = vpop.f32.mrf.mxu0 }
 0x549   : > { %v9140_v49 = vadd.f32 %v4635_v33, %v9003_v60 }
 0x54a   : > { %v4850_v53 = vpop.f32.mrf.mxu1  ;;  %v4637_v24 = vpop.f32.mrf.mxu0 }
 0x54b   : > { %v9142_v52 = vadd.f32 %v4850_v53, %v4626_v15 }
 0x54c   : > { %v4852_v22 = vpop.f32.mrf.mxu1  ;;  %v4640_v25 = vpop.f32.mrf.mxu0 }
 0x54d   : > { %v9145_v35 = vadd.f32 %v4640_v25, %v9011_v62 }
 0x54e   : > { %v9147_v12 = vpop.f32.mrf.mxu1  ;;  %v4642_v23 = vpop.f32.mrf.mxu0 }
 0x550   : > { %v4857_v18 = vpop.f32.mrf.mxu1  ;;  %v4645_v51 = vpop.f32.mrf.mxu0 }
 0x551   : > { %v9150_v28 = vadd.f32 %v4645_v51, %v9015_v40 }
 0x552   : > { %v9152_v1 = vpop.f32.mrf.mxu1  ;;  %v4647_v60 = vpop.f32.mrf.mxu0 }
 0x554   : > { %v4862_v41 = vpop.f32.mrf.mxu1  ;;  %v5840_v56 = vpop.f32.mrf.mxu0 }
 0x555   : > { %v9157_v2 = vadd.f32 %v5840_v56, %v9025_v5 }
 0x556   : > { %v9154_v55 = vpop.f32.mrf.mxu1  ;;  %v4940_v43 = vpop.f32.mrf.mxu0 }
 0x557   : > { %v9160_v37 = vadd.f32 %v4940_v43, %v9022_v9  ;;  %v5137_v63 = vmul.f32 %v9157_v2, %v9157_v2 }
 0x558   : > { %v4867_v62 = vpop.f32.mrf.mxu1  ;;  %v5843_v61 = vpop.f32.mrf.mxu0 }
 0x559   : > { %v5136_v40 = vmul.f32 %v9160_v37, %v9160_v37  ;;  %v5099_v39 = vadd.f32 %v9157_v2, %v9160_v37  ;;  %v9171_v5 = vadd.f32 %v5843_v61, %v9035_v57 }
 0x55a   : > { %v9164_v0 = vpop.f32.mrf.mxu1  ;;  %v4950_v19 = vpop.f32.mrf.mxu0 }
 0x55b   : > { %v9174_v15 = vadd.f32 %v4950_v19, %v9032_v47  ;;  %v5168_v7 = vadd.f32 %v5137_v63, %v5136_v40  ;;  %v5139_v38 = vmul.f32 %v9171_v5, %v9171_v5 }
 0x55c   : > { %v4872_v9 = vpop.f32.mrf.mxu1  ;;  %v5846_v6 = vpop.f32.mrf.mxu0 }
 0x55d   : > { %v5100_v21 = vadd.f32 %v5099_v39, %v9174_v15  ;;  %v5138_v34 = vmul.f32 %v9174_v15, %v9174_v15  ;;  %v9180_v54 = vadd.f32 %v5846_v6, %v9045_v45 }
 0x55e   : > { %v4960_v16 = vpop.f32.mrf.mxu0 }
 0x55f   : > { %v5169_v57 = vadd.f32 %v5168_v7, %v5138_v34  ;;  %v9185_v33 = vadd.f32 %v4960_v16, %v9042_v59  ;;  %v5101_v47 = vadd.f32 %v5100_v21, %v9171_v5  ;;  %v5141_v45 = vmul.f32 %v9180_v54, %v9180_v54 }
 0x560   : > { %v5849_v53 = vpop.f32.mrf.mxu0 }
 0x561   : > { %v5102_v24 = vadd.f32 %v5101_v47, %v9185_v33  ;;  %v5140_v22 = vmul.f32 %v9185_v33, %v9185_v33  ;;  %v5170_v25 = vadd.f32 %v5169_v57, %v5139_v38  ;;  %v9194_v51 = vadd.f32 %v5849_v53, %v9055_v46 }
 0x562   : > { %v4970_v23 = vpop.f32.mrf.mxu0 }
 0x563   : > { %v5171_v18 = vadd.f32 %v5170_v25, %v5140_v22  ;;  %v9197_v59 = vadd.f32 %v4970_v23, %v9052_v17  ;;  %v5103_v60 = vadd.f32 %v5102_v24, %v9180_v54  ;;  %v5143_v46 = vmul.f32 %v9194_v51, %v9194_v51 }
 0x564   : > { %v5852_v41 = vpop.f32.mrf.mxu0 }
 0x565   : > { %v5104_v56 = vadd.f32 %v5103_v60, %v9197_v59  ;;  %v5142_v43 = vmul.f32 %v9197_v59, %v9197_v59  ;;  %v5172_v62 = vadd.f32 %v5171_v18, %v5141_v45  ;;  %v9204_v61 = vadd.f32 %v5852_v41, %v9065_v44 }
 0x566   : > { %v4980_v40 = vpop.f32.mrf.mxu0 }
 0x567   : > { %v5173_v19 = vadd.f32 %v5172_v62, %v5142_v43  ;;  %v9209_v17 = vadd.f32 %v4980_v40, %v9062_v20  ;;  %v5105_v63 = vadd.f32 %v5104_v56, %v9194_v51  ;;  %v5145_v44 = vmul.f32 %v9204_v61, %v9204_v61 }
 0x568   : > { %v5855_v39 = vpop.f32.mrf.mxu0 }
 0x569   : > { %v5106_v9 = vadd.f32 %v5105_v63, %v9209_v17  ;;  %v5144_v6 = vmul.f32 %v9209_v17, %v9209_v17  ;;  %v5174_v7 = vadd.f32 %v5173_v19, %v5143_v46  ;;  %v9218_v16 = vadd.f32 %v5855_v39, %v9075_v3 }
 0x56a   : > { %v4990_v21 = vpop.f32.mrf.mxu0 }
 0x56b   : > { %v5175_v34 = vadd.f32 %v5174_v7, %v5144_v6  ;;  %v9221_v20 = vadd.f32 %v4990_v21, %v9072_v58  ;;  %v5107_v38 = vadd.f32 %v5106_v9, %v9204_v61  ;;  %v5147_v3 = vmul.f32 %v9218_v16, %v9218_v16 }
 0x56c   : > { %v5858_v57 = vpop.f32.mrf.mxu0 }
 0x56d   : > { %v5108_v47 = vadd.f32 %v5107_v38, %v9221_v20  ;;  %v5146_v53 = vmul.f32 %v9221_v20, %v9221_v20  ;;  %v5176_v24 = vadd.f32 %v5175_v34, %v5145_v44  ;;  %v9228_v22 = vadd.f32 %v5858_v57, %v9085_v48 }
 0x56e   : > { %v5000_v25 = vpop.f32.mrf.mxu0 }
 0x56f   : > { %v5177_v45 = vadd.f32 %v5176_v24, %v5146_v53  ;;  %v9233_v58 = vadd.f32 %v5000_v25, %v9082_v8  ;;  %v5109_v23 = vadd.f32 %v5108_v47, %v9218_v16  ;;  %v5149_v48 = vmul.f32 %v9228_v22, %v9228_v22 }
 0x570   : > { %v5861_v18 = vpop.f32.mrf.mxu0 }
 0x571   : > { %v5110_v60 = vadd.f32 %v5109_v23, %v9233_v58  ;;  %v5148_v41 = vmul.f32 %v9233_v58, %v9233_v58  ;;  %v5178_v56 = vadd.f32 %v5177_v45, %v5147_v3  ;;  %v9242_v40 = vadd.f32 %v5861_v18, %v9095_v11 }
 0x572   : > { %v5010_v43 = vpop.f32.mrf.mxu0 }
 0x573   : > { %v5179_v62 = vadd.f32 %v5178_v56, %v5148_v41  ;;  %v9245_v8 = vadd.f32 %v5010_v43, %v9092_v27  ;;  %v5111_v46 = vadd.f32 %v5110_v60, %v9228_v22  ;;  %v5151_v11 = vmul.f32 %v9242_v40, %v9242_v40 }
 0x574   : > { %v5864_v19 = vpop.f32.mrf.mxu0 }
 0x575   : > { %v5112_v63 = vadd.f32 %v5111_v46, %v9245_v8  ;;  %v5150_v39 = vmul.f32 %v9245_v8, %v9245_v8  ;;  %v5180_v9 = vadd.f32 %v5179_v62, %v5149_v48  ;;  %v9252_v6 = vadd.f32 %v5864_v19, %v9107_v30 }
 0x576   : > { %v5020_v7 = vpop.f32.mrf.mxu0 }
 0x577   : > { %v5181_v44 = vadd.f32 %v5180_v9, %v5150_v39  ;;  %v9257_v27 = vadd.f32 %v5020_v7, %v9098_v29  ;;  %v5113_v21 = vadd.f32 %v5112_v63, %v9242_v40  ;;  %v5153_v30 = vmul.f32 %v9252_v6, %v9252_v6 }
 0x578   : > { %v5867_v34 = vpop.f32.mrf.mxu0 }
 0x579   : > { %v5114_v38 = vadd.f32 %v5113_v21, %v9257_v27  ;;  %v5152_v57 = vmul.f32 %v9257_v27, %v9257_v27  ;;  %v5182_v47 = vadd.f32 %v5181_v44, %v5151_v11  ;;  %v9266_v25 = vadd.f32 %v5867_v34, %v9114_v14 }
 0x57a   : > { %v5030_v53 = vpop.f32.mrf.mxu0 }
 0x57b   : > { %v5183_v24 = vadd.f32 %v5182_v47, %v5152_v57  ;;  %v9269_v29 = vadd.f32 %v5030_v53, %v9111_v36  ;;  %v5115_v3 = vadd.f32 %v5114_v38, %v9252_v6  ;;  %v5155_v14 = vmul.f32 %v9266_v25, %v9266_v25 }
 0x57c   : > { %v5870_v45 = vpop.f32.mrf.mxu0 }
 0x57d   : > { %v5116_v23 = vadd.f32 %v5115_v3, %v9269_v29  ;;  %v5154_v18 = vmul.f32 %v9269_v29, %v9269_v29  ;;  %v5184_v60 = vadd.f32 %v5183_v24, %v5153_v30  ;;  %v9276_v41 = vadd.f32 %v5870_v45, %v9120_v10 }
 0x57e   : > { %v5040_v56 = vpop.f32.mrf.mxu0 }
 0x57f   : > { %v5185_v48 = vadd.f32 %v5184_v60, %v5154_v18  ;;  %v9281_v36 = vadd.f32 %v5040_v56, %v9117_v42  ;;  %v5117_v43 = vadd.f32 %v5116_v23, %v9266_v25  ;;  %v5157_v10 = vmul.f32 %v9276_v41, %v9276_v41 }
 0x580   : > { %v5873_v62 = vpop.f32.mrf.mxu0 }
 0x581   : > { %v5118_v46 = vadd.f32 %v5117_v43, %v9281_v36  ;;  %v5156_v19 = vmul.f32 %v9281_v36, %v9281_v36  ;;  %v5186_v63 = vadd.f32 %v5185_v48, %v5155_v14  ;;  %v9290_v7 = vadd.f32 %v5873_v62, %v9126_v4 }
 0x582   : > { %v5050_v39 = vpop.f32.mrf.mxu0  ;;  %v4861_v48 = vadd.f32 %v9152_v1, %v9140_v49  ;;  %v4856_v62 = vadd.f32 %v9147_v12, %v9135_v13  ;;  %v4866_v13 = vadd.f32 %v9154_v55, %v9145_v35  ;;  %v4871_v1 = vadd.f32 %v9164_v0, %v9150_v28 }
 0x583   : > { %v5187_v9 = vadd.f32 %v5186_v63, %v5156_v19  ;;  %v9293_v42 = vadd.f32 %v5050_v39, %v9123_v32  ;;  %v5119_v11 = vadd.f32 %v5118_v46, %v9276_v41  ;;  %v5159_v4 = vmul.f32 %v9290_v7, %v9290_v7 }
 0x584   : > { %v5876_v44 = vpop.f32.mrf.mxu0 }
 0x585   : > { %v5120_v21 = vadd.f32 %v5119_v11, %v9293_v42  ;;  %v5158_v34 = vmul.f32 %v9293_v42, %v9293_v42  ;;  %v5188_v38 = vadd.f32 %v5187_v9, %v5157_v10  ;;  %v9300_v57 = vadd.f32 %v5876_v44, %v9132_v50 }
 0x586   : > { %v5060_v47 = vpop.f32.mrf.mxu0 }
 0x587   : > { %v5189_v30 = vadd.f32 %v5188_v38, %v5158_v34  ;;  %v9305_v32 = vadd.f32 %v5060_v47, %v9129_v31  ;;  %v5121_v53 = vadd.f32 %v5120_v21, %v9290_v7  ;;  %v5161_v50 = vmul.f32 %v9300_v57, %v9300_v57 }
 0x588   : > { %v5879_v24 = vpop.f32.mrf.mxu0 }
 0x589   : > { %v5122_v3 = vadd.f32 %v5121_v53, %v9305_v32  ;;  %v5160_v45 = vmul.f32 %v9305_v32, %v9305_v32  ;;  %v5190_v23 = vadd.f32 %v5189_v30, %v5159_v4  ;;  %v9314_v56 = vadd.f32 %v5879_v24, %v9142_v52 }
 0x58a   : > { %v5070_v18 = vpop.f32.mrf.mxu0 }
 0x58b   : > { %v5191_v60 = vadd.f32 %v5190_v23, %v5160_v45  ;;  %v9317_v31 = vadd.f32 %v5070_v18, %v9137_v26  ;;  %v5123_v14 = vadd.f32 %v5122_v3, %v9300_v57  ;;  %v5163_v26 = vmul.f32 %v9314_v56, %v9314_v56 }
 0x58c   : > { %v5882_v43 = vpop.f32.mrf.mxu0 }
 0x58d   : > { %v5124_v46 = vadd.f32 %v5123_v14, %v9317_v31  ;;  %v5162_v19 = vmul.f32 %v9317_v31, %v9317_v31  ;;  %v5192_v63 = vadd.f32 %v5191_v60, %v5161_v50  ;;  %v9327_v52 = vadd.f32 %v5882_v43, %v4861_v48 }
 0x58e   : > { %v5080_v10 = vpop.f32.mrf.mxu0 }
 0x58f   : > { %v5193_v39 = vadd.f32 %v5192_v63, %v5162_v19  ;;  %v9331_v9 = vadd.f32 %v5080_v10, %v4856_v62  ;;  %v5125_v49 = vadd.f32 %v5124_v46, %v9314_v56  ;;  %v5165_v34 = vmul.f32 %v9327_v52, %v9327_v52 }
 0x590   : > { %v5885_v12 = vpop.f32.mrf.mxu0 }
 0x591   : > { %v5126_v11 = vadd.f32 %v5125_v49, %v9331_v9  ;;  %v5164_v44 = vmul.f32 %v9331_v9, %v9331_v9  ;;  %v5194_v21 = vadd.f32 %v5193_v39, %v5163_v26  ;;  %v9343_v4 = vadd.f32 %v5885_v12, %v4871_v1 }
 0x592   : > { %v5090_v38 = vpop.f32.mrf.mxu0 }
 0x593   : > { %v5195_v47 = vadd.f32 %v5194_v21, %v5164_v44  ;;  %v9345_v30 = vadd.f32 %v5090_v38, %v4866_v13  ;;  %v5127_v35 = vadd.f32 %v5126_v11, %v9327_v52  ;;  %v5167_v53 = vmul.f32 %v9343_v4, %v9343_v4  ;;  %v9561_v38 = vld [vmem:[#allocation9_spill] sm:$0xff] }
 0x595   : > { %v5128_v55 = vadd.f32 %v5127_v35, %v9345_v30  ;;  %v5166_v28 = vmul.f32 %v9345_v30, %v9345_v30  ;;  %v5196_v0 = vadd.f32 %v5195_v47, %v5165_v34 }
 0x597   : > { %v5129_v24 = vadd.f32 %v5128_v55, %v9343_v4  ;;  %v5197_v3 = vadd.f32 %v5196_v0, %v5166_v28  ;;  %v5301_v55 = vld [vmem:[%s9533_s6] sm:$0x1] }
 0x599   : > { %v5130_v45 = vrot.slane %v5129_v24, 4  ;;  %v5198_v23 = vadd.f32 %v5197_v3, %v5167_v53  ;;  %v5302_v53 = vld [vmem:[%s9534_s7] sm:$0x1]  ;;  %v9562_v3 = vld [vmem:[#allocation10_spill] sm:$0xff] }
 0x59b   : > { %v5131_v50 = vadd.f32 %v5130_v45, %v5129_v24  ;;  %v5199_v18 = vrot.slane %v5198_v23, 4 }
 0x59d   : > { %v5132_v60 = vrot.slane %v5131_v50, 2  ;;  %v5200_v14 = vadd.f32 %v5199_v18, %v5198_v23 }
 0x59f   : > { %v5133_v48 = vadd.f32 %v5132_v60, %v5131_v50  ;;  %v5201_v43 = vrot.slane %v5200_v14, 2 }
 0x5a1   : > { %v5134_v62 = vrot.slane %v5133_v48, 1  ;;  %v5202_v46 = vadd.f32 %v5201_v43, %v5200_v14 }
 0x5a3   : > { %v5203_v19 = vrot.slane %v5202_v46, 1  ;;  %v5135_v63 = vadd.f32 %v5134_v62, %v5133_v48 }
 0x5a5   : > { %v5204_v10 = vadd.f32 %v5203_v19, %v5202_v46 }
 0x5a7   : > { %v5205_v26 = vsel %vm2651_vm4, %v5135_v63, %v5204_v10 }
 0x5a8   : > { %5919 = vmatmul.mubr.f32.vlgmr.msra.gmra.mxu1 %v5205_v26 }
 0x668   : > { %v5288_v39 = vpop.f32.mrf.mxu1 }
 0x669   : > { %v5292_v49 = vmul.f32 0.00390625, %v5288_v39 }
 0x66a   : > { %v5920_v13 = vpop.f32.mrf.mxu1 }
 0x66b   : > { %v5293_v12 = vmul.f32 %v5292_v49, %v5292_v49 }
 0x66d   : > { %v5295_v1 = vrot.slane %v5293_v12, 7 }
 0x66f   : > { %v5297_v11 = vsub.f32 %v5292_v49, %v5295_v1 }
 0x671   : > { %v5298_v44 = vmax.f32 %v5297_v11, 0.0 }
 0x673   : > { %v5299_v21 = vadd.f32 1e-05, %v5298_v44 }
 0x675   : > { %5968 = vrsqrt.f32 %v5299_v21 }
 0x682   : > { %v5969_v34 = vpop.eup %5968 }
 0x683   : > { %v5310_v47 = vrot.slane %v5969_v34, %v9561_v38 }
 0x685   : > { %v5311_v35 = vcombine.high %v5310_v47, %v5310_v47 }
 0x687   : > { %v5318_v28 = vrot.slane %v5311_v35, %v9561_v38 }
 0x689   : > { %v5320_v0 = vmul.f32 %v5318_v28, %v5301_v55 }
 0x68b   : > { %v5321_v24 = vmul.f32 %v5320_v0, %v5292_v49  ;;  %v5327_v45 = vrot.slane %v5320_v0, %v9562_v3 }
 0x68d   : > { %v5322_v23 = vsub.f32 %v5302_v53, %v5321_v24  ;;  %v5329_v50 = vmul.f32 %v5327_v45, %v9160_v37  ;;  %v5330_v18 = vmul.f32 %v5327_v45, %v9157_v2  ;;  %v5331_v60 = vmul.f32 %v5327_v45, %v9174_v15 }
 0x68e   : > { %v5332_v14 = vmul.f32 %v5327_v45, %v9171_v5  ;;  %v5333_v48 = vmul.f32 %v5327_v45, %v9185_v33  ;;  %v5334_v43 = vmul.f32 %v5327_v45, %v9180_v54  ;;  %v5335_v62 = vmul.f32 %v5327_v45, %v9197_v59 }
 0x68f   : > { %v5365_v46 = vrot.slane %v5322_v23, %v9562_v3  ;;  %v5336_v19 = vmul.f32 %v5327_v45, %v9194_v51  ;;  %v5337_v63 = vmul.f32 %v5327_v45, %v9209_v17  ;;  %v5338_v37 = vmul.f32 %v5327_v45, %v9204_v61 }
 0x690   : > { %v5339_v2 = vmul.f32 %v5327_v45, %v9221_v20  ;;  %v5340_v15 = vmul.f32 %v5327_v45, %v9218_v16  ;;  %v5341_v5 = vmul.f32 %v5327_v45, %v9233_v58  ;;  %v5342_v33 = vmul.f32 %v5327_v45, %v9228_v22 }
 0x691   : > { %v5343_v54 = vmul.f32 %v5327_v45, %v9245_v8  ;;  %v5344_v59 = vmul.f32 %v5327_v45, %v9242_v40  ;;  %v5345_v10 = vmul.f32 %v5327_v45, %v9257_v27  ;;  %v5346_v51 = vmul.f32 %v5327_v45, %v9252_v6 }
 0x692   : > { %v5347_v17 = vmul.f32 %v5327_v45, %v9269_v29  ;;  %v5348_v61 = vmul.f32 %v5327_v45, %v9266_v25  ;;  %v5349_v20 = vmul.f32 %v5327_v45, %v9281_v36  ;;  %v5350_v16 = vmul.f32 %v5327_v45, %v9276_v41 }
 0x693   : > { %v5351_v58 = vmul.f32 %v5327_v45, %v9293_v42  ;;  %v5352_v22 = vmul.f32 %v5327_v45, %v9290_v7  ;;  %v5353_v8 = vmul.f32 %v5327_v45, %v9305_v32  ;;  %v5354_v40 = vmul.f32 %v5327_v45, %v9300_v57 }
 0x694   : > { %v5355_v27 = vmul.f32 %v5327_v45, %v9317_v31  ;;  %v5356_v6 = vmul.f32 %v5327_v45, %v9314_v56  ;;  %v5357_v29 = vmul.f32 %v5327_v45, %v9331_v9  ;;  %v5358_v25 = vmul.f32 %v5327_v45, %v9327_v52 }
 0x695   : > { %v5359_v36 = vmul.f32 %v5327_v45, %v9345_v30  ;;  %v5360_v41 = vmul.f32 %v5327_v45, %v9343_v4  ;;  %v5367_v42 = vadd.f32 %v5365_v46, %v5329_v50  ;;  %v5368_v26 = vadd.f32 %v5365_v46, %v5330_v18 }
 0x696   : > { %v5369_v7 = vadd.f32 %v5365_v46, %v5331_v60  ;;  %v5370_v32 = vadd.f32 %v5365_v46, %v5332_v14  ;;  %v5371_v39 = vadd.f32 %v5365_v46, %v5333_v48  ;;  %v5372_v57 = vadd.f32 %v5365_v46, %v5334_v43 }
 0x697   : > { %v5373_v49 = vadd.f32 %v5365_v46, %v5335_v62  ;;  %v5374_v31 = vadd.f32 %v5365_v46, %v5336_v19  ;;  %v5375_v13 = vadd.f32 %v5365_v46, %v5337_v63  ;;  %v5376_v56 = vadd.f32 %v5365_v46, %v5338_v37 }
 0x698   : > { %v5377_v12 = vadd.f32 %v5365_v46, %v5339_v2  ;;  %v5378_v9 = vadd.f32 %v5365_v46, %v5340_v15  ;;  %v5379_v1 = vadd.f32 %v5365_v46, %v5341_v5  ;;  %v5380_v52 = vadd.f32 %v5365_v46, %v5342_v33 }
 0x699   : > { %v5381_v30 = vadd.f32 %v5365_v46, %v5343_v54  ;;  %v5382_v4 = vadd.f32 %v5365_v46, %v5344_v59  ;;  %v5383_v11 = vadd.f32 %v5365_v46, %v5345_v10  ;;  %v5384_v44 = vadd.f32 %v5365_v46, %v5346_v51 }
 0x69a   : > { %v9400_v21 = vadd.f32 %v5365_v46, %v5347_v17  ;;  %v9402_v34 = vadd.f32 %v5365_v46, %v5348_v61  ;;  %v9404_v38 = vadd.f32 %v5365_v46, %v5349_v20  ;;  %v9406_v47 = vadd.f32 %v5365_v46, %v5350_v16 }
 0x69b   : > { %v9408_v35 = vadd.f32 %v5365_v46, %v5351_v58  ;;  %v9410_v55 = vadd.f32 %v5365_v46, %v5352_v22  ;;  %v9412_v28 = vadd.f32 %v5365_v46, %v5353_v8  ;;  %v9414_v0 = vadd.f32 %v5365_v46, %v5354_v40 }
 0x69c   : > { %v9416_v53 = vadd.f32 %v5365_v46, %v5355_v27  ;;  %v9418_v24 = vadd.f32 %v5365_v46, %v5356_v6  ;;  %v9420_v3 = vadd.f32 %v5365_v46, %v5357_v29  ;;  %v9422_v45 = vadd.f32 %v5365_v46, %v5358_v25 }
 0x69d   : > { %v9424_v23 = vadd.f32 %v5365_v46, %v5359_v36  ;;  %v9426_v50 = vadd.f32 %v5365_v46, %v5360_v41  ;;  %v5399_v18 = vmax.f32 %v5367_v42, 0.0  ;;  %v5400_v60 = vmax.f32 %v5368_v26, 0.0 }
 0x69e   : > { %v5401_v14 = vmax.f32 %v5369_v7, 0.0  ;;  %v5402_v48 = vmax.f32 %v5370_v32, 0.0  ;;  %v5403_v43 = vmax.f32 %v5371_v39, 0.0  ;;  %v5404_v62 = vmax.f32 %v5372_v57, 0.0 }
 0x69f   : > { %v5405_v19 = vmax.f32 %v5373_v49, 0.0  ;;  %v5406_v63 = vmax.f32 %v5374_v31, 0.0  ;;  %v5407_v37 = vmax.f32 %v5375_v13, 0.0  ;;  %v5408_v2 = vmax.f32 %v5376_v56, 0.0  ;;  %5431 = vst [vmem:[%s9428_s16] sm:$0xff] %v5399_v18  ;;  %5432 = vst [vmem:[%s9428_s16 + $0x8] sm:$0xff] %v5400_v60 }
 0x6a0   : > { %v5409_v46 = vmax.f32 %v5377_v12, 0.0  ;;  %v5410_v15 = vmax.f32 %v5378_v9, 0.0  ;;  %v5411_v5 = vmax.f32 %v5379_v1, 0.0  ;;  %v5412_v33 = vmax.f32 %v5380_v52, 0.0  ;;  %5433 = vst [vmem:[%s9428_s16 + $0x10] sm:$0xff] %v5401_v14  ;;  %5434 = vst [vmem:[%s9428_s16 + $0x18] sm:$0xff] %v5402_v48 }
 0x6a1   : > { %5435 = vst [vmem:[%s9428_s16 + $0x20] sm:$0xff] %v5403_v43  ;;  %5436 = vst [vmem:[%s9428_s16 + $0x28] sm:$0xff] %v5404_v62  ;;  %v5413_v54 = vmax.f32 %v5381_v30, 0.0  ;;  %v5414_v59 = vmax.f32 %v5382_v4, 0.0  ;;  %v5415_v10 = vmax.f32 %v5383_v11, 0.0  ;;  %v5416_v51 = vmax.f32 %v5384_v44, 0.0 }
 0x6a2   : > { %5437 = vst [vmem:[%s9428_s16 + $0x30] sm:$0xff] %v5405_v19  ;;  %5438 = vst [vmem:[%s9428_s16 + $0x38] sm:$0xff] %v5406_v63  ;;  %v5417_v17 = vmax.f32 %v9400_v21, 0.0  ;;  %v5418_v61 = vmax.f32 %v9402_v34, 0.0  ;;  %v5419_v20 = vmax.f32 %v9404_v38, 0.0  ;;  %v5420_v16 = vmax.f32 %v9406_v47, 0.0 }
 0x6a3   : > { %5439 = vst [vmem:[%s9428_s16 + $0x40] sm:$0xff] %v5407_v37  ;;  %5440 = vst [vmem:[%s9428_s16 + $0x48] sm:$0xff] %v5408_v2  ;;  %v5421_v58 = vmax.f32 %v9408_v35, 0.0  ;;  %v5422_v22 = vmax.f32 %v9410_v55, 0.0  ;;  %v5423_v8 = vmax.f32 %v9412_v28, 0.0  ;;  %v5424_v40 = vmax.f32 %v9414_v0, 0.0 }
 0x6a4   : > { %5441 = vst [vmem:[%s9428_s16 + $0x50] sm:$0xff] %v5409_v46  ;;  %5442 = vst [vmem:[%s9428_s16 + $0x58] sm:$0xff] %v5410_v15  ;;  %v5425_v27 = vmax.f32 %v9416_v53, 0.0  ;;  %v5426_v6 = vmax.f32 %v9418_v24, 0.0  ;;  %v5427_v29 = vmax.f32 %v9420_v3, 0.0  ;;  %v5428_v25 = vmax.f32 %v9422_v45, 0.0 }
 0x6a5   : > { %5443 = vst [vmem:[%s9428_s16 + $0x60] sm:$0xff] %v5411_v5  ;;  %5444 = vst [vmem:[%s9428_s16 + $0x68] sm:$0xff] %v5412_v33  ;;  %v5429_v36 = vmax.f32 %v9424_v23, 0.0  ;;  %v5430_v41 = vmax.f32 %v9426_v50, 0.0 }
 0x6a6   : > { %5445 = vst [vmem:[%s9428_s16 + $0x70] sm:$0xff] %v5413_v54  ;;  %5446 = vst [vmem:[%s9428_s16 + $0x78] sm:$0xff] %v5414_v59 }
 0x6a7   : > { %5447 = vst [vmem:[%s9428_s16 + $0x80] sm:$0xff] %v5415_v10  ;;  %5448 = vst [vmem:[%s9428_s16 + $0x88] sm:$0xff] %v5416_v51 }
 0x6a8   : > { %5449 = vst [vmem:[%s9428_s16 + $0x90] sm:$0xff] %v5417_v17  ;;  %5450 = vst [vmem:[%s9428_s16 + $0x98] sm:$0xff] %v5418_v61 }
 0x6a9   : > { %5451 = vst [vmem:[%s9428_s16 + $0xa0] sm:$0xff] %v5419_v20  ;;  %5452 = vst [vmem:[%s9428_s16 + $0xa8] sm:$0xff] %v5420_v16 }
 0x6aa   : > { %5453 = vst [vmem:[%s9428_s16 + $0xb0] sm:$0xff] %v5421_v58  ;;  %5454 = vst [vmem:[%s9428_s16 + $0xb8] sm:$0xff] %v5422_v22 }
 0x6ab   : > { %5455 = vst [vmem:[%s9428_s16 + $0xc0] sm:$0xff] %v5423_v8  ;;  %5456 = vst [vmem:[%s9428_s16 + $0xc8] sm:$0xff] %v5424_v40 }
 0x6ac   : > { %5457 = vst [vmem:[%s9428_s16 + $0xd0] sm:$0xff] %v5425_v27  ;;  %5458 = vst [vmem:[%s9428_s16 + $0xd8] sm:$0xff] %v5426_v6 }
 0x6ad   : > { %5459 = vst [vmem:[%s9428_s16 + $0xe0] sm:$0xff] %v5427_v29  ;;  %5460 = vst [vmem:[%s9428_s16 + $0xe8] sm:$0xff] %v5428_v25 }
 0x6ae   : > { %5461 = vst [vmem:[%s9428_s16 + $0xf0] sm:$0xff] %v5429_v36  ;;  %5462 = vst [vmem:[%s9428_s16 + $0xf8] sm:$0xff] %v5430_v41 }
 0x6af   : > { %5988 = shalt.err (!%p5985_p3)
}
 0x6b0   : > { %s5989_s26 = scalar_lea.hbm %s9469_s25, 4096  ;;  %s5993_s22 = scalar_lea.hbm %s9536_s9, 8192 }
 0x6b1   : > { %p5990_p4 = scmp.ne.s32.totalorder %s9469_s25, %s5989_s26  ;;  %p5994_p9 = scmp.lt.s32.totalorder %s9469_s25, %s9536_s9 }
 0x6b2   : > { %p5995_p10 = scmp.lt.s32.totalorder %s5993_s22, %s5989_s26 }
 0x6b3   : > { %p5991_p7 = pnand %p5990_p4, %p6132_p5 }
 0x6b4   : > { %p5996_p11 = por %p5995_p10, %p5994_p9 }
 0x6b5   : > { %p5992_p8 = pneg %p5991_p7 }
 0x6b7   : > { %p5997_p12 = pnand %p5996_p11, %p5992_p8 }
 0x6b9   : > { %6000 = shalt.err (!%p5997_p12)
}
 0x6ba   : > { %s6042_s28 = smov 128   ;;  %s6043_s29 = smov 8  }
 0x6bb   : > { %5921 = dma.vmem_to_hbm [thread:$0]  (%p6132_p5), %s9471_s23, 4096, %s9469_s25, %s9487_s27, %s6042_s28, %s6042_s28, %s6043_s29  }
 0x6bc PF: > { %p5927_p13 = scmp.ge.s32.totalorder %s6035_s12, 2  ;;  %s5492_s14 = sand.u32 1, %s6023_s30  }
 0x6bd   : > { %s5493_s17 = scalar_lea.sflag [#allocation7], %s5492_s14 }
 0x6be   : > { %p5924_p0 = pnand %p5927_p13, %p6136_p6 }
 0x6c0   : > { %p5925_p1 = pneg %p5924_p0 }
 0x6c2   : > { %6018 = dma.done.wait (%p5925_p1), %s5493_s17, 4096  }
 0x6c3   : > { %6020 = vsyncadd (%p5925_p1), %s5493_s17, 4294963200  ;;  %p19_p2 = scmp.ge.s32.totalorder %s6119_s15, 4   ;;  %s9563_s30 = smov %s6027_s10 }
 0x6c4   : > { %s9564_s10 = smov %s6031_s11  ;;  %s9565_s11 = smov %s6130_s18 }
 0x6c5   : > { %s9566_s12 = smov %s6119_s15  ;;  %21 = sbr.rel (!%p19_p2) target bundleno = 3 (0x3), region = 95 }
 0x6ca   :  { %5498 = vsyncpa [#allocation7], 1 }
 0x6cb   :  { %5500 = vsyncpa [#allocation7 + $0x1], 1 }

</bundles_post_ra>
